<compile_context>
chip_gen: v7x
topology: tpu7x:2x2x1
jax: 0.10.0
libtpu: 0.0.40
codegen_flags: <defaults>
</compile_context>

<pallas_src>
import functools
import math

import jax
import jax.numpy as jnp
import numpy as np
from jax import lax
from jax.experimental import pallas as pl
from jax.experimental.pallas import tpu as pltpu

_CPAD = 8  # column offset of the conv interior inside the padded scratch
           # (multiple of 8 -> the per-conv interior store is sublane-aligned)


# ----------------------------------------------------------------------------
# Fused ResidualGroup kernel (one batch element per grid step)
# ----------------------------------------------------------------------------
def residual_group_kernel(x_ref, w1_ref, b1_ref, w2_ref, b2_ref,
                          wd_ref, bd_ref, wu_ref, bu_ref, wf_ref, bf_ref,
                          o_ref, xpad_ref, cur_ref,
                          *, H, W, C, Cr, n_resblocks, mm_dtype):
    # x_ref   : (H, W, C)        input activation (NHWC, one batch element)
    # w1_ref  : (NB, 9C, C)      RCAB conv1, row index = (ky*3+kx)*C + ci
    # b1_ref  : (NB, 1, C)
    # w2_ref  : (NB, 9C, C)      RCAB conv2
    # b2_ref  : (NB, 1, C)
    # wd_ref  : (NB, C, Cr)      CA 1x1 squeeze      (f32)
    # bd_ref  : (NB, 1, Cr)
    # wu_ref  : (NB, Cr, C)      CA 1x1 excite       (f32)
    # bu_ref  : (NB, 1, C)
    # wf_ref  : (9C, C)          trailing conv of the group
    # bf_ref  : (1, C)
    # o_ref   : (H, W, C)
    # xpad_ref: (H+2, 8+W+8, C)  f32 VMEM scratch, zero halo = SAME padding
    # cur_ref : (H*W, C)         f32 VMEM scratch, running activation
    Wp = W + 2 * _CPAD
    HW = H * W
    f32 = jnp.float32

    # Zero ONLY the halo bands the conv taps actually read (not the whole
    # scratch).  Done every grid step on purpose: under megacore sharding each
    # TensorCore owns its own scratch, so a program_id==0 guard would leave
    # one core's halo uninitialised.
    xpad_ref[0:1, :, :] = jnp.zeros((1, Wp, C), f32)                   # top row
    xpad_ref[H + 1:H + 2, :, :] = jnp.zeros((1, Wp, C), f32)           # bottom row
    xpad_ref[:, 0:_CPAD, :] = jnp.zeros((H + 2, _CPAD, C), f32)        # left cols
    xpad_ref[:, _CPAD + W:Wp, :] = jnp.zeros((H + 2, _CPAD, C), f32)   # right cols

    def conv3x3(inp_2d, w_mat, bias_row, relu):
        # inp_2d: (H*W, C) f32 ; w_mat: (9C, cout) mm_dtype ; bias_row: (1, cout)
        # Aligned interior store (row offset 1 is a leading dim -> free; column
        # offset _CPAD and width W are multiples of 8 -> unmasked).
        xpad_ref[1:1 + H, _CPAD:_CPAD + W, :] = inp_2d.reshape(H, W, C)
        # One (H+2)-row band per kx shift: 3 loads per conv instead of 9 slab
        # loads; the ky slices below are leading-dim slices of values (cheap).
        bands = [
            xpad_ref[:, _CPAD - 1 + kx:_CPAD - 1 + kx + W, :].astype(mm_dtype)
            for kx in range(3)
        ]
        # im2col patches (H*W, 9C): ONE deep MXU matmul (K = 9C) instead of
        # nine K=C dots; W % 8 == 0 keeps the (H,W,C)->(H*W,C) reshape free.
        patches = jnp.concatenate(
            [bands[kx][ky:ky + H].reshape(HW, C)
             for ky in range(3) for kx in range(3)],
            axis=-1)
        acc = jnp.dot(patches, w_mat, preferred_element_type=f32) + bias_row
        if relu:
            acc = jnp.maximum(acc, 0.0)
        return acc                                                     # (H*W, cout) f32

    # Running activation lives in VMEM scratch (not as a long-lived SSA value).
    cur_ref[...] = x_ref[...].reshape(HW, C).astype(f32)

    def rcab(blk, carry):
        cur = cur_ref[...]                                             # (HW, C) f32
        res = conv3x3(cur, w1_ref[blk], b1_ref[blk], relu=True)
        res = conv3x3(res, w2_ref[blk], b2_ref[blk], relu=False)
        # CALayer: global avg pool -> 1x1 -> ReLU -> 1x1 -> sigmoid -> scale
        pooled = jnp.mean(res, axis=0, keepdims=True)                  # (1, C)
        z = jnp.maximum(
            jnp.dot(pooled, wd_ref[blk], preferred_element_type=f32) + bd_ref[blk],
            0.0)                                                       # (1, Cr)
        t = jnp.dot(z, wu_ref[blk], preferred_element_type=f32) + bu_ref[blk]
        scale = 0.5 * (jnp.tanh(0.5 * t) + 1.0)    # overflow-free sigmoid (EUP)
        cur_ref[...] = cur + res * scale                               # RCAB residual
        return carry

    lax.fori_loop(0, n_resblocks, rcab, 0)

    # Trailing conv of the group + group residual (x re-read, not kept live).
    res = conv3x3(cur_ref[...], wf_ref[...], bf_ref[...], relu=False)
    x0 = x_ref[...].reshape(HW, C).astype(f32)
    o_ref[...] = (res + x0).reshape(H, W, C).astype(o_ref.dtype)


# ----------------------------------------------------------------------------
# pallas_call wrappers
# ----------------------------------------------------------------------------
def residual_group_forward_nhwc(x_nhwc, params, matmul_dtype=jnp.bfloat16):
    N, H, W, C = x_nhwc.shape
    nb = params["w1"].shape[0]
    Cr = params["wd"].shape[-1]
    if W % 8 != 0:
        raise ValueError("W must be a multiple of 8 for the aligned layout")

    # Conv taps in the MXU dtype (resident in VMEM across grid steps).
    w1 = params["w1"].astype(matmul_dtype)
    w2 = params["w2"].astype(matmul_dtype)
    wf = params["wf"].astype(matmul_dtype)

    kern = functools.partial(residual_group_kernel, H=H, W=W, C=C, Cr=Cr,
                             n_resblocks=nb, mm_dtype=matmul_dtype)

    return pl.pallas_call(
        kern,
        out_shape=jax.ShapeDtypeStruct((N, H, W, C), jnp.float32),
        grid=(N,),
        in_specs=[
            pl.BlockSpec((None, H, W, C), lambda n: (n, 0, 0, 0)),     # x
            pl.BlockSpec((nb, 9 * C, C), lambda n: (0, 0, 0)),         # w1
            pl.BlockSpec((nb, 1, C), lambda n: (0, 0, 0)),             # b1
            pl.BlockSpec((nb, 9 * C, C), lambda n: (0, 0, 0)),         # w2
            pl.BlockSpec((nb, 1, C), lambda n: (0, 0, 0)),             # b2
            pl.BlockSpec((nb, C, Cr), lambda n: (0, 0, 0)),            # wd
            pl.BlockSpec((nb, 1, Cr), lambda n: (0, 0, 0)),            # bd
            pl.BlockSpec((nb, Cr, C), lambda n: (0, 0, 0)),            # wu
            pl.BlockSpec((nb, 1, C), lambda n: (0, 0, 0)),             # bu
            pl.BlockSpec((9 * C, C), lambda n: (0, 0)),                # wf
            pl.BlockSpec((1, C), lambda n: (0, 0)),                    # bf
        ],
        out_specs=pl.BlockSpec((None, H, W, C), lambda n: (n, 0, 0, 0)),
        scratch_shapes=[
            pltpu.VMEM((H + 2, W + 2 * _CPAD, C), jnp.float32),  # padded act
            pltpu.VMEM((H * W, C), jnp.float32),                 # running `cur`
        ],
        compiler_params=pltpu.CompilerParams(
            dimension_semantics=("parallel",),
            vmem_limit_bytes=64 * 1024 * 1024),
    )(x_nhwc, w1, params["b1"], w2, params["b2"],
      params["wd"], params["bd"], params["wu"], params["bu"],
      wf, params["bf"])


def residual_group_forward(x_nchw, params, matmul_dtype=jnp.bfloat16):
    # NCHW shim matching the PyTorch module.  In a full network keep
    # activations NHWC end-to-end and transpose only at model entry/exit.
    x = jnp.transpose(x_nchw, (0, 2, 3, 1))                 # NCHW -> NHWC
    out = residual_group_forward_nhwc(x, params, matmul_dtype)
    return jnp.transpose(out, (0, 3, 1, 2))                 # NHWC -> NCHW


# ----------------------------------------------------------------------------
# Deterministic parameter init (PyTorch Conv2d-like uniform init)
# ----------------------------------------------------------------------------
def init_params(key, n_feat, reduction, n_resblocks):
    C, Cr = n_feat, n_feat // reduction
    keys = jax.random.split(key, 8 * n_resblocks + 2)

    def conv_init(kw, kb, ci, co, ksz):
        bound = 1.0 / math.sqrt(ci * ksz * ksz)
        w = jax.random.uniform(kw, (co, ci, ksz, ksz), jnp.float32, -bound, bound)
        b = jax.random.uniform(kb, (co,), jnp.float32, -bound, bound)
        return w, b

    blocks, idx = [], 0
    for _ in range(n_resblocks):
        w1, b1 = conv_init(keys[idx], keys[idx + 1], C, C, 3); idx += 2
        w2, b2 = conv_init(keys[idx], keys[idx + 1], C, C, 3); idx += 2
        wd, bd = conv_init(keys[idx], keys[idx + 1], C, Cr, 1); idx += 2
        wu, bu = conv_init(keys[idx], keys[idx + 1], Cr, C, 1); idx += 2
        blocks.append(dict(w1=w1, b1=b1, w2=w2, b2=b2,
                           wd=wd, bd=bd, wu=wu, bu=bu))
    wf, bf = conv_init(keys[idx], keys[idx + 1], C, C, 3)

    def oihw_to_mat(w):                 # (Co,Ci,3,3) -> (9*Ci, Co), ky-major rows
        co, ci = w.shape[0], w.shape[1]
        return jnp.transpose(w, (2, 3, 1, 0)).reshape(9 * ci, co)

    return {
        # original (OIHW) params for the plain-JAX reference
        "blocks_oihw": blocks, "wf_oihw": wf, "bf_vec": bf,
        # kernel-format params (stacked across resblocks)
        "w1": jnp.stack([oihw_to_mat(b_["w1"]) for b_ in blocks]),
        "b1": jnp.stack([b_["b1"].reshape(1, C) for b_ in blocks]),
        "w2": jnp.stack([oihw_to_mat(b_["w2"]) for b_ in blocks]),
        "b2": jnp.stack([b_["b2"].reshape(1, C) for b_ in blocks]),
        "wd": jnp.stack([jnp.transpose(b_["wd"].reshape(Cr, C)) for b_ in blocks]),
        "bd": jnp.stack([b_["bd"].reshape(1, Cr) for b_ in blocks]),
        "wu": jnp.stack([jnp.transpose(b_["wu"].reshape(C, Cr)) for b_ in blocks]),
        "bu": jnp.stack([b_["bu"].reshape(1, C) for b_ in blocks]),
        "wf": oihw_to_mat(wf),
        "bf": bf.reshape(1, C),
    }


# ----------------------------------------------------------------------------
# Plain-JAX reference (for correctness checks)
# ----------------------------------------------------------------------------
def ref_residual_group(x_nchw, params):
    def conv2d(x, w_oihw, b, pad):
        y = jax.lax.conv_general_dilated(
            x, w_oihw, (1, 1), ((pad, pad), (pad, pad)),
            dimension_numbers=("NCHW", "OIHW", "NCHW"))
        return y + b[None, :, None, None]

    out = x_nchw
    for p in params["blocks_oihw"]:
        y = jax.nn.relu(conv2d(out, p["w1"], p["b1"], 1))
        y = conv2d(y, p["w2"], p["b2"], 1)
        g = jnp.mean(y, axis=(2, 3), keepdims=True)          # global avg pool
        z = jax.nn.relu(conv2d(g, p["wd"], p["bd"], 0))
        s = jax.nn.sigmoid(conv2d(z, p["wu"], p["bu"], 0))
        out = out + y * s                                     # RCAB residual
    y = conv2d(out, params["wf_oihw"], params["bf_vec"], 1)
    return y + x_nchw                                         # group residual


if __name__ == "__main__":
    N, n_feat, reduction, n_resblocks, H, W = 2, 32, 4, 2, 16, 16

    key = jax.random.PRNGKey(0)
    k_x, k_p = jax.random.split(key)
    x = jax.random.normal(k_x, (N, n_feat, H, W), jnp.float32)
    params = init_params(k_p, n_feat, reduction, n_resblocks)

    ref = jax.block_until_ready(ref_residual_group(x, params))

    # Exact path: f32 MXU operands -> tight check against the XLA reference.
    out_f32 = jax.block_until_ready(
        residual_group_forward(x, params, matmul_dtype=jnp.float32))
    assert out_f32.shape == (N, n_feat, H, W), out_f32.shape
    np.testing.assert_allclose(np.asarray(out_f32), np.asarray(ref),
                               rtol=5e-4, atol=5e-4)

    # Fast path (default): bf16 MXU operands with f32 accumulation; looser
    # tolerance covers bf16 operand rounding through 5 chained convolutions.
    out_bf16 = jax.block_until_ready(
        residual_group_forward(x, params, matmul_dtype=jnp.bfloat16))
    np.testing.assert_allclose(np.asarray(out_bf16), np.asarray(ref),
                               rtol=3e-2, atol=3e-2)

    print("KERNEL_OK")
</pallas_src>

<mosaic_0001>
module attributes {stable_mosaic.version = 11 : i64} {
  func.func @residual_group_kernel(%arg0: i32, %arg1: memref<1x16x16x32xf32, #tpu.memory_space<vmem>>, %arg2: memref<2x288x32xf32, #tpu.memory_space<vmem>>, %arg3: memref<2x1x32xf32, #tpu.memory_space<vmem>>, %arg4: memref<2x288x32xf32, #tpu.memory_space<vmem>>, %arg5: memref<2x1x32xf32, #tpu.memory_space<vmem>>, %arg6: memref<2x32x8xf32, #tpu.memory_space<vmem>>, %arg7: memref<2x1x8xf32, #tpu.memory_space<vmem>>, %arg8: memref<2x8x32xf32, #tpu.memory_space<vmem>>, %arg9: memref<2x1x32xf32, #tpu.memory_space<vmem>>, %arg10: memref<288x32xf32, #tpu.memory_space<vmem>>, %arg11: memref<1x32xf32, #tpu.memory_space<vmem>>, %arg12: memref<1x16x16x32xf32, #tpu.memory_space<vmem>>, %arg13: memref<18x32x32xf32, #tpu.memory_space<vmem>>, %arg14: memref<256x32xf32, #tpu.memory_space<vmem>>) attributes {dimension_semantics = [#tpu.dimension_semantics<parallel>], iteration_bounds = array<i64: 2>, scalar_prefetch = 0 : i64, scratch_operands = 2 : i64, tpu.core_type = #tpu.core_type<tc>, window_params = [{transform_indices = @transform_0, window_bounds = array<i64: 1, 16, 16, 32>}, {pipeline_mode = #tpu.pipeline_mode<synchronous>, transform_indices = @transform_1, window_bounds = array<i64: 2, 288, 32>}, {pipeline_mode = #tpu.pipeline_mode<synchronous>, transform_indices = @transform_2, window_bounds = array<i64: 2, 1, 32>}, {pipeline_mode = #tpu.pipeline_mode<synchronous>, transform_indices = @transform_3, window_bounds = array<i64: 2, 288, 32>}, {pipeline_mode = #tpu.pipeline_mode<synchronous>, transform_indices = @transform_4, window_bounds = array<i64: 2, 1, 32>}, {pipeline_mode = #tpu.pipeline_mode<synchronous>, transform_indices = @transform_5, window_bounds = array<i64: 2, 32, 8>}, {pipeline_mode = #tpu.pipeline_mode<synchronous>, transform_indices = @transform_6, window_bounds = array<i64: 2, 1, 8>}, {pipeline_mode = #tpu.pipeline_mode<synchronous>, transform_indices = @transform_7, window_bounds = array<i64: 2, 8, 32>}, {pipeline_mode = #tpu.pipeline_mode<synchronous>, transform_indices = @transform_8, window_bounds = array<i64: 2, 1, 32>}, {pipeline_mode = #tpu.pipeline_mode<synchronous>, transform_indices = @transform_9, window_bounds = array<i64: 288, 32>}, {pipeline_mode = #tpu.pipeline_mode<synchronous>, transform_indices = @transform_10, window_bounds = array<i64: 1, 32>}, {transform_indices = @transform_11, window_bounds = array<i64: 1, 16, 16, 32>}]} {
    %cst = arith.constant 0.000000e+00 : f32
    %0 = vector.broadcast %cst : f32 to vector<1x32x32xf32>
    %c0 = arith.constant 0 : index
    %c0_0 = arith.constant 0 : index
    %c0_1 = arith.constant 0 : index
    %1 = vector.load %arg13[%c0, %c0_0, %c0_1] : memref<18x32x32xf32, #tpu.memory_space<vmem>>, vector<1x32x32xf32>
    tpu.vector_store %arg13[%c0, %c0_0, %c0_1], %0 {strides = array<i32>} : memref<18x32x32xf32, #tpu.memory_space<vmem>>, vector<1x32x32xf32>,
    %cst_2 = arith.constant 0.000000e+00 : f32
    %2 = vector.broadcast %cst_2 : f32 to vector<1x32x32xf32>
    %c17 = arith.constant 17 : index
    %c0_3 = arith.constant 0 : index
    %c0_4 = arith.constant 0 : index
    %3 = vector.load %arg13[%c17, %c0_3, %c0_4] : memref<18x32x32xf32, #tpu.memory_space<vmem>>, vector<1x32x32xf32>
    tpu.vector_store %arg13[%c17, %c0_3, %c0_4], %2 {strides = array<i32>} : memref<18x32x32xf32, #tpu.memory_space<vmem>>, vector<1x32x32xf32>,
    %cst_5 = arith.constant 0.000000e+00 : f32
    %4 = vector.broadcast %cst_5 : f32 to vector<18x8x32xf32>
    %c0_6 = arith.constant 0 : index
    %c0_7 = arith.constant 0 : index
    %c0_8 = arith.constant 0 : index
    %5 = vector.load %arg13[%c0_6, %c0_7, %c0_8] : memref<18x32x32xf32, #tpu.memory_space<vmem>>, vector<18x8x32xf32>
    tpu.vector_store %arg13[%c0_6, %c0_7, %c0_8], %4 {strides = array<i32>} : memref<18x32x32xf32, #tpu.memory_space<vmem>>, vector<18x8x32xf32>,
    %cst_9 = arith.constant 0.000000e+00 : f32
    %6 = vector.broadcast %cst_9 : f32 to vector<18x8x32xf32>
    %c0_10 = arith.constant 0 : index
    %c24 = arith.constant 24 : index
    %c0_11 = arith.constant 0 : index
    %7 = vector.load %arg13[%c0_10, %c24, %c0_11] : memref<18x32x32xf32, #tpu.memory_space<vmem>>, vector<18x8x32xf32>
    tpu.vector_store %arg13[%c0_10, %c24, %c0_11], %6 {strides = array<i32>} : memref<18x32x32xf32, #tpu.memory_space<vmem>>, vector<18x8x32xf32>,
    %c0_12 = arith.constant 0 : index
    %c0_13 = arith.constant 0 : index
    %c0_14 = arith.constant 0 : index
    %c0_15 = arith.constant 0 : index
    %8 = vector.load %arg1[%c0_12, %c0_13, %c0_14, %c0_15] : memref<1x16x16x32xf32, #tpu.memory_space<vmem>>, vector<1x16x16x32xf32>
    %9 = vector.shape_cast %8 : vector<1x16x16x32xf32> to vector<16x16x32xf32>
    %10 = vector.shape_cast %9 : vector<16x16x32xf32> to vector<256x32xf32>
    %c0_16 = arith.constant 0 : index
    %c0_17 = arith.constant 0 : index
    %11 = vector.load %arg14[%c0_16, %c0_17] : memref<256x32xf32, #tpu.memory_space<vmem>>, vector<256x32xf32>
    tpu.vector_store %arg14[%c0_16, %c0_17], %10 {strides = array<i32>} : memref<256x32xf32, #tpu.memory_space<vmem>>, vector<256x32xf32>,
    %c0_i32 = arith.constant 0 : i32
    %c2_i32 = arith.constant 2 : i32
    %12 = arith.addi %c0_i32, %c2_i32 : i32
    %c1_i32 = arith.constant 1 : i32
    scf.for %arg15 = %c0_i32 to %12 step %c1_i32  : i32 {
      %c0_42 = arith.constant 0 : index
      %c0_43 = arith.constant 0 : index
      %51 = vector.load %arg14[%c0_42, %c0_43] : memref<256x32xf32, #tpu.memory_space<vmem>>, vector<256x32xf32>
      %52 = arith.index_cast %arg15 : i32 to index
      %c0_44 = arith.constant 0 : index
      %c0_45 = arith.constant 0 : index
      %53 = vector.load %arg2[%52, %c0_44, %c0_45] : memref<2x288x32xf32, #tpu.memory_space<vmem>>, vector<1x288x32xf32>
      %54 = vector.shape_cast %53 : vector<1x288x32xf32> to vector<288x32xf32>
      %55 = arith.index_cast %arg15 : i32 to index
      %c0_46 = arith.constant 0 : index
      %c0_47 = arith.constant 0 : index
      %56 = vector.load %arg3[%55, %c0_46, %c0_47] : memref<2x1x32xf32, #tpu.memory_space<vmem>>, vector<1x1x32xf32>
      %57 = vector.shape_cast %56 : vector<1x1x32xf32> to vector<1x32xf32>
      %58 = vector.shape_cast %51 : vector<256x32xf32> to vector<16x16x32xf32>
      %c1_48 = arith.constant 1 : index
      %c8_49 = arith.constant 8 : index
      %c0_50 = arith.constant 0 : index
      %59 = vector.load %arg13[%c1_48, %c8_49, %c0_50] : memref<18x32x32xf32, #tpu.memory_space<vmem>>, vector<16x16x32xf32>
      tpu.vector_store %arg13[%c1_48, %c8_49, %c0_50], %58 {strides = array<i32>} : memref<18x32x32xf32, #tpu.memory_space<vmem>>, vector<16x16x32xf32>,
      %c0_51 = arith.constant 0 : index
      %c7_52 = arith.constant 7 : index
      %c0_53 = arith.constant 0 : index
      %60 = vector.load %arg13[%c0_51, %c7_52, %c0_53] : memref<18x32x32xf32, #tpu.memory_space<vmem>>, vector<18x16x32xf32>
      %c0_54 = arith.constant 0 : index
      %c8_55 = arith.constant 8 : index
      %c0_56 = arith.constant 0 : index
      %61 = vector.load %arg13[%c0_54, %c8_55, %c0_56] : memref<18x32x32xf32, #tpu.memory_space<vmem>>, vector<18x16x32xf32>
      %c0_57 = arith.constant 0 : index
      %c9_58 = arith.constant 9 : index
      %c0_59 = arith.constant 0 : index
      %62 = vector.load %arg13[%c0_57, %c9_58, %c0_59] : memref<18x32x32xf32, #tpu.memory_space<vmem>>, vector<18x16x32xf32>
      %63 = vector.extract_strided_slice %60 {offsets = [0, 0, 0], sizes = [16, 16, 32], strides = [1, 1, 1]} : vector<18x16x32xf32> to vector<16x16x32xf32>
      %64 = vector.shape_cast %63 : vector<16x16x32xf32> to vector<256x32xf32>
      %65 = vector.extract_strided_slice %61 {offsets = [0, 0, 0], sizes = [16, 16, 32], strides = [1, 1, 1]} : vector<18x16x32xf32> to vector<16x16x32xf32>
      %66 = vector.shape_cast %65 : vector<16x16x32xf32> to vector<256x32xf32>
      %67 = vector.extract_strided_slice %62 {offsets = [0, 0, 0], sizes = [16, 16, 32], strides = [1, 1, 1]} : vector<18x16x32xf32> to vector<16x16x32xf32>
      %68 = vector.shape_cast %67 : vector<16x16x32xf32> to vector<256x32xf32>
      %69 = vector.extract_strided_slice %60 {offsets = [1, 0, 0], sizes = [16, 16, 32], strides = [1, 1, 1]} : vector<18x16x32xf32> to vector<16x16x32xf32>
      %70 = vector.shape_cast %69 : vector<16x16x32xf32> to vector<256x32xf32>
      %71 = vector.extract_strided_slice %61 {offsets = [1, 0, 0], sizes = [16, 16, 32], strides = [1, 1, 1]} : vector<18x16x32xf32> to vector<16x16x32xf32>
      %72 = vector.shape_cast %71 : vector<16x16x32xf32> to vector<256x32xf32>
      %73 = vector.extract_strided_slice %62 {offsets = [1, 0, 0], sizes = [16, 16, 32], strides = [1, 1, 1]} : vector<18x16x32xf32> to vector<16x16x32xf32>
      %74 = vector.shape_cast %73 : vector<16x16x32xf32> to vector<256x32xf32>
      %75 = vector.extract_strided_slice %60 {offsets = [2, 0, 0], sizes = [16, 16, 32], strides = [1, 1, 1]} : vector<18x16x32xf32> to vector<16x16x32xf32>
      %76 = vector.shape_cast %75 : vector<16x16x32xf32> to vector<256x32xf32>
      %77 = vector.extract_strided_slice %61 {offsets = [2, 0, 0], sizes = [16, 16, 32], strides = [1, 1, 1]} : vector<18x16x32xf32> to vector<16x16x32xf32>
      %78 = vector.shape_cast %77 : vector<16x16x32xf32> to vector<256x32xf32>
      %79 = vector.extract_strided_slice %62 {offsets = [2, 0, 0], sizes = [16, 16, 32], strides = [1, 1, 1]} : vector<18x16x32xf32> to vector<16x16x32xf32>
      %80 = vector.shape_cast %79 : vector<16x16x32xf32> to vector<256x32xf32>
      %81 = tpu.concatenate %64, %66, %68, %70, %72, %74, %76, %78, %80 in 1 : vector<256x32xf32>, vector<256x32xf32>, vector<256x32xf32>, vector<256x32xf32>, vector<256x32xf32>, vector<256x32xf32>, vector<256x32xf32>, vector<256x32xf32>, vector<256x32xf32> -> vector<256x288xf32>
      %cst_60 = arith.constant dense<0.000000e+00> : vector<256x32xf32>
      %82 = tpu.matmul %81, %54, %cst_60 {dimension_numbers = #tpu.dot_dimension_numbers<[1], [0], [0], [1], [0, 0, 1, 1], [], []>} : vector<256x288xf32>, vector<288x32xf32>, vector<256x32xf32> -> vector<256x32xf32>
      %83 = vector.broadcast %57 : vector<1x32xf32> to vector<256x32xf32>
      %84 = arith.addf %82, %83 : vector<256x32xf32>
      %cst_61 = arith.constant 0.000000e+00 : f32
      %85 = vector.broadcast %cst_61 : f32 to vector<256x32xf32>
      %86 = arith.maximumf %84, %85 : vector<256x32xf32>
      %87 = arith.index_cast %arg15 : i32 to index
      %c0_62 = arith.constant 0 : index
      %c0_63 = arith.constant 0 : index
      %88 = vector.load %arg4[%87, %c0_62, %c0_63] : memref<2x288x32xf32, #tpu.memory_space<vmem>>, vector<1x288x32xf32>
      %89 = vector.shape_cast %88 : vector<1x288x32xf32> to vector<288x32xf32>
      %90 = arith.index_cast %arg15 : i32 to index
      %c0_64 = arith.constant 0 : index
      %c0_65 = arith.constant 0 : index
      %91 = vector.load %arg5[%90, %c0_64, %c0_65] : memref<2x1x32xf32, #tpu.memory_space<vmem>>, vector<1x1x32xf32>
      %92 = vector.shape_cast %91 : vector<1x1x32xf32> to vector<1x32xf32>
      %93 = vector.shape_cast %86 : vector<256x32xf32> to vector<16x16x32xf32>
      %c1_66 = arith.constant 1 : index
      %c8_67 = arith.constant 8 : index
      %c0_68 = arith.constant 0 : index
      %94 = vector.load %arg13[%c1_66, %c8_67, %c0_68] : memref<18x32x32xf32, #tpu.memory_space<vmem>>, vector<16x16x32xf32>
      tpu.vector_store %arg13[%c1_66, %c8_67, %c0_68], %93 {strides = array<i32>} : memref<18x32x32xf32, #tpu.memory_space<vmem>>, vector<16x16x32xf32>,
      %c0_69 = arith.constant 0 : index
      %c7_70 = arith.constant 7 : index
      %c0_71 = arith.constant 0 : index
      %95 = vector.load %arg13[%c0_69, %c7_70, %c0_71] : memref<18x32x32xf32, #tpu.memory_space<vmem>>, vector<18x16x32xf32>
      %c0_72 = arith.constant 0 : index
      %c8_73 = arith.constant 8 : index
      %c0_74 = arith.constant 0 : index
      %96 = vector.load %arg13[%c0_72, %c8_73, %c0_74] : memref<18x32x32xf32, #tpu.memory_space<vmem>>, vector<18x16x32xf32>
      %c0_75 = arith.constant 0 : index
      %c9_76 = arith.constant 9 : index
      %c0_77 = arith.constant 0 : index
      %97 = vector.load %arg13[%c0_75, %c9_76, %c0_77] : memref<18x32x32xf32, #tpu.memory_space<vmem>>, vector<18x16x32xf32>
      %98 = vector.extract_strided_slice %95 {offsets = [0, 0, 0], sizes = [16, 16, 32], strides = [1, 1, 1]} : vector<18x16x32xf32> to vector<16x16x32xf32>
      %99 = vector.shape_cast %98 : vector<16x16x32xf32> to vector<256x32xf32>
      %100 = vector.extract_strided_slice %96 {offsets = [0, 0, 0], sizes = [16, 16, 32], strides = [1, 1, 1]} : vector<18x16x32xf32> to vector<16x16x32xf32>
      %101 = vector.shape_cast %100 : vector<16x16x32xf32> to vector<256x32xf32>
      %102 = vector.extract_strided_slice %97 {offsets = [0, 0, 0], sizes = [16, 16, 32], strides = [1, 1, 1]} : vector<18x16x32xf32> to vector<16x16x32xf32>
      %103 = vector.shape_cast %102 : vector<16x16x32xf32> to vector<256x32xf32>
      %104 = vector.extract_strided_slice %95 {offsets = [1, 0, 0], sizes = [16, 16, 32], strides = [1, 1, 1]} : vector<18x16x32xf32> to vector<16x16x32xf32>
      %105 = vector.shape_cast %104 : vector<16x16x32xf32> to vector<256x32xf32>
      %106 = vector.extract_strided_slice %96 {offsets = [1, 0, 0], sizes = [16, 16, 32], strides = [1, 1, 1]} : vector<18x16x32xf32> to vector<16x16x32xf32>
      %107 = vector.shape_cast %106 : vector<16x16x32xf32> to vector<256x32xf32>
      %108 = vector.extract_strided_slice %97 {offsets = [1, 0, 0], sizes = [16, 16, 32], strides = [1, 1, 1]} : vector<18x16x32xf32> to vector<16x16x32xf32>
      %109 = vector.shape_cast %108 : vector<16x16x32xf32> to vector<256x32xf32>
      %110 = vector.extract_strided_slice %95 {offsets = [2, 0, 0], sizes = [16, 16, 32], strides = [1, 1, 1]} : vector<18x16x32xf32> to vector<16x16x32xf32>
      %111 = vector.shape_cast %110 : vector<16x16x32xf32> to vector<256x32xf32>
      %112 = vector.extract_strided_slice %96 {offsets = [2, 0, 0], sizes = [16, 16, 32], strides = [1, 1, 1]} : vector<18x16x32xf32> to vector<16x16x32xf32>
      %113 = vector.shape_cast %112 : vector<16x16x32xf32> to vector<256x32xf32>
      %114 = vector.extract_strided_slice %97 {offsets = [2, 0, 0], sizes = [16, 16, 32], strides = [1, 1, 1]} : vector<18x16x32xf32> to vector<16x16x32xf32>
      %115 = vector.shape_cast %114 : vector<16x16x32xf32> to vector<256x32xf32>
      %116 = tpu.concatenate %99, %101, %103, %105, %107, %109, %111, %113, %115 in 1 : vector<256x32xf32>, vector<256x32xf32>, vector<256x32xf32>, vector<256x32xf32>, vector<256x32xf32>, vector<256x32xf32>, vector<256x32xf32>, vector<256x32xf32>, vector<256x32xf32> -> vector<256x288xf32>
      %cst_78 = arith.constant dense<0.000000e+00> : vector<256x32xf32>
      %117 = tpu.matmul %116, %89, %cst_78 {dimension_numbers = #tpu.dot_dimension_numbers<[1], [0], [0], [1], [0, 0, 1, 1], [], []>} : vector<256x288xf32>, vector<288x32xf32>, vector<256x32xf32> -> vector<256x32xf32>
      %118 = vector.broadcast %92 : vector<1x32xf32> to vector<256x32xf32>
      %119 = arith.addf %117, %118 : vector<256x32xf32>
      %cst_79 = arith.constant dense<0.000000e+00> : vector<32xf32>
      %120 = vector.multi_reduction <add>, %119, %cst_79 [0] : vector<256x32xf32> to vector<32xf32>
      %121 = vector.shape_cast %120 : vector<32xf32> to vector<1x32xf32>
      %cst_80 = arith.constant 2.560000e+02 : f32
      %122 = vector.broadcast %cst_80 : f32 to vector<1x32xf32>
      %123 = arith.divf %121, %122 : vector<1x32xf32>
      %124 = arith.index_cast %arg15 : i32 to index
      %c0_81 = arith.constant 0 : index
      %c0_82 = arith.constant 0 : index
      %125 = vector.load %arg6[%124, %c0_81, %c0_82] : memref<2x32x8xf32, #tpu.memory_space<vmem>>, vector<1x32x8xf32>
      %126 = vector.shape_cast %125 : vector<1x32x8xf32> to vector<32x8xf32>
      %cst_83 = arith.constant dense<0.000000e+00> : vector<1x8xf32>
      %127 = tpu.matmul %123, %126, %cst_83 {dimension_numbers = #tpu.dot_dimension_numbers<[1], [0], [0], [1], [0, 0, 1, 1], [], []>} : vector<1x32xf32>, vector<32x8xf32>, vector<1x8xf32> -> vector<1x8xf32>
      %128 = arith.index_cast %arg15 : i32 to index
      %c0_84 = arith.constant 0 : index
      %c0_85 = arith.constant 0 : index
      %129 = vector.load %arg7[%128, %c0_84, %c0_85] : memref<2x1x8xf32, #tpu.memory_space<vmem>>, vector<1x1x8xf32>
      %130 = vector.shape_cast %129 : vector<1x1x8xf32> to vector<1x8xf32>
      %131 = arith.addf %127, %130 : vector<1x8xf32>
      %cst_86 = arith.constant 0.000000e+00 : f32
      %132 = vector.broadcast %cst_86 : f32 to vector<1x8xf32>
      %133 = arith.maximumf %131, %132 : vector<1x8xf32>
      %134 = arith.index_cast %arg15 : i32 to index
      %c0_87 = arith.constant 0 : index
      %c0_88 = arith.constant 0 : index
      %135 = vector.load %arg8[%134, %c0_87, %c0_88] : memref<2x8x32xf32, #tpu.memory_space<vmem>>, vector<1x8x32xf32>
      %136 = vector.shape_cast %135 : vector<1x8x32xf32> to vector<8x32xf32>
      %cst_89 = arith.constant dense<0.000000e+00> : vector<1x32xf32>
      %137 = tpu.matmul %133, %136, %cst_89 {dimension_numbers = #tpu.dot_dimension_numbers<[1], [0], [0], [1], [0, 0, 1, 1], [], []>} : vector<1x8xf32>, vector<8x32xf32>, vector<1x32xf32> -> vector<1x32xf32>
      %138 = arith.index_cast %arg15 : i32 to index
      %c0_90 = arith.constant 0 : index
      %c0_91 = arith.constant 0 : index
      %139 = vector.load %arg9[%138, %c0_90, %c0_91] : memref<2x1x32xf32, #tpu.memory_space<vmem>>, vector<1x1x32xf32>
      %140 = vector.shape_cast %139 : vector<1x1x32xf32> to vector<1x32xf32>
      %141 = arith.addf %137, %140 : vector<1x32xf32>
      %cst_92 = arith.constant 5.000000e-01 : f32
      %142 = vector.broadcast %cst_92 : f32 to vector<1x32xf32>
      %143 = arith.mulf %142, %141 : vector<1x32xf32>
      %144 = math.tanh %143 : vector<1x32xf32>
      %cst_93 = arith.constant 1.000000e+00 : f32
      %145 = vector.broadcast %cst_93 : f32 to vector<1x32xf32>
      %146 = arith.addf %144, %145 : vector<1x32xf32>
      %cst_94 = arith.constant 5.000000e-01 : f32
      %147 = vector.broadcast %cst_94 : f32 to vector<1x32xf32>
      %148 = arith.mulf %147, %146 : vector<1x32xf32>
      %149 = vector.broadcast %148 : vector<1x32xf32> to vector<256x32xf32>
      %150 = arith.mulf %119, %149 : vector<256x32xf32>
      %151 = arith.addf %51, %150 : vector<256x32xf32>
      %c0_95 = arith.constant 0 : index
      %c0_96 = arith.constant 0 : index
      %152 = vector.load %arg14[%c0_95, %c0_96] : memref<256x32xf32, #tpu.memory_space<vmem>>, vector<256x32xf32>
      tpu.vector_store %arg14[%c0_95, %c0_96], %151 {strides = array<i32>} : memref<256x32xf32, #tpu.memory_space<vmem>>, vector<256x32xf32>,
    }
    %c2_i32_18 = arith.constant 2 : i32
    %c0_19 = arith.constant 0 : index
    %c0_20 = arith.constant 0 : index
    %13 = vector.load %arg14[%c0_19, %c0_20] : memref<256x32xf32, #tpu.memory_space<vmem>>, vector<256x32xf32>
    %c0_21 = arith.constant 0 : index
    %c0_22 = arith.constant 0 : index
    %14 = vector.load %arg10[%c0_21, %c0_22] : memref<288x32xf32, #tpu.memory_space<vmem>>, vector<288x32xf32>
    %c0_23 = arith.constant 0 : index
    %c0_24 = arith.constant 0 : index
    %15 = vector.load %arg11[%c0_23, %c0_24] : memref<1x32xf32, #tpu.memory_space<vmem>>, vector<1x32xf32>
    %16 = vector.shape_cast %13 : vector<256x32xf32> to vector<16x16x32xf32>
    %c1 = arith.constant 1 : index
    %c8 = arith.constant 8 : index
    %c0_25 = arith.constant 0 : index
    %17 = vector.load %arg13[%c1, %c8, %c0_25] : memref<18x32x32xf32, #tpu.memory_space<vmem>>, vector<16x16x32xf32>
    tpu.vector_store %arg13[%c1, %c8, %c0_25], %16 {strides = array<i32>} : memref<18x32x32xf32, #tpu.memory_space<vmem>>, vector<16x16x32xf32>,
    %c0_26 = arith.constant 0 : index
    %c7 = arith.constant 7 : index
    %c0_27 = arith.constant 0 : index
    %18 = vector.load %arg13[%c0_26, %c7, %c0_27] : memref<18x32x32xf32, #tpu.memory_space<vmem>>, vector<18x16x32xf32>
    %c0_28 = arith.constant 0 : index
    %c8_29 = arith.constant 8 : index
    %c0_30 = arith.constant 0 : index
    %19 = vector.load %arg13[%c0_28, %c8_29, %c0_30] : memref<18x32x32xf32, #tpu.memory_space<vmem>>, vector<18x16x32xf32>
    %c0_31 = arith.constant 0 : index
    %c9 = arith.constant 9 : index
    %c0_32 = arith.constant 0 : index
    %20 = vector.load %arg13[%c0_31, %c9, %c0_32] : memref<18x32x32xf32, #tpu.memory_space<vmem>>, vector<18x16x32xf32>
    %21 = vector.extract_strided_slice %18 {offsets = [0, 0, 0], sizes = [16, 16, 32], strides = [1, 1, 1]} : vector<18x16x32xf32> to vector<16x16x32xf32>
    %22 = vector.shape_cast %21 : vector<16x16x32xf32> to vector<256x32xf32>
    %23 = vector.extract_strided_slice %19 {offsets = [0, 0, 0], sizes = [16, 16, 32], strides = [1, 1, 1]} : vector<18x16x32xf32> to vector<16x16x32xf32>
    %24 = vector.shape_cast %23 : vector<16x16x32xf32> to vector<256x32xf32>
    %25 = vector.extract_strided_slice %20 {offsets = [0, 0, 0], sizes = [16, 16, 32], strides = [1, 1, 1]} : vector<18x16x32xf32> to vector<16x16x32xf32>
    %26 = vector.shape_cast %25 : vector<16x16x32xf32> to vector<256x32xf32>
    %27 = vector.extract_strided_slice %18 {offsets = [1, 0, 0], sizes = [16, 16, 32], strides = [1, 1, 1]} : vector<18x16x32xf32> to vector<16x16x32xf32>
    %28 = vector.shape_cast %27 : vector<16x16x32xf32> to vector<256x32xf32>
    %29 = vector.extract_strided_slice %19 {offsets = [1, 0, 0], sizes = [16, 16, 32], strides = [1, 1, 1]} : vector<18x16x32xf32> to vector<16x16x32xf32>
    %30 = vector.shape_cast %29 : vector<16x16x32xf32> to vector<256x32xf32>
    %31 = vector.extract_strided_slice %20 {offsets = [1, 0, 0], sizes = [16, 16, 32], strides = [1, 1, 1]} : vector<18x16x32xf32> to vector<16x16x32xf32>
    %32 = vector.shape_cast %31 : vector<16x16x32xf32> to vector<256x32xf32>
    %33 = vector.extract_strided_slice %18 {offsets = [2, 0, 0], sizes = [16, 16, 32], strides = [1, 1, 1]} : vector<18x16x32xf32> to vector<16x16x32xf32>
    %34 = vector.shape_cast %33 : vector<16x16x32xf32> to vector<256x32xf32>
    %35 = vector.extract_strided_slice %19 {offsets = [2, 0, 0], sizes = [16, 16, 32], strides = [1, 1, 1]} : vector<18x16x32xf32> to vector<16x16x32xf32>
    %36 = vector.shape_cast %35 : vector<16x16x32xf32> to vector<256x32xf32>
    %37 = vector.extract_strided_slice %20 {offsets = [2, 0, 0], sizes = [16, 16, 32], strides = [1, 1, 1]} : vector<18x16x32xf32> to vector<16x16x32xf32>
    %38 = vector.shape_cast %37 : vector<16x16x32xf32> to vector<256x32xf32>
    %39 = tpu.concatenate %22, %24, %26, %28, %30, %32, %34, %36, %38 in 1 : vector<256x32xf32>, vector<256x32xf32>, vector<256x32xf32>, vector<256x32xf32>, vector<256x32xf32>, vector<256x32xf32>, vector<256x32xf32>, vector<256x32xf32>, vector<256x32xf32> -> vector<256x288xf32>
    %cst_33 = arith.constant dense<0.000000e+00> : vector<256x32xf32>
    %40 = tpu.matmul %39, %14, %cst_33 {dimension_numbers = #tpu.dot_dimension_numbers<[1], [0], [0], [1], [0, 0, 1, 1], [], []>} : vector<256x288xf32>, vector<288x32xf32>, vector<256x32xf32> -> vector<256x32xf32>
    %41 = vector.broadcast %15 : vector<1x32xf32> to vector<256x32xf32>
    %42 = arith.addf %40, %41 : vector<256x32xf32>
    %c0_34 = arith.constant 0 : index
    %c0_35 = arith.constant 0 : index
    %c0_36 = arith.constant 0 : index
    %c0_37 = arith.constant 0 : index
    %43 = vector.load %arg1[%c0_34, %c0_35, %c0_36, %c0_37] : memref<1x16x16x32xf32, #tpu.memory_space<vmem>>, vector<1x16x16x32xf32>
    %44 = vector.shape_cast %43 : vector<1x16x16x32xf32> to vector<16x16x32xf32>
    %45 = vector.shape_cast %44 : vector<16x16x32xf32> to vector<256x32xf32>
    %46 = arith.addf %42, %45 : vector<256x32xf32>
    %47 = vector.shape_cast %46 : vector<256x32xf32> to vector<16x16x32xf32>
    %c0_38 = arith.constant 0 : index
    %c0_39 = arith.constant 0 : index
    %c0_40 = arith.constant 0 : index
    %c0_41 = arith.constant 0 : index
    %48 = vector.load %arg12[%c0_38, %c0_39, %c0_40, %c0_41] : memref<1x16x16x32xf32, #tpu.memory_space<vmem>>, vector<1x16x16x32xf32>
    %49 = vector.shape_cast %48 : vector<1x16x16x32xf32> to vector<16x16x32xf32>
    %50 = vector.shape_cast %47 : vector<16x16x32xf32> to vector<1x16x16x32xf32>
    tpu.vector_store %arg12[%c0_38, %c0_39, %c0_40, %c0_41], %50 {strides = array<i32>} : memref<1x16x16x32xf32, #tpu.memory_space<vmem>>, vector<1x16x16x32xf32>,
    return
  }
  func.func @transform_0(%arg0: i32) -> (i32, i32, i32, i32) {
    %c0_i32 = arith.constant 0 : i32
    %c0_i32_0 = arith.constant 0 : i32
    %c0_i32_1 = arith.constant 0 : i32
    %c0_i32_2 = arith.constant 0 : i32
    return %arg0, %c0_i32, %c0_i32_0, %c0_i32_1 : i32, i32, i32, i32
  }
  func.func @transform_1(%arg0: i32) -> (i32, i32, i32) {
    %c0_i32 = arith.constant 0 : i32
    %c0_i32_0 = arith.constant 0 : i32
    %c0_i32_1 = arith.constant 0 : i32
    %c0_i32_2 = arith.constant 0 : i32
    return %c0_i32, %c0_i32_0, %c0_i32_1 : i32, i32, i32
  }
  func.func @transform_2(%arg0: i32) -> (i32, i32, i32) {
    %c0_i32 = arith.constant 0 : i32
    %c0_i32_0 = arith.constant 0 : i32
    %c0_i32_1 = arith.constant 0 : i32
    %c0_i32_2 = arith.constant 0 : i32
    return %c0_i32, %c0_i32_0, %c0_i32_1 : i32, i32, i32
  }
  func.func @transform_3(%arg0: i32) -> (i32, i32, i32) {
    %c0_i32 = arith.constant 0 : i32
    %c0_i32_0 = arith.constant 0 : i32
    %c0_i32_1 = arith.constant 0 : i32
    %c0_i32_2 = arith.constant 0 : i32
    return %c0_i32, %c0_i32_0, %c0_i32_1 : i32, i32, i32
  }
  func.func @transform_4(%arg0: i32) -> (i32, i32, i32) {
    %c0_i32 = arith.constant 0 : i32
    %c0_i32_0 = arith.constant 0 : i32
    %c0_i32_1 = arith.constant 0 : i32
    %c0_i32_2 = arith.constant 0 : i32
    return %c0_i32, %c0_i32_0, %c0_i32_1 : i32, i32, i32
  }
  func.func @transform_5(%arg0: i32) -> (i32, i32, i32) {
    %c0_i32 = arith.constant 0 : i32
    %c0_i32_0 = arith.constant 0 : i32
    %c0_i32_1 = arith.constant 0 : i32
    %c0_i32_2 = arith.constant 0 : i32
    return %c0_i32, %c0_i32_0, %c0_i32_1 : i32, i32, i32
  }
  func.func @transform_6(%arg0: i32) -> (i32, i32, i32) {
    %c0_i32 = arith.constant 0 : i32
    %c0_i32_0 = arith.constant 0 : i32
    %c0_i32_1 = arith.constant 0 : i32
    %c0_i32_2 = arith.constant 0 : i32
    return %c0_i32, %c0_i32_0, %c0_i32_1 : i32, i32, i32
  }
  func.func @transform_7(%arg0: i32) -> (i32, i32, i32) {
    %c0_i32 = arith.constant 0 : i32
    %c0_i32_0 = arith.constant 0 : i32
    %c0_i32_1 = arith.constant 0 : i32
    %c0_i32_2 = arith.constant 0 : i32
    return %c0_i32, %c0_i32_0, %c0_i32_1 : i32, i32, i32
  }
  func.func @transform_8(%arg0: i32) -> (i32, i32, i32) {
    %c0_i32 = arith.constant 0 : i32
    %c0_i32_0 = arith.constant 0 : i32
    %c0_i32_1 = arith.constant 0 : i32
    %c0_i32_2 = arith.constant 0 : i32
    return %c0_i32, %c0_i32_0, %c0_i32_1 : i32, i32, i32
  }
  func.func @transform_9(%arg0: i32) -> (i32, i32) {
    %c0_i32 = arith.constant 0 : i32
    %c0_i32_0 = arith.constant 0 : i32
    %c0_i32_1 = arith.constant 0 : i32
    return %c0_i32, %c0_i32_0 : i32, i32
  }
  func.func @transform_10(%arg0: i32) -> (i32, i32) {
    %c0_i32 = arith.constant 0 : i32
    %c0_i32_0 = arith.constant 0 : i32
    %c0_i32_1 = arith.constant 0 : i32
    return %c0_i32, %c0_i32_0 : i32, i32
  }
  func.func @transform_11(%arg0: i32) -> (i32, i32, i32, i32) {
    %c0_i32 = arith.constant 0 : i32
    %c0_i32_0 = arith.constant 0 : i32
    %c0_i32_1 = arith.constant 0 : i32
    %c0_i32_2 = arith.constant 0 : i32
    return %arg0, %c0_i32, %c0_i32_0, %c0_i32_1 : i32, i32, i32, i32
  }
}

</mosaic_0001>

<bundles_post_ra>
// kernel: tpu_custom_call.1
= control target key start
LH: loop header
LB: loop body
LE: loop exit
PB: predicated region body
PF: predicated region fallthrough
CT: control target
= control target key end

     0   :  { %s12717_s0 = inlined_call_operand.hbm [shape: f32[2,16,16,32], index: 0, kind: input, shape index: {}]   ;;  %s12718_s1 = inlined_call_operand.hbm [shape: f32[2,288,32], index: 1, kind: input, shape index: {}]   ;;  %s12719_s2 = inlined_call_operand.hbm [shape: f32[2,1,32], index: 2, kind: input, shape index: {}]   ;;  %s12720_s3 = inlined_call_operand.hbm [shape: f32[2,288,32], index: 3, kind: input, shape index: {}]   ;;  %s12721_s4 = inlined_call_operand.hbm [shape: f32[2,1,32], index: 4, kind: input, shape index: {}]   ;;  %s12722_s5 = inlined_call_operand.hbm [shape: f32[2,32,8], index: 5, kind: input, shape index: {}]   ;;  %s12723_s6 = inlined_call_operand.hbm [shape: f32[2,1,8], index: 6, kind: input, shape index: {}]   ;;  %s12724_s7 = inlined_call_operand.hbm [shape: f32[2,8,32], index: 7, kind: input, shape index: {}]   ;;  %s12725_s8 = inlined_call_operand.hbm [shape: f32[2,1,32], index: 8, kind: input, shape index: {}]   ;;  %s12726_s9 = inlined_call_operand.hbm [shape: f32[288,32], index: 9, kind: input, shape index: {}]   ;;  %s12727_s10 = inlined_call_operand.hbm [shape: f32[1,32], index: 10, kind: input, shape index: {}]   ;;  %s12728_s11 = inlined_call_operand.hbm [shape: f32[2,16,16,32], index: 11, kind: output, shape index: {}]  }
   0x1   :  { %12794 = sst [smem:[#allocation85_spill]] %s12717_s0 }
   0x2   :  { %12795 = sst [smem:[#allocation86_spill]] %s12718_s1 }
   0x3   :  { %12796 = sst [smem:[#allocation87_spill]] %s12728_s11 }
   0x4   :  { %16 = vsyncpa [#allocation5], 0 }
   0x5   :  { %18 = vsyncpa [#allocation5 + $0x1], 0 }
   0x6   :  { %19 = vsyncpa [#allocation8], 0 }
   0x7   :  { %20 = vsyncpa [#allocation11], 0 }
   0x8   :  { %21 = vsyncpa [#allocation14], 0 }
   0x9   :  { %22 = vsyncpa [#allocation17], 0 }
   0xa   :  { %23 = vsyncpa [#allocation20], 0 }
   0xb   :  { %24 = vsyncpa [#allocation6], 0 }
   0xc   :  { %26 = vsyncpa [#allocation6 + $0x1], 0  ;;  %s8960_s17 = smov 0   ;;  %s8962_s18 = smov 0  }
   0xd   :  { %s8964_s19 = smov 0   ;;  %s8966_s20 = smov 0  }
   0xe LB: > { %s8871_s21 = smov [#allocation7]   ;;  %s8981_s23 = sadd.s32 4294967295, %s8865_s20   ;;  %s8865_s20 = sphi %s8966_s20, %s12940_s20   ;;  %s8861_s19 = sphi %s8964_s19, %s12939_s19   ;;  %s8857_s18 = sphi %s8962_s18, %s12938_s18   ;;  %s8853_s17 = sphi %s8960_s17, %s12937_s17  }
   0xf   : > { %s311_s22 = sshll.u32 %s8871_s21, 4  ;;  %p6116_p0 = scmp.ge.s32.totalorder %s8865_s20, 1  ;;  %s8986_s22 = int_to_ptr.vmem [resolvable:$true] %s311_s22 }
  0x10   : > { %p12732_p1 = scmp.eq.s32.totalorder %s8981_s23, 0  ;;  %p299_p2 = scmp.lt.s32.totalorder %s8865_s20, 3 }
  0x11   : > { %s8872_s25 = smov [#allocation10]   ;;  %s8873_s28 = smov [#allocation13]  }
  0x12   : > { %p8988_p3 = pnand %p6116_p0, %p299_p2  ;;  %s337_s26 = sshll.u32 %s8872_s25, 4  ;;  %s9001_s26 = int_to_ptr.vmem [resolvable:$true] %s337_s26 }
  0x13   : > { %s363_s29 = sshll.u32 %s8873_s28, 4  ;;  %s12800_s1 = sld [smem:[#allocation86_spill]]  ;;  %s9003_s29 = int_to_ptr.vmem [resolvable:$true] %s363_s29 }
  0x14   : > { %s12797_s24 = scalar_select %p8988_p3, 1, 0 }
  0x15   : > { %p6807_p5 = pneg %p8988_p3 }
  0x16   : > { %12798 = sst [smem:[#allocation30_spill]] %s12797_s24 }
  0x17   : > { %p8997_p6 = pnand %p6807_p5, %p12732_p1 }
  0x19   : > { %s8465_s13 = scalar_lea.hbm %s12800_s1, 9216  ;;  %p9013_p8 = pneg %p8997_p6 }
  0x1a   : > { %p8466_p7 = scmp.ne.s32.totalorder %s12800_s1, %s8465_s13  ;;  %p8472_p11 = scmp.lt.u32.totalorder %s8465_s13, %s12800_s1 }
  0x1c   : > { %p8468_p9 = pnand %p9013_p8, %p8466_p7 }
  0x1e   : > { %p8469_p10 = pneg %p8468_p9 }
  0x20   : > { %p8474_p12 = pnand %p8472_p11, %p8469_p10 }
  0x22   : > { %8477 = shalt.err (!%p8474_p12)
}
  0x23   : > { %s8478_s28 = scalar_lea.vmem %s8986_s22, 9216  ;;  %p8486_p5 = scmp.lt.s32.totalorder %s8986_s22, %s8986_s22 }
  0x24   : > { %p8479_p13 = scmp.ne.s32.totalorder %s8986_s22, %s8478_s28  ;;  %p8487_p4 = scmp.lt.s32.totalorder %s8478_s28, %s8478_s28 }
  0x26   : > { %p8481_p0 = pnand %p8479_p13, %p9013_p8  ;;  %p8488_p7 = por %p8487_p4, %p8486_p5 }
  0x28   : > { %p8482_p2 = pneg %p8481_p0 }
  0x2a   : > { %p8489_p9 = pnand %p8488_p7, %p8482_p2 }
  0x2c   : > { %8492 = shalt.err (!%p8489_p9)
}
  0x2d   : > { %s12734_s30 = smov 128   ;;  %s12735_s12 = smov 8  }
  0x2e   : > { %6810 = dma.hbm_to_vmem [thread:$0]  (!%p8997_p6), %s12800_s1, 9216, %s8986_s22, [#allocation8], %s12734_s30, %s12734_s30, %s12735_s12  }
  0x2f   : > { %s8493_s25 = scalar_lea.hbm %s12720_s3, 9216 }
  0x30   : > { %p8494_p4 = scmp.ne.s32.totalorder %s12720_s3, %s8493_s25  ;;  %p8500_p12 = scmp.lt.u32.totalorder %s8493_s25, %s12720_s3 }
  0x32   : > { %p8496_p10 = pnand %p8494_p4, %p9013_p8 }
  0x34   : > { %p8497_p11 = pneg %p8496_p10 }
  0x36   : > { %p8502_p13 = pnand %p8500_p12, %p8497_p11 }
  0x38   : > { %8505 = shalt.err (!%p8502_p13)
}
  0x39   : > { %s8506_s22 = scalar_lea.vmem %s9001_s26, 9216  ;;  %p8514_p7 = scmp.lt.s32.totalorder %s9001_s26, %s9001_s26 }
  0x3a   : > { %p8507_p0 = scmp.ne.s32.totalorder %s9001_s26, %s8506_s22  ;;  %p8515_p9 = scmp.lt.s32.totalorder %s8506_s22, %s8506_s22 }
  0x3c   : > { %p8509_p2 = pnand %p8507_p0, %p9013_p8  ;;  %p8516_p4 = por %p8515_p9, %p8514_p7 }
  0x3e   : > { %p8510_p5 = pneg %p8509_p2 }
  0x40   : > { %p8517_p10 = pnand %p8516_p4, %p8510_p5 }
  0x42   : > { %8520 = shalt.err (!%p8517_p10)
}
  0x43   : > { %6816 = dma.hbm_to_vmem [thread:$0]  (!%p8997_p6), %s12720_s3, 9216, %s9001_s26, [#allocation11], %s12734_s30, %s12734_s30, %s12735_s12  }
  0x44   : > { %s8521_s14 = scalar_lea.hbm %s12722_s5, 1024 }
  0x45   : > { %p8522_p11 = scmp.ne.s32.totalorder %s12722_s5, %s8521_s14  ;;  %p8528_p0 = scmp.lt.u32.totalorder %s8521_s14, %s12722_s5 }
  0x47   : > { %p8524_p12 = pnand %p8522_p11, %p9013_p8 }
  0x49   : > { %p8525_p13 = pneg %p8524_p12 }
  0x4b   : > { %p8530_p2 = pnand %p8528_p0, %p8525_p13 }
  0x4d   : > { %8533 = shalt.err (!%p8530_p2)
}
  0x4e   : > { %s8534_s26 = scalar_lea.vmem %s9003_s29, 1024  ;;  %p8542_p4 = scmp.lt.s32.totalorder %s9003_s29, %s9003_s29 }
  0x4f   : > { %p8535_p5 = scmp.ne.s32.totalorder %s9003_s29, %s8534_s26  ;;  %p8543_p10 = scmp.lt.s32.totalorder %s8534_s26, %s8534_s26 }
  0x51   : > { %p8537_p7 = pnand %p8535_p5, %p9013_p8  ;;  %p8544_p11 = por %p8543_p10, %p8542_p4 }
  0x53   : > { %p8538_p9 = pneg %p8537_p7 }
  0x55   : > { %p8545_p12 = pnand %p8544_p11, %p8538_p9 }
  0x57   : > { %8548 = shalt.err (!%p8545_p12)
}
  0x58   : > { %6822 = dma.hbm_to_vmem [thread:$0]  (!%p8997_p6), %s12722_s5, 1024, %s9003_s29, [#allocation14], %s12734_s30, %s12734_s30, %s12735_s12  }
  0x59   : > { %s8876_s11 = smov [#allocation16]   ;;  %s8877_s13 = smov [#allocation19]  }
  0x5a   : > { %s389_s24 = sshll.u32 %s8876_s11, 4  ;;  %s415_s14 = sshll.u32 %s8877_s13, 4  ;;  %s390_s24 = int_to_ptr.vmem [resolvable:$true] %s389_s24  ;;  %s416_s14 = int_to_ptr.vmem [resolvable:$true] %s415_s14 }
  0x5b   : > { %s8549_s25 = scalar_lea.hbm %s12724_s7, 256 }
  0x5c   : > { %p8550_p13 = scmp.ne.s32.totalorder %s12724_s7, %s8549_s25  ;;  %p8556_p5 = scmp.lt.u32.totalorder %s8549_s25, %s12724_s7 }
  0x5e   : > { %p8552_p0 = pnand %p8550_p13, %p9013_p8 }
  0x60   : > { %p8553_p2 = pneg %p8552_p0 }
  0x62   : > { %p8558_p7 = pnand %p8556_p5, %p8553_p2 }
  0x64   : > { %8561 = shalt.err (!%p8558_p7)
}
  0x65   : > { %s8562_s29 = scalar_lea.vmem %s390_s24, 256  ;;  %p8570_p11 = scmp.lt.s32.totalorder %s390_s24, %s390_s24 }
  0x66   : > { %p8563_p9 = scmp.ne.s32.totalorder %s390_s24, %s8562_s29  ;;  %p8571_p12 = scmp.lt.s32.totalorder %s8562_s29, %s8562_s29 }
  0x68   : > { %p8565_p4 = pnand %p8563_p9, %p9013_p8  ;;  %p8572_p1 = por %p8571_p12, %p8570_p11 }
  0x6a   : > { %p8566_p10 = pneg %p8565_p4 }
  0x6c   : > { %p8573_p3 = pnand %p8572_p1, %p8566_p10 }
  0x6e   : > { %8576 = shalt.err (!%p8573_p3)
}
  0x6f   : > { %6828 = dma.hbm_to_vmem [thread:$0]  (!%p8997_p6), %s12724_s7, 256, %s390_s24, [#allocation17], %s12734_s30, %s12734_s30, %s12735_s12  }
  0x70   : > { %s8577_s15 = scalar_lea.hbm %s12726_s9, 4608 }
  0x71   : > { %p8578_p1 = scmp.ne.s32.totalorder %s12726_s9, %s8577_s15  ;;  %p8584_p0 = scmp.lt.u32.totalorder %s8577_s15, %s12726_s9 }
  0x73   : > { %p8580_p3 = pnand %p8578_p1, %p9013_p8 }
  0x75   : > { %p8581_p13 = pneg %p8580_p3 }
  0x77   : > { %p8586_p2 = pnand %p8584_p0, %p8581_p13 }
  0x79   : > { %8589 = shalt.err (!%p8586_p2)
}
  0x7a   : > { %s8590_s22 = scalar_lea.vmem %s416_s14, 4608  ;;  %p8598_p4 = scmp.lt.s32.totalorder %s416_s14, %s416_s14 }
  0x7b   : > { %p8591_p5 = scmp.ne.s32.totalorder %s416_s14, %s8590_s22  ;;  %p8599_p10 = scmp.lt.s32.totalorder %s8590_s22, %s8590_s22 }
  0x7d   : > { %p8593_p7 = pnand %p8591_p5, %p9013_p8  ;;  %p8600_p11 = por %p8599_p10, %p8598_p4 }
  0x7f   : > { %p8594_p9 = pneg %p8593_p7 }
  0x81   : > { %p8601_p12 = pnand %p8600_p11, %p8594_p9 }
  0x83   : > { %8604 = shalt.err (!%p8601_p12)
}
  0x84   : > { %6834 = dma.hbm_to_vmem [thread:$0]  (!%p8997_p6), %s12726_s9, 4608, %s416_s14, [#allocation20], %s12734_s30, %s12734_s30, %s12735_s12  }
  0x85   : > { %s8878_s1 = smov [#allocation9]   ;;  %s8605_s15 = scalar_lea.hbm %s12719_s2, 32 }
  0x86   : > { %s324_s0 = sshll.u32 %s8878_s1, 4  ;;  %p8606_p1 = scmp.ne.s32.totalorder %s12719_s2, %s8605_s15  ;;  %s325_s0 = int_to_ptr.vmem [resolvable:$true] %s324_s0 }
  0x87   : > { %p8612_p0 = scmp.lt.u32.totalorder %s8605_s15, %s12719_s2 }
  0x88   : > { %p8608_p3 = pnand %p8606_p1, %p9013_p8 }
  0x8a   : > { %p8609_p13 = pneg %p8608_p3 }
  0x8c   : > { %p8614_p2 = pnand %p8612_p0, %p8609_p13 }
  0x8e   : > { %8617 = shalt.err (!%p8614_p2)
}
  0x8f   : > { %s8618_s14 = scalar_lea.vmem %s325_s0, 32  ;;  %p8626_p4 = scmp.lt.s32.totalorder %s325_s0, %s325_s0 }
  0x90   : > { %p8619_p5 = scmp.ne.s32.totalorder %s325_s0, %s8618_s14  ;;  %p8627_p10 = scmp.lt.s32.totalorder %s8618_s14, %s8618_s14 }
  0x92   : > { %p8621_p7 = pnand %p8619_p5, %p9013_p8  ;;  %p8628_p11 = por %p8627_p10, %p8626_p4 }
  0x94   : > { %p8622_p9 = pneg %p8621_p7 }
  0x96   : > { %p8629_p12 = pnand %p8628_p11, %p8622_p9 }
  0x98   : > { %8632 = shalt.err (!%p8629_p12)
}
  0x99   : > { %s8879_s22 = smov 16   ;;  %s8880_s24 = smov 1  }
  0x9a   : > { %6813 = dma.hbm_to_vmem [thread:$0]  (!%p8997_p6), %s12719_s2, 32, %s325_s0, [#allocation8], %s8879_s22, %s8879_s22, %s8880_s24  }
  0x9b   : > { %s8881_s11 = smov [#allocation12]   ;;  %s8882_s15 = smov [#allocation15]  }
  0x9c   : > { %s350_s13 = sshll.u32 %s8881_s11, 4  ;;  %s376_s21 = sshll.u32 %s8882_s15, 4  ;;  %s351_s13 = int_to_ptr.vmem [resolvable:$true] %s350_s13  ;;  %s9152_s21 = int_to_ptr.vmem [resolvable:$true] %s376_s21 }
  0x9d   : > { %s8633_s26 = scalar_lea.hbm %s12721_s4, 32 }
  0x9e   : > { %p8634_p1 = scmp.ne.s32.totalorder %s12721_s4, %s8633_s26  ;;  %p8640_p0 = scmp.lt.u32.totalorder %s8633_s26, %s12721_s4 }
  0xa0   : > { %p8636_p3 = pnand %p8634_p1, %p9013_p8 }
  0xa2   : > { %p8637_p13 = pneg %p8636_p3 }
  0xa4   : > { %p8642_p2 = pnand %p8640_p0, %p8637_p13 }
  0xa6   : > { %8645 = shalt.err (!%p8642_p2)
}
  0xa7   : > { %s8646_s1 = scalar_lea.vmem %s351_s13, 32  ;;  %p8654_p4 = scmp.lt.s32.totalorder %s351_s13, %s351_s13 }
  0xa8   : > { %p8647_p5 = scmp.ne.s32.totalorder %s351_s13, %s8646_s1  ;;  %p8655_p10 = scmp.lt.s32.totalorder %s8646_s1, %s8646_s1 }
  0xaa   : > { %p8649_p7 = pnand %p8647_p5, %p9013_p8  ;;  %p8656_p11 = por %p8655_p10, %p8654_p4 }
  0xac   : > { %p8650_p9 = pneg %p8649_p7 }
  0xae   : > { %p8657_p12 = pnand %p8656_p11, %p8650_p9 }
  0xb0   : > { %8660 = shalt.err (!%p8657_p12)
}
  0xb1   : > { %6819 = dma.hbm_to_vmem [thread:$0]  (!%p8997_p6), %s12721_s4, 32, %s351_s13, [#allocation11], %s8879_s22, %s8879_s22, %s8880_s24  }
  0xb2   : > { %s8661_s28 = scalar_lea.hbm %s12723_s6, 32 }
  0xb3   : > { %p8662_p1 = scmp.ne.s32.totalorder %s12723_s6, %s8661_s28  ;;  %p8668_p0 = scmp.lt.u32.totalorder %s8661_s28, %s12723_s6 }
  0xb5   : > { %p8664_p3 = pnand %p8662_p1, %p9013_p8 }
  0xb7   : > { %p8665_p13 = pneg %p8664_p3 }
  0xb9   : > { %p8670_p2 = pnand %p8668_p0, %p8665_p13 }
  0xbb   : > { %8673 = shalt.err (!%p8670_p2)
}
  0xbc   : > { %s8674_s13 = scalar_lea.vmem %s9152_s21, 32  ;;  %p8682_p4 = scmp.lt.s32.totalorder %s9152_s21, %s9152_s21 }
  0xbd   : > { %p8675_p5 = scmp.ne.s32.totalorder %s9152_s21, %s8674_s13  ;;  %p8683_p10 = scmp.lt.s32.totalorder %s8674_s13, %s8674_s13 }
  0xbf   : > { %p8677_p7 = pnand %p8675_p5, %p9013_p8  ;;  %p8684_p11 = por %p8683_p10, %p8682_p4 }
  0xc1   : > { %p8678_p9 = pneg %p8677_p7 }
  0xc3   : > { %p8685_p12 = pnand %p8684_p11, %p8678_p9 }
  0xc5   : > { %8688 = shalt.err (!%p8685_p12)
}
  0xc6   : > { %6825 = dma.hbm_to_vmem [thread:$0]  (!%p8997_p6), %s12723_s6, 32, %s9152_s21, [#allocation14], %s8879_s22, %s8879_s22, %s8880_s24  }
  0xc7   : > { %s8883_s11 = smov [#allocation18]   ;;  %s8884_s25 = smov [#allocation21]  }
  0xc8   : > { %s402_s15 = sshll.u32 %s8883_s11, 4  ;;  %s429_s28 = sshll.u32 %s8884_s25, 4  ;;  %s403_s15 = int_to_ptr.vmem [resolvable:$true] %s402_s15  ;;  %s9201_s28 = int_to_ptr.vmem [resolvable:$true] %s429_s28 }
  0xc9   : > { %s8689_s29 = scalar_lea.hbm %s12725_s8, 32 }
  0xca   : > { %p8690_p1 = scmp.ne.s32.totalorder %s12725_s8, %s8689_s29  ;;  %p8696_p0 = scmp.lt.u32.totalorder %s8689_s29, %s12725_s8 }
  0xcc   : > { %p8692_p3 = pnand %p8690_p1, %p9013_p8 }
  0xce   : > { %p8693_p13 = pneg %p8692_p3 }
  0xd0   : > { %p8698_p2 = pnand %p8696_p0, %p8693_p13 }
  0xd2   : > { %8701 = shalt.err (!%p8698_p2)
}
  0xd3   : > { %s8702_s30 = scalar_lea.vmem %s403_s15, 32  ;;  %p8710_p4 = scmp.lt.s32.totalorder %s403_s15, %s403_s15 }
  0xd4   : > { %p8703_p5 = scmp.ne.s32.totalorder %s403_s15, %s8702_s30  ;;  %p8711_p10 = scmp.lt.s32.totalorder %s8702_s30, %s8702_s30 }
  0xd6   : > { %p8705_p7 = pnand %p8703_p5, %p9013_p8  ;;  %p8712_p11 = por %p8711_p10, %p8710_p4 }
  0xd8   : > { %p8706_p9 = pneg %p8705_p7 }
  0xda   : > { %p8713_p12 = pnand %p8712_p11, %p8706_p9 }
  0xdc   : > { %8716 = shalt.err (!%p8713_p12)
}
  0xdd   : > { %6831 = dma.hbm_to_vmem [thread:$0]  (!%p8997_p6), %s12725_s8, 32, %s403_s15, [#allocation17], %s8879_s22, %s8879_s22, %s8880_s24  }
  0xde   : > { %s8717_s29 = scalar_lea.hbm %s12727_s10, 16 }
  0xdf   : > { %p8718_p1 = scmp.ne.s32.totalorder %s12727_s10, %s8717_s29  ;;  %p8724_p0 = scmp.lt.u32.totalorder %s8717_s29, %s12727_s10 }
  0xe1   : > { %p8720_p3 = pnand %p8718_p1, %p9013_p8 }
  0xe3   : > { %p8721_p13 = pneg %p8720_p3 }
  0xe5   : > { %p8726_p2 = pnand %p8724_p0, %p8721_p13 }
  0xe7   : > { %8729 = shalt.err (!%p8726_p2)
}
  0xe8   : > { %s8730_s22 = scalar_lea.vmem %s9201_s28, 16  ;;  %s8737_s24 = scalar_lea.vmem %s9201_s28, 32 }
  0xe9   : > { %p8731_p5 = scmp.ne.s32.totalorder %s9201_s28, %s8730_s22  ;;  %p8738_p4 = scmp.lt.s32.totalorder %s9201_s28, %s9201_s28 }
  0xea   : > { %p8739_p10 = scmp.lt.s32.totalorder %s8737_s24, %s8730_s22 }
  0xeb   : > { %p8733_p7 = pnand %p8731_p5, %p9013_p8 }
  0xec   : > { %p8740_p11 = por %p8739_p10, %p8738_p4 }
  0xed   : > { %p8734_p9 = pneg %p8733_p7 }
  0xef   : > { %p8741_p12 = pnand %p8740_p11, %p8734_p9 }
  0xf1   : > { %8744 = shalt.err (!%p8741_p12)
}
  0xf2   : > { %6837 = dma.hbm_to_vmem [thread:$0]  (!%p8997_p6), %s12727_s10, 16, %s9201_s28, [#allocation20]  }
  0xf3   : > { %s6115_s27 = sadd.s32 4294967294, %s8865_s20   ;;  %s9250_s16 = sadd.s32 1, %s8865_s20  }
  0xf4   : > { %s36_s11 = ssub.s32 %s8865_s20, %s9250_s16  ;;  %s39_s25 = sadd.s32 1, %s8861_s19 }
  0xf5   : > { %p37_p8 = scmp.eq.s32.totalorder %s36_s11, 0  ;;  %p46_p1 = scmp.ne.s32.totalorder %s8861_s19, %s8857_s18 }
  0xf6   : > { %p47_p3 = scmp.eq.s32.totalorder %s8865_s20, 0  ;;  %p52_p13 = scmp.ne.s32.totalorder %s8857_s18, %s8853_s17 }
  0xf7   : > { %s9261_s26 = scalar_select %p37_p8, %s8861_s19, %s39_s25  }
  0xf8   : > { %p9263_p0 = por %p47_p3, %p46_p1  ;;  %p12803_p2 = scmp.eq.s32.totalorder %s8981_s23, 0 }
  0xf9   : > { %p286_p5 = scmp.eq.s32.totalorder %s8981_s23, 1  ;;  %p292_p7 = scmp.eq.s32.totalorder %s6115_s27, 1 }
  0xfa   : > { %p9269_p6 = por %p12803_p2, %p52_p13  ;;  %p6856_p9 = scmp.lt.s32.totalorder %s8865_s20, 2 }
  0xfb   : > { %s440_s29 = sand.u32 1, %s8861_s19   ;;  %p9276_p4 = por %p286_p5, %p46_p1 }
  0xfc   : > { %p9280_p10 = por %p292_p7, %p52_p13  ;;  %s6128_s1 = sshll.u32 %s440_s29, 8 }
  0xfd   : > { %s12805_s0 = scalar_select %p9276_p4, 1, 0 }
  0xfe   : > { %s12806_s13 = scalar_select %p9280_p10, 1, 0 }
  0xff   : > { %s6252_s21 = sshll.u32 %s8865_s20, 12  ;;  %s12807_s15 = sld [smem:[#allocation85_spill]] }
 0x100   : > { %s444_s27 = scalar_lea.vmem [#allocation4], %s6128_s1  ;;  %p9294_p11 = pnand %p6856_p9, %p9263_p0 }
 0x101   : > { %s451_s11 = sshll.u32 %s444_s27, 4  ;;  %s9298_s12 = scalar_lea.sflag [#allocation5], %s440_s29  ;;  %s9290_s11 = int_to_ptr.vmem [resolvable:$true] %s451_s11 }
 0x102   : > { %p8747_p8 = pneg %p9294_p11 }
 0x105   : > { %s9288_s30 = scalar_lea.hbm %s12807_s15, %s6252_s21  ;;  %s8750_s14 = scalar_lea.hbm %s12807_s15, 8192 }
 0x106   : > { %s8745_s22 = scalar_lea.hbm %s9288_s30, 4096  ;;  %p8751_p13 = scmp.lt.u32.totalorder %s9288_s30, %s12807_s15 }
 0x107   : > { %p8746_p12 = scmp.ne.s32.totalorder %s9288_s30, %s8745_s22  ;;  %p8752_p0 = scmp.lt.u32.totalorder %s8750_s14, %s8745_s22 }
 0x108   : > { %p8754_p5 = scmp.lt.u32.totalorder %s8745_s22, %s9288_s30 }
 0x109   : > { %p8748_p1 = pnand %p8747_p8, %p8746_p12  ;;  %p8753_p2 = por %p8752_p0, %p8751_p13 }
 0x10b   : > { %p8749_p3 = pneg %p8748_p1  ;;  %p8755_p7 = por %p8754_p5, %p8753_p2 }
 0x10d   : > { %p8756_p9 = pnand %p8755_p7, %p8749_p3 }
 0x10f   : > { %8759 = shalt.err (!%p8756_p9)
}
 0x110   : > { %s8760_s29 = scalar_lea.vmem %s9290_s11, 4096  ;;  %s8885_s1 = smov [#allocation4]  }
 0x111   : > { %p8761_p12 = scmp.ne.s32.totalorder %s9290_s11, %s8760_s29  ;;  %s8765_s21 = sshll.u32 %s8885_s1, 4  ;;  %s8766_s21 = int_to_ptr.vmem [resolvable:$false] %s8765_s21 }
 0x112   : > { %s8767_s24 = scalar_lea.vmem %s8766_s21, 8192  ;;  %p8768_p4 = scmp.lt.s32.totalorder %s9290_s11, %s8766_s21 }
 0x113   : > { %p8763_p1 = pnand %p8761_p12, %p8747_p8  ;;  %p8769_p13 = scmp.lt.s32.totalorder %s8767_s24, %s8760_s29 }
 0x115   : > { %p8764_p10 = pneg %p8763_p1  ;;  %p8770_p0 = por %p8769_p13, %p8768_p4 }
 0x117   : > { %p8771_p2 = pnand %p8770_p0, %p8764_p10 }
 0x119   : > { %8774 = shalt.err (!%p8771_p2)
}
 0x11a   : > { %s12809_s22 = smov 8   ;;  %s12810_s14 = smov 128  }
 0x11b   : > { %6841 = dma.hbm_to_vmem [thread:$0]  (!%p9294_p11), %s9288_s30, 4096, %s9290_s11, %s9298_s12, %s12810_s14, %s12810_s14, %s12809_s22  }
 0x11c   : > { %s12811_s27 = sld [smem:[#allocation30_spill]] }
 0x122   : > { %p12812_p8 = scmp.ne.s32.totalorder %s12811_s27, 0 }
 0x124   : > { %463 = sbr.rel (%p12812_p8) target bundleno = 2326 (0x916), region = 64 }
 0x12b   : > { %s9332_s1 = sand.u32 1, %s8857_s18  }
 0x12c   : > { %s6132_s29 = sshll.u32 %s9332_s1, 8  ;;  %s466_s21 = scalar_lea.sflag [#allocation5], %s9332_s1 }
 0x12d   : > { %s9338_s25 = scalar_lea.vmem [#allocation4], %s6132_s29 }
 0x12e   : > { %8824 = dma.done.wait (%p9269_p6), %s466_s21, 4096  }
 0x12f   : > { %8826 = vsyncadd (%p9269_p6), %s466_s21, 4294963200  ;;  %p12813_p4 = scmp.eq.s32.totalorder %s8981_s23, 0 }
 0x131   : > { %8828 = dma.done.wait (%p12813_p4), [#allocation8], 9248   ;;  %p12814_p10 = pmov %p12813_p4 }
 0x132   : > { %p12815_p11 = pmov %p12813_p4 }
 0x133   : > { %8830 = vsyncadd (%p12814_p10), [#allocation8], 4294958048 }
 0x134   : > { %8832 = dma.done.wait (%p12815_p11), [#allocation11], 9248   ;;  %p12816_p3 = pmov %p12813_p4 }
 0x136   : > { %8834 = vsyncadd (%p12816_p3), [#allocation11], 4294958048  ;;  %p12817_p5 = pmov %p12816_p3 }
 0x137   : > { %p12818_p7 = pmov %p12816_p3 }
 0x138   : > { %8836 = dma.done.wait (%p12817_p5), [#allocation14], 1056  }
 0x139   : > { %8838 = vsyncadd (%p12818_p7), [#allocation14], 4294966240  ;;  %p12819_p6 = pmov %p12816_p3 }
 0x13a   : > { %p12820_p9 = pmov %p12816_p3 }
 0x13b   : > { %8840 = dma.done.wait (%p12819_p6), [#allocation17], 288  }
 0x13c   : > { %8842 = vsyncadd (%p12820_p9), [#allocation17], 4294967008  ;;  %p12821_p12 = pmov %p12816_p3 }
 0x13d   : > { %p12822_p1 = pmov %p12816_p3 }
 0x13e   : > { %8844 = dma.done.wait (%p12821_p12), [#allocation20], 4624  }
 0x13f   : > { %8846 = vsyncadd (%p12822_p1), [#allocation20], 4294962672  ;;  %vm548_vm0 = vcmask 261120   ;;  %v8886_v0 = vmov 0.0   ;;  %v594_v1 = vld [vmem:[%s9338_s25] sm:$0xff]  ;;  %v595_v2 = vld [vmem:[%s9338_s25 + $0x8] sm:$0xff] }
 0x140   : > { %549 = vst.msk [vmem:[#allocation2] sm:$0xff] %vm548_vm0, %v8886_v0  ;;  %550 = vst.msk [vmem:[#allocation2 + $0x8] sm:$0xff] %vm548_vm0, %v8886_v0  ;;  %v596_v3 = vld [vmem:[%s9338_s25 + $0x10] sm:$0xff]  ;;  %v597_v4 = vld [vmem:[%s9338_s25 + $0x18] sm:$0xff]  ;;  %s9474_s12 = scalar_lea.vmem [#allocation22], %s6132_s29  ;;  %s9476_s28 = smov 0  }
 0x141   : > { %551 = vst.msk [vmem:[#allocation2 + $0x10] sm:$0xff] %vm548_vm0, %v8886_v0  ;;  %552 = vst.msk [vmem:[#allocation2 + $0x18] sm:$0xff] %vm548_vm0, %v8886_v0  ;;  %v598_v5 = vld [vmem:[%s9338_s25 + $0x20] sm:$0xff]  ;;  %v599_v6 = vld [vmem:[%s9338_s25 + $0x28] sm:$0xff] }
 0x142   : > { %554 = vst.msk [vmem:[#allocation2 + $0x220] sm:$0xff] %vm548_vm0, %v8886_v0  ;;  %555 = vst.msk [vmem:[#allocation2 + $0x228] sm:$0xff] %vm548_vm0, %v8886_v0  ;;  %v600_v7 = vld [vmem:[%s9338_s25 + $0x30] sm:$0xff]  ;;  %v601_v8 = vld [vmem:[%s9338_s25 + $0x38] sm:$0xff] }
 0x143   : > { %556 = vst.msk [vmem:[#allocation2 + $0x230] sm:$0xff] %vm548_vm0, %v8886_v0  ;;  %557 = vst.msk [vmem:[#allocation2 + $0x238] sm:$0xff] %vm548_vm0, %v8886_v0  ;;  %v602_v9 = vld [vmem:[%s9338_s25 + $0x40] sm:$0xff]  ;;  %v603_v10 = vld [vmem:[%s9338_s25 + $0x48] sm:$0xff] }
 0x144   : > { %559 = vst.msk [vmem:[#allocation2 + $0x20] sm:$0xff] %vm548_vm0, %v8886_v0  ;;  %560 = vst.msk [vmem:[#allocation2 + $0x40] sm:$0xff] %vm548_vm0, %v8886_v0  ;;  %v604_v11 = vld [vmem:[%s9338_s25 + $0x50] sm:$0xff]  ;;  %v605_v12 = vld [vmem:[%s9338_s25 + $0x58] sm:$0xff] }
 0x145   : > { %561 = vst.msk [vmem:[#allocation2 + $0x60] sm:$0xff] %vm548_vm0, %v8886_v0  ;;  %562 = vst.msk [vmem:[#allocation2 + $0x80] sm:$0xff] %vm548_vm0, %v8886_v0  ;;  %v606_v13 = vld [vmem:[%s9338_s25 + $0x60] sm:$0xff]  ;;  %v607_v14 = vld [vmem:[%s9338_s25 + $0x68] sm:$0xff] }
 0x146   : > { %563 = vst.msk [vmem:[#allocation2 + $0xa0] sm:$0xff] %vm548_vm0, %v8886_v0  ;;  %564 = vst.msk [vmem:[#allocation2 + $0xc0] sm:$0xff] %vm548_vm0, %v8886_v0  ;;  %v608_v15 = vld [vmem:[%s9338_s25 + $0x70] sm:$0xff]  ;;  %v609_v16 = vld [vmem:[%s9338_s25 + $0x78] sm:$0xff] }
 0x147   : > { %565 = vst.msk [vmem:[#allocation2 + $0xe0] sm:$0xff] %vm548_vm0, %v8886_v0  ;;  %566 = vst.msk [vmem:[#allocation2 + $0x100] sm:$0xff] %vm548_vm0, %v8886_v0  ;;  %v610_v17 = vld [vmem:[%s9338_s25 + $0x80] sm:$0xff]  ;;  %v611_v18 = vld [vmem:[%s9338_s25 + $0x88] sm:$0xff] }
 0x148   : > { %567 = vst.msk [vmem:[#allocation2 + $0x120] sm:$0xff] %vm548_vm0, %v8886_v0  ;;  %568 = vst.msk [vmem:[#allocation2 + $0x140] sm:$0xff] %vm548_vm0, %v8886_v0  ;;  %v612_v19 = vld [vmem:[%s9338_s25 + $0x90] sm:$0xff]  ;;  %v613_v20 = vld [vmem:[%s9338_s25 + $0x98] sm:$0xff] }
 0x149   : > { %569 = vst.msk [vmem:[#allocation2 + $0x160] sm:$0xff] %vm548_vm0, %v8886_v0  ;;  %570 = vst.msk [vmem:[#allocation2 + $0x180] sm:$0xff] %vm548_vm0, %v8886_v0  ;;  %v614_v21 = vld [vmem:[%s9338_s25 + $0xa0] sm:$0xff]  ;;  %v615_v22 = vld [vmem:[%s9338_s25 + $0xa8] sm:$0xff] }
 0x14a   : > { %571 = vst.msk [vmem:[#allocation2 + $0x1a0] sm:$0xff] %vm548_vm0, %v8886_v0  ;;  %572 = vst.msk [vmem:[#allocation2 + $0x1c0] sm:$0xff] %vm548_vm0, %v8886_v0  ;;  %v616_v23 = vld [vmem:[%s9338_s25 + $0xb0] sm:$0xff]  ;;  %v617_v24 = vld [vmem:[%s9338_s25 + $0xb8] sm:$0xff] }
 0x14b   : > { %573 = vst.msk [vmem:[#allocation2 + $0x1e0] sm:$0xff] %vm548_vm0, %v8886_v0  ;;  %574 = vst.msk [vmem:[#allocation2 + $0x200] sm:$0xff] %vm548_vm0, %v8886_v0  ;;  %v618_v25 = vld [vmem:[%s9338_s25 + $0xc0] sm:$0xff]  ;;  %v619_v26 = vld [vmem:[%s9338_s25 + $0xc8] sm:$0xff] }
 0x14c   : > { %577 = vst.msk [vmem:[#allocation2 + $0x38] sm:$0xff] %vm548_vm0, %v8886_v0  ;;  %578 = vst.msk [vmem:[#allocation2 + $0x58] sm:$0xff] %vm548_vm0, %v8886_v0  ;;  %v620_v27 = vld [vmem:[%s9338_s25 + $0xd0] sm:$0xff]  ;;  %v621_v28 = vld [vmem:[%s9338_s25 + $0xd8] sm:$0xff] }
 0x14d   : > { %579 = vst.msk [vmem:[#allocation2 + $0x78] sm:$0xff] %vm548_vm0, %v8886_v0  ;;  %580 = vst.msk [vmem:[#allocation2 + $0x98] sm:$0xff] %vm548_vm0, %v8886_v0  ;;  %v622_v29 = vld [vmem:[%s9338_s25 + $0xe0] sm:$0xff]  ;;  %v623_v30 = vld [vmem:[%s9338_s25 + $0xe8] sm:$0xff] }
 0x14e   : > { %581 = vst.msk [vmem:[#allocation2 + $0xb8] sm:$0xff] %vm548_vm0, %v8886_v0  ;;  %582 = vst.msk [vmem:[#allocation2 + $0xd8] sm:$0xff] %vm548_vm0, %v8886_v0  ;;  %v624_v31 = vld [vmem:[%s9338_s25 + $0xf0] sm:$0xff]  ;;  %v625_v32 = vld [vmem:[%s9338_s25 + $0xf8] sm:$0xff] }
 0x14f   : > { %583 = vst.msk [vmem:[#allocation2 + $0xf8] sm:$0xff] %vm548_vm0, %v8886_v0  ;;  %584 = vst.msk [vmem:[#allocation2 + $0x118] sm:$0xff] %vm548_vm0, %v8886_v0 }
 0x150   : > { %585 = vst.msk [vmem:[#allocation2 + $0x138] sm:$0xff] %vm548_vm0, %v8886_v0  ;;  %586 = vst.msk [vmem:[#allocation2 + $0x158] sm:$0xff] %vm548_vm0, %v8886_v0 }
 0x151   : > { %587 = vst.msk [vmem:[#allocation2 + $0x178] sm:$0xff] %vm548_vm0, %v8886_v0  ;;  %588 = vst.msk [vmem:[#allocation2 + $0x198] sm:$0xff] %vm548_vm0, %v8886_v0 }
 0x152   : > { %589 = vst.msk [vmem:[#allocation2 + $0x1b8] sm:$0xff] %vm548_vm0, %v8886_v0  ;;  %590 = vst.msk [vmem:[#allocation2 + $0x1d8] sm:$0xff] %vm548_vm0, %v8886_v0 }
 0x153   : > { %591 = vst.msk [vmem:[#allocation2 + $0x1f8] sm:$0xff] %vm548_vm0, %v8886_v0  ;;  %592 = vst.msk [vmem:[#allocation2 + $0x218] sm:$0xff] %vm548_vm0, %v8886_v0 }
 0x154   : > { %558 = vst.msk [vmem:[#allocation2] sm:$0xff] %vm548_vm0, %v8886_v0  ;;  %575 = vst.msk [vmem:[#allocation2 + $0x220] sm:$0xff] %vm548_vm0, %v8886_v0 }
 0x155   : > { %576 = vst.msk [vmem:[#allocation2 + $0x18] sm:$0xff] %vm548_vm0, %v8886_v0  ;;  %593 = vst.msk [vmem:[#allocation2 + $0x238] sm:$0xff] %vm548_vm0, %v8886_v0 }
 0x156   : > { %626 = vst.msk [vmem:[#allocation3] sm:$0xff] %vm548_vm0, %v594_v1  ;;  %627 = vst.msk [vmem:[#allocation3 + $0x8] sm:$0xff] %vm548_vm0, %v595_v2 }
 0x157   : > { %628 = vst.msk [vmem:[#allocation3 + $0x10] sm:$0xff] %vm548_vm0, %v596_v3  ;;  %629 = vst.msk [vmem:[#allocation3 + $0x18] sm:$0xff] %vm548_vm0, %v597_v4 }
 0x158   : > { %630 = vst.msk [vmem:[#allocation3 + $0x20] sm:$0xff] %vm548_vm0, %v598_v5  ;;  %631 = vst.msk [vmem:[#allocation3 + $0x28] sm:$0xff] %vm548_vm0, %v599_v6 }
 0x159   : > { %632 = vst.msk [vmem:[#allocation3 + $0x30] sm:$0xff] %vm548_vm0, %v600_v7  ;;  %633 = vst.msk [vmem:[#allocation3 + $0x38] sm:$0xff] %vm548_vm0, %v601_v8 }
 0x15a   : > { %634 = vst.msk [vmem:[#allocation3 + $0x40] sm:$0xff] %vm548_vm0, %v602_v9  ;;  %635 = vst.msk [vmem:[#allocation3 + $0x48] sm:$0xff] %vm548_vm0, %v603_v10 }
 0x15b   : > { %636 = vst.msk [vmem:[#allocation3 + $0x50] sm:$0xff] %vm548_vm0, %v604_v11  ;;  %637 = vst.msk [vmem:[#allocation3 + $0x58] sm:$0xff] %vm548_vm0, %v605_v12 }
 0x15c   : > { %638 = vst.msk [vmem:[#allocation3 + $0x60] sm:$0xff] %vm548_vm0, %v606_v13  ;;  %639 = vst.msk [vmem:[#allocation3 + $0x68] sm:$0xff] %vm548_vm0, %v607_v14 }
 0x15d   : > { %640 = vst.msk [vmem:[#allocation3 + $0x70] sm:$0xff] %vm548_vm0, %v608_v15  ;;  %641 = vst.msk [vmem:[#allocation3 + $0x78] sm:$0xff] %vm548_vm0, %v609_v16 }
 0x15e   : > { %642 = vst.msk [vmem:[#allocation3 + $0x80] sm:$0xff] %vm548_vm0, %v610_v17  ;;  %643 = vst.msk [vmem:[#allocation3 + $0x88] sm:$0xff] %vm548_vm0, %v611_v18 }
 0x15f   : > { %644 = vst.msk [vmem:[#allocation3 + $0x90] sm:$0xff] %vm548_vm0, %v612_v19  ;;  %645 = vst.msk [vmem:[#allocation3 + $0x98] sm:$0xff] %vm548_vm0, %v613_v20 }
 0x160   : > { %646 = vst.msk [vmem:[#allocation3 + $0xa0] sm:$0xff] %vm548_vm0, %v614_v21  ;;  %647 = vst.msk [vmem:[#allocation3 + $0xa8] sm:$0xff] %vm548_vm0, %v615_v22 }
 0x161   : > { %648 = vst.msk [vmem:[#allocation3 + $0xb0] sm:$0xff] %vm548_vm0, %v616_v23  ;;  %649 = vst.msk [vmem:[#allocation3 + $0xb8] sm:$0xff] %vm548_vm0, %v617_v24 }
 0x162   : > { %650 = vst.msk [vmem:[#allocation3 + $0xc0] sm:$0xff] %vm548_vm0, %v618_v25  ;;  %651 = vst.msk [vmem:[#allocation3 + $0xc8] sm:$0xff] %vm548_vm0, %v619_v26 }
 0x163   : > { %652 = vst.msk [vmem:[#allocation3 + $0xd0] sm:$0xff] %vm548_vm0, %v620_v27  ;;  %653 = vst.msk [vmem:[#allocation3 + $0xd8] sm:$0xff] %vm548_vm0, %v621_v28 }
 0x164   : > { %654 = vst.msk [vmem:[#allocation3 + $0xe0] sm:$0xff] %vm548_vm0, %v622_v29  ;;  %655 = vst.msk [vmem:[#allocation3 + $0xe8] sm:$0xff] %vm548_vm0, %v623_v30 }
 0x165   : > { %656 = vst.msk [vmem:[#allocation3 + $0xf0] sm:$0xff] %vm548_vm0, %v624_v31  ;;  %657 = vst.msk [vmem:[#allocation3 + $0xf8] sm:$0xff] %vm548_vm0, %v625_v32 }
 0x166 LB: >> { %v9481_v33 = vld [vmem:[#allocation3] sm:$0xff]  ;;  %v9483_v34 = vld [vmem:[#allocation3 + $0x8] sm:$0xff]  ;;  %v9489_v35 = vld [vmem:[#allocation3 + $0x10] sm:$0xff]  ;;  %v12737_v36 = vmov 0.0|0.0   ;;  %s696_s30 = smul.u32 288, %s8869_s28  ;;  %s8888_s24 = smov 32   ;;  %s8869_s28 = sphi %s9476_s28, %s663_s28  }
 0x167   : >> { %12823 = vst [vmem:[#allocation31_spill] sm:$0xff] %v9481_v33  ;;  %12824 = vst [vmem:[#allocation32_spill] sm:$0xff] %v9483_v34  ;;  %6553 = vmatprep.subr.bf16.mxu0 %v12737_v36  ;;  %v9494_v37 = vld [vmem:[#allocation3 + $0x18] sm:$0xff]  ;;  %v9496_v38 = vld [vmem:[#allocation3 + $0x20] sm:$0xff]  ;;  %s8889_s22 = smov 96   ;;  %s8890_s14 = smov 64  }
 0x168   : >> { %737 = vst.msk [vmem:[#allocation2 + $0x28] sm:$0xff] %vm548_vm0, %v9481_v33  ;;  %738 = vst.msk [vmem:[#allocation2 + $0x30] sm:$0xff] %vm548_vm0, %v9483_v34  ;;  %v9502_v39 = vld [vmem:[#allocation3 + $0x28] sm:$0xff]  ;;  %v9504_v40 = vld [vmem:[#allocation3 + $0x30] sm:$0xff]  ;;  %s9539_s11 = scalar_lea.vmem [#allocation7], %s696_s30  ;;  %vm1589_vm1 = vcmask 523264  }
 0x169   : >> { %12825 = vst [vmem:[#allocation33_spill] sm:$0xff] %v9489_v35  ;;  %739 = vst.msk [vmem:[#allocation2 + $0x48] sm:$0xff] %vm548_vm0, %v9489_v35  ;;  %v9506_v41 = vld [vmem:[#allocation3 + $0x38] sm:$0xff]  ;;  %v805_v42 = vld [vmem:[#allocation2 + $0x8] sm:$0xff]  ;;  %vm1622_vm2 = vcmask 785408   ;;  %s10338_s27 = scalar_lea.vmem [#allocation10], %s696_s30 }
 0x16a   : >> { %12826 = vst [vmem:[#allocation34_spill] sm:$0xff] %v9494_v37  ;;  %12827 = vst [vmem:[#allocation35_spill] sm:$0xff] %v9496_v38  ;;  %v9515_v43 = vld [vmem:[#allocation3 + $0x40] sm:$0xff]  ;;  %v9517_v44 = vld [vmem:[#allocation3 + $0x48] sm:$0xff]  ;;  %s734_s29 = scalar_lea.vmem [#allocation9], %s8869_s28  ;;  %s2342_s21 = scalar_lea.vmem [#allocation12], %s8869_s28 }
 0x16b   : >> { %740 = vst.msk [vmem:[#allocation2 + $0x50] sm:$0xff] %vm548_vm0, %v9494_v37  ;;  %741 = vst.msk [vmem:[#allocation2 + $0x68] sm:$0xff] %vm548_vm0, %v9496_v38  ;;  %v9519_v45 = vld [vmem:[#allocation3 + $0x50] sm:$0xff]  ;;  %v9527_v46 = vld [vmem:[#allocation3 + $0x58] sm:$0xff]  ;;  %s6210_s30 = sshll.u32 %s8869_s28, 5  ;;  %vm8891_vm3 = vmmov 0  }
 0x16c   : >> { %12828 = vst [vmem:[#allocation36_spill] sm:$0xff] %v9502_v39  ;;  %12829 = vst [vmem:[#allocation37_spill] sm:$0xff] %v9504_v40  ;;  %v9529_v47 = vld [vmem:[#allocation3 + $0x60] sm:$0xff]  ;;  %v9531_v48 = vld [vmem:[#allocation3 + $0x68] sm:$0xff]  ;;  %vm4036_vm4 = vcmask 64512  }
 0x16d   : >> { %12830 = vst [vmem:[#allocation38_spill] sm:$0xff] %v9506_v41  ;;  %742 = vst.msk [vmem:[#allocation2 + $0x70] sm:$0xff] %vm548_vm0, %v9502_v39  ;;  %v698_v49 = vld [vmem:[%s9539_s11] sm:$0xff]  ;;  %v699_v50 = vld [vmem:[%s9539_s11 + $0x8] sm:$0xff] }
 0x16e   : >> { %743 = vst.msk [vmem:[#allocation2 + $0x88] sm:$0xff] %vm548_vm0, %v9504_v40  ;;  %744 = vst.msk [vmem:[#allocation2 + $0x90] sm:$0xff] %vm548_vm0, %v9506_v41  ;;  %v700_v51 = vld [vmem:[%s9539_s11 + $0x10] sm:$0xff]  ;;  %v6554_v53 = vpack.c.bf16 %v699_v50, %v698_v49  ;;  %v701_v54 = vld [vmem:[%s9539_s11 + $0x18] sm:$0xff] }
 0x16f   : >> { %12831 = vst [vmem:[#allocation39_spill] sm:$0xff] %v9515_v43  ;;  %12832 = vst [vmem:[#allocation40_spill] sm:$0xff] %v9517_v44  ;;  %v841_v52 = vld [vmem:[#allocation2 + $0x9] sm:$0xff]  ;;  %v9553_v61 = vld [vmem:[#allocation2 + $0x31] sm:$0xff]  ;;  %v6557_v62 = vpack.c.bf16 %v701_v54, %v700_v51 }
 0x170   : >> { %12833 = vst [vmem:[#allocation41_spill] sm:$0xff] %v9519_v45  ;;  %745 = vst.msk [vmem:[#allocation2 + $0xa8] sm:$0xff] %vm548_vm0, %v9515_v43  ;;  %v843_v55 = vld [vmem:[#allocation2 + $0x29] sm:$0xff]  ;;  %6555 = vmatpush1.bf16.msra.mxu0 %v6554_v53  ;;  %v702_v0 = vld [vmem:[%s9539_s11 + $0x20] sm:$0xff] }
 0x171   : >> { %746 = vst.msk [vmem:[#allocation2 + $0xb0] sm:$0xff] %vm548_vm0, %v9517_v44  ;;  %747 = vst.msk [vmem:[#allocation2 + $0xc8] sm:$0xff] %vm548_vm0, %v9519_v45  ;;  %v9547_v56 = vld [vmem:[#allocation2 + $0x27] sm:$0xff]  ;;  %v806_v57 = vld [vmem:[#allocation2 + $0x10] sm:$0xff]  ;;  %v6935_v58 = vpack.i.bf16 %v805_v42, %v843_v55  ;;  %6556 = vmatprep.subr.bf16.mxu0 %v12737_v36 }
 0x172   : >> { %12834 = vst [vmem:[#allocation42_spill] sm:$0xff] %v9527_v46  ;;  %12835 = vst [vmem:[#allocation43_spill] sm:$0xff] %v9529_v47  ;;  %v9549_v59 = vld [vmem:[#allocation2 + $0x48] sm:$0xff]  ;;  %v6950_v4 = vpack.i.bf16 %v806_v57, %v9553_v61  ;;  %v842_v6 = vld [vmem:[#allocation2 + $0x11] sm:$0xff] }
 0x173   : >> { %12836 = vst [vmem:[#allocation44_spill] sm:$0xff] %v9531_v48  ;;  %748 = vst.msk [vmem:[#allocation2 + $0xd0] sm:$0xff] %vm548_vm0, %v9527_v46  ;;  %v9551_v60 = vld [vmem:[#allocation2 + $0x47] sm:$0xff]  ;;  %v6945_v63 = vpack.i.bf16 %v9547_v56, %v9549_v59  ;;  %6936 = vrot.lane.b32.xlu0 %v6935_v58, %s8888_s24  ;;  %v9566_v5 = vld [vmem:[#allocation2 + $0x4f] sm:$0xff] }
 0x174   : >> { %749 = vst.msk [vmem:[#allocation2 + $0xe8] sm:$0xff] %vm548_vm0, %v9529_v47  ;;  %750 = vst.msk [vmem:[#allocation2 + $0xf0] sm:$0xff] %vm548_vm0, %v9531_v48  ;;  %v703_v1 = vld [vmem:[%s9539_s11 + $0x28] sm:$0xff]  ;;  %v6940_v2 = vpack.i.bf16 %v841_v52, %v9551_v60  ;;  %v9572_v8 = vld [vmem:[#allocation2 + $0x50] sm:$0xff]  ;;  %6558 = vmatpush1.bf16.msra.mxu0 %v6557_v62  ;;  %v6955_v10 = vpack.i.bf16 %v842_v6, %v9566_v5 }
 0x175   : >> { %v9562_v3 = vld [vmem:[#allocation2 + $0x49] sm:$0xff]  ;;  %6946 = vrot.lane.b32.xlu1 %v6945_v63, %s8889_s22  ;;  %v6560_v9 = vpack.c.bf16 %v703_v1, %v702_v0  ;;  %6559 = vmatprep.subr.bf16.mxu0 %v12737_v36  ;;  %v9594_v18 = vld [vmem:[#allocation2 + $0x51] sm:$0xff]  ;;  %v706_v24 = vld [vmem:[%s9539_s11 + $0x40] sm:$0xff] }
 0x176   : >> { %6377 = vmatprep.mubr.msk.f32.mxu1 %vm548_vm0, %v9562_v3  ;;  %v9570_v7 = vld [vmem:[#allocation2 + $0x2f] sm:$0xff]  ;;  %v9582_v13 = vld [vmem:[#allocation2 + $0x67] sm:$0xff]  ;;  %v705_v21 = vld [vmem:[%s9539_s11 + $0x38] sm:$0xff] }
 0x177   : >> { %6941 = vrot.lane.b32.xlu0 %v6940_v2, %s8890_s14  ;;  %v6960_v11 = vpack.i.bf16 %v9570_v7, %v9572_v8  ;;  %v9580_v12 = vld [vmem:[#allocation2 + $0x28] sm:$0xff]  ;;  %v6970_v15 = vpack.i.bf16 %v843_v55, %v9582_v13  ;;  %v9592_v17 = vld [vmem:[#allocation2 + $0x30] sm:$0xff]  ;;  %v9607_v26 = vld [vmem:[#allocation3 + $0x78] sm:$0xff] }
 0x178   : >> { %6561 = vmatpush1.bf16.msra.mxu0 %v6560_v9  ;;  %v6965_v14 = vpack.i.bf16 %v9580_v12, %v9562_v3  ;;  %v9590_v16 = vld [vmem:[#allocation2 + $0x68] sm:$0xff]  ;;  %v9596_v19 = vld [vmem:[#allocation3 + $0x70] sm:$0xff]  ;;  %12838 = vst [vmem:[#allocation46_spill] sm:$0xff] %v9607_v26  ;;  %v6980_v27 = vpack.i.bf16 %v9592_v17, %v9594_v18  ;;  %752 = vst.msk [vmem:[#allocation2 + $0x110] sm:$0xff] %vm548_vm0, %v9607_v26 }
 0x179   : >> { %6951 = vrot.lane.b32.xlu1 %v6950_v4, %s8888_s24  ;;  %6562 = vmatprep.subr.bf16.mxu0 %v12737_v36  ;;  %12837 = vst [vmem:[#allocation45_spill] sm:$0xff] %v9596_v19  ;;  %751 = vst.msk [vmem:[#allocation2 + $0x108] sm:$0xff] %vm548_vm0, %v9596_v19  ;;  %v704_v20 = vld [vmem:[%s9539_s11 + $0x30] sm:$0xff]  ;;  %v6975_v22 = vpack.i.bf16 %v9551_v60, %v9590_v16  ;;  %v707_v25 = vld [vmem:[%s9539_s11 + $0x48] sm:$0xff] }
 0x17a   : >> { %v6563_v23 = vpack.c.bf16 %v705_v21, %v704_v20  ;;  %v9612_v28 = vld [vmem:[#allocation2 + $0x6f] sm:$0xff]  ;;  %v9616_v29 = vld [vmem:[#allocation3 + $0x80] sm:$0xff]  ;;  %v6566_v31 = vpack.c.bf16 %v707_v25, %v706_v24  ;;  %v709_v42 = vld [vmem:[%s9539_s11 + $0x58] sm:$0xff] }
 0x17b   : >> { %6956 = vrot.lane.b32.xlu0 %v6955_v10, %s8890_s14  ;;  %12839 = vst [vmem:[#allocation47_spill] sm:$0xff] %v9616_v29  ;;  %v9618_v30 = vld [vmem:[#allocation2 + $0x70] sm:$0xff]  ;;  %753 = vst.msk [vmem:[#allocation2 + $0x128] sm:$0xff] %vm548_vm0, %v9616_v29  ;;  %v9625_v49 = vld [vmem:[#allocation3 + $0x88] sm:$0xff]  ;;  %v6985_v50 = vpack.i.bf16 %v9553_v61, %v9612_v28 }
 0x17c   : >> { %6564 = vmatpush1.bf16.msra.mxu0 %v6563_v23  ;;  %v708_v32 = vld [vmem:[%s9539_s11 + $0x50] sm:$0xff]  ;;  %12840 = vst [vmem:[#allocation48_spill] sm:$0xff] %v9625_v49  ;;  %754 = vst.msk [vmem:[#allocation2 + $0x130] sm:$0xff] %vm548_vm0, %v9625_v49  ;;  %v6990_v52 = vpack.i.bf16 %v9566_v5, %v9618_v30  ;;  %v9641_v54 = vld [vmem:[#allocation2 + $0x87] sm:$0xff] }
 0x17d   : >> { %6961 = vrot.lane.b32.xlu1 %v6960_v11, %s8889_s22  ;;  %6565 = vmatprep.subr.bf16.mxu0 %v12737_v36  ;;  %v9632_v51 = vld [vmem:[#allocation3 + $0x90] sm:$0xff]  ;;  %v6569_v55 = vpack.c.bf16 %v709_v42, %v708_v32  ;;  %v9643_v57 = vld [vmem:[#allocation3 + $0x98] sm:$0xff]  ;;  %v710_v58 = vld [vmem:[%s9539_s11 + $0x60] sm:$0xff]  ;;  %v7000_v0 = vpack.i.bf16 %v9562_v3, %v9641_v54 }
 0x17e   : >> { %12841 = vst [vmem:[#allocation49_spill] sm:$0xff] %v9632_v51  ;;  %v9637_v53 = vld [vmem:[#allocation2 + $0x69] sm:$0xff]  ;;  %755 = vst.msk [vmem:[#allocation2 + $0x148] sm:$0xff] %vm548_vm0, %v9632_v51  ;;  %v9650_v62 = vld [vmem:[#allocation3 + $0xa0] sm:$0xff] }
 0x17f   : >> { %6966 = vrot.lane.b32.xlu0 %v6965_v14, %s8888_s24  ;;  %12842 = vst [vmem:[#allocation50_spill] sm:$0xff] %v9643_v57  ;;  %v711_v61 = vld [vmem:[%s9539_s11 + $0x68] sm:$0xff]  ;;  %756 = vst.msk [vmem:[#allocation2 + $0x150] sm:$0xff] %vm548_vm0, %v9643_v57  ;;  %v6995_v63 = vpack.i.bf16 %v9549_v59, %v9637_v53  ;;  %v9662_v2 = vld [vmem:[#allocation2 + $0x71] sm:$0xff] }
 0x180   : >> { %6567 = vmatpush1.bf16.msra.mxu0 %v6566_v31  ;;  %12843 = vst [vmem:[#allocation51_spill] sm:$0xff] %v9650_v62  ;;  %757 = vst.msk [vmem:[#allocation2 + $0x168] sm:$0xff] %vm548_vm0, %v9650_v62  ;;  %v9660_v1 = vld [vmem:[#allocation2 + $0x88] sm:$0xff]  ;;  %v6572_v4 = vpack.c.bf16 %v711_v61, %v710_v58  ;;  %v712_v6 = vld [vmem:[%s9539_s11 + $0x70] sm:$0xff]  ;;  %v7010_v3 = vpack.i.bf16 %v9572_v8, %v9662_v2 }
 0x181   : >> { %6971 = vrot.lane.b32.xlu1 %v6970_v15, %s8890_s14  ;;  %6568 = vmatprep.subr.bf16.mxu0 %v12737_v36  ;;  %v713_v9 = vld [vmem:[%s9539_s11 + $0x78] sm:$0xff]  ;;  %v7005_v10 = vpack.i.bf16 %v9582_v13, %v9660_v1  ;;  %v9673_v11 = vld [vmem:[#allocation2 + $0x8f] sm:$0xff]  ;;  %v714_v21 = vld [vmem:[%s9539_s11 + $0x80] sm:$0xff] }
 0x182   : >> { %v9675_v14 = vld [vmem:[#allocation3 + $0xa8] sm:$0xff]  ;;  %v9677_v15 = vld [vmem:[#allocation2 + $0x90] sm:$0xff]  ;;  %v6575_v20 = vpack.c.bf16 %v713_v9, %v712_v6  ;;  %v7015_v23 = vpack.i.bf16 %v9594_v18, %v9673_v11  ;;  %v730_v25 = vld [vmem:[%s9539_s11 + $0x100] sm:$0xff] }
 0x183   : >> { %6976 = vrot.lane.b32.xlu0 %v6975_v22, %s8889_s22  ;;  %12844 = vst [vmem:[#allocation52_spill] sm:$0xff] %v9675_v14  ;;  %758 = vst.msk [vmem:[#allocation2 + $0x170] sm:$0xff] %vm548_vm0, %v9675_v14  ;;  %v715_v22 = vld [vmem:[%s9539_s11 + $0x88] sm:$0xff]  ;;  %v9696_v42 = vld [vmem:[#allocation3 + $0xb0] sm:$0xff] }
 0x184   : >> { %6570 = vmatpush1.bf16.msra.mxu0 %v6569_v55  ;;  %v9687_v24 = vld [vmem:[#allocation2 + $0x89] sm:$0xff]  ;;  %12845 = vst [vmem:[#allocation53_spill] sm:$0xff] %v9696_v42  ;;  %v717_v55 = vld [vmem:[%s9539_s11 + $0x98] sm:$0xff]  ;;  %759 = vst.msk [vmem:[#allocation2 + $0x188] sm:$0xff] %vm548_vm0, %v9696_v42 }
 0x185   : >> { %6981 = vrot.lane.b32.xlu1 %v6980_v27, %s8888_s24  ;;  %6571 = vmatprep.subr.bf16.mxu0 %v12737_v36  ;;  %v7020_v27 = vpack.i.bf16 %v9612_v28, %v9677_v15  ;;  %v9693_v31 = vld [vmem:[#allocation2 + $0xa7] sm:$0xff]  ;;  %v732_v61 = vld [vmem:[%s9539_s11 + $0x110] sm:$0xff]  ;;  %v7025_v6 = vpack.i.bf16 %v9590_v16, %v9687_v24 }
 0x186   : >> { %v731_v32 = vld [vmem:[%s9539_s11 + $0x108] sm:$0xff]  ;;  %v9883_v14 = vld [vmem:[#allocation2 + $0x131] sm:$0xff] }
 0x187   : >> { %6986 = vrot.lane.b32.xlu0 %v6985_v50, %s8890_s14  ;;  %v6578_v50 = vpack.c.bf16 %v715_v22, %v714_v21  ;;  %v6601_v58 = vpack.c.bf16 %v731_v32, %v730_v25  ;;  %v7030_v21 = vpack.i.bf16 %v9637_v53, %v9693_v31  ;;  %v9725_v22 = vld [vmem:[#allocation2 + $0xa8] sm:$0xff]  ;;  %v9898_v57 = vld [vmem:[#allocation2 + $0x151] sm:$0xff] }
 0x188   : >> { %6573 = vmatpush1.bf16.msra.mxu0 %v6572_v4  ;;  %v9707_v4 = vld [vmem:[#allocation3 + $0xc0] sm:$0xff]  ;;  %v9737_v32 = vld [vmem:[#allocation3 + $0xe8] sm:$0xff]  ;;  %v9914_v49 = vld [vmem:[#allocation2 + $0x110] sm:$0xff] }
 0x189   : >> { %6991 = vrot.lane.b32.xlu1 %v6990_v52, %s8889_s22  ;;  %6574 = vmatprep.subr.bf16.mxu0 %v12737_v36  ;;  %v716_v52 = vld [vmem:[%s9539_s11 + $0x90] sm:$0xff]  ;;  %12847 = vst [vmem:[#allocation55_spill] sm:$0xff] %v9707_v4  ;;  %761 = vst.msk [vmem:[#allocation2 + $0x1a8] sm:$0xff] %vm548_vm0, %v9707_v4  ;;  %v9894_v62 = vld [vmem:[#allocation2 + $0x108] sm:$0xff] }
 0x18a   : >> { %6602 = vmatprep.subr.bf16.mxu1 %v6601_v58  ;;  %v6581_v25 = vpack.c.bf16 %v717_v55, %v716_v52  ;;  %12852 = vst [vmem:[#allocation60_spill] sm:$0xff] %v9737_v32  ;;  %766 = vst.msk [vmem:[#allocation2 + $0x1f0] sm:$0xff] %vm548_vm0, %v9737_v32  ;;  %v9756_v55 = vld [vmem:[#allocation2 + $0xaf] sm:$0xff]  ;;  %v9930_v19 = vld [vmem:[#allocation2 + $0x127] sm:$0xff] }
 0x18b   : >> { %6996 = vrot.lane.b32.xlu0 %v6995_v63, %s8888_s24  ;;  %v733_v63 = vld [vmem:[%s9539_s11 + $0x118] sm:$0xff]  ;;  %6604 = vmatpush3.bf16.msra.mxu1 %v6601_v58  ;;  %v718_v58 = vld [vmem:[%s9539_s11 + $0xa0] sm:$0xff]  ;;  %v9760_v32 = vld [vmem:[#allocation2 + $0xb0] sm:$0xff]  ;;  %12861 = vst [vmem:[#allocation68_spill] sm:$0xff] %v9894_v62 }
 0x18c   : >> { %6576 = vmatpush1.bf16.msra.mxu0 %v6575_v20  ;;  %v6605_v9 = vpack.c.bf16 %v733_v63, %v732_v61  ;;  %v9720_v20 = vld [vmem:[#allocation3 + $0xd8] sm:$0xff]  ;;  %v719_v61 = vld [vmem:[%s9539_s11 + $0xa8] sm:$0xff]  ;;  %v9746_v63 = vld [vmem:[#allocation3 + $0xf0] sm:$0xff]  ;;  %12863 = vst [vmem:[#allocation70_spill] sm:$0xff] %v9914_v49 }
 0x18d   : >> { %7001 = vrot.lane.b32.xlu1 %v7000_v0, %s8890_s14  ;;  %6577 = vmatprep.subr.bf16.mxu0 %v12737_v36  ;;  %v9705_v0 = vld [vmem:[#allocation3 + $0xb8] sm:$0xff]  ;;  %12850 = vst [vmem:[#allocation58_spill] sm:$0xff] %v9720_v20  ;;  %764 = vst.msk [vmem:[#allocation2 + $0x1d0] sm:$0xff] %vm548_vm0, %v9720_v20  ;;  %v727_v20 = vld [vmem:[%s9539_s11 + $0xe8] sm:$0xff] }
 0x18e   : >> { %12846 = vst [vmem:[#allocation54_spill] sm:$0xff] %v9705_v0  ;;  %760 = vst.msk [vmem:[#allocation2 + $0x190] sm:$0xff] %vm548_vm0, %v9705_v0  ;;  %6606 = vmatprep.subr.bf16.mxu1 %v6605_v9  ;;  %v9872_v42 = vld [vmem:[#allocation2 + $0x129] sm:$0xff] }
 0x18f   : >> { %7006 = vrot.lane.b32.xlu0 %v7005_v10, %s8889_s22  ;;  %v9716_v10 = vld [vmem:[#allocation3 + $0xc8] sm:$0xff]  ;;  %12853 = vst [vmem:[#allocation61_spill] sm:$0xff] %v9746_v63  ;;  %767 = vst.msk [vmem:[#allocation2 + $0x208] sm:$0xff] %vm548_vm0, %v9746_v63  ;;  %6608 = vmatpush3.bf16.msra.mxu1 %v6605_v9  ;;  %v721_v63 = vld [vmem:[%s9539_s11 + $0xb8] sm:$0xff]  ;;  %v7045_v9 = vpack.i.bf16 %v9662_v2, %v9756_v55 }
 0x190   : >> { %12848 = vst [vmem:[#allocation56_spill] sm:$0xff] %v9716_v10  ;;  %762 = vst.msk [vmem:[#allocation2 + $0x1b0] sm:$0xff] %vm548_vm0, %v9716_v10  ;;  %6579 = vmatpush1.bf16.msra.mxu0 %v6578_v50  ;;  %v7035_v50 = vpack.i.bf16 %v9641_v54, %v9725_v22  ;;  %v9830_v10 = vld [vmem:[#allocation2 + $0xd1] sm:$0xff]  ;;  %v9903_v51 = vld [vmem:[#allocation2 + $0x169] sm:$0xff] }
 0x191   : >> { %7011 = vrot.lane.b32.xlu1 %v7010_v3, %s8888_s24  ;;  %v9718_v3 = vld [vmem:[#allocation3 + $0xd0] sm:$0xff]  ;;  %6580 = vmatprep.subr.bf16.mxu0 %v12737_v36  ;;  %v9758_v36 = vld [vmem:[#allocation3 + $0xf8] sm:$0xff]  ;;  %12864 = vst [vmem:[#allocation71_spill] sm:$0xff] %v9930_v19  ;;  %v9944_v47 = vld [vmem:[#allocation2 + $0x128] sm:$0xff] }
 0x192   : >> { %12849 = vst [vmem:[#allocation57_spill] sm:$0xff] %v9718_v3  ;;  %763 = vst.msk [vmem:[#allocation2 + $0x1c8] sm:$0xff] %vm548_vm0, %v9718_v3  ;;  %6378 = vmatmul.mubr.msk.f32.vlgmr.msra.gmra.mrb[0].mxu1 %vm548_vm0, %v9594_v18  ;;  %v723_v18 = vld [vmem:[%s9539_s11 + $0xc8] sm:$0xff]  ;;  %v9964_v44 = vld [vmem:[#allocation2 + $0x130] sm:$0xff] }
 0x193   : >> { %7016 = vrot.lane.b32.xlu0 %v7015_v23, %s8890_s14  ;;  %v9733_v23 = vld [vmem:[#allocation2 + $0x91] sm:$0xff]  ;;  %12854 = vst [vmem:[#allocation62_spill] sm:$0xff] %v9758_v36  ;;  %768 = vst.msk [vmem:[#allocation2 + $0x210] sm:$0xff] %vm548_vm0, %v9758_v36  ;;  %6380 = vmatprep.mubr.msk.f32.mxu1 %vm548_vm0, %v9637_v53  ;;  %v722_v36 = vld [vmem:[%s9539_s11 + $0xc0] sm:$0xff] }
 0x194   : >> { %v7040_v52 = vpack.i.bf16 %v9618_v30, %v9733_v23  ;;  %6582 = vmatpush1.bf16.msra.mxu0 %v6581_v25  ;;  %v7050_v25 = vpack.i.bf16 %v9673_v11, %v9760_v32  ;;  %v853_v3 = vld [vmem:[#allocation2 + $0xc9] sm:$0xff]  ;;  %12865 = vst [vmem:[#allocation72_spill] sm:$0xff] %v9944_v47  ;;  %12867 = vst [vmem:[#allocation74_spill] sm:$0xff] %v9964_v44  ;;  %v9982_v39 = vld [vmem:[#allocation2 + $0x1f1] sm:$0xff] }
 0x195   : >> { %7021 = vrot.lane.b32.xlu1 %v7020_v27, %s8889_s22  ;;  %v9735_v27 = vld [vmem:[#allocation3 + $0xe0] sm:$0xff]  ;;  %v7085_v4 = vpack.i.bf16 %v9725_v22, %v853_v3  ;;  %v9921_v26 = vld [vmem:[#allocation2 + $0x189] sm:$0xff]  ;;  %v9932_v48 = vld [vmem:[#allocation2 + $0x191] sm:$0xff] }
 0x196   : >> { %12851 = vst [vmem:[#allocation59_spill] sm:$0xff] %v9735_v27  ;;  %765 = vst.msk [vmem:[#allocation2 + $0x1e8] sm:$0xff] %vm548_vm0, %v9735_v27  ;;  %v12855_v27 = vmov 0.0|0.0   ;;  %6381 = vmatmul.mubr.msk.f32.gmra.mrb[2].mxu1 %vm548_vm0, %v9662_v2  ;;  %v725_v2 = vld [vmem:[%s9539_s11 + $0xd8] sm:$0xff]  ;;  %v9980_v40 = vld [vmem:[#allocation2 + $0x147] sm:$0xff] }
 0x197   : >> { %7026 = vrot.lane.b32.xlu0 %v7025_v6, %s8888_s24  ;;  %v6584_v6 = vpack.c.bf16 %v719_v61, %v718_v58  ;;  %6609 = vmatprep.subr.bf16.mxu1 %v12855_v27  ;;  %v9776_v58 = vld [vmem:[#allocation2 + $0xa9] sm:$0xff]  ;;  %v9948_v46 = vld [vmem:[#allocation2 + $0x1b1] sm:$0xff]  ;;  %12868 = vst [vmem:[#allocation75_spill] sm:$0xff] %v9980_v40 }
 0x198   : >> { %6583 = vmatprep.subr.bf16.mxu0 %v12855_v27  ;;  %v9780_v61 = vld [vmem:[#allocation2 + $0xc7] sm:$0xff]  ;;  %6383 = vmatprep.mubr.msk.f32.mxu1 %vm548_vm0, %v9687_v24  ;;  %v10010_v35 = vld [vmem:[#allocation2 + $0x150] sm:$0xff] }
 0x199   : >> { %7031 = vrot.lane.b32.xlu1 %v7030_v21, %s8890_s14  ;;  %v720_v21 = vld [vmem:[%s9539_s11 + $0xb0] sm:$0xff]  ;;  %6585 = vmatpush1.bf16.msra.mxu0 %v6584_v6  ;;  %v7060_v53 = vpack.i.bf16 %v9687_v24, %v9780_v61  ;;  %v9793_v6 = vld [vmem:[#allocation2 + $0xc8] sm:$0xff] }
 0x19a   : >> { %6586 = vmatprep.subr.bf16.mxu0 %v12855_v27  ;;  %6384 = vmatmul.mubr.msk.f32.gmra.mrb[4].mxu1 %vm548_vm0, %v9733_v23  ;;  %v9953_v45 = vld [vmem:[#allocation2 + $0x1c9] sm:$0xff]  ;;  %v9998_v37 = vld [vmem:[#allocation2 + $0x211] sm:$0xff] }
 0x19b   : >> { %7036 = vrot.lane.b32.xlu0 %v7035_v50, %s8889_s22  ;;  %v6587_v50 = vpack.c.bf16 %v721_v63, %v720_v21  ;;  %v9797_v63 = vld [vmem:[#allocation2 + $0xb1] sm:$0xff]  ;;  %v6590_v21 = vpack.c.bf16 %v723_v18, %v722_v36  ;;  %6386 = vmatprep.mubr.msk.f32.mxu1 %vm548_vm0, %v9776_v58  ;;  %v9994_v38 = vld [vmem:[#allocation2 + $0x148] sm:$0xff] }
 0x19c   : >> { %v7070_v24 = vpack.i.bf16 %v9677_v15, %v9797_v63  ;;  %v9814_v36 = vld [vmem:[#allocation2 + $0xd0] sm:$0xff]  ;;  %12869 = vst [vmem:[#allocation76_spill] sm:$0xff] %v9994_v38  ;;  %v791_v33 = vld [vmem:[#allocation2 + $0x167] sm:$0xff] }
 0x19d   : >> { %7041 = vrot.lane.b32.xlu1 %v7040_v52, %s8888_s24  ;;  %v7055_v52 = vpack.i.bf16 %v9660_v1, %v9776_v58  ;;  %6588 = vmatpush1.bf16.msra.mxu0 %v6587_v50  ;;  %v9810_v50 = vld [vmem:[#allocation2 + $0xcf] sm:$0xff] }
 0x19e   : >> { %6589 = vmatprep.subr.bf16.mxu0 %v12855_v27  ;;  %12856 = vst [vmem:[#allocation63_spill] sm:$0xff] %v9810_v50  ;;  %6387 = vmatmul.mubr.msk.f32.gmra.mrb[6].mxu1 %vm548_vm0, %v9797_v63  ;;  %v9971_v41 = vld [vmem:[#allocation2 + $0x1e9] sm:$0xff] }
 0x19f   : >> { %7046 = vrot.lane.b32.xlu0 %v7045_v9, %s8890_s14  ;;  %v724_v9 = vld [vmem:[%s9539_s11 + $0xd0] sm:$0xff]  ;;  %6389 = vmatprep.mubr.msk.f32.mxu1 %vm548_vm0, %v853_v3 }
 0x1a0   : >> { %v6593_v18 = vpack.c.bf16 %v725_v2, %v724_v9  ;;  %v9828_v9 = vld [vmem:[#allocation2 + $0xe7] sm:$0xff] }
 0x1a1   : >> { %7051 = vrot.lane.b32.xlu1 %v7050_v25, %s8889_s22  ;;  %v7065_v25 = vpack.i.bf16 %v9693_v31, %v9793_v6  ;;  %6591 = vmatpush1.bf16.msra.mxu0 %v6590_v21  ;;  %v7080_v21 = vpack.i.bf16 %v9756_v55, %v9814_v36  ;;  %12857 = vst [vmem:[#allocation64_spill] sm:$0xff] %v9828_v9 }
 0x1a2   : >> { %6592 = vmatprep.subr.bf16.mxu0 %v12855_v27  ;;  %6390 = vmatmul.mubr.msk.f32.gmra.mrb[8].mxu1 %vm548_vm0, %v9830_v10 }
 0x1a3   : >> { %7056 = vrot.lane.b32.xlu0 %v7055_v52, %s8888_s24  ;;  %v726_v52 = vld [vmem:[%s9539_s11 + $0xe0] sm:$0xff] }
 0x1a4   : >> { %v6596_v2 = vpack.c.bf16 %v727_v20, %v726_v52  ;;  %v7090_v20 = vpack.i.bf16 %v9776_v58, %v9828_v9  ;;  %v7100_v58 = vpack.i.bf16 %v9760_v32, %v9830_v10 }
 0x1a5   : >> { %7061 = vrot.lane.b32.xlu1 %v7060_v53, %s8890_s14  ;;  %v7075_v53 = vpack.i.bf16 %v9733_v23, %v9810_v50  ;;  %6594 = vmatpush1.bf16.msra.mxu0 %v6593_v18  ;;  %v728_v23 = vld [vmem:[%s9539_s11 + $0xf0] sm:$0xff]  ;;  %v9844_v18 = vld [vmem:[#allocation2 + $0xe8] sm:$0xff] }
 0x1a6   : >> { %6595 = vmatprep.subr.bf16.mxu0 %v12855_v27  ;;  %v7095_v0 = vpack.i.bf16 %v9780_v61, %v9844_v18 }
 0x1a7   : >> { %7066 = vrot.lane.b32.xlu0 %v7065_v25, %s8889_s22  ;;  %v729_v25 = vld [vmem:[%s9539_s11 + $0xf8] sm:$0xff]  ;;  %s3950_s11 = scalar_lea.vmem [#allocation13], %s6210_s30 }
 0x1a8   : >> { %v6599_v52 = vpack.c.bf16 %v729_v25, %v728_v23  ;;  %v9865_v23 = vld [vmem:[#allocation2 + $0xf0] sm:$0xff] }
 0x1a9   : >> { %7071 = vrot.lane.b32.xlu1 %v7070_v24, %s8888_s24  ;;  %v9837_v24 = vld [vmem:[#allocation2 + $0xe9] sm:$0xff]  ;;  %6597 = vmatpush1.bf16.msra.mxu0 %v6596_v2  ;;  %12859 = vst [vmem:[#allocation66_spill] sm:$0xff] %v9865_v23 }
 0x1aa   : >> { %6392 = vmatprep.mubr.msk.f32.mxu1 %vm548_vm0, %v9837_v24  ;;  %6598 = vmatprep.subr.bf16.mxu0 %v12855_v27  ;;  %v9861_v2 = vld [vmem:[#allocation2 + $0xef] sm:$0xff]  ;;  %v7210_v27 = vpack.i.bf16 %v9872_v42, %v791_v33 }
 0x1ab   : >> { %7076 = vrot.lane.b32.xlu0 %v7075_v53, %s8890_s14  ;;  %v9848_v53 = vld [vmem:[#allocation2 + $0xf1] sm:$0xff]  ;;  %12858 = vst [vmem:[#allocation65_spill] sm:$0xff] %v9861_v2  ;;  %v7105_v25 = vpack.i.bf16 %v9797_v63, %v9861_v2  ;;  %v9888_v63 = vld [vmem:[#allocation2 + $0x149] sm:$0xff] }
 0x1ac   : >> { %6393 = vmatmul.mubr.msk.f32.gmra.mrb[10].mxu1 %vm548_vm0, %v9848_v53 }
 0x1ad   : >> { %7081 = vrot.lane.b32.xlu1 %v7080_v21, %s8889_s22  ;;  %v9854_v21 = vld [vmem:[#allocation2 + $0x109] sm:$0xff]  ;;  %6600 = vmatpush1.bf16.msra.mxu0 %v6599_v52 }
 0x1ae   : >> { %6395 = vmatprep.mubr.msk.f32.mxu1 %vm548_vm0, %v9854_v21  ;;  %v9881_v52 = vld [vmem:[#allocation2 + $0x107] sm:$0xff] }
 0x1af   : >> { %7086 = vrot.lane.b32.xlu0 %v7085_v4, %s8888_s24  ;;  %v9867_v4 = vld [vmem:[#allocation2 + $0x111] sm:$0xff]  ;;  %12860 = vst [vmem:[#allocation67_spill] sm:$0xff] %v9881_v52 }
 0x1b0   : >> { %6396 = vmatmul.mubr.msk.f32.gmra.mrb[12].mxu1 %vm548_vm0, %v9867_v4 }
 0x1b1   : >> { %7091 = vrot.lane.b32.xlu1 %v7090_v20, %s8890_s14  ;;  %v7110_v20 = vpack.i.bf16 %v9810_v50, %v9865_v23  ;;  %6398 = vmatprep.mubr.msk.f32.mxu1 %vm548_vm0, %v9872_v42 }
 0x1b3   : >> { %7096 = vrot.lane.b32.xlu0 %v7095_v0, %s8889_s22  ;;  %v7115_v0 = vpack.i.bf16 %v9793_v6, %v9837_v24 }
 0x1b4   : >> { %6399 = vmatmul.mubr.msk.f32.gmra.mrb[14].mxu1 %vm548_vm0, %v9883_v14 }
 0x1b5   : >> { %7101 = vrot.lane.b32.xlu1 %v7100_v58, %s8888_s24  ;;  %v7120_v58 = vpack.i.bf16 %v853_v3, %v9881_v52  ;;  %6401 = vmatprep.mubr.msk.f32.mxu1 %vm548_vm0, %v9888_v63  ;;  %v7130_v3 = vpack.i.bf16 %v9814_v36, %v9848_v53 }
 0x1b7   : >> { %7106 = vrot.lane.b32.xlu0 %v7105_v25, %s8890_s14  ;;  %v7125_v25 = vpack.i.bf16 %v9828_v9, %v9894_v62 }
 0x1b8   : >> { %6402 = vmatmul.mubr.msk.f32.gmra.mrb[16].mxu1 %vm548_vm0, %v9898_v57 }
 0x1b9   : >> { %7111 = vrot.lane.b32.xlu1 %v7110_v20, %s8889_s22  ;;  %v9910_v20 = vld [vmem:[#allocation2 + $0x10f] sm:$0xff]  ;;  %6404 = vmatprep.mubr.msk.f32.mxu1 %vm548_vm0, %v9903_v51 }
 0x1ba   : >> { %12862 = vst [vmem:[#allocation69_spill] sm:$0xff] %v9910_v20  ;;  %v7135_v29 = vpack.i.bf16 %v9830_v10, %v9910_v20  ;;  %v7145_v10 = vpack.i.bf16 %v9844_v18, %v9854_v21 }
 0x1bb   : >> { %7116 = vrot.lane.b32.xlu0 %v7115_v0, %s8888_s24  ;;  %v9916_v0 = vld [vmem:[#allocation2 + $0x171] sm:$0xff] }
 0x1bc   : >> { %6405 = vmatmul.mubr.msk.f32.gmra.mrb[18].mxu1 %vm548_vm0, %v9916_v0 }
 0x1bd   : >> { %7121 = vrot.lane.b32.xlu1 %v7120_v58, %s8890_s14  ;;  %v7140_v58 = vpack.i.bf16 %v9861_v2, %v9914_v49  ;;  %6407 = vmatprep.mubr.msk.f32.mxu1 %vm548_vm0, %v9921_v26 }
 0x1bf   : >> { %7126 = vrot.lane.b32.xlu0 %v7125_v25, %s8889_s22  ;;  %v9937_v25 = vld [vmem:[#allocation2 + $0x1a9] sm:$0xff] }
 0x1c0   : >> { %6408 = vmatmul.mubr.msk.f32.gmra.mrb[20].mxu1 %vm548_vm0, %v9932_v48 }
 0x1c1   : >> { %7131 = vrot.lane.b32.xlu1 %v7130_v3, %s8888_s24  ;;  %v7150_v3 = vpack.i.bf16 %v9837_v24, %v9930_v19  ;;  %6410 = vmatprep.mubr.msk.f32.mxu1 %vm548_vm0, %v9937_v25  ;;  %v7160_v24 = vpack.i.bf16 %v9865_v23, %v9867_v4  ;;  %v770_v23 = vld [vmem:[#allocation2 + $0xf] sm:$0xff] }
 0x1c3   : >> { %7136 = vrot.lane.b32.xlu0 %v7135_v29, %s8890_s14  ;;  %v7155_v29 = vpack.i.bf16 %v9881_v52, %v9944_v47 }
 0x1c4   : >> { %6411 = vmatmul.mubr.msk.f32.gmra.mrb[22].mxu1 %vm548_vm0, %v9948_v46 }
 0x1c5   : >> { %7141 = vrot.lane.b32.xlu1 %v7140_v58, %s8889_s22  ;;  %v9960_v58 = vld [vmem:[#allocation2 + $0x12f] sm:$0xff]  ;;  %6413 = vmatprep.mubr.msk.f32.mxu1 %vm548_vm0, %v9953_v45 }
 0x1c6   : >> { %12866 = vst [vmem:[#allocation73_spill] sm:$0xff] %v9960_v58  ;;  %v7165_v43 = vpack.i.bf16 %v9848_v53, %v9960_v58  ;;  %v7175_v53 = vpack.i.bf16 %v9894_v62, %v9872_v42  ;;  %v7200_v34 = vpack.i.bf16 %v9960_v58, %v10010_v35  ;;  %v10043_v58 = vld [vmem:[#allocation2 + $0x188] sm:$0xff] }
 0x1c7   : >> { %7146 = vrot.lane.b32.xlu0 %v7145_v10, %s8888_s24  ;;  %v9966_v10 = vld [vmem:[#allocation2 + $0x1d1] sm:$0xff] }
 0x1c8   : >> { %6414 = vmatmul.mubr.msk.f32.gmra.mrb[24].mxu1 %vm548_vm0, %v9966_v10 }
 0x1c9   : >> { %7151 = vrot.lane.b32.xlu1 %v7150_v3, %s8890_s14  ;;  %v7170_v3 = vpack.i.bf16 %v9910_v20, %v9964_v44  ;;  %6416 = vmatprep.mubr.msk.f32.mxu1 %vm548_vm0, %v9971_v41 }
 0x1cb   : >> { %7156 = vrot.lane.b32.xlu0 %v7155_v29, %s8889_s22  ;;  %v9987_v29 = vld [vmem:[#allocation2 + $0x209] sm:$0xff] }
 0x1cc   : >> { %6417 = vmatmul.mubr.msk.f32.gmra.mrb[26].mxu1 %vm548_vm0, %v9982_v39 }
 0x1cd   : >> { %7161 = vrot.lane.b32.xlu1 %v7160_v24, %s8888_s24  ;;  %v7180_v24 = vpack.i.bf16 %v9854_v21, %v9980_v40  ;;  %6419 = vmatprep.mubr.msk.f32.mxu1 %vm548_vm0, %v9987_v29  ;;  %v7190_v21 = vpack.i.bf16 %v9914_v49, %v9883_v14 }
 0x1cf   : >> { %7166 = vrot.lane.b32.xlu0 %v7165_v43, %s8890_s14  ;;  %v7185_v43 = vpack.i.bf16 %v9930_v19, %v9994_v38  ;;  %v10023_v19 = vld [vmem:[#allocation2 + $0x168] sm:$0xff] }
 0x1d0   : >> { %6420 = vmatmul.mubr.msk.f32.gmra.mrb[28].mxu1 %vm548_vm0, %v9998_v37 }
 0x1d1   : >> { %7171 = vrot.lane.b32.xlu1 %v7170_v3, %s8889_s22  ;;  %v10008_v3 = vld [vmem:[#allocation2 + $0x14f] sm:$0xff] }
 0x1d2   : >> { %12870 = vst [vmem:[#allocation77_spill] sm:$0xff] %v10008_v3 }
 0x1d3   : >> { %7176 = vrot.lane.b32.xlu0 %v7175_v53, %s8888_s24  ;;  %v7195_v53 = vpack.i.bf16 %v9867_v4, %v10008_v3  ;;  %v7215_v4 = vpack.i.bf16 %v9980_v40, %v10023_v19  ;;  %v10041_v40 = vld [vmem:[#allocation2 + $0x187] sm:$0xff] }
 0x1d5   : >> { %7181 = vrot.lane.b32.xlu1 %v7180_v24, %s8890_s14  ;;  %v7205_v24 = vpack.i.bf16 %v9944_v47, %v9888_v63  ;;  %v769_v47 = vld [vmem:[#allocation2 + $0x7] sm:$0xff] }
 0x1d7   : >> { %7186 = vrot.lane.b32.xlu0 %v7185_v43, %s8889_s22  ;;  %v7220_v43 = vpack.i.bf16 %v9964_v44, %v9898_v57 }
 0x1d9   : >> { %7191 = vrot.lane.b32.xlu1 %v7190_v21, %s8888_s24  ;;  %v10031_v21 = vld [vmem:[#allocation2 + $0x16f] sm:$0xff] }
 0x1db   : >> { %7196 = vrot.lane.b32.xlu0 %v7195_v53, %s8890_s14  ;;  %v10033_v53 = vld [vmem:[#allocation2 + $0x170] sm:$0xff] }
 0x1dc   : >> { %v7230_v42 = vpack.i.bf16 %v10008_v3, %v10033_v53  ;;  %v7245_v3 = vpack.i.bf16 %v791_v33, %v10043_v58 }
 0x1dd   : >> { %7201 = vrot.lane.b32.xlu1 %v7200_v34, %s8889_s22  ;;  %v7225_v34 = vpack.i.bf16 %v9883_v14, %v10031_v21  ;;  %v7240_v14 = vpack.i.bf16 %v9888_v63, %v10041_v40  ;;  %v10056_v63 = vld [vmem:[#allocation2 + $0x18f] sm:$0xff] }
 0x1df   : >> { %7206 = vrot.lane.b32.xlu0 %v7205_v24, %s8888_s24 }
 0x1e1   : >> { %7211 = vrot.lane.b32.xlu1 %v7210_v27, %s8890_s14 }
 0x1e3   : >> { %7216 = vrot.lane.b32.xlu0 %v7215_v4, %s8889_s22  ;;  %v7235_v4 = vpack.i.bf16 %v9994_v38, %v9903_v51 }
 0x1e5   : >> { %7221 = vrot.lane.b32.xlu1 %v7220_v43, %s8888_s24  ;;  %v6937_v24 = vpop.permute.xlu0 %6936 }
 0x1e6   : >> { %v6939_v44 = vunpack.i.h.bf16 %v6937_v24  ;;  %v6938_v20 = vunpack.i.l.bf16 %v6937_v24 }
 0x1e7   : >> { %v6947_v27 = vpop.permute.xlu1 %6946  ;;  %7226 = vrot.lane.b32.xlu0 %v7225_v34, %s8890_s14 }
 0x1e8   : >> { %v6949_v52 = vunpack.i.h.bf16 %v6947_v27  ;;  %v6948_v49 = vunpack.i.l.bf16 %v6947_v27  ;;  %v1557_v34 = vsel %vm548_vm0, %v769_v47, %v6939_v44 }
 0x1e9   : >> { %7231 = vrot.lane.b32.xlu1 %v7230_v42, %s8889_s22  ;;  %v6942_v43 = vpop.permute.xlu0 %6941  ;;  %v1655_v42 = vsel %vm548_vm0, %v9580_v12, %v6938_v20 }
 0x1ea   : >> { %v6944_v2 = vunpack.i.h.bf16 %v6942_v43  ;;  %v6943_v24 = vunpack.i.l.bf16 %v6942_v43  ;;  %v7250_v43 = vpack.i.bf16 %v10010_v35, %v9916_v0 }
 0x1eb   : >> { %v6952_v62 = vpop.permute.xlu1 %6951  ;;  %7236 = vrot.lane.b32.xlu0 %v7235_v4, %s8888_s24  ;;  %v10065_v4 = vld [vmem:[#allocation2 + $0x190] sm:$0xff] }
 0x1ec   : >> { %v6954_v9 = vunpack.i.h.bf16 %v6952_v62  ;;  %v6953_v38 = vunpack.i.l.bf16 %v6952_v62  ;;  %v1687_v33 = vsel %vm1589_vm1, %v1655_v42, %v6943_v24  ;;  %v1590_v27 = vsel %vm1589_vm1, %v1557_v34, %v6944_v2 }
 0x1ed   : >> { %7241 = vrot.lane.b32.xlu1 %v7240_v14, %s8890_s14  ;;  %v6957_v44 = vpop.permute.xlu0 %6956  ;;  %v1719_v47 = vsel %vm1622_vm2, %v1687_v33, %v6948_v49  ;;  %v1623_v62 = vsel %vm1622_vm2, %v1590_v27, %v6949_v52  ;;  %v7255_v14 = vpack.i.bf16 %v9898_v57, %v10056_v63  ;;  %v7260_v33 = vpack.i.bf16 %v10031_v21, %v10065_v4  ;;  %v10085_v21 = vld [vmem:[#allocation2 + $0x1a8] sm:$0xff] }
 0x1ee   : >> { %v6959_v12 = vunpack.i.h.bf16 %v6957_v44  ;;  %v6958_v20 = vunpack.i.l.bf16 %v6957_v44  ;;  %1887 = vmatprep.mubr.f32.mxu0 %v1719_v47  ;;  %v1558_v24 = vsel %vm548_vm0, %v770_v23, %v6954_v9  ;;  %v1656_v2 = vsel %vm548_vm0, %v9592_v17, %v6953_v38  ;;  %v10080_v38 = vld [vmem:[#allocation2 + $0x1a7] sm:$0xff] }
 0x1ef   : >> { %v6962_v50 = vpop.permute.xlu1 %6961  ;;  %7246 = vrot.lane.b32.xlu0 %v7245_v3, %s8889_s22  ;;  %1888 = vmatmul.mubr.f32.vlgmr.msra.gmra.mrb[0].mxu0 %v1623_v62  ;;  %v7265_v44 = vpack.i.bf16 %v10023_v19, %v9921_v26 }
 0x1f0   : >> { %v6964_v34 = vunpack.i.h.bf16 %v6962_v50  ;;  %v6963_v42 = vunpack.i.l.bf16 %v6962_v50  ;;  %v1688_v49 = vsel %vm1589_vm1, %v1656_v2, %v6958_v20  ;;  %v1591_v52 = vsel %vm1589_vm1, %v1558_v24, %v6959_v12 }
 0x1f1   : >> { %7251 = vrot.lane.b32.xlu1 %v7250_v43, %s8888_s24  ;;  %v6967_v57 = vpop.permute.xlu0 %6966  ;;  %v7270_v12 = vpack.i.bf16 %v9903_v51, %v10080_v38 }
 0x1f2   : >> { %v1720_v9 = vsel %vm1622_vm2, %v1688_v49, %v6963_v42  ;;  %v1624_v23 = vsel %vm1622_vm2, %v1591_v52, %v6964_v34  ;;  %v6969_v17 = vunpack.i.h.bf16 %v6967_v57  ;;  %v6968_v50 = vunpack.i.l.bf16 %v6967_v57  ;;  %v10099_v52 = vld [vmem:[#allocation2 + $0x1af] sm:$0xff] }
 0x1f3   : >> { %v6972_v3 = vpop.permute.xlu1 %6971  ;;  %1892 = vmatprep.mubr.f32.mxu0 %v1720_v9  ;;  %7256 = vrot.lane.b32.xlu0 %v7255_v14, %s8890_s14  ;;  %v7275_v34 = vpack.i.bf16 %v10041_v40, %v10085_v21  ;;  %v7280_v57 = vpack.i.bf16 %v10033_v53, %v9932_v48  ;;  %v10106_v9 = vld [vmem:[#allocation2 + $0x1b0] sm:$0xff] }
 0x1f4   : >> { %v6974_v27 = vunpack.i.h.bf16 %v6972_v3  ;;  %v6973_v43 = vunpack.i.l.bf16 %v6972_v3  ;;  %1893 = vmatmul.mubr.f32.gmra.mrb[2].mxu0 %v1624_v23  ;;  %v1559_v47 = vsel %vm548_vm0, %v9547_v56, %v6969_v17  ;;  %v1657_v62 = vsel %vm548_vm0, %v9549_v59, %v6968_v50 }
 0x1f5   : >> { %7261 = vrot.lane.b32.xlu1 %v7260_v33, %s8889_s22  ;;  %v6977_v20 = vpop.permute.xlu0 %6976  ;;  %v7285_v3 = vpack.i.bf16 %v9916_v0, %v10099_v52 }
 0x1f6   : >> { %v6979_v24 = vunpack.i.h.bf16 %v6977_v20  ;;  %v6978_v14 = vunpack.i.l.bf16 %v6977_v20  ;;  %v1689_v56 = vsel %vm1589_vm1, %v1657_v62, %v6973_v43  ;;  %v1592_v59 = vsel %vm1589_vm1, %v1559_v47, %v6974_v27 }
 0x1f7   : >> { %v6982_v2 = vpop.permute.xlu1 %6981  ;;  %7266 = vrot.lane.b32.xlu0 %v7265_v44, %s8888_s24  ;;  %v7290_v20 = vpack.i.bf16 %v10056_v63, %v10106_v9  ;;  %v10127_v63 = vld [vmem:[#allocation2 + $0x1c8] sm:$0xff] }
 0x1f8   : >> { %v6984_v42 = vunpack.i.h.bf16 %v6982_v2  ;;  %v6983_v49 = vunpack.i.l.bf16 %v6982_v2  ;;  %v1721_v51 = vsel %vm1622_vm2, %v1689_v56, %v6978_v14  ;;  %v1625_v33 = vsel %vm1622_vm2, %v1592_v59, %v6979_v24  ;;  %v10122_v14 = vld [vmem:[#allocation2 + $0x1c7] sm:$0xff] }
 0x1f9   : >> { %7271 = vrot.lane.b32.xlu1 %v7270_v12, %s8890_s14  ;;  %v6987_v40 = vpop.permute.xlu0 %6986  ;;  %1897 = vmatprep.mubr.f32.mxu0 %v1721_v51  ;;  %v7295_v56 = vpack.i.bf16 %v10043_v58, %v9937_v25 }
 0x1fa   : >> { %v6989_v23 = vunpack.i.h.bf16 %v6987_v40  ;;  %v6988_v17 = vunpack.i.l.bf16 %v6987_v40  ;;  %1898 = vmatmul.mubr.f32.gmra.mrb[4].mxu0 %v1625_v33  ;;  %v1560_v27 = vsel %vm548_vm0, %v9570_v7, %v6984_v42  ;;  %v1658_v43 = vsel %vm548_vm0, %v9572_v8, %v6983_v49 }
 0x1fb   : >> { %v6992_v50 = vpop.permute.xlu1 %6991  ;;  %7276 = vrot.lane.b32.xlu0 %v7275_v34, %s8889_s22  ;;  %v7300_v33 = vpack.i.bf16 %v9921_v26, %v10122_v14 }
 0x1fc   : >> { %v6994_v44 = vunpack.i.h.bf16 %v6992_v50  ;;  %v6993_v47 = vunpack.i.l.bf16 %v6992_v50  ;;  %v1690_v62 = vsel %vm1589_vm1, %v1658_v43, %v6988_v17  ;;  %v1593_v12 = vsel %vm1589_vm1, %v1560_v27, %v6989_v23  ;;  %v10141_v43 = vld [vmem:[#allocation2 + $0x1cf] sm:$0xff] }
 0x1fd   : >> { %7281 = vrot.lane.b32.xlu1 %v7280_v57, %s8888_s24  ;;  %v6997_v0 = vpop.permute.xlu0 %6996  ;;  %v7305_v50 = vpack.i.bf16 %v10080_v38, %v10127_v63 }
 0x1fe   : >> { %v1722_v24 = vsel %vm1622_vm2, %v1690_v62, %v6993_v47  ;;  %v1626_v7 = vsel %vm1622_vm2, %v1593_v12, %v6994_v44  ;;  %v6999_v8 = vunpack.i.h.bf16 %v6997_v0  ;;  %v6998_v2 = vunpack.i.l.bf16 %v6997_v0  ;;  %v10148_v62 = vld [vmem:[#allocation2 + $0x1d0] sm:$0xff] }
 0x1ff   : >> { %v7002_v42 = vpop.permute.xlu1 %7001  ;;  %1902 = vmatprep.mubr.f32.mxu0 %v1722_v24  ;;  %7286 = vrot.lane.b32.xlu0 %v7285_v3, %s8890_s14  ;;  %v7310_v47 = vpack.i.bf16 %v10065_v4, %v9948_v46  ;;  %v7315_v24 = vpack.i.bf16 %v9932_v48, %v10141_v43 }
 0x200   : >> { %v7004_v34 = vunpack.i.h.bf16 %v7002_v42  ;;  %v7003_v49 = vunpack.i.l.bf16 %v7002_v42  ;;  %1903 = vmatmul.mubr.f32.gmra.mrb[6].mxu0 %v1626_v7  ;;  %v1561_v59 = vsel %vm548_vm0, %v9551_v60, %v6999_v8  ;;  %v1659_v51 = vsel %vm548_vm0, %v9590_v16, %v6998_v2 }
 0x201   : >> { %7291 = vrot.lane.b32.xlu1 %v7290_v20, %s8889_s22  ;;  %v7007_v57 = vpop.permute.xlu0 %7006 }
 0x202   : >> { %v7009_v40 = vunpack.i.h.bf16 %v7007_v57  ;;  %v7008_v23 = vunpack.i.l.bf16 %v7007_v57  ;;  %v1691_v60 = vsel %vm1589_vm1, %v1659_v51, %v7003_v49  ;;  %v1594_v16 = vsel %vm1589_vm1, %v1561_v59, %v7004_v34  ;;  %v10164_v51 = vld [vmem:[#allocation2 + $0x1e7] sm:$0xff] }
 0x203   : >> { %v7012_v17 = vpop.permute.xlu1 %7011  ;;  %7296 = vrot.lane.b32.xlu0 %v7295_v56, %s8888_s24  ;;  %v7320_v56 = vpack.i.bf16 %v10099_v52, %v10148_v62  ;;  %v10169_v52 = vld [vmem:[#allocation2 + $0x1e8] sm:$0xff] }
 0x204   : >> { %v7014_v3 = vunpack.i.h.bf16 %v7012_v17  ;;  %v7013_v27 = vunpack.i.l.bf16 %v7012_v17  ;;  %v1723_v26 = vsel %vm1622_vm2, %v1691_v60, %v7008_v23  ;;  %v1627_v44 = vsel %vm1622_vm2, %v1594_v16, %v7009_v40 }
 0x205   : >> { %7301 = vrot.lane.b32.xlu1 %v7300_v33, %s8890_s14  ;;  %v7017_v38 = vpop.permute.xlu0 %7016  ;;  %1907 = vmatprep.mubr.f32.mxu0 %v1723_v26  ;;  %v7325_v17 = vpack.i.bf16 %v10085_v21, %v9953_v45 }
 0x206   : >> { %v7019_v12 = vunpack.i.h.bf16 %v7017_v38  ;;  %v7018_v20 = vunpack.i.l.bf16 %v7017_v38  ;;  %1908 = vmatmul.mubr.f32.gmra.mrb[8].mxu0 %v1627_v44  ;;  %v1562_v7 = vsel %vm548_vm0, %v9566_v5, %v7014_v3  ;;  %v1660_v8 = vsel %vm548_vm0, %v9618_v30, %v7013_v27 }
 0x207   : >> { %v7022_v0 = vpop.permute.xlu1 %7021  ;;  %7306 = vrot.lane.b32.xlu0 %v7305_v50, %s8889_s22  ;;  %v7330_v27 = vpack.i.bf16 %v9937_v25, %v10164_v51 }
 0x208   : >> { %v7024_v2 = vunpack.i.h.bf16 %v7022_v0  ;;  %v7023_v42 = vunpack.i.l.bf16 %v7022_v0  ;;  %v1692_v34 = vsel %vm1589_vm1, %v1660_v8, %v7018_v20  ;;  %v1595_v49 = vsel %vm1589_vm1, %v1562_v7, %v7019_v12  ;;  %v10183_v20 = vld [vmem:[#allocation2 + $0x1ef] sm:$0xff] }
 0x209   : >> { %7311 = vrot.lane.b32.xlu1 %v7310_v47, %s8888_s24  ;;  %v7027_v48 = vpop.permute.xlu0 %7026  ;;  %v7335_v47 = vpack.i.bf16 %v10122_v14, %v10169_v52  ;;  %v10190_v8 = vld [vmem:[#allocation2 + $0x1f0] sm:$0xff] }
 0x20a   : >> { %v1724_v59 = vsel %vm1622_vm2, %v1692_v34, %v7023_v42  ;;  %v1628_v5 = vsel %vm1622_vm2, %v1595_v49, %v7024_v2  ;;  %v7029_v30 = vunpack.i.h.bf16 %v7027_v48  ;;  %v7028_v33 = vunpack.i.l.bf16 %v7027_v48 }
 0x20b   : >> { %v7032_v57 = vpop.permute.xlu1 %7031  ;;  %1912 = vmatprep.mubr.f32.mxu0 %v1724_v59  ;;  %7316 = vrot.lane.b32.xlu0 %v7315_v24, %s8890_s14  ;;  %v7340_v24 = vpack.i.bf16 %v10106_v9, %v9966_v10  ;;  %v7345_v49 = vpack.i.bf16 %v9948_v46, %v10183_v20 }
 0x20c   : >> { %v7034_v40 = vunpack.i.h.bf16 %v7032_v57  ;;  %v7033_v23 = vunpack.i.l.bf16 %v7032_v57  ;;  %1913 = vmatmul.mubr.f32.gmra.mrb[10].mxu0 %v1628_v5  ;;  %v1563_v50 = vsel %vm548_vm0, %v9582_v13, %v7029_v30  ;;  %v1661_v3 = vsel %vm548_vm0, %v9660_v1, %v7028_v33 }
 0x20d   : >> { %7321 = vrot.lane.b32.xlu1 %v7320_v56, %s8889_s22  ;;  %v7037_v60 = vpop.permute.xlu0 %7036  ;;  %v7350_v57 = vpack.i.bf16 %v10141_v43, %v10190_v8 }
 0x20e   : >> { %v7039_v16 = vunpack.i.h.bf16 %v7037_v60  ;;  %v7038_v26 = vunpack.i.l.bf16 %v7037_v60  ;;  %v1693_v13 = vsel %vm1589_vm1, %v1661_v3, %v7033_v23  ;;  %v1596_v1 = vsel %vm1589_vm1, %v1563_v50, %v7034_v40  ;;  %v10206_v23 = vld [vmem:[#allocation2 + $0x207] sm:$0xff] }
 0x20f   : >> { %v7042_v44 = vpop.permute.xlu1 %7041  ;;  %7326 = vrot.lane.b32.xlu0 %v7325_v17, %s8888_s24  ;;  %v7355_v60 = vpack.i.bf16 %v10127_v63, %v9971_v41 }
 0x210   : >> { %v7044_v38 = vunpack.i.h.bf16 %v7042_v44  ;;  %v7043_v12 = vunpack.i.l.bf16 %v7042_v44  ;;  %v1725_v25 = vsel %vm1622_vm2, %v1693_v13, %v7038_v26  ;;  %v1629_v0 = vsel %vm1622_vm2, %v1596_v1, %v7039_v16  ;;  %v10211_v16 = vld [vmem:[#allocation2 + $0x208] sm:$0xff] }
 0x211   : >> { %7331 = vrot.lane.b32.xlu1 %v7330_v27, %s8890_s14  ;;  %v7047_v7 = vpop.permute.xlu0 %7046  ;;  %1917 = vmatprep.mubr.f32.mxu0 %v1725_v25  ;;  %v7365_v25 = vpack.i.bf16 %v10164_v51, %v10211_v16 }
 0x212   : >> { %v7049_v2 = vunpack.i.h.bf16 %v7047_v7  ;;  %v7048_v42 = vunpack.i.l.bf16 %v7047_v7  ;;  %1918 = vmatmul.mubr.f32.gmra.mrb[12].mxu0 %v1629_v0  ;;  %v1564_v56 = vsel %vm548_vm0, %v9612_v28, %v7044_v38  ;;  %v1662_v48 = vsel %vm548_vm0, %v9677_v15, %v7043_v12  ;;  %v10225_v7 = vld [vmem:[#allocation2 + $0x20f] sm:$0xff] }
 0x213   : >> { %v7052_v34 = vpop.permute.xlu1 %7051  ;;  %7336 = vrot.lane.b32.xlu0 %v7335_v47, %s8889_s22  ;;  %v7360_v47 = vpack.i.bf16 %v9953_v45, %v10206_v23 }
 0x214   : >> { %v7054_v59 = vunpack.i.h.bf16 %v7052_v34  ;;  %v7053_v5 = vunpack.i.l.bf16 %v7052_v34  ;;  %v1694_v30 = vsel %vm1589_vm1, %v1662_v48, %v7048_v42  ;;  %v1597_v33 = vsel %vm1589_vm1, %v1564_v56, %v7049_v2 }
 0x215   : >> { %7341 = vrot.lane.b32.xlu1 %v7340_v24, %s8888_s24  ;;  %v7057_v46 = vpop.permute.xlu0 %7056  ;;  %v7370_v42 = vpack.i.bf16 %v10148_v62, %v9982_v39 }
 0x216   : >> { %v1726_v40 = vsel %vm1622_vm2, %v1694_v30, %v7053_v5  ;;  %v1630_v28 = vsel %vm1622_vm2, %v1597_v33, %v7054_v59  ;;  %v7059_v15 = vunpack.i.h.bf16 %v7057_v46  ;;  %v7058_v17 = vunpack.i.l.bf16 %v7057_v46 }
 0x217   : >> { %v7062_v50 = vpop.permute.xlu1 %7061  ;;  %1922 = vmatprep.mubr.f32.mxu0 %v1726_v40  ;;  %7346 = vrot.lane.b32.xlu0 %v7345_v49, %s8890_s14  ;;  %v10232_v49 = vld [vmem:[#allocation2 + $0x210] sm:$0xff]  ;;  %v7375_v5 = vpack.i.bf16 %v9966_v10, %v10225_v7 }
 0x218   : >> { %v7064_v3 = vunpack.i.h.bf16 %v7062_v50  ;;  %v7063_v27 = vunpack.i.l.bf16 %v7062_v50  ;;  %1923 = vmatmul.mubr.f32.gmra.mrb[14].mxu0 %v1630_v28  ;;  %v1565_v26 = vsel %vm548_vm0, %v9641_v54, %v7059_v15  ;;  %v1663_v44 = vsel %vm548_vm0, %v9725_v22, %v7058_v17  ;;  %v803_v50 = vld [vmem:[#allocation2 + $0x227] sm:$0xff] }
 0x219   : >> { %7351 = vrot.lane.b32.xlu1 %v7350_v57, %s8889_s22  ;;  %v7067_v38 = vpop.permute.xlu0 %7066  ;;  %v7380_v15 = vpack.i.bf16 %v10183_v20, %v10232_v49 }
 0x21a   : >> { %v7069_v12 = vunpack.i.h.bf16 %v7067_v38  ;;  %v7068_v13 = vunpack.i.l.bf16 %v7067_v38  ;;  %v1695_v54 = vsel %vm1589_vm1, %v1663_v44, %v7063_v27  ;;  %v1598_v22 = vsel %vm1589_vm1, %v1565_v26, %v7064_v3  ;;  %v876_v26 = vld [vmem:[#allocation2 + $0x231] sm:$0xff] }
 0x21b   : >> { %v7072_v1 = vpop.permute.xlu1 %7071  ;;  %7356 = vrot.lane.b32.xlu0 %v7355_v60, %s8888_s24  ;;  %v7385_v38 = vpack.i.bf16 %v10169_v52, %v9987_v29 }
 0x21c   : >> { %v7074_v0 = vunpack.i.h.bf16 %v7072_v1  ;;  %v7073_v24 = vunpack.i.l.bf16 %v7072_v1  ;;  %v1727_v45 = vsel %vm1622_vm2, %v1695_v54, %v7068_v13  ;;  %v1631_v2 = vsel %vm1622_vm2, %v1598_v22, %v7069_v12  ;;  %v839_v12 = vld [vmem:[#allocation2 + $0x228] sm:$0xff] }
 0x21d   : >> { %7361 = vrot.lane.b32.xlu1 %v7360_v47, %s8890_s14  ;;  %v7077_v34 = vpop.permute.xlu0 %7076  ;;  %1927 = vmatprep.mubr.f32.mxu0 %v1727_v45  ;;  %v7395_v45 = vpack.i.bf16 %v10206_v23, %v839_v12  ;;  %v840_v23 = vld [vmem:[#allocation2 + $0x230] sm:$0xff] }
 0x21e   : >> { %v7079_v56 = vunpack.i.h.bf16 %v7077_v34  ;;  %v7078_v48 = vunpack.i.l.bf16 %v7077_v34  ;;  %1928 = vmatmul.mubr.f32.gmra.mrb[16].mxu0 %v1631_v2  ;;  %v1566_v30 = vsel %vm548_vm0, %v9673_v11, %v7074_v0  ;;  %v1664_v33 = vsel %vm548_vm0, %v9760_v32, %v7073_v24  ;;  %v875_v32 = vld [vmem:[#allocation2 + $0x229] sm:$0xff] }
 0x21f   : >> { %v7082_v59 = vpop.permute.xlu1 %7081  ;;  %7366 = vrot.lane.b32.xlu0 %v7365_v25, %s8889_s22  ;;  %6422 = vmatprep.mubr.msk.f32.mxu1 %vm548_vm0, %v875_v32  ;;  %v7390_v25 = vpack.i.bf16 %v9971_v41, %v803_v50 }
 0x220   : >> { %v7084_v57 = vunpack.i.h.bf16 %v7082_v59  ;;  %v7083_v46 = vunpack.i.l.bf16 %v7082_v59  ;;  %v1696_v40 = vsel %vm1589_vm1, %v1664_v33, %v7078_v48  ;;  %v1599_v28 = vsel %vm1589_vm1, %v1566_v30, %v7079_v56  ;;  %6423 = vmatmul.mubr.msk.f32.gmra.mrb[30].mxu1 %vm548_vm0, %v876_v26 }
 0x221   : >> { %7371 = vrot.lane.b32.xlu1 %v7370_v42, %s8888_s24  ;;  %v7087_v10 = vpop.permute.xlu0 %7086  ;;  %v804_v42 = vld [vmem:[#allocation2 + $0x22f] sm:$0xff]  ;;  %v7400_v56 = vpack.i.bf16 %v10190_v8, %v9998_v37 }
 0x222   : >> { %v1728_v17 = vsel %vm1622_vm2, %v1696_v40, %v7083_v46  ;;  %v1632_v11 = vsel %vm1622_vm2, %v1599_v28, %v7084_v57  ;;  %v7089_v3 = vunpack.i.h.bf16 %v7087_v10  ;;  %v7088_v27 = vunpack.i.l.bf16 %v7087_v10 }
 0x223   : >> { %v7092_v60 = vpop.permute.xlu1 %7091  ;;  %1932 = vmatprep.mubr.f32.mxu0 %v1728_v17  ;;  %7376 = vrot.lane.b32.xlu0 %v7375_v5, %s8890_s14  ;;  %v7405_v33 = vpack.i.bf16 %v9982_v39, %v804_v42  ;;  %v7410_v10 = vpack.i.bf16 %v10225_v7, %v840_v23 }
 0x224   : >> { %v7094_v44 = vunpack.i.h.bf16 %v7092_v60  ;;  %v7093_v47 = vunpack.i.l.bf16 %v7092_v60  ;;  %1933 = vmatmul.mubr.f32.gmra.mrb[18].mxu0 %v1632_v11  ;;  %v1567_v13 = vsel %vm548_vm0, %v9693_v31, %v7089_v3  ;;  %v1665_v1 = vsel %vm548_vm0, %v9793_v6, %v7088_v27 }
 0x225   : >> { %7381 = vrot.lane.b32.xlu1 %v7380_v15, %s8889_s22  ;;  %v7097_v0 = vpop.permute.xlu0 %7096 }
 0x226   : >> { %v7099_v24 = vunpack.i.h.bf16 %v7097_v0  ;;  %v7098_v54 = vunpack.i.l.bf16 %v7097_v0  ;;  %v1697_v31 = vsel %vm1589_vm1, %v1665_v1, %v7093_v47  ;;  %v1600_v6 = vsel %vm1589_vm1, %v1567_v13, %v7094_v44 }
 0x227   : >> { %v7102_v22 = vpop.permute.xlu1 %7101  ;;  %7386 = vrot.lane.b32.xlu0 %v7385_v38, %s8888_s24 }
 0x228   : >> { %v7104_v29 = vunpack.i.h.bf16 %v7102_v22  ;;  %v7103_v2 = vunpack.i.l.bf16 %v7102_v22  ;;  %v1729_v41 = vsel %vm1622_vm2, %v1697_v31, %v7098_v54  ;;  %v1633_v34 = vsel %vm1622_vm2, %v1600_v6, %v7099_v24  ;;  %v12871_v22 = vld [vmem:[#allocation63_spill] sm:$0xff] }
 0x229   : >> { %7391 = vrot.lane.b32.xlu1 %v7390_v25, %s8890_s14  ;;  %v7107_v48 = vpop.permute.xlu0 %7106  ;;  %1937 = vmatprep.mubr.f32.mxu0 %v1729_v41 }
 0x22a   : >> { %v7109_v59 = vunpack.i.h.bf16 %v7107_v48  ;;  %v7108_v5 = vunpack.i.l.bf16 %v7107_v48  ;;  %1938 = vmatmul.mubr.f32.gmra.mrb[20].mxu0 %v1633_v34  ;;  %v1568_v57 = vsel %vm548_vm0, %v9756_v55, %v7104_v29  ;;  %v1666_v46 = vsel %vm548_vm0, %v9814_v36, %v7103_v2  ;;  %v12872_v29 = vld [vmem:[#allocation66_spill] sm:$0xff] }
 0x22b   : >> { %v7112_v30 = vpop.permute.xlu1 %7111  ;;  %7396 = vrot.lane.b32.xlu0 %v7395_v45, %s8889_s22 }
 0x22c   : >> { %v7114_v40 = vunpack.i.h.bf16 %v7112_v30  ;;  %v7113_v28 = vunpack.i.l.bf16 %v7112_v30  ;;  %v1698_v37 = vsel %vm1589_vm1, %v1666_v46, %v7108_v5  ;;  %v1601_v15 = vsel %vm1589_vm1, %v1568_v57, %v7109_v59  ;;  %v12873_v57 = vld [vmem:[#allocation64_spill] sm:$0xff] }
 0x22d   : >> { %7401 = vrot.lane.b32.xlu1 %v7400_v56, %s8888_s24  ;;  %v7117_v17 = vpop.permute.xlu0 %7116 }
 0x22e   : >> { %v1730_v39 = vsel %vm1622_vm2, %v1698_v37, %v7113_v28  ;;  %v1634_v55 = vsel %vm1622_vm2, %v1601_v15, %v7114_v40  ;;  %v7119_v11 = vunpack.i.h.bf16 %v7117_v17  ;;  %v7118_v50 = vunpack.i.l.bf16 %v7117_v17  ;;  %v12874_v40 = vld [vmem:[#allocation68_spill] sm:$0xff] }
 0x22f   : >> { %v7122_v36 = vpop.permute.xlu1 %7121  ;;  %1942 = vmatprep.mubr.f32.mxu0 %v1730_v39  ;;  %7406 = vrot.lane.b32.xlu0 %v7405_v33, %s8890_s14 }
 0x230   : >> { %v7124_v32 = vunpack.i.h.bf16 %v7122_v36  ;;  %v7123_v3 = vunpack.i.l.bf16 %v7122_v36  ;;  %1943 = vmatmul.mubr.f32.gmra.mrb[22].mxu0 %v1634_v55  ;;  %v1569_v27 = vsel %vm548_vm0, %v9780_v61, %v7119_v11  ;;  %v1667_v7 = vsel %vm548_vm0, %v9844_v18, %v7118_v50 }
 0x231   : >> { %7411 = vrot.lane.b32.xlu1 %v7410_v10, %s8889_s22  ;;  %v7127_v60 = vpop.permute.xlu0 %7126 }
 0x232   : >> { %v7129_v26 = vunpack.i.h.bf16 %v7127_v60  ;;  %v7128_v44 = vunpack.i.l.bf16 %v7127_v60  ;;  %v1699_v13 = vsel %vm1589_vm1, %v1667_v7, %v7123_v3  ;;  %v1602_v1 = vsel %vm1589_vm1, %v1569_v27, %v7124_v32 }
 0x233   : >> { %v7132_v47 = vpop.permute.xlu1 %7131 }
 0x234   : >> { %v7134_v38 = vunpack.i.h.bf16 %v7132_v47  ;;  %v7133_v12 = vunpack.i.l.bf16 %v7132_v47  ;;  %v1731_v25 = vsel %vm1622_vm2, %v1699_v13, %v7128_v44  ;;  %v1635_v0 = vsel %vm1622_vm2, %v1602_v1, %v7129_v26  ;;  %v12875_v26 = vld [vmem:[#allocation65_spill] sm:$0xff]  ;;  %v12876_v47 = vld [vmem:[#allocation70_spill] sm:$0xff] }
 0x235   : >> { %v7137_v61 = vpop.permute.xlu0 %7136  ;;  %1947 = vmatprep.mubr.f32.mxu0 %v1731_v25 }
 0x236   : >> { %v7139_v24 = vunpack.i.h.bf16 %v7137_v61  ;;  %v7138_v18 = vunpack.i.l.bf16 %v7137_v61  ;;  %1948 = vmatmul.mubr.f32.gmra.mrb[24].mxu0 %v1635_v0  ;;  %v1570_v45 = vsel %vm548_vm0, %v12871_v22, %v7134_v38  ;;  %v1668_v2 = vsel %vm548_vm0, %v12872_v29, %v7133_v12 }
 0x237   : >> { %v7142_v54 = vpop.permute.xlu1 %7141 }
 0x238   : >> { %v7144_v31 = vunpack.i.h.bf16 %v7142_v54  ;;  %v7143_v6 = vunpack.i.l.bf16 %v7142_v54  ;;  %v1700_v42 = vsel %vm1589_vm1, %v1668_v2, %v7138_v18  ;;  %v1603_v41 = vsel %vm1589_vm1, %v1570_v45, %v7139_v24  ;;  %v12877_v2 = vld [vmem:[#allocation67_spill] sm:$0xff] }
 0x239   : >> { %v7147_v34 = vpop.permute.xlu0 %7146 }
 0x23a   : >> { %v1732_v56 = vsel %vm1622_vm2, %v1700_v42, %v7143_v6  ;;  %v1636_v48 = vsel %vm1622_vm2, %v1603_v41, %v7144_v31  ;;  %v7149_v23 = vunpack.i.h.bf16 %v7147_v34  ;;  %v7148_v59 = vunpack.i.l.bf16 %v7147_v34  ;;  %v12878_v6 = vld [vmem:[#allocation72_spill] sm:$0xff] }
 0x23b   : >> { %v7152_v5 = vpop.permute.xlu1 %7151  ;;  %1952 = vmatprep.mubr.f32.mxu0 %v1732_v56 }
 0x23c   : >> { %v7154_v30 = vunpack.i.h.bf16 %v7152_v5  ;;  %v7153_v33 = vunpack.i.l.bf16 %v7152_v5  ;;  %1953 = vmatmul.mubr.f32.gmra.mrb[26].mxu0 %v1636_v48  ;;  %v1571_v46 = vsel %vm548_vm0, %v12873_v57, %v7149_v23  ;;  %v1669_v28 = vsel %vm548_vm0, %v12874_v40, %v7148_v59 }
 0x23d   : >> { %v7157_v37 = vpop.permute.xlu0 %7156 }
 0x23e   : >> { %v7159_v15 = vunpack.i.h.bf16 %v7157_v37  ;;  %v7158_v10 = vunpack.i.l.bf16 %v7157_v37  ;;  %v1701_v11 = vsel %vm1589_vm1, %v1669_v28, %v7153_v33  ;;  %v1604_v50 = vsel %vm1589_vm1, %v1571_v46, %v7154_v30 }
 0x23f   : >> { %v7162_v17 = vpop.permute.xlu1 %7161 }
 0x240   : >> { %v7164_v39 = vunpack.i.h.bf16 %v7162_v17  ;;  %v7163_v55 = vunpack.i.l.bf16 %v7162_v17  ;;  %v1733_v36 = vsel %vm1622_vm2, %v1701_v11, %v7158_v10  ;;  %v1637_v32 = vsel %vm1622_vm2, %v1604_v50, %v7159_v15  ;;  %v12879_v15 = vld [vmem:[#allocation69_spill] sm:$0xff]  ;;  %v12880_v17 = vld [vmem:[#allocation74_spill] sm:$0xff] }
 0x241   : >> { %v7167_v3 = vpop.permute.xlu0 %7166  ;;  %1957 = vmatprep.mubr.f32.mxu0 %v1733_v36 }
 0x242   : >> { %v7169_v27 = vunpack.i.h.bf16 %v7167_v3  ;;  %v7168_v7 = vunpack.i.l.bf16 %v7167_v3  ;;  %1958 = vmatmul.mubr.f32.gmra.mrb[28].mxu0 %v1637_v32  ;;  %v1572_v44 = vsel %vm548_vm0, %v12875_v26, %v7164_v39  ;;  %v1670_v38 = vsel %vm548_vm0, %v12876_v47, %v7163_v55 }
 0x243   : >> { %v7172_v60 = vpop.permute.xlu1 %7171 }
 0x244   : >> { %v7174_v12 = vunpack.i.h.bf16 %v7172_v60  ;;  %v7173_v13 = vunpack.i.l.bf16 %v7172_v60  ;;  %v1702_v1 = vsel %vm1589_vm1, %v1670_v38, %v7168_v7  ;;  %v1605_v25 = vsel %vm1589_vm1, %v1572_v44, %v7169_v27  ;;  %v12881_v38 = vld [vmem:[#allocation71_spill] sm:$0xff] }
 0x245   : >> { %v7177_v0 = vpop.permute.xlu0 %7176 }
 0x246   : >> { %v1734_v61 = vsel %vm1622_vm2, %v1702_v1, %v7173_v13  ;;  %v1638_v24 = vsel %vm1622_vm2, %v1605_v25, %v7174_v12  ;;  %v7179_v18 = vunpack.i.h.bf16 %v7177_v0  ;;  %v7178_v54 = vunpack.i.l.bf16 %v7177_v0  ;;  %v12882_v13 = vld [vmem:[#allocation76_spill] sm:$0xff] }
 0x247   : >> { %v7182_v22 = vpop.permute.xlu1 %7181  ;;  %1962 = vmatprep.mubr.f32.mxu0 %v1734_v61 }
 0x248   : >> { %v7184_v45 = vunpack.i.h.bf16 %v7182_v22  ;;  %v7183_v29 = vunpack.i.l.bf16 %v7182_v22  ;;  %1963 = vmatmul.mubr.f32.gmra.mrb[30].mxu0 %v1638_v24  ;;  %v1573_v31 = vsel %vm548_vm0, %v12877_v2, %v7179_v18  ;;  %v1671_v42 = vsel %vm548_vm0, %v12878_v6, %v7178_v54  ;;  %v2339_v2 = vld [vmem:[%s10338_s27 + $0x108] sm:$0xff] }
 0x249   : >> { %v7187_v41 = vpop.permute.xlu0 %7186 }
 0x24a   : >> { %v7189_v34 = vunpack.i.h.bf16 %v7187_v41  ;;  %v7188_v56 = vunpack.i.l.bf16 %v7187_v41  ;;  %v1703_v5 = vsel %vm1589_vm1, %v1671_v42, %v7183_v29  ;;  %v1606_v30 = vsel %vm1589_vm1, %v1573_v31, %v7184_v45  ;;  %v2338_v29 = vld [vmem:[%s10338_s27 + $0x100] sm:$0xff] }
 0x24b   : >> { %v7192_v48 = vpop.permute.xlu1 %7191  ;;  %v10344_v42 = vpack.c.bf16 %v2339_v2, %v2338_v29 }
 0x24c   : >> { %v7194_v23 = vunpack.i.h.bf16 %v7192_v48  ;;  %v7193_v59 = vunpack.i.l.bf16 %v7192_v48  ;;  %v1735_v33 = vsel %vm1622_vm2, %v1703_v5, %v7188_v56  ;;  %v1639_v57 = vsel %vm1622_vm2, %v1606_v30, %v7189_v34 }
 0x24d   : >> { %v7197_v46 = vpop.permute.xlu0 %7196  ;;  %1967 = vmatprep.mubr.f32.mxu0 %v1735_v33  ;;  %6658 = vmatprep.subr.bf16.mxu0 %v10344_v42 }
 0x24e   : >> { %v7199_v40 = vunpack.i.h.bf16 %v7197_v46  ;;  %v7198_v28 = vunpack.i.l.bf16 %v7197_v46  ;;  %1968 = vmatmul.mubr.f32.gmra.mrb[32].mxu0 %v1639_v57  ;;  %v1574_v10 = vsel %vm548_vm0, %v12879_v15, %v7194_v23  ;;  %v1672_v39 = vsel %vm548_vm0, %v12880_v17, %v7193_v59  ;;  %v12883_v23 = vld [vmem:[#allocation73_spill] sm:$0xff]  ;;  %v2340_v57 = vld [vmem:[%s10338_s27 + $0x110] sm:$0xff]  ;;  %v2341_v46 = vld [vmem:[%s10338_s27 + $0x118] sm:$0xff] }
 0x24f   : >> { %v7202_v37 = vpop.permute.xlu1 %7201  ;;  %6660 = vmatpush3.bf16.msra.mxu0 %v10344_v42 }
 0x250   : >> { %v7204_v55 = vunpack.i.h.bf16 %v7202_v37  ;;  %v7203_v11 = vunpack.i.l.bf16 %v7202_v37  ;;  %v1704_v50 = vsel %vm1589_vm1, %v1672_v39, %v7198_v28  ;;  %v1607_v36 = vsel %vm1589_vm1, %v1574_v10, %v7199_v40 }
 0x251   : >> { %v7207_v32 = vpop.permute.xlu0 %7206  ;;  %v10356_v37 = vpack.c.bf16 %v2341_v46, %v2340_v57 }
 0x252   : >> { %v1736_v3 = vsel %vm1622_vm2, %v1704_v50, %v7203_v11  ;;  %v1640_v27 = vsel %vm1622_vm2, %v1607_v36, %v7204_v55  ;;  %v7209_v7 = vunpack.i.h.bf16 %v7207_v32  ;;  %v7208_v60 = vunpack.i.l.bf16 %v7207_v32  ;;  %v12884_v36 = vld [vmem:[#allocation75_spill] sm:$0xff] }
 0x253   : >> { %v7212_v26 = vpop.permute.xlu1 %7211  ;;  %1972 = vmatprep.mubr.f32.mxu0 %v1736_v3  ;;  %6662 = vmatprep.subr.bf16.mxu0 %v10356_v37 }
 0x254   : >> { %v7214_v44 = vunpack.i.h.bf16 %v7212_v26  ;;  %v7213_v47 = vunpack.i.l.bf16 %v7212_v26  ;;  %1973 = vmatmul.mubr.f32.gmra.mrb[34].mxu0 %v1640_v27  ;;  %v1575_v12 = vsel %vm548_vm0, %v12881_v38, %v7209_v7  ;;  %v1673_v1 = vsel %vm548_vm0, %v12882_v13, %v7208_v60 }
 0x255   : >> { %v7217_v25 = vpop.permute.xlu0 %7216  ;;  %6664 = vmatpush3.bf16.msra.mxu0 %v10356_v37 }
 0x256   : >> { %v7219_v0 = vunpack.i.h.bf16 %v7217_v25  ;;  %v7218_v61 = vunpack.i.l.bf16 %v7217_v25  ;;  %v1705_v22 = vsel %vm1589_vm1, %v1673_v1, %v7213_v47  ;;  %v1608_v45 = vsel %vm1589_vm1, %v1575_v12, %v7214_v44 }
 0x257   : >> { %v7222_v24 = vpop.permute.xlu1 %7221 }
 0x258   : >> { %v7224_v18 = vunpack.i.h.bf16 %v7222_v24  ;;  %v7223_v54 = vunpack.i.l.bf16 %v7222_v24  ;;  %v1737_v31 = vsel %vm1622_vm2, %v1705_v22, %v7218_v61  ;;  %v1641_v6 = vsel %vm1622_vm2, %v1608_v45, %v7219_v0  ;;  %v12885_v24 = vld [vmem:[#allocation77_spill] sm:$0xff] }
 0x259   : >> { %v7227_v41 = vpop.permute.xlu0 %7226  ;;  %1977 = vmatprep.mubr.f32.mxu0 %v1737_v31 }
 0x25a   : >> { %v7229_v34 = vunpack.i.h.bf16 %v7227_v41  ;;  %v7228_v56 = vunpack.i.l.bf16 %v7227_v41  ;;  %1978 = vmatmul.mubr.f32.gmra.mrb[36].mxu0 %v1641_v6  ;;  %v1576_v59 = vsel %vm548_vm0, %v12883_v23, %v7224_v18  ;;  %v1674_v5 = vsel %vm548_vm0, %v10010_v35, %v7223_v54 }
 0x25b   : >> { %v7232_v48 = vpop.permute.xlu1 %7231 }
 0x25c   : >> { %v7234_v30 = vunpack.i.h.bf16 %v7232_v48  ;;  %v7233_v33 = vunpack.i.l.bf16 %v7232_v48  ;;  %v1706_v40 = vsel %vm1589_vm1, %v1674_v5, %v7228_v56  ;;  %v1609_v28 = vsel %vm1589_vm1, %v1576_v59, %v7229_v34  ;;  %v7897_v5 = vld [vmem:[#allocation2 + $0x167] sm:$0xff] }
 0x25d   : >> { %v7237_v15 = vpop.permute.xlu0 %7236 }
 0x25e   : >> { %v1738_v10 = vsel %vm1622_vm2, %v1706_v40, %v7233_v33  ;;  %v1642_v17 = vsel %vm1622_vm2, %v1609_v28, %v7234_v30  ;;  %v7239_v39 = vunpack.i.h.bf16 %v7237_v15  ;;  %v7238_v55 = vunpack.i.l.bf16 %v7237_v15 }
 0x25f   : >> { %v7242_v35 = vpop.permute.xlu1 %7241  ;;  %1982 = vmatprep.mubr.f32.mxu0 %v1738_v10 }
 0x260   : >> { %v7244_v11 = vunpack.i.h.bf16 %v7242_v35  ;;  %v7243_v50 = vunpack.i.l.bf16 %v7242_v35  ;;  %1983 = vmatmul.mubr.f32.gmra.mrb[38].mxu0 %v1642_v17  ;;  %v1577_v32 = vsel %vm548_vm0, %v12884_v36, %v7239_v39  ;;  %v1675_v3 = vsel %vm548_vm0, %v10023_v19, %v7238_v55 }
 0x261   : >> { %v7247_v27 = vpop.permute.xlu0 %7246 }
 0x262   : >> { %v7249_v7 = vunpack.i.h.bf16 %v7247_v27  ;;  %v7248_v60 = vunpack.i.l.bf16 %v7247_v27  ;;  %v1707_v38 = vsel %vm1589_vm1, %v1675_v3, %v7243_v50  ;;  %v1610_v12 = vsel %vm1589_vm1, %v1577_v32, %v7244_v11  ;;  %v7898_v27 = vld [vmem:[#allocation2 + $0x16f] sm:$0xff] }
 0x263   : >> { %v7252_v26 = vpop.permute.xlu1 %7251 }
 0x264   : >> { %v7254_v44 = vunpack.i.h.bf16 %v7252_v26  ;;  %v7253_v47 = vunpack.i.l.bf16 %v7252_v26  ;;  %v1739_v13 = vsel %vm1622_vm2, %v1707_v38, %v7248_v60  ;;  %v1643_v1 = vsel %vm1622_vm2, %v1610_v12, %v7249_v7 }
 0x265   : >> { %v7257_v25 = vpop.permute.xlu0 %7256  ;;  %1987 = vmatprep.mubr.f32.mxu0 %v1739_v13  ;;  %v10381_v28 = vpop.f32.mrb[0].mxu1 }
 0x266   : >> { %v7259_v0 = vunpack.i.h.bf16 %v7257_v25  ;;  %v7258_v19 = vunpack.i.l.bf16 %v7257_v25  ;;  %1988 = vmatmul.mubr.f32.gmra.mrb[40].mxu0 %v1643_v1  ;;  %v1578_v18 = vsel %vm548_vm0, %v12885_v24, %v7254_v44  ;;  %v1676_v54 = vsel %vm548_vm0, %v10033_v53, %v7253_v47  ;;  %v10385_v55 = vpop.f32.mrb[1].mxu1 }
 0x267   : >> { %v7262_v61 = vpop.permute.xlu1 %7261 }
 0x268   : >> { %v7264_v22 = vunpack.i.h.bf16 %v7262_v61  ;;  %v7263_v45 = vunpack.i.l.bf16 %v7262_v61  ;;  %v1708_v29 = vsel %vm1589_vm1, %v1676_v54, %v7258_v19  ;;  %v1611_v2 = vsel %vm1589_vm1, %v1578_v18, %v7259_v0 }
 0x269   : >> { %v7267_v31 = vpop.permute.xlu0 %7266  ;;  %v10389_v3 = vpop.f32.mrb[2].mxu1 }
 0x26a   : >> { %v1740_v6 = vsel %vm1622_vm2, %v1708_v29, %v7263_v45  ;;  %v1644_v41 = vsel %vm1622_vm2, %v1611_v2, %v7264_v22  ;;  %v7269_v34 = vunpack.i.h.bf16 %v7267_v31  ;;  %v7268_v56 = vunpack.i.l.bf16 %v7267_v31  ;;  %v10394_v47 = vpop.f32.mrb[3].mxu1  ;;  %v7899_v22 = vld [vmem:[#allocation2 + $0x187] sm:$0xff] }
 0x26b   : >> { %v7272_v48 = vpop.permute.xlu1 %7271  ;;  %1992 = vmatprep.mubr.f32.mxu0 %v1740_v6 }
 0x26c   : >> { %v7274_v23 = vunpack.i.h.bf16 %v7272_v48  ;;  %v7273_v59 = vunpack.i.l.bf16 %v7272_v48  ;;  %1993 = vmatmul.mubr.f32.gmra.mrb[42].mxu0 %v1644_v41  ;;  %v1579_v53 = vsel %vm548_vm0, %v7897_v5, %v7269_v34  ;;  %v1677_v30 = vsel %vm548_vm0, %v10043_v58, %v7268_v56 }
 0x26d   : >> { %v7277_v33 = vpop.permute.xlu0 %7276  ;;  %v10400_v24 = vpop.f32.mrb[4].mxu1 }
 0x26e   : >> { %v7279_v57 = vunpack.i.h.bf16 %v7277_v33  ;;  %v7278_v46 = vunpack.i.l.bf16 %v7277_v33  ;;  %v1709_v17 = vsel %vm1589_vm1, %v1677_v30, %v7273_v59  ;;  %v1612_v39 = vsel %vm1589_vm1, %v1579_v53, %v7274_v23  ;;  %v10402_v54 = vpop.f32.mrb[5].mxu1 }
 0x26f   : >> { %v7282_v40 = vpop.permute.xlu1 %7281 }
 0x270   : >> { %v7284_v15 = vunpack.i.h.bf16 %v7282_v40  ;;  %v7283_v10 = vunpack.i.l.bf16 %v7282_v40  ;;  %v1741_v35 = vsel %vm1622_vm2, %v1709_v17, %v7278_v46  ;;  %v1645_v11 = vsel %vm1622_vm2, %v1612_v39, %v7279_v57 }
 0x271   : >> { %v7287_v50 = vpop.permute.xlu0 %7286  ;;  %1997 = vmatprep.mubr.f32.mxu0 %v1741_v35  ;;  %v10407_v34 = vpop.f32.mrb[6].mxu1 }
 0x272   : >> { %v7289_v58 = vunpack.i.h.bf16 %v7287_v50  ;;  %v7288_v36 = vunpack.i.l.bf16 %v7287_v50  ;;  %1998 = vmatmul.mubr.f32.gmra.mrb[44].mxu0 %v1645_v11  ;;  %v1580_v7 = vsel %vm548_vm0, %v7898_v27, %v7284_v15  ;;  %v1678_v60 = vsel %vm548_vm0, %v10065_v4, %v7283_v10  ;;  %v10411_v5 = vpop.f32.mrb[7].mxu1  ;;  %v7900_v15 = vld [vmem:[#allocation2 + $0x18f] sm:$0xff] }
 0x273   : >> { %v7292_v32 = vpop.permute.xlu1 %7291 }
 0x274   : >> { %v7294_v26 = vunpack.i.h.bf16 %v7292_v32  ;;  %v7293_v44 = vunpack.i.l.bf16 %v7292_v32  ;;  %v1710_v38 = vsel %vm1589_vm1, %v1678_v60, %v7288_v36  ;;  %v1613_v12 = vsel %vm1589_vm1, %v1580_v7, %v7289_v58 }
 0x275   : >> { %v7297_v13 = vpop.permute.xlu0 %7296  ;;  %v10415_v40 = vpop.f32.mrb[8].mxu1 }
 0x276   : >> { %v1742_v1 = vsel %vm1622_vm2, %v1710_v38, %v7293_v44  ;;  %v1646_v25 = vsel %vm1622_vm2, %v1613_v12, %v7294_v26  ;;  %v7299_v0 = vunpack.i.h.bf16 %v7297_v13  ;;  %v7298_v19 = vunpack.i.l.bf16 %v7297_v13  ;;  %v10420_v11 = vpop.f32.mrb[9].mxu1  ;;  %v7901_v13 = vld [vmem:[#allocation2 + $0x1a7] sm:$0xff] }
 0x277   : >> { %v7302_v61 = vpop.permute.xlu1 %7301  ;;  %2002 = vmatprep.mubr.f32.mxu0 %v1742_v1 }
 0x278   : >> { %v7304_v4 = vunpack.i.h.bf16 %v7302_v61  ;;  %v7303_v18 = vunpack.i.l.bf16 %v7302_v61  ;;  %2003 = vmatmul.mubr.f32.gmra.mrb[46].mxu0 %v1646_v25  ;;  %v1581_v45 = vsel %vm548_vm0, %v7899_v22, %v7299_v0  ;;  %v1679_v29 = vsel %vm548_vm0, %v10085_v21, %v7298_v19 }
 0x279   : >> { %v7307_v2 = vpop.permute.xlu0 %7306 }
 0x27a   : >> { %v7309_v31 = vunpack.i.h.bf16 %v7307_v2  ;;  %v7308_v6 = vunpack.i.l.bf16 %v7307_v2  ;;  %v1711_v23 = vsel %vm1589_vm1, %v1679_v29, %v7303_v18  ;;  %v1614_v59 = vsel %vm1589_vm1, %v1581_v45, %v7304_v4 }
 0x27b   : >> { %v7312_v41 = vpop.permute.xlu1 %7311 }
 0x27c   : >> { %v7314_v56 = vunpack.i.h.bf16 %v7312_v41  ;;  %v7313_v48 = vunpack.i.l.bf16 %v7312_v41  ;;  %v1743_v53 = vsel %vm1622_vm2, %v1711_v23, %v7308_v6  ;;  %v1647_v30 = vsel %vm1622_vm2, %v1614_v59, %v7309_v31  ;;  %v7902_v23 = vld [vmem:[#allocation2 + $0x1af] sm:$0xff] }
 0x27d   : >> { %v7317_v33 = vpop.permute.xlu0 %7316  ;;  %2007 = vmatprep.mubr.f32.mxu0 %v1743_v53 }
 0x27e   : >> { %v7319_v21 = vunpack.i.h.bf16 %v7317_v33  ;;  %v7318_v57 = vunpack.i.l.bf16 %v7317_v33  ;;  %2008 = vmatmul.mubr.f32.gmra.mrb[48].mxu0 %v1647_v30  ;;  %v1582_v10 = vsel %vm548_vm0, %v7900_v15, %v7314_v56  ;;  %v1680_v17 = vsel %vm548_vm0, %v10106_v9, %v7313_v48 }
 0x27f   : >> { %v7322_v46 = vpop.permute.xlu1 %7321  ;;  %v10426_v44 = vpop.f32.mrb[10].mxu1 }
 0x280   : >> { %v7324_v39 = vunpack.i.h.bf16 %v7322_v46  ;;  %v7323_v35 = vunpack.i.l.bf16 %v7322_v46  ;;  %v1712_v50 = vsel %vm1589_vm1, %v1680_v17, %v7318_v57  ;;  %v1615_v58 = vsel %vm1589_vm1, %v1582_v10, %v7319_v21  ;;  %v10428_v12 = vpop.f32.mrb[11].mxu1 }
 0x281   : >> { %v7327_v36 = vpop.permute.xlu0 %7326 }
 0x282   : >> { %v1744_v32 = vsel %vm1622_vm2, %v1712_v50, %v7323_v35  ;;  %v1648_v27 = vsel %vm1622_vm2, %v1615_v58, %v7324_v39  ;;  %v7329_v7 = vunpack.i.h.bf16 %v7327_v36  ;;  %v7328_v60 = vunpack.i.l.bf16 %v7327_v36 }
 0x283   : >> { %v7332_v26 = vpop.permute.xlu1 %7331  ;;  %2012 = vmatprep.mubr.f32.mxu0 %v1744_v32 }
 0x284   : >> { %v7334_v9 = vunpack.i.h.bf16 %v7332_v26  ;;  %v7333_v38 = vunpack.i.l.bf16 %v7332_v26  ;;  %2013 = vmatmul.mubr.f32.gmra.mrb[50].mxu0 %v1648_v27  ;;  %v1583_v1 = vsel %vm548_vm0, %v7901_v13, %v7329_v7  ;;  %v1681_v25 = vsel %vm548_vm0, %v10127_v63, %v7328_v60  ;;  %v10437_v63 = vpop.f32.mrb[12].mxu1 }
 0x285   : >> { %v7337_v0 = vpop.permute.xlu0 %7336  ;;  %v10442_v21 = vpop.f32.mrb[13].mxu1 }
 0x286   : >> { %v7339_v19 = vunpack.i.h.bf16 %v7337_v0  ;;  %v7338_v61 = vunpack.i.l.bf16 %v7337_v0  ;;  %v1713_v45 = vsel %vm1589_vm1, %v1681_v25, %v7333_v38  ;;  %v1616_v29 = vsel %vm1589_vm1, %v1583_v1, %v7334_v9 }
 0x287   : >> { %v7342_v4 = vpop.permute.xlu1 %7341 }
 0x288   : >> { %v7344_v18 = vunpack.i.h.bf16 %v7342_v4  ;;  %v7343_v22 = vunpack.i.l.bf16 %v7342_v4  ;;  %v1745_v2 = vsel %vm1622_vm2, %v1713_v45, %v7338_v61  ;;  %v1649_v31 = vsel %vm1622_vm2, %v1616_v29, %v7339_v19  ;;  %v2307_v61 = vld [vmem:[%s10338_s27 + $0x8] sm:$0xff] }
 0x289   : >> { %v7347_v6 = vpop.permute.xlu0 %7346  ;;  %2017 = vmatprep.mubr.f32.mxu0 %v1745_v2 }
 0x28a   : >> { %v7349_v41 = vunpack.i.h.bf16 %v7347_v6  ;;  %v7348_v56 = vunpack.i.l.bf16 %v7347_v6  ;;  %2018 = vmatmul.mubr.f32.gmra.mrb[52].mxu0 %v1649_v31  ;;  %v1584_v59 = vsel %vm548_vm0, %v7902_v23, %v7344_v18  ;;  %v1682_v53 = vsel %vm548_vm0, %v10148_v62, %v7343_v22  ;;  %v10458_v22 = vpop.f32.mrb[14].mxu1 }
 0x28b   : >> { %v7352_v48 = vpop.permute.xlu1 %7351 }
 0x28c   : >> { %v7354_v30 = vunpack.i.h.bf16 %v7352_v48  ;;  %v7353_v33 = vunpack.i.l.bf16 %v7352_v48  ;;  %v1714_v57 = vsel %vm1589_vm1, %v1682_v53, %v7348_v56  ;;  %v1617_v46 = vsel %vm1589_vm1, %v1584_v59, %v7349_v41  ;;  %v10464_v41 = vpop.f32.mrb[15].mxu1 }
 0x28d   : >> { %v7357_v15 = vpop.permute.xlu0 %7356 }
 0x28e   : >> { %v1746_v10 = vsel %vm1622_vm2, %v1714_v57, %v7353_v33  ;;  %v1650_v17 = vsel %vm1622_vm2, %v1617_v46, %v7354_v30  ;;  %v7359_v39 = vunpack.i.h.bf16 %v7357_v15  ;;  %v7358_v35 = vunpack.i.l.bf16 %v7357_v15 }
 0x28f   : >> { %v7362_v50 = vpop.permute.xlu1 %7361  ;;  %2022 = vmatprep.mubr.f32.mxu0 %v1746_v10  ;;  %v12886_v30 = vmov 0.0|0.0  }
 0x290   : >> { %v7364_v58 = vunpack.i.h.bf16 %v7362_v50  ;;  %v7363_v36 = vunpack.i.l.bf16 %v7362_v50  ;;  %2023 = vmatmul.mubr.f32.gmra.mrb[54].mxu0 %v1650_v17  ;;  %v1585_v62 = vsel %vm548_vm0, %v10122_v14, %v7359_v39  ;;  %v1683_v32 = vsel %vm548_vm0, %v10169_v52, %v7358_v35  ;;  %v2306_v14 = vld [vmem:[%s10338_s27] sm:$0xff] }
 0x291   : >> { %v7367_v27 = vpop.permute.xlu0 %7366  ;;  %v6610_v45 = vpack.c.bf16 %v2307_v61, %v2306_v14  ;;  %v10487_v61 = vpop.f32.mrb[16].mxu1 }
 0x292   : >> { %v7369_v7 = vunpack.i.h.bf16 %v7367_v27  ;;  %v7368_v60 = vunpack.i.l.bf16 %v7367_v27  ;;  %v1715_v13 = vsel %vm1589_vm1, %v1683_v32, %v7363_v36  ;;  %v1618_v1 = vsel %vm1589_vm1, %v1585_v62, %v7364_v58  ;;  %v2310_v58 = vld [vmem:[%s10338_s27 + $0x20] sm:$0xff]  ;;  %v2311_v36 = vld [vmem:[%s10338_s27 + $0x28] sm:$0xff] }
 0x293   : >> { %v7372_v26 = vpop.permute.xlu1 %7371  ;;  %6611 = vmatpush1.bf16.msra.mxu1 %v6610_v45 }
 0x294   : >> { %v7374_v9 = vunpack.i.h.bf16 %v7372_v26  ;;  %v7373_v38 = vunpack.i.l.bf16 %v7372_v26  ;;  %v1747_v25 = vsel %vm1622_vm2, %v1715_v13, %v7368_v60  ;;  %v1651_v0 = vsel %vm1622_vm2, %v1618_v1, %v7369_v7  ;;  %6612 = vmatprep.subr.bf16.mxu1 %v12886_v30  ;;  %v2312_v1 = vld [vmem:[%s10338_s27 + $0x30] sm:$0xff] }
 0x295   : >> { %v7377_v19 = vpop.permute.xlu0 %7376  ;;  %2027 = vmatprep.mubr.f32.mxu0 %v1747_v25  ;;  %v6616_v7 = vpack.c.bf16 %v2311_v36, %v2310_v58  ;;  %v2313_v25 = vld [vmem:[%s10338_s27 + $0x38] sm:$0xff]  ;;  %v2324_v36 = vld [vmem:[%s10338_s27 + $0x90] sm:$0xff] }
 0x296   : >> { %v7379_v4 = vunpack.i.h.bf16 %v7377_v19  ;;  %v7378_v52 = vunpack.i.l.bf16 %v7377_v19  ;;  %2028 = vmatmul.mubr.f32.gmra.mrb[56].mxu0 %v1651_v0  ;;  %v1586_v29 = vsel %vm548_vm0, %v10141_v43, %v7374_v9  ;;  %v1684_v2 = vsel %vm548_vm0, %v10190_v8, %v7373_v38  ;;  %v2308_v43 = vld [vmem:[%s10338_s27 + $0x10] sm:$0xff]  ;;  %v2309_v8 = vld [vmem:[%s10338_s27 + $0x18] sm:$0xff] }
 0x297   : >> { %v7382_v18 = vpop.permute.xlu1 %7381  ;;  %v6613_v15 = vpack.c.bf16 %v2309_v8, %v2308_v43  ;;  %v2318_v8 = vld [vmem:[%s10338_s27 + $0x60] sm:$0xff] }
 0x298   : >> { %v7384_v31 = vunpack.i.h.bf16 %v7382_v18  ;;  %v7383_v6 = vunpack.i.l.bf16 %v7382_v18  ;;  %v1716_v56 = vsel %vm1589_vm1, %v1684_v2, %v7378_v52  ;;  %v1619_v48 = vsel %vm1589_vm1, %v1586_v29, %v7379_v4  ;;  %v10493_v2 = vpop.f32.mrb[17].mxu1 }
 0x299   : >> { %v7387_v23 = vpop.permute.xlu0 %7386  ;;  %6614 = vmatpush1.bf16.msra.mxu1 %v6613_v15  ;;  %v6619_v4 = vpack.c.bf16 %v2313_v25, %v2312_v1 }
 0x29a   : >> { %v1748_v59 = vsel %vm1622_vm2, %v1716_v56, %v7383_v6  ;;  %v1652_v53 = vsel %vm1622_vm2, %v1619_v48, %v7384_v31  ;;  %v7389_v33 = vunpack.i.h.bf16 %v7387_v23  ;;  %v7388_v57 = vunpack.i.l.bf16 %v7387_v23  ;;  %6615 = vmatprep.subr.bf16.mxu1 %v12886_v30  ;;  %v2315_v48 = vld [vmem:[%s10338_s27 + $0x48] sm:$0xff] }
 0x29b   : >> { %v7392_v46 = vpop.permute.xlu1 %7391  ;;  %2032 = vmatprep.mubr.f32.mxu0 %v1748_v59  ;;  %v2316_v59 = vld [vmem:[%s10338_s27 + $0x50] sm:$0xff] }
 0x29c   : >> { %v7394_v10 = vunpack.i.h.bf16 %v7392_v46  ;;  %v7393_v17 = vunpack.i.l.bf16 %v7392_v46  ;;  %2033 = vmatmul.mubr.f32.gmra.mrb[58].mxu0 %v1652_v53  ;;  %v1587_v39 = vsel %vm548_vm0, %v10164_v51, %v7389_v33  ;;  %v1685_v35 = vsel %vm548_vm0, %v10211_v16, %v7388_v57  ;;  %v2317_v53 = vld [vmem:[%s10338_s27 + $0x58] sm:$0xff]  ;;  %v2319_v33 = vld [vmem:[%s10338_s27 + $0x68] sm:$0xff]  ;;  %v10508_v57 = vpop.f32.mrb[18].mxu1 }
 0x29d   : >> { %v7397_v50 = vpop.permute.xlu0 %7396  ;;  %6617 = vmatpush1.bf16.msra.mxu1 %v6616_v7  ;;  %v6625_v43 = vpack.c.bf16 %v2317_v53, %v2316_v59  ;;  %v6628_v46 = vpack.c.bf16 %v2319_v33, %v2318_v8  ;;  %v10510_v15 = vpop.f32.mrb[19].mxu1  ;;  %v2334_v53 = vld [vmem:[%s10338_s27 + $0xe0] sm:$0xff] }
 0x29e   : >> { %v7399_v62 = vunpack.i.h.bf16 %v7397_v50  ;;  %v7398_v32 = vunpack.i.l.bf16 %v7397_v50  ;;  %v1717_v9 = vsel %vm1589_vm1, %v1685_v35, %v7393_v17  ;;  %v1620_v51 = vsel %vm1589_vm1, %v1587_v39, %v7394_v10  ;;  %6618 = vmatprep.subr.bf16.mxu1 %v12886_v30  ;;  %v2320_v10 = vld [vmem:[%s10338_s27 + $0x70] sm:$0xff]  ;;  %v2321_v17 = vld [vmem:[%s10338_s27 + $0x78] sm:$0xff]  ;;  %v2322_v35 = vld [vmem:[%s10338_s27 + $0x80] sm:$0xff] }
 0x29f   : >> { %v7402_v27 = vpop.permute.xlu1 %7401  ;;  %v6631_v39 = vpack.c.bf16 %v2321_v17, %v2320_v10  ;;  %v2323_v50 = vld [vmem:[%s10338_s27 + $0x88] sm:$0xff]  ;;  %v2336_v10 = vld [vmem:[%s10338_s27 + $0xf0] sm:$0xff]  ;;  %v2337_v17 = vld [vmem:[%s10338_s27 + $0xf8] sm:$0xff] }
 0x2a0   : >> { %v7404_v60 = vunpack.i.h.bf16 %v7402_v27  ;;  %v7403_v26 = vunpack.i.l.bf16 %v7402_v27  ;;  %v1749_v16 = vsel %vm1622_vm2, %v1717_v9, %v7398_v32  ;;  %v1653_v38 = vsel %vm1622_vm2, %v1620_v51, %v7399_v62  ;;  %v2325_v62 = vld [vmem:[%s10338_s27 + $0x98] sm:$0xff]  ;;  %v10521_v32 = vpop.f32.mrb[20].mxu1  ;;  %v10531_v51 = vld [vmem:[%s734_s29] ss:$0 sm:$0xff] }
 0x2a1   : >> { %v7407_v13 = vpop.permute.xlu0 %7406  ;;  %2037 = vmatprep.mubr.f32.mxu0 %v1749_v16  ;;  %6620 = vmatpush1.bf16.msra.mxu1 %v6619_v4  ;;  %v6634_v58 = vpack.c.bf16 %v2323_v50, %v2322_v35  ;;  %v6637_v27 = vpack.c.bf16 %v2325_v62, %v2324_v36  ;;  %v10523_v7 = vpop.f32.mrb[21].mxu1  ;;  %v2328_v16 = vld [vmem:[%s10338_s27 + $0xb0] sm:$0xff]  ;;  %v2331_v4 = vld [vmem:[%s10338_s27 + $0xc8] sm:$0xff]  ;;  %v6655_v36 = vpack.c.bf16 %v2337_v17, %v2336_v10 }
 0x2a2   : >> { %v7409_v0 = vunpack.i.h.bf16 %v7407_v13  ;;  %v7408_v19 = vunpack.i.l.bf16 %v7407_v13  ;;  %2038 = vmatmul.mubr.f32.gmra.mrb[60].mxu0 %v1653_v38  ;;  %v1588_v52 = vsel %vm548_vm0, %v10183_v20, %v7404_v60  ;;  %v1686_v18 = vsel %vm548_vm0, %v10232_v49, %v7403_v26  ;;  %6621 = vmatprep.subr.bf16.mxu1 %v12886_v30  ;;  %v2314_v49 = vld [vmem:[%s10338_s27 + $0x40] sm:$0xff]  ;;  %v2327_v26 = vld [vmem:[%s10338_s27 + $0xa8] sm:$0xff]  ;;  %v2329_v38 = vld [vmem:[%s10338_s27 + $0xb8] sm:$0xff] }
 0x2a3   : >> { %v7412_v14 = vpop.permute.xlu1 %7411  ;;  %v6622_v23 = vpack.c.bf16 %v2315_v48, %v2314_v49  ;;  %v2326_v60 = vld [vmem:[%s10338_s27 + $0xa0] sm:$0xff]  ;;  %v6643_v1 = vpack.c.bf16 %v2329_v38, %v2328_v16  ;;  %v2333_v49 = vld [vmem:[%s10338_s27 + $0xd8] sm:$0xff]  ;;  %v2413_v50 = vld [vmem:[#allocation2 + $0x10] sm:$0xff] }
 0x2a4   : >> { %v7414_v45 = vunpack.i.h.bf16 %v7412_v14  ;;  %v7413_v29 = vunpack.i.l.bf16 %v7412_v14  ;;  %v1718_v31 = vsel %vm1589_vm1, %v1686_v18, %v7408_v19  ;;  %v1621_v6 = vsel %vm1589_vm1, %v1588_v52, %v7409_v0  ;;  %v2330_v14 = vld [vmem:[%s10338_s27 + $0xc0] sm:$0xff]  ;;  %v10541_v18 = vpop.f32.mrb[22].mxu1 }
 0x2a5   : >> { %6623 = vmatpush1.bf16.msra.mxu1 %v6622_v23  ;;  %v6640_v9 = vpack.c.bf16 %v2327_v26, %v2326_v60 }
 0x2a6   : >> { %v1750_v56 = vsel %vm1622_vm2, %v1718_v31, %v7413_v29  ;;  %v1654_v20 = vsel %vm1622_vm2, %v1621_v6, %v7414_v45  ;;  %6624 = vmatprep.subr.bf16.mxu1 %v12886_v30  ;;  %v6646_v45 = vpack.c.bf16 %v2331_v4, %v2330_v14 }
 0x2a7   : >> { %2042 = vmatprep.mubr.f32.mxu0 %v1750_v56  ;;  %v10544_v56 = vpop.f32.mrb[23].mxu1 }
 0x2a8   : >> { %2043 = vmatmul.mubr.f32.gmra.mrb[62].mxu0 %v1654_v20  ;;  %v2332_v20 = vld [vmem:[%s10338_s27 + $0xd0] sm:$0xff]  ;;  %v10561_v60 = vpop.f32.mrb[24].mxu1 }
 0x2a9   : >> { %6626 = vmatpush1.bf16.msra.mxu1 %v6625_v43  ;;  %v6649_v48 = vpack.c.bf16 %v2333_v49, %v2332_v20  ;;  %v2335_v43 = vld [vmem:[%s10338_s27 + $0xe8] sm:$0xff]  ;;  %s4034_s27 = scalar_lea.vmem [#allocation18], %s8869_s28 }
 0x2aa   : >> { %6627 = vmatprep.subr.bf16.mxu1 %v12886_v30 }
 0x2ad   : >> { %6629 = vmatpush1.bf16.msra.mxu1 %v6628_v46 }
 0x2ae   : >> { %6630 = vmatprep.subr.bf16.mxu1 %v12886_v30 }
 0x2b1   : >> { %6632 = vmatpush1.bf16.msra.mxu1 %v6631_v39 }
 0x2b2   : >> { %6633 = vmatprep.subr.bf16.mxu1 %v12886_v30 }
 0x2b5   : >> { %6635 = vmatpush1.bf16.msra.mxu1 %v6634_v58  ;;  %v2412_v58 = vld [vmem:[#allocation2 + $0x8] sm:$0xff] }
 0x2b6   : >> { %6636 = vmatprep.subr.bf16.mxu1 %v12886_v30 }
 0x2b9   : >> { %6638 = vmatpush1.bf16.msra.mxu1 %v6637_v27 }
 0x2ba   : >> { %6639 = vmatprep.subr.bf16.mxu1 %v12886_v30 }
 0x2bd   : >> { %6641 = vmatpush1.bf16.msra.mxu1 %v6640_v9  ;;  %v10568_v9 = vpop.f32.mrb[25].mxu1 }
 0x2be   : >> { %6642 = vmatprep.subr.bf16.mxu1 %v12886_v30 }
 0x2c1   : >> { %6644 = vmatpush1.bf16.msra.mxu1 %v6643_v1 }
 0x2c2   : >> { %v1889_v13 = vpop.f32.mrb[0].mxu0  ;;  %6645 = vmatprep.subr.bf16.mxu1 %v12886_v30 }
 0x2c3   : >> { %v1890_v25 = vadd.f32 %v10531_v51, %v1889_v13  ;;  %v1891_v0 = vpop.f32.mrb[1].mxu0 }
 0x2c4   : >> { %v2448_v0 = vld [vmem:[#allocation2 + $0x9] sm:$0xff] }
 0x2c5   : >> { %v2115_v19 = vadd.f32 %v10385_v55, %v1890_v25  ;;  %6647 = vmatpush1.bf16.msra.mxu1 %v6646_v45 }
 0x2c6   : >> { %6648 = vmatprep.subr.bf16.mxu1 %v12886_v30 }
 0x2c7   : >> { %v1894_v52 = vpop.f32.mrb[2].mxu0  ;;  %v2273_v29 = vmax.f32 %v2115_v19, 0.0 }
 0x2c8   : >> { %v1895_v31 = vadd.f32 %v10531_v51, %v1894_v52  ;;  %v1896_v6 = vpop.f32.mrb[3].mxu0 }
 0x2c9   : >> { %2344 = vst.msk [vmem:[#allocation2 + $0x28] sm:$0xff] %vm548_vm0, %v2273_v29  ;;  %6650 = vmatpush1.bf16.msra.mxu1 %v6649_v48 }
 0x2ca   : >> { %v2120_v55 = vadd.f32 %v10381_v28, %v1895_v31  ;;  %6651 = vmatprep.subr.bf16.mxu1 %v12886_v30  ;;  %v6652_v28 = vpack.c.bf16 %v2335_v43, %v2334_v53 }
 0x2cc   : >> { %v2274_v23 = vmax.f32 %v2120_v55, 0.0 }
 0x2cd   : >> { %v1899_v59 = vpop.f32.mrb[4].mxu0  ;;  %6653 = vmatpush1.bf16.msra.mxu1 %v6652_v28 }
 0x2ce   : >> { %2345 = vst.msk [vmem:[#allocation2 + $0x30] sm:$0xff] %vm548_vm0, %v2274_v23  ;;  %v1900_v8 = vadd.f32 %v10531_v51, %v1899_v59  ;;  %v1901_v33 = vpop.f32.mrb[5].mxu0  ;;  %6654 = vmatprep.subr.bf16.mxu1 %v12886_v30  ;;  %v2449_v23 = vld [vmem:[#allocation2 + $0x11] sm:$0xff]  ;;  %v10593_v59 = vpop.f32.mrb[26].mxu1 }
 0x2d0   : >> { %v2125_v46 = vadd.f32 %v10394_v47, %v1900_v8  ;;  %v10602_v8 = vpop.f32.mrb[27].mxu1 }
 0x2d1   : >> { %6656 = vmatpush1.bf16.msra.mxu1 %v6655_v36 }
 0x2d2   : >> { %v2275_v39 = vmax.f32 %v2125_v46, 0.0  ;;  %6727 = vmatprep.subr.bf16.mxu1 %v10344_v42 }
 0x2d3   : >> { %v1904_v35 = vpop.f32.mrb[6].mxu0 }
 0x2d4   : >> { %v1905_v62 = vadd.f32 %v10531_v51, %v1904_v35  ;;  %v1906_v27 = vpop.f32.mrb[7].mxu0  ;;  %2346 = vst.msk [vmem:[#allocation2 + $0x48] sm:$0xff] %vm548_vm0, %v2275_v39 }
 0x2d5   : >> { %v10564_v26 = vld [vmem:[#allocation2 + $0x31] sm:$0xff]  ;;  %v10566_v47 = vld [vmem:[#allocation2 + $0x29] sm:$0xff] }
 0x2d6   : >> { %v2130_v16 = vadd.f32 %v10389_v3, %v1905_v62  ;;  %v7420_v38 = vpack.i.bf16 %v2413_v50, %v10564_v26  ;;  %v7415_v13 = vpack.i.bf16 %v2412_v58, %v10566_v47  ;;  %v10580_v3 = vld [vmem:[#allocation2 + $0x27] sm:$0xff]  ;;  %v10591_v48 = vld [vmem:[#allocation2 + $0x2f] sm:$0xff] }
 0x2d7   : >> { %v10616_v39 = vld [vmem:[#allocation2 + $0x30] sm:$0xff] }
 0x2d8   : >> { %v2276_v1 = vmax.f32 %v2130_v16, 0.0  ;;  %7421 = vrot.lane.b32.xlu1 %v7420_v38, %s8888_s24  ;;  %7416 = vrot.lane.b32.xlu0 %v7415_v13, %s8888_s24 }
 0x2d9   : >> { %v1909_v25 = vpop.f32.mrb[8].mxu0 }
 0x2da   : >> { %2347 = vst.msk [vmem:[#allocation2 + $0x50] sm:$0xff] %vm548_vm0, %v2276_v1  ;;  %v1910_v19 = vadd.f32 %v10531_v51, %v1909_v25  ;;  %v1911_v14 = vpop.f32.mrb[9].mxu0 }
 0x2db   : >> { %v10578_v4 = vld [vmem:[#allocation2 + $0x47] sm:$0xff] }
 0x2dc   : >> { %v10582_v52 = vld [vmem:[#allocation2 + $0x48] sm:$0xff]  ;;  %v2135_v45 = vadd.f32 %v10402_v54, %v1910_v19  ;;  %v7425_v29 = vpack.i.bf16 %v2448_v0, %v10578_v4 }
 0x2dd   : >> { %v7430_v31 = vpack.i.bf16 %v10580_v3, %v10582_v52 }
 0x2de   : >> { %v2277_v6 = vmax.f32 %v2135_v45, 0.0  ;;  %7426 = vrot.lane.b32.xlu1 %v7425_v29, %s8890_s14  ;;  %v10639_v45 = vpop.f32.mrb[28].mxu1 }
 0x2df   : >> { %v1914_v55 = vpop.f32.mrb[10].mxu0  ;;  %7431 = vrot.lane.b32.xlu0 %v7430_v31, %s8889_s22  ;;  %v10649_v31 = vpop.f32.mrb[29].mxu1 }
 0x2e0   : >> { %v1915_v20 = vadd.f32 %v10531_v51, %v1914_v55  ;;  %v1916_v49 = vpop.f32.mrb[11].mxu0  ;;  %2348 = vst.msk [vmem:[#allocation2 + $0x68] sm:$0xff] %vm548_vm0, %v2277_v6 }
 0x2e1   : >> { %v10596_v54 = vld [vmem:[#allocation2 + $0x49] sm:$0xff]  ;;  %v10598_v53 = vld [vmem:[#allocation2 + $0x51] sm:$0xff] }
 0x2e2   : >> { %v10600_v43 = vld [vmem:[#allocation2 + $0x50] sm:$0xff]  ;;  %v2140_v33 = vadd.f32 %v10400_v24, %v1915_v20  ;;  %6433 = vmatprep.mubr.msk.f32.mxu0 %vm548_vm0, %v10596_v54  ;;  %v10619_v24 = vld [vmem:[#allocation2 + $0x28] sm:$0xff]  ;;  %v7450_v50 = vpack.i.bf16 %v10616_v39, %v10598_v53 }
 0x2e3   : >> { %v7440_v28 = vpack.i.bf16 %v10591_v48, %v10600_v43  ;;  %v10609_v46 = vld [vmem:[#allocation2 + $0x4f] sm:$0xff]  ;;  %6434 = vmatmul.mubr.msk.f32.vlgmr.msra.gmra.mrb[64].mxu0 %vm548_vm0, %v10598_v53  ;;  %v7445_v58 = vpack.i.bf16 %v10619_v24, %v10596_v54 }
 0x2e4   : >> { %v7435_v10 = vpack.i.bf16 %v2449_v23, %v10609_v46  ;;  %v2278_v17 = vmax.f32 %v2140_v33, 0.0 }
 0x2e5   : >> { %7441 = vrot.lane.b32.xlu1 %v7440_v28, %s8889_s22  ;;  %v1919_v35 = vpop.f32.mrb[12].mxu0 }
 0x2e6   : >> { %7436 = vrot.lane.b32.xlu0 %v7435_v10, %s8890_s14  ;;  %2349 = vst.msk [vmem:[#allocation2 + $0x70] sm:$0xff] %vm548_vm0, %v2278_v17  ;;  %v1920_v36 = vadd.f32 %v10531_v51, %v1919_v35  ;;  %v1921_v62 = vpop.f32.mrb[13].mxu0 }
 0x2e7   : >> { %v10627_v27 = vld [vmem:[#allocation2 + $0x67] sm:$0xff] }
 0x2e8   : >> { %v10629_v16 = vld [vmem:[#allocation2 + $0x68] sm:$0xff]  ;;  %v2145_v38 = vadd.f32 %v10411_v5, %v1920_v36  ;;  %v7455_v13 = vpack.i.bf16 %v10566_v47, %v10627_v27 }
 0x2e9   : >> { %7451 = vrot.lane.b32.xlu1 %v7450_v50, %s8888_s24  ;;  %v7460_v1 = vpack.i.bf16 %v10578_v4, %v10629_v16 }
 0x2ea   : >> { %7446 = vrot.lane.b32.xlu0 %v7445_v58, %s8888_s24  ;;  %v2279_v25 = vmax.f32 %v2145_v38, 0.0 }
 0x2eb   : >> { %v1924_v0 = vpop.f32.mrb[14].mxu0 }
 0x2ec   : >> { %v1925_v19 = vadd.f32 %v10531_v51, %v1924_v0  ;;  %v1926_v14 = vpop.f32.mrb[15].mxu0  ;;  %2350 = vst.msk [vmem:[#allocation2 + $0x88] sm:$0xff] %vm548_vm0, %v2279_v25 }
 0x2ed   : >> { %7456 = vrot.lane.b32.xlu1 %v7455_v13, %s8890_s14  ;;  %v10643_v5 = vld [vmem:[#allocation2 + $0x69] sm:$0xff]  ;;  %v10645_v29 = vld [vmem:[#allocation2 + $0x71] sm:$0xff] }
 0x2ee   : >> { %7461 = vrot.lane.b32.xlu0 %v7460_v1, %s8889_s22  ;;  %v10647_v47 = vld [vmem:[#allocation2 + $0x70] sm:$0xff]  ;;  %v2150_v6 = vadd.f32 %v10407_v34, %v1925_v19  ;;  %6436 = vmatprep.mubr.msk.f32.mxu0 %vm548_vm0, %v10643_v5  ;;  %v7480_v34 = vpack.i.bf16 %v10600_v43, %v10645_v29  ;;  %v7475_v28 = vpack.i.bf16 %v10582_v52, %v10643_v5 }
 0x2ef   : >> { %v7470_v55 = vpack.i.bf16 %v10609_v46, %v10647_v47  ;;  %v10656_v20 = vld [vmem:[#allocation2 + $0x6f] sm:$0xff]  ;;  %6437 = vmatmul.mubr.msk.f32.gmra.mrb[66].mxu0 %vm548_vm0, %v10645_v29 }
 0x2f0   : >> { %v7465_v49 = vpack.i.bf16 %v10564_v26, %v10656_v20  ;;  %v2280_v23 = vmax.f32 %v2150_v6, 0.0 }
 0x2f1   : >> { %7471 = vrot.lane.b32.xlu1 %v7470_v55, %s8889_s22  ;;  %v1929_v33 = vpop.f32.mrb[16].mxu0 }
 0x2f2   : >> { %7466 = vrot.lane.b32.xlu0 %v7465_v49, %s8890_s14  ;;  %2351 = vst.msk [vmem:[#allocation2 + $0x90] sm:$0xff] %vm548_vm0, %v2280_v23  ;;  %v1930_v10 = vadd.f32 %v10531_v51, %v1929_v33  ;;  %v1931_v17 = vpop.f32.mrb[17].mxu0 }
 0x2f3   : >> { %v2384_v26 = vld [vmem:[#allocation2 + $0x87] sm:$0xff]  ;;  %v10680_v25 = vpop.f32.mrb[30].mxu1 }
 0x2f4   : >> { %v10671_v35 = vld [vmem:[#allocation2 + $0x88] sm:$0xff]  ;;  %v2155_v50 = vadd.f32 %v10420_v11, %v1930_v10  ;;  %v7485_v58 = vpack.i.bf16 %v10596_v54, %v2384_v26  ;;  %v10688_v19 = vpop.f32.mrb[31].mxu1 }
 0x2f5   : >> { %7481 = vrot.lane.b32.xlu1 %v7480_v34, %s8888_s24  ;;  %v7490_v36 = vpack.i.bf16 %v10627_v27, %v10671_v35 }
 0x2f6   : >> { %7476 = vrot.lane.b32.xlu0 %v7475_v28, %s8888_s24  ;;  %v2281_v62 = vmax.f32 %v2155_v50, 0.0 }
 0x2f7   : >> { %v1934_v38 = vpop.f32.mrb[18].mxu0 }
 0x2f8   : >> { %v1935_v13 = vadd.f32 %v10531_v51, %v1934_v38  ;;  %v1936_v1 = vpop.f32.mrb[19].mxu0  ;;  %2352 = vst.msk [vmem:[#allocation2 + $0xa8] sm:$0xff] %vm548_vm0, %v2281_v62 }
 0x2f9   : >> { %7486 = vrot.lane.b32.xlu1 %v7485_v58, %s8890_s14  ;;  %v2456_v11 = vld [vmem:[#allocation2 + $0x89] sm:$0xff]  ;;  %v10684_v0 = vld [vmem:[#allocation2 + $0x91] sm:$0xff] }
 0x2fa   : >> { %7491 = vrot.lane.b32.xlu0 %v7490_v36, %s8889_s22  ;;  %v10686_v54 = vld [vmem:[#allocation2 + $0x90] sm:$0xff]  ;;  %v2160_v14 = vadd.f32 %v10415_v40, %v1935_v13  ;;  %6439 = vmatprep.mubr.msk.f32.mxu0 %vm548_vm0, %v2456_v11  ;;  %v7510_v40 = vpack.i.bf16 %v10647_v47, %v10684_v0  ;;  %v7505_v33 = vpack.i.bf16 %v10629_v16, %v2456_v11 }
 0x2fb   : >> { %v7500_v6 = vpack.i.bf16 %v10656_v20, %v10686_v54  ;;  %v2385_v55 = vld [vmem:[#allocation2 + $0x8f] sm:$0xff]  ;;  %6440 = vmatmul.mubr.msk.f32.gmra.mrb[68].mxu0 %vm548_vm0, %v10684_v0 }
 0x2fc   : >> { %v7495_v49 = vpack.i.bf16 %v10598_v53, %v2385_v55  ;;  %v2282_v23 = vmax.f32 %v2160_v14, 0.0 }
 0x2fd   : >> { %7501 = vrot.lane.b32.xlu1 %v7500_v6, %s8889_s22  ;;  %v1939_v34 = vpop.f32.mrb[20].mxu0 }
 0x2fe   : >> { %7496 = vrot.lane.b32.xlu0 %v7495_v49, %s8890_s14  ;;  %2353 = vst.msk [vmem:[#allocation2 + $0xb0] sm:$0xff] %vm548_vm0, %v2282_v23  ;;  %v1940_v28 = vadd.f32 %v10531_v51, %v1939_v34  ;;  %v1941_v10 = vpop.f32.mrb[21].mxu0 }
 0x2ff   : >> { %v2386_v17 = vld [vmem:[#allocation2 + $0xa7] sm:$0xff] }
 0x300   : >> { %v10705_v53 = vld [vmem:[#allocation2 + $0xa8] sm:$0xff]  ;;  %v2165_v50 = vadd.f32 %v10428_v12, %v1940_v28  ;;  %v7515_v58 = vpack.i.bf16 %v10643_v5, %v2386_v17 }
 0x301   : >> { %7511 = vrot.lane.b32.xlu1 %v7510_v40, %s8888_s24  ;;  %v7520_v36 = vpack.i.bf16 %v2384_v26, %v10705_v53 }
 0x302   : >> { %7506 = vrot.lane.b32.xlu0 %v7505_v33, %s8888_s24  ;;  %v2283_v62 = vmax.f32 %v2165_v50, 0.0 }
 0x303   : >> { %v1944_v38 = vpop.f32.mrb[22].mxu0 }
 0x304   : >> { %v1945_v13 = vadd.f32 %v10531_v51, %v1944_v38  ;;  %v1946_v1 = vpop.f32.mrb[23].mxu0  ;;  %2354 = vst.msk [vmem:[#allocation2 + $0xc8] sm:$0xff] %vm548_vm0, %v2283_v62 }
 0x305   : >> { %7516 = vrot.lane.b32.xlu1 %v7515_v58, %s8890_s14  ;;  %v2458_v14 = vld [vmem:[#allocation2 + $0xa9] sm:$0xff]  ;;  %v10715_v6 = vld [vmem:[#allocation2 + $0xb1] sm:$0xff] }
 0x306   : >> { %7521 = vrot.lane.b32.xlu0 %v7520_v36, %s8889_s22  ;;  %v10717_v12 = vld [vmem:[#allocation2 + $0xb0] sm:$0xff]  ;;  %v2170_v5 = vadd.f32 %v10426_v44, %v1945_v13  ;;  %6442 = vmatprep.mubr.msk.f32.mxu0 %vm548_vm0, %v2458_v14  ;;  %v7540_v44 = vpack.i.bf16 %v10686_v54, %v10715_v6  ;;  %v7535_v33 = vpack.i.bf16 %v10671_v35, %v2458_v14 }
 0x307   : >> { %v7530_v26 = vpack.i.bf16 %v2385_v55, %v10717_v12  ;;  %v2387_v49 = vld [vmem:[#allocation2 + $0xaf] sm:$0xff]  ;;  %6443 = vmatmul.mubr.msk.f32.gmra.mrb[70].mxu0 %vm548_vm0, %v10715_v6 }
 0x308   : >> { %v7525_v23 = vpack.i.bf16 %v10645_v29, %v2387_v49  ;;  %v2284_v40 = vmax.f32 %v2170_v5, 0.0 }
 0x309   : >> { %7531 = vrot.lane.b32.xlu1 %v7530_v26, %s8889_s22  ;;  %v1949_v34 = vpop.f32.mrb[24].mxu0 }
 0x30a   : >> { %7526 = vrot.lane.b32.xlu0 %v7525_v23, %s8890_s14  ;;  %2355 = vst.msk [vmem:[#allocation2 + $0xd0] sm:$0xff] %vm548_vm0, %v2284_v40  ;;  %v1950_v55 = vadd.f32 %v10531_v51, %v1949_v34  ;;  %v1951_v28 = vpop.f32.mrb[25].mxu0 }
 0x30b   : >> { %v2388_v10 = vld [vmem:[#allocation2 + $0xc7] sm:$0xff] }
 0x30c   : >> { %v10733_v29 = vld [vmem:[#allocation2 + $0xc8] sm:$0xff]  ;;  %v2175_v50 = vadd.f32 %v10442_v21, %v1950_v55  ;;  %v7545_v58 = vpack.i.bf16 %v2456_v11, %v2388_v10 }
 0x30d   : >> { %7541 = vrot.lane.b32.xlu1 %v7540_v44, %s8888_s24  ;;  %v7550_v36 = vpack.i.bf16 %v2386_v17, %v10733_v29 }
 0x30e   : >> { %7536 = vrot.lane.b32.xlu0 %v7535_v33, %s8888_s24  ;;  %v2285_v62 = vmax.f32 %v2175_v50, 0.0 }
 0x30f   : >> { %v1954_v38 = vpop.f32.mrb[26].mxu0 }
 0x310   : >> { %v1955_v13 = vadd.f32 %v10531_v51, %v1954_v38  ;;  %v1956_v1 = vpop.f32.mrb[27].mxu0  ;;  %2356 = vst.msk [vmem:[#allocation2 + $0xe8] sm:$0xff] %vm548_vm0, %v2285_v62 }
 0x311   : >> { %7546 = vrot.lane.b32.xlu1 %v7545_v58, %s8890_s14  ;;  %v2460_v5 = vld [vmem:[#allocation2 + $0xc9] sm:$0xff]  ;;  %v10742_v26 = vld [vmem:[#allocation2 + $0xd1] sm:$0xff] }
 0x312   : >> { %7551 = vrot.lane.b32.xlu0 %v7550_v36, %s8889_s22  ;;  %v2425_v21 = vld [vmem:[#allocation2 + $0xd0] sm:$0xff]  ;;  %v2180_v23 = vadd.f32 %v10437_v63, %v1955_v13  ;;  %6445 = vmatprep.mubr.msk.f32.mxu0 %vm548_vm0, %v2460_v5  ;;  %v7570_v34 = vpack.i.bf16 %v10717_v12, %v10742_v26  ;;  %v7565_v33 = vpack.i.bf16 %v10705_v53, %v2460_v5 }
 0x313   : >> { %v7560_v11 = vpack.i.bf16 %v2387_v49, %v2425_v21  ;;  %v2389_v17 = vld [vmem:[#allocation2 + $0xcf] sm:$0xff]  ;;  %6446 = vmatmul.mubr.msk.f32.gmra.mrb[72].mxu0 %vm548_vm0, %v10742_v26 }
 0x314   : >> { %v7555_v40 = vpack.i.bf16 %v10684_v0, %v2389_v17  ;;  %v2286_v44 = vmax.f32 %v2180_v23, 0.0 }
 0x315   : >> { %7561 = vrot.lane.b32.xlu1 %v7560_v11, %s8889_s22  ;;  %v1959_v63 = vpop.f32.mrb[28].mxu0 }
 0x316   : >> { %7556 = vrot.lane.b32.xlu0 %v7555_v40, %s8890_s14  ;;  %2357 = vst.msk [vmem:[#allocation2 + $0xf0] sm:$0xff] %vm548_vm0, %v2286_v44  ;;  %v1960_v49 = vadd.f32 %v10531_v51, %v1959_v63  ;;  %v1961_v55 = vpop.f32.mrb[29].mxu0 }
 0x317   : >> { %v2390_v28 = vld [vmem:[#allocation2 + $0xe7] sm:$0xff] }
 0x318   : >> { %v10757_v0 = vld [vmem:[#allocation2 + $0xe8] sm:$0xff]  ;;  %v2185_v50 = vadd.f32 %v10464_v41, %v1960_v49  ;;  %v7575_v58 = vpack.i.bf16 %v2458_v14, %v2390_v28 }
 0x319   : >> { %7571 = vrot.lane.b32.xlu1 %v7570_v34, %s8888_s24  ;;  %v7580_v36 = vpack.i.bf16 %v2388_v10, %v10757_v0 }
 0x31a   : >> { %7566 = vrot.lane.b32.xlu0 %v7565_v33, %s8888_s24  ;;  %v2287_v62 = vmax.f32 %v2185_v50, 0.0 }
 0x31b   : >> { %v1964_v38 = vpop.f32.mrb[30].mxu0 }
 0x31c   : >> { %v1965_v13 = vadd.f32 %v10531_v51, %v1964_v38  ;;  %v1966_v1 = vpop.f32.mrb[31].mxu0  ;;  %2358 = vst.msk [vmem:[#allocation2 + $0x108] sm:$0xff] %vm548_vm0, %v2287_v62 }
 0x31d   : >> { %7576 = vrot.lane.b32.xlu1 %v7575_v58, %s8890_s14  ;;  %v2462_v23 = vld [vmem:[#allocation2 + $0xe9] sm:$0xff]  ;;  %v10766_v11 = vld [vmem:[#allocation2 + $0xf1] sm:$0xff] }
 0x31e   : >> { %7581 = vrot.lane.b32.xlu0 %v7580_v36, %s8889_s22  ;;  %v2427_v41 = vld [vmem:[#allocation2 + $0xf0] sm:$0xff]  ;;  %v2190_v40 = vadd.f32 %v10458_v22, %v1965_v13  ;;  %6448 = vmatprep.mubr.msk.f32.mxu0 %vm548_vm0, %v2462_v23  ;;  %v7600_v63 = vpack.i.bf16 %v2425_v21, %v10766_v11  ;;  %v7595_v22 = vpack.i.bf16 %v10733_v29, %v2462_v23 }
 0x31f   : >> { %v7590_v14 = vpack.i.bf16 %v2389_v17, %v2427_v41  ;;  %v2391_v10 = vld [vmem:[#allocation2 + $0xef] sm:$0xff]  ;;  %6449 = vmatmul.mubr.msk.f32.gmra.mrb[74].mxu0 %vm548_vm0, %v10766_v11 }
 0x320   : >> { %v7585_v44 = vpack.i.bf16 %v10715_v6, %v2391_v10  ;;  %v2288_v34 = vmax.f32 %v2190_v40, 0.0 }
 0x321   : >> { %7591 = vrot.lane.b32.xlu1 %v7590_v14, %s8889_s22  ;;  %v1969_v33 = vpop.f32.mrb[32].mxu0 }
 0x322   : >> { %7586 = vrot.lane.b32.xlu0 %v7585_v44, %s8890_s14  ;;  %2359 = vst.msk [vmem:[#allocation2 + $0x110] sm:$0xff] %vm548_vm0, %v2288_v34  ;;  %v1970_v17 = vadd.f32 %v10531_v51, %v1969_v33  ;;  %v1971_v49 = vpop.f32.mrb[33].mxu0 }
 0x323   : >> { %v2392_v55 = vld [vmem:[#allocation2 + $0x107] sm:$0xff] }
 0x324   : >> { %v10780_v50 = vld [vmem:[#allocation2 + $0x108] sm:$0xff]  ;;  %v2195_v6 = vadd.f32 %v10493_v2, %v1970_v17  ;;  %v7605_v58 = vpack.i.bf16 %v2460_v5, %v2392_v55 }
 0x325   : >> { %7601 = vrot.lane.b32.xlu1 %v7600_v63, %s8888_s24  ;;  %v7610_v36 = vpack.i.bf16 %v2390_v28, %v10780_v50 }
 0x326   : >> { %7596 = vrot.lane.b32.xlu0 %v7595_v22, %s8888_s24  ;;  %v2289_v62 = vmax.f32 %v2195_v6, 0.0 }
 0x327   : >> { %v1974_v21 = vpop.f32.mrb[34].mxu0 }
 0x328   : >> { %v1975_v38 = vadd.f32 %v10531_v51, %v1974_v21  ;;  %v1976_v13 = vpop.f32.mrb[35].mxu0  ;;  %2360 = vst.msk [vmem:[#allocation2 + $0x128] sm:$0xff] %vm548_vm0, %v2289_v62 }
 0x329   : >> { %7606 = vrot.lane.b32.xlu1 %v7605_v58, %s8890_s14  ;;  %v2464_v1 = vld [vmem:[#allocation2 + $0x109] sm:$0xff]  ;;  %v10789_v40 = vld [vmem:[#allocation2 + $0x111] sm:$0xff] }
 0x32a   : >> { %7611 = vrot.lane.b32.xlu0 %v7610_v36, %s8889_s22  ;;  %v2429_v2 = vld [vmem:[#allocation2 + $0x110] sm:$0xff]  ;;  %v2200_v14 = vadd.f32 %v10487_v61, %v1975_v38  ;;  %6451 = vmatprep.mubr.msk.f32.mxu0 %vm548_vm0, %v2464_v1  ;;  %v7630_v63 = vpack.i.bf16 %v2427_v41, %v10789_v40  ;;  %v7625_v61 = vpack.i.bf16 %v10757_v0, %v2464_v1 }
 0x32b   : >> { %v7620_v5 = vpack.i.bf16 %v2391_v10, %v2429_v2  ;;  %v2393_v28 = vld [vmem:[#allocation2 + $0x10f] sm:$0xff]  ;;  %6452 = vmatmul.mubr.msk.f32.gmra.mrb[76].mxu0 %vm548_vm0, %v10789_v40 }
 0x32c   : >> { %v7615_v44 = vpack.i.bf16 %v10742_v26, %v2393_v28  ;;  %v2290_v34 = vmax.f32 %v2200_v14, 0.0 }
 0x32d   : >> { %7621 = vrot.lane.b32.xlu1 %v7620_v5, %s8889_s22  ;;  %v1979_v33 = vpop.f32.mrb[36].mxu0 }
 0x32e   : >> { %7616 = vrot.lane.b32.xlu0 %v7615_v44, %s8890_s14  ;;  %2361 = vst.msk [vmem:[#allocation2 + $0x130] sm:$0xff] %vm548_vm0, %v2290_v34  ;;  %v1980_v10 = vadd.f32 %v10531_v51, %v1979_v33  ;;  %v1981_v22 = vpop.f32.mrb[37].mxu0 }
 0x32f   : >> { %v2394_v17 = vld [vmem:[#allocation2 + $0x127] sm:$0xff] }
 0x330   : >> { %v10803_v49 = vld [vmem:[#allocation2 + $0x128] sm:$0xff]  ;;  %v2205_v26 = vadd.f32 %v10510_v15, %v1980_v10  ;;  %v7635_v6 = vpack.i.bf16 %v2462_v23, %v2394_v17 }
 0x331   : >> { %7631 = vrot.lane.b32.xlu1 %v7630_v63, %s8888_s24  ;;  %v7640_v58 = vpack.i.bf16 %v2392_v55, %v10803_v49 }
 0x332   : >> { %7626 = vrot.lane.b32.xlu0 %v7625_v61, %s8888_s24  ;;  %v2291_v36 = vmax.f32 %v2205_v26, 0.0 }
 0x333   : >> { %v1984_v41 = vpop.f32.mrb[38].mxu0 }
 0x334   : >> { %v1985_v62 = vadd.f32 %v10531_v51, %v1984_v41  ;;  %v1986_v0 = vpop.f32.mrb[39].mxu0  ;;  %2362 = vst.msk [vmem:[#allocation2 + $0x148] sm:$0xff] %vm548_vm0, %v2291_v36 }
 0x335   : >> { %7636 = vrot.lane.b32.xlu1 %v7635_v6, %s8890_s14  ;;  %v2466_v21 = vld [vmem:[#allocation2 + $0x129] sm:$0xff]  ;;  %v10812_v38 = vld [vmem:[#allocation2 + $0x131] sm:$0xff] }
 0x336   : >> { %7641 = vrot.lane.b32.xlu0 %v7640_v58, %s8889_s22  ;;  %v2431_v15 = vld [vmem:[#allocation2 + $0x130] sm:$0xff]  ;;  %v2210_v13 = vadd.f32 %v10508_v57, %v1985_v62  ;;  %6454 = vmatprep.mubr.msk.f32.mxu0 %vm548_vm0, %v2466_v21  ;;  %v7660_v44 = vpack.i.bf16 %v2429_v2, %v10812_v38  ;;  %v7655_v57 = vpack.i.bf16 %v10780_v50, %v2466_v21 }
 0x337   : >> { %v7650_v23 = vpack.i.bf16 %v2393_v28, %v2431_v15  ;;  %v2395_v55 = vld [vmem:[#allocation2 + $0x12f] sm:$0xff]  ;;  %6455 = vmatmul.mubr.msk.f32.gmra.mrb[78].mxu0 %vm548_vm0, %v10812_v38 }
 0x338   : >> { %v7645_v14 = vpack.i.bf16 %v10766_v11, %v2395_v55  ;;  %v2292_v5 = vmax.f32 %v2210_v13, 0.0 }
 0x339   : >> { %7651 = vrot.lane.b32.xlu1 %v7650_v23, %s8889_s22  ;;  %v1989_v34 = vpop.f32.mrb[40].mxu0 }
 0x33a   : >> { %7646 = vrot.lane.b32.xlu0 %v7645_v14, %s8890_s14  ;;  %2363 = vst.msk [vmem:[#allocation2 + $0x150] sm:$0xff] %vm548_vm0, %v2292_v5  ;;  %v1990_v28 = vadd.f32 %v10531_v51, %v1989_v34  ;;  %v1991_v63 = vpop.f32.mrb[41].mxu0 }
 0x33b   : >> { %v2396_v33 = vld [vmem:[#allocation2 + $0x147] sm:$0xff] }
 0x33c   : >> { %v10826_v61 = vld [vmem:[#allocation2 + $0x148] sm:$0xff]  ;;  %v2215_v11 = vadd.f32 %v10523_v7, %v1990_v28  ;;  %v7665_v10 = vpack.i.bf16 %v2464_v1, %v2396_v33 }
 0x33d   : >> { %7661 = vrot.lane.b32.xlu1 %v7660_v44, %s8888_s24  ;;  %v7670_v22 = vpack.i.bf16 %v2394_v17, %v10826_v61 }
 0x33e   : >> { %7656 = vrot.lane.b32.xlu0 %v7655_v57, %s8888_s24  ;;  %v2293_v26 = vmax.f32 %v2215_v11, 0.0 }
 0x33f   : >> { %v1994_v2 = vpop.f32.mrb[42].mxu0 }
 0x340   : >> { %v1995_v6 = vadd.f32 %v10531_v51, %v1994_v2  ;;  %v1996_v50 = vpop.f32.mrb[43].mxu0  ;;  %2364 = vst.msk [vmem:[#allocation2 + $0x168] sm:$0xff] %vm548_vm0, %v2293_v26 }
 0x341   : >> { %7666 = vrot.lane.b32.xlu1 %v7665_v10, %s8890_s14  ;;  %v10835_v58 = vld [vmem:[#allocation2 + $0x149] sm:$0xff]  ;;  %v10837_v36 = vld [vmem:[#allocation2 + $0x151] sm:$0xff] }
 0x342   : >> { %7671 = vrot.lane.b32.xlu0 %v7670_v22, %s8889_s22  ;;  %v10839_v7 = vld [vmem:[#allocation2 + $0x150] sm:$0xff]  ;;  %v2220_v1 = vadd.f32 %v10521_v32, %v1995_v6  ;;  %6457 = vmatprep.mubr.msk.f32.mxu0 %vm548_vm0, %v10835_v58  ;;  %v7690_v32 = vpack.i.bf16 %v2431_v15, %v10837_v36  ;;  %v7685_v23 = vpack.i.bf16 %v10803_v49, %v10835_v58 }
 0x343   : >> { %v7680_v17 = vpack.i.bf16 %v2395_v55, %v10839_v7  ;;  %v2397_v41 = vld [vmem:[#allocation2 + $0x14f] sm:$0xff]  ;;  %6458 = vmatmul.mubr.msk.f32.gmra.mrb[80].mxu0 %vm548_vm0, %v10837_v36 }
 0x344   : >> { %v7675_v62 = vpack.i.bf16 %v10789_v40, %v2397_v41  ;;  %v2294_v0 = vmax.f32 %v2220_v1, 0.0 }
 0x345   : >> { %7681 = vrot.lane.b32.xlu1 %v7680_v17, %s8889_s22  ;;  %v1999_v13 = vpop.f32.mrb[44].mxu0 }
 0x346   : >> { %7676 = vrot.lane.b32.xlu0 %v7675_v62, %s8890_s14  ;;  %2365 = vst.msk [vmem:[#allocation2 + $0x170] sm:$0xff] %vm548_vm0, %v2294_v0  ;;  %v2000_v55 = vadd.f32 %v10531_v51, %v1999_v13  ;;  %v2001_v14 = vpop.f32.mrb[45].mxu0 }
 0x347   : >> { %v10856_v5 = vld [vmem:[#allocation2 + $0x167] sm:$0xff] }
 0x348   : >> { %v10858_v40 = vld [vmem:[#allocation2 + $0x168] sm:$0xff]  ;;  %v2225_v44 = vadd.f32 %v10544_v56, %v2000_v55  ;;  %v7695_v34 = vpack.i.bf16 %v2466_v21, %v10856_v5 }
 0x349   : >> { %7691 = vrot.lane.b32.xlu1 %v7690_v32, %s8888_s24  ;;  %v7700_v15 = vpack.i.bf16 %v2396_v33, %v10858_v40  ;;  %v2376_v33 = vld [vmem:[#allocation2 + $0x7] sm:$0xff] }
 0x34a   : >> { %7686 = vrot.lane.b32.xlu0 %v7685_v23, %s8888_s24  ;;  %v7417_v57 = vpop.permute.xlu0 %7416  ;;  %v2295_v28 = vmax.f32 %v2225_v44, 0.0  ;;  %v7422_v10 = vpop.permute.xlu1 %7421 }
 0x34b   : >> { %v2004_v49 = vpop.f32.mrb[46].mxu0  ;;  %v7419_v22 = vunpack.i.h.bf16 %v7417_v57  ;;  %v7418_v50 = vunpack.i.l.bf16 %v7417_v57 }
 0x34c   : >> { %v2005_v63 = vadd.f32 %v10531_v51, %v2004_v49  ;;  %v2006_v11 = vpop.f32.mrb[47].mxu0  ;;  %2366 = vst.msk [vmem:[#allocation2 + $0x188] sm:$0xff] %vm548_vm0, %v2295_v28  ;;  %v7424_v28 = vunpack.i.h.bf16 %v7422_v10 }
 0x34d   : >> { %7696 = vrot.lane.b32.xlu1 %v7695_v34, %s8890_s14  ;;  %v10868_v56 = vld [vmem:[#allocation2 + $0x169] sm:$0xff]  ;;  %v10870_v26 = vld [vmem:[#allocation2 + $0x171] sm:$0xff]  ;;  %v3164_v0 = vsel %vm548_vm0, %v2376_v33, %v7419_v22  ;;  %v7423_v33 = vunpack.i.l.bf16 %v7422_v10 }
 0x34e   : >> { %7701 = vrot.lane.b32.xlu0 %v7700_v15, %s8889_s22  ;;  %v10872_v21 = vld [vmem:[#allocation2 + $0x170] sm:$0xff]  ;;  %v2230_v2 = vadd.f32 %v10541_v18, %v2005_v63  ;;  %6460 = vmatprep.mubr.msk.f32.mxu0 %vm548_vm0, %v10868_v56  ;;  %v7720_v34 = vpack.i.bf16 %v10839_v7, %v10870_v26 }
 0x34f   : >> { %v10877_v6 = vld [vmem:[#allocation2 + $0x16f] sm:$0xff]  ;;  %6461 = vmatmul.mubr.msk.f32.gmra.mrb[82].mxu0 %vm548_vm0, %v10870_v26  ;;  %v7710_v1 = vpack.i.bf16 %v2397_v41, %v10872_v21  ;;  %v3260_v41 = vsel %vm548_vm0, %v10619_v24, %v7418_v50 }
 0x350   : >> { %v7705_v17 = vpack.i.bf16 %v10812_v38, %v10877_v6  ;;  %v2296_v62 = vmax.f32 %v2230_v2, 0.0  ;;  %v7427_v18 = vpop.permute.xlu1 %7426  ;;  %v7715_v38 = vpack.i.bf16 %v10826_v61, %v10868_v56  ;;  %v2377_v2 = vld [vmem:[#allocation2 + $0xf] sm:$0xff] }
 0x351   : >> { %7711 = vrot.lane.b32.xlu1 %v7710_v1, %s8889_s22  ;;  %v7432_v32 = vpop.permute.xlu0 %7431  ;;  %v7429_v13 = vunpack.i.h.bf16 %v7427_v18  ;;  %v7428_v23 = vunpack.i.l.bf16 %v7427_v18  ;;  %v2009_v44 = vpop.f32.mrb[48].mxu0 }
 0x352   : >> { %7706 = vrot.lane.b32.xlu0 %v7705_v17, %s8890_s14  ;;  %2367 = vst.msk [vmem:[#allocation2 + $0x190] sm:$0xff] %vm548_vm0, %v2296_v62  ;;  %v7434_v55 = vunpack.i.h.bf16 %v7432_v32  ;;  %v7433_v14 = vunpack.i.l.bf16 %v7432_v32  ;;  %v2010_v15 = vadd.f32 %v10531_v51, %v2009_v44  ;;  %v2011_v57 = vpop.f32.mrb[49].mxu0 }
 0x353   : >> { %v3196_v49 = vsel %vm1589_vm1, %v3164_v0, %v7429_v13  ;;  %v3292_v63 = vsel %vm1589_vm1, %v3260_v41, %v7428_v23  ;;  %v10897_v11 = vld [vmem:[#allocation2 + $0x187] sm:$0xff] }
 0x354   : >> { %v10899_v22 = vld [vmem:[#allocation2 + $0x188] sm:$0xff]  ;;  %v2235_v24 = vadd.f32 %v10568_v9, %v2010_v15  ;;  %v3324_v61 = vsel %vm1622_vm2, %v3292_v63, %v7433_v14  ;;  %v3228_v7 = vsel %vm1622_vm2, %v3196_v49, %v7434_v55  ;;  %v7725_v1 = vpack.i.bf16 %v10835_v58, %v10897_v11 }
 0x355   : >> { %7721 = vrot.lane.b32.xlu1 %v7720_v34, %s8888_s24  ;;  %3492 = vmatprep.mubr.f32.mxu1 %v3324_v61  ;;  %v7730_v17 = vpack.i.bf16 %v10856_v5, %v10899_v22  ;;  %v3165_v14 = vsel %vm548_vm0, %v2377_v2, %v7424_v28  ;;  %v3261_v58 = vsel %vm548_vm0, %v10616_v39, %v7423_v33 }
 0x356   : >> { %7716 = vrot.lane.b32.xlu0 %v7715_v38, %s8888_s24  ;;  %v2297_v10 = vmax.f32 %v2235_v24, 0.0  ;;  %3493 = vmatmul.mubr.f32.vlgmr.msra.gmra.mrb[32].mxu1 %v3228_v7 }
 0x357   : >> { %v7442_v50 = vpop.permute.xlu1 %7441  ;;  %v2014_v0 = vpop.f32.mrb[50].mxu0  ;;  %6729 = vmatpush3.bf16.msra.mxu1 %v10344_v42 }
 0x358   : >> { %v7443_v62 = vunpack.i.l.bf16 %v7442_v50  ;;  %v7437_v9 = vpop.permute.xlu0 %7436  ;;  %v7444_v18 = vunpack.i.h.bf16 %v7442_v50  ;;  %v2015_v23 = vadd.f32 %v10531_v51, %v2014_v0  ;;  %v2016_v55 = vpop.f32.mrb[51].mxu0  ;;  %2368 = vst.msk [vmem:[#allocation2 + $0x1a8] sm:$0xff] %vm548_vm0, %v2297_v10  ;;  %6728 = vmatprep.subr.bf16.mxu1 %v10356_v37 }
 0x359   : >> { %v7439_v32 = vunpack.i.h.bf16 %v7437_v9  ;;  %v7438_v13 = vunpack.i.l.bf16 %v7437_v9  ;;  %7726 = vrot.lane.b32.xlu1 %v7725_v1, %s8890_s14  ;;  %v10918_v5 = vld [vmem:[#allocation2 + $0x190] sm:$0xff] }
 0x35a   : >> { %7731 = vrot.lane.b32.xlu0 %v7730_v17, %s8889_s22  ;;  %v10920_v44 = vld [vmem:[#allocation2 + $0x18f] sm:$0xff]  ;;  %v2240_v41 = vadd.f32 %v10561_v60, %v2015_v23  ;;  %v7740_v34 = vpack.i.bf16 %v10877_v6, %v10918_v5 }
 0x35b   : >> { %v7452_v38 = vpop.permute.xlu1 %7451  ;;  %v3293_v42 = vsel %vm1589_vm1, %v3261_v58, %v7438_v13  ;;  %v7735_v39 = vpack.i.bf16 %v10837_v36, %v10920_v44  ;;  %v3197_v28 = vsel %vm1589_vm1, %v3165_v14, %v7439_v32  ;;  %v10931_v49 = vld [vmem:[#allocation2 + $0x191] sm:$0xff]  ;;  %v10934_v61 = vld [vmem:[#allocation2 + $0x189] sm:$0xff]  ;;  %6730 = vmatpush3.bf16.msra.mxu1 %v10356_v37 }
 0x35c   : >> { %v7447_v15 = vpop.permute.xlu0 %7446  ;;  %v3325_v57 = vsel %vm1622_vm2, %v3293_v42, %v7443_v62  ;;  %v2298_v63 = vmax.f32 %v2240_v41, 0.0  ;;  %v3229_v24 = vsel %vm1622_vm2, %v3197_v28, %v7444_v18  ;;  %v7454_v36 = vunpack.i.h.bf16 %v7452_v38  ;;  %6665 = vmatprep.subr.bf16.mxu1 %v12886_v30 }
 0x35d   : >> { %v7449_v60 = vunpack.i.h.bf16 %v7447_v15  ;;  %v7448_v33 = vunpack.i.l.bf16 %v7447_v15  ;;  %3497 = vmatprep.mubr.f32.mxu1 %v3325_v57  ;;  %7741 = vrot.lane.b32.xlu1 %v7740_v34, %s8889_s22  ;;  %v2019_v6 = vpop.f32.mrb[52].mxu0  ;;  %v7750_v2 = vpack.i.bf16 %v10872_v21, %v10931_v49  ;;  %v7745_v62 = vpack.i.bf16 %v10858_v40, %v10934_v61 }
 0x35e   : >> { %7736 = vrot.lane.b32.xlu0 %v7735_v39, %s8890_s14  ;;  %2369 = vst.msk [vmem:[#allocation2 + $0x1b0] sm:$0xff] %vm548_vm0, %v2298_v63  ;;  %3498 = vmatmul.mubr.f32.gmra.mrb[34].mxu1 %v3229_v24  ;;  %v2020_v50 = vadd.f32 %v10531_v51, %v2019_v6  ;;  %v2021_v10 = vpop.f32.mrb[53].mxu0  ;;  %v7453_v23 = vunpack.i.l.bf16 %v7452_v38 }
 0x35f   : >> { %v7457_v7 = vpop.permute.xlu1 %7456  ;;  %v3166_v9 = vsel %vm548_vm0, %v10580_v3, %v7449_v60  ;;  %v3262_v0 = vsel %vm548_vm0, %v10582_v52, %v7448_v33  ;;  %v10950_v21 = vld [vmem:[#allocation2 + $0x1a7] sm:$0xff]  ;;  %v3167_v60 = vsel %vm548_vm0, %v10591_v48, %v7454_v36 }
 0x360   : >> { %v7459_v1 = vunpack.i.h.bf16 %v7457_v7  ;;  %v7458_v17 = vunpack.i.l.bf16 %v7457_v7  ;;  %v7462_v37 = vpop.permute.xlu0 %7461  ;;  %v10952_v13 = vld [vmem:[#allocation2 + $0x1a8] sm:$0xff]  ;;  %v2245_v55 = vadd.f32 %v10602_v8, %v2020_v50  ;;  %v7755_v3 = vpack.i.bf16 %v10868_v56, %v10950_v21 }
 0x361   : >> { %v7464_v18 = vunpack.i.h.bf16 %v7462_v37  ;;  %v7463_v32 = vunpack.i.l.bf16 %v7462_v37  ;;  %7751 = vrot.lane.b32.xlu1 %v7750_v2, %s8888_s24  ;;  %v7760_v58 = vpack.i.bf16 %v10897_v11, %v10952_v13  ;;  %v3263_v11 = vsel %vm548_vm0, %v10600_v43, %v7453_v23 }
 0x362   : >> { %7746 = vrot.lane.b32.xlu0 %v7745_v62, %s8888_s24  ;;  %v3294_v40 = vsel %vm1589_vm1, %v3262_v0, %v7458_v17  ;;  %v3198_v41 = vsel %vm1589_vm1, %v3166_v9, %v7459_v1  ;;  %v2299_v38 = vmax.f32 %v2245_v55, 0.0 }
 0x363   : >> { %v7472_v14 = vpop.permute.xlu1 %7471  ;;  %v3326_v52 = vsel %vm1622_vm2, %v3294_v40, %v7463_v32  ;;  %v2024_v34 = vpop.f32.mrb[54].mxu0  ;;  %v3230_v39 = vsel %vm1622_vm2, %v3198_v41, %v7464_v18  ;;  %v10997_v18 = vld [vmem:[%s734_s29] ss:$0 sm:$0xff] }
 0x364   : >> { %v7473_v42 = vunpack.i.l.bf16 %v7472_v14  ;;  %v7467_v8 = vpop.permute.xlu0 %7466  ;;  %3502 = vmatprep.mubr.f32.mxu1 %v3326_v52  ;;  %v7474_v15 = vunpack.i.h.bf16 %v7472_v14  ;;  %v2025_v56 = vadd.f32 %v10531_v51, %v2024_v34  ;;  %v2026_v63 = vpop.f32.mrb[55].mxu0  ;;  %2370 = vst.msk [vmem:[#allocation2 + $0x1c8] sm:$0xff] %vm548_vm0, %v2299_v38 }
 0x365   : >> { %v7469_v57 = vunpack.i.h.bf16 %v7467_v8  ;;  %v7468_v28 = vunpack.i.l.bf16 %v7467_v8  ;;  %3503 = vmatmul.mubr.f32.gmra.mrb[36].mxu1 %v3230_v39  ;;  %7756 = vrot.lane.b32.xlu1 %v7755_v3, %s8890_s14  ;;  %v10973_v33 = vld [vmem:[#allocation2 + $0x1b0] sm:$0xff] }
 0x366   : >> { %7761 = vrot.lane.b32.xlu0 %v7760_v58, %s8889_s22  ;;  %v10975_v24 = vld [vmem:[#allocation2 + $0x1af] sm:$0xff]  ;;  %v2250_v51 = vadd.f32 %v10593_v59, %v2025_v56  ;;  %v7770_v48 = vpack.i.bf16 %v10920_v44, %v10973_v33 }
 0x367   : >> { %v7482_v6 = vpop.permute.xlu1 %7481  ;;  %v3295_v7 = vsel %vm1589_vm1, %v3263_v11, %v7468_v28  ;;  %v7765_v43 = vpack.i.bf16 %v10870_v26, %v10975_v24  ;;  %v3199_v50 = vsel %vm1589_vm1, %v3167_v60, %v7469_v57  ;;  %v10985_v1 = vld [vmem:[#allocation2 + $0x1b1] sm:$0xff]  ;;  %v10988_v62 = vld [vmem:[#allocation2 + $0x1a9] sm:$0xff] }
 0x368   : >> { %v7477_v36 = vpop.permute.xlu0 %7476  ;;  %v3327_v2 = vsel %vm1622_vm2, %v3295_v7, %v7473_v42  ;;  %v2300_v17 = vmax.f32 %v2250_v51, 0.0  ;;  %v3231_v10 = vsel %vm1622_vm2, %v3199_v50, %v7474_v15  ;;  %v7484_v26 = vunpack.i.h.bf16 %v7482_v6 }
 0x369   : >> { %v7479_v37 = vunpack.i.h.bf16 %v7477_v36  ;;  %v7478_v59 = vunpack.i.l.bf16 %v7477_v36  ;;  %3507 = vmatprep.mubr.f32.mxu1 %v3327_v2  ;;  %7771 = vrot.lane.b32.xlu1 %v7770_v48, %s8889_s22  ;;  %v2029_v44 = vpop.f32.mrb[56].mxu0  ;;  %v7780_v0 = vpack.i.bf16 %v10918_v5, %v10985_v1  ;;  %v7775_v14 = vpack.i.bf16 %v10899_v22, %v10988_v62 }
 0x36a   : >> { %7766 = vrot.lane.b32.xlu0 %v7765_v43, %s8890_s14  ;;  %2371 = vst.msk [vmem:[#allocation2 + $0x1d0] sm:$0xff] %vm548_vm0, %v2300_v17  ;;  %3508 = vmatmul.mubr.f32.gmra.mrb[38].mxu1 %v3231_v10  ;;  %v2030_v32 = vadd.f32 %v10997_v18, %v2029_v44  ;;  %v2031_v3 = vpop.f32.mrb[57].mxu0  ;;  %v7483_v8 = vunpack.i.l.bf16 %v7482_v6  ;;  %v3169_v48 = vsel %vm548_vm0, %v10609_v46, %v7484_v26 }
 0x36b   : >> { %v7487_v9 = vpop.permute.xlu1 %7486  ;;  %v3168_v52 = vsel %vm548_vm0, %v10578_v4, %v7479_v37  ;;  %v3264_v58 = vsel %vm548_vm0, %v10629_v16, %v7478_v59  ;;  %v11006_v38 = vld [vmem:[#allocation2 + $0x1c7] sm:$0xff] }
 0x36c   : >> { %v7489_v23 = vunpack.i.h.bf16 %v7487_v9  ;;  %v7488_v55 = vunpack.i.l.bf16 %v7487_v9  ;;  %v7492_v40 = vpop.permute.xlu0 %7491  ;;  %v11008_v42 = vld [vmem:[#allocation2 + $0x1c8] sm:$0xff]  ;;  %v2255_v34 = vadd.f32 %v10649_v31, %v2030_v32  ;;  %v7785_v4 = vpack.i.bf16 %v10934_v61, %v11006_v38 }
 0x36d   : >> { %v7494_v41 = vunpack.i.h.bf16 %v7492_v40  ;;  %v7493_v5 = vunpack.i.l.bf16 %v7492_v40  ;;  %7781 = vrot.lane.b32.xlu1 %v7780_v0, %s8888_s24  ;;  %v7790_v15 = vpack.i.bf16 %v10950_v21, %v11008_v42  ;;  %v3265_v21 = vsel %vm548_vm0, %v10647_v47, %v7483_v8 }
 0x36e   : >> { %7776 = vrot.lane.b32.xlu0 %v7775_v14, %s8888_s24  ;;  %v3296_v22 = vsel %vm1589_vm1, %v3264_v58, %v7488_v55  ;;  %v3200_v57 = vsel %vm1589_vm1, %v3168_v52, %v7489_v23  ;;  %v2301_v28 = vmax.f32 %v2255_v34, 0.0 }
 0x36f   : >> { %v7502_v39 = vpop.permute.xlu1 %7501  ;;  %v3328_v16 = vsel %vm1622_vm2, %v3296_v22, %v7493_v5  ;;  %v2034_v63 = vpop.f32.mrb[58].mxu0  ;;  %v3232_v60 = vsel %vm1622_vm2, %v3200_v57, %v7494_v41 }
 0x370   : >> { %v7503_v56 = vunpack.i.l.bf16 %v7502_v39  ;;  %v7497_v31 = vpop.permute.xlu0 %7496  ;;  %3512 = vmatprep.mubr.f32.mxu1 %v3328_v16  ;;  %v7504_v11 = vunpack.i.h.bf16 %v7502_v39  ;;  %v2035_v61 = vadd.f32 %v10997_v18, %v2034_v63  ;;  %v2036_v7 = vpop.f32.mrb[59].mxu0  ;;  %2372 = vst.msk [vmem:[#allocation2 + $0x1e8] sm:$0xff] %vm548_vm0, %v2301_v28 }
 0x371   : >> { %v7499_v51 = vunpack.i.h.bf16 %v7497_v31  ;;  %v7498_v6 = vunpack.i.l.bf16 %v7497_v31  ;;  %3513 = vmatmul.mubr.f32.gmra.mrb[40].mxu1 %v3232_v60  ;;  %7786 = vrot.lane.b32.xlu1 %v7785_v4, %s8890_s14  ;;  %v11029_v43 = vld [vmem:[#allocation2 + $0x1d0] sm:$0xff] }
 0x372   : >> { %7791 = vrot.lane.b32.xlu0 %v7790_v15, %s8889_s22  ;;  %v11031_v36 = vld [vmem:[#allocation2 + $0x1cf] sm:$0xff]  ;;  %v2260_v2 = vadd.f32 %v10639_v45, %v2035_v61  ;;  %v7800_v46 = vpack.i.bf16 %v10975_v24, %v11029_v43 }
 0x373   : >> { %v7512_v50 = vpop.permute.xlu1 %7511  ;;  %v3297_v17 = vsel %vm1589_vm1, %v3265_v21, %v7498_v6  ;;  %v7795_v47 = vpack.i.bf16 %v10931_v49, %v11031_v36  ;;  %v3201_v10 = vsel %vm1589_vm1, %v3169_v48, %v7499_v51  ;;  %v11041_v26 = vld [vmem:[#allocation2 + $0x1d1] sm:$0xff]  ;;  %v11044_v32 = vld [vmem:[#allocation2 + $0x1c9] sm:$0xff] }
 0x374   : >> { %v7507_v37 = vpop.permute.xlu0 %7506  ;;  %v3329_v59 = vsel %vm1622_vm2, %v3297_v17, %v7503_v56  ;;  %v2302_v44 = vmax.f32 %v2260_v2, 0.0  ;;  %v3233_v45 = vsel %vm1622_vm2, %v3201_v10, %v7504_v11  ;;  %v7514_v49 = vunpack.i.h.bf16 %v7512_v50 }
 0x375   : >> { %v7509_v9 = vunpack.i.h.bf16 %v7507_v37  ;;  %v7508_v0 = vunpack.i.l.bf16 %v7507_v37  ;;  %3517 = vmatprep.mubr.f32.mxu1 %v3329_v59  ;;  %7801 = vrot.lane.b32.xlu1 %v7800_v46, %s8889_s22  ;;  %v2039_v24 = vpop.f32.mrb[60].mxu0  ;;  %v7810_v55 = vpack.i.bf16 %v10973_v33, %v11041_v26  ;;  %v7805_v41 = vpack.i.bf16 %v10952_v13, %v11044_v32 }
 0x376   : >> { %7796 = vrot.lane.b32.xlu0 %v7795_v47, %s8890_s14  ;;  %2373 = vst.msk [vmem:[#allocation2 + $0x1f0] sm:$0xff] %vm548_vm0, %v2302_v44  ;;  %3518 = vmatmul.mubr.f32.gmra.mrb[42].mxu1 %v3233_v45  ;;  %v2040_v40 = vadd.f32 %v10997_v18, %v2039_v24  ;;  %v2041_v58 = vpop.f32.mrb[61].mxu0  ;;  %v7513_v16 = vunpack.i.l.bf16 %v7512_v50  ;;  %v3171_v21 = vsel %vm548_vm0, %v10656_v20, %v7514_v49 }
 0x377   : >> { %v7517_v23 = vpop.permute.xlu1 %7516  ;;  %v3170_v5 = vsel %vm548_vm0, %v10627_v27, %v7509_v9  ;;  %v3266_v8 = vsel %vm548_vm0, %v10671_v35, %v7508_v0  ;;  %v11058_v4 = vld [vmem:[#allocation2 + $0x1e7] sm:$0xff] }
 0x378   : >> { %v7519_v3 = vunpack.i.h.bf16 %v7517_v23  ;;  %v7518_v14 = vunpack.i.l.bf16 %v7517_v23  ;;  %v7522_v52 = vpop.permute.xlu0 %7521  ;;  %v11060_v39 = vld [vmem:[#allocation2 + $0x1e8] sm:$0xff]  ;;  %v2265_v15 = vadd.f32 %v10688_v19, %v2040_v40  ;;  %v7815_v27 = vpack.i.bf16 %v10988_v62, %v11058_v4 }
 0x379   : >> { %v7524_v34 = vunpack.i.h.bf16 %v7522_v52  ;;  %v7523_v22 = vunpack.i.l.bf16 %v7522_v52  ;;  %7811 = vrot.lane.b32.xlu1 %v7810_v55, %s8888_s24  ;;  %v7820_v56 = vpack.i.bf16 %v11006_v38, %v11060_v39  ;;  %v3267_v2 = vsel %vm548_vm0, %v10686_v54, %v7513_v16  ;;  %v7904_v52 = vld [vmem:[#allocation2 + $0x87] sm:$0xff] }
 0x37a   : >> { %7806 = vrot.lane.b32.xlu0 %v7805_v41, %s8888_s24  ;;  %v3298_v57 = vsel %vm1589_vm1, %v3266_v8, %v7518_v14  ;;  %v3202_v31 = vsel %vm1589_vm1, %v3170_v5, %v7519_v3  ;;  %v2303_v63 = vmax.f32 %v2265_v15, 0.0 }
 0x37b   : >> { %v7532_v28 = vpop.permute.xlu1 %7531  ;;  %v3330_v35 = vsel %vm1622_vm2, %v3298_v57, %v7523_v22  ;;  %v2044_v11 = vpop.f32.mrb[62].mxu0  ;;  %v3234_v51 = vsel %vm1622_vm2, %v3202_v31, %v7524_v34 }
 0x37c   : >> { %v7533_v60 = vunpack.i.l.bf16 %v7532_v28  ;;  %v7527_v19 = vpop.permute.xlu0 %7526  ;;  %3522 = vmatprep.mubr.f32.mxu1 %v3330_v35  ;;  %v7534_v6 = vunpack.i.h.bf16 %v7532_v28  ;;  %v2045_v62 = vadd.f32 %v10997_v18, %v2044_v11  ;;  %v2046_v48 = vpop.f32.mrb[63].mxu0  ;;  %2374 = vst.msk [vmem:[#allocation2 + $0x208] sm:$0xff] %vm548_vm0, %v2303_v63 }
 0x37d   : >> { %v7529_v61 = vunpack.i.h.bf16 %v7527_v19  ;;  %v7528_v7 = vunpack.i.l.bf16 %v7527_v19  ;;  %3523 = vmatmul.mubr.f32.gmra.mrb[44].mxu1 %v3234_v51  ;;  %7816 = vrot.lane.b32.xlu1 %v7815_v27, %s8890_s14  ;;  %v11081_v50 = vld [vmem:[#allocation2 + $0x1f0] sm:$0xff]  ;;  %v2410_v51 = vld [vmem:[#allocation2 + $0x227] sm:$0xff] }
 0x37e   : >> { %7821 = vrot.lane.b32.xlu0 %v7820_v56, %s8889_s22  ;;  %v11083_v17 = vld [vmem:[#allocation2 + $0x1ef] sm:$0xff]  ;;  %v2270_v18 = vadd.f32 %v10680_v25, %v2045_v62  ;;  %v7830_v20 = vpack.i.bf16 %v11031_v36, %v11081_v50 }
 0x37f   : >> { %v7542_v46 = vpop.permute.xlu1 %7541  ;;  %v3299_v47 = vsel %vm1589_vm1, %v3267_v2, %v7528_v7  ;;  %v7825_v54 = vpack.i.bf16 %v10985_v1, %v11083_v17  ;;  %v3203_v10 = vsel %vm1589_vm1, %v3171_v21, %v7529_v61  ;;  %v11094_v45 = vld [vmem:[#allocation2 + $0x1f1] sm:$0xff]  ;;  %v11096_v49 = vld [vmem:[#allocation2 + $0x1e9] sm:$0xff] }
 0x380   : >> { %v7537_v37 = vpop.permute.xlu0 %7536  ;;  %v3331_v59 = vsel %vm1622_vm2, %v3299_v47, %v7533_v60  ;;  %v2304_v44 = vmax.f32 %v2270_v18, 0.0  ;;  %v3235_v25 = vsel %vm1622_vm2, %v3203_v10, %v7534_v6  ;;  %v7544_v1 = vunpack.i.h.bf16 %v7542_v46  ;;  %v7905_v6 = vld [vmem:[#allocation2 + $0x8f] sm:$0xff] }
 0x381   : >> { %v7539_v9 = vunpack.i.h.bf16 %v7537_v37  ;;  %v7538_v0 = vunpack.i.l.bf16 %v7537_v37  ;;  %3527 = vmatprep.mubr.f32.mxu1 %v3331_v59  ;;  %7831 = vrot.lane.b32.xlu1 %v7830_v20, %s8889_s22  ;;  %v7840_v3 = vpack.i.bf16 %v11029_v43, %v11094_v45  ;;  %v7835_v14 = vpack.i.bf16 %v11008_v42, %v11096_v49 }
 0x382   : >> { %7826 = vrot.lane.b32.xlu0 %v7825_v54, %s8890_s14  ;;  %2375 = vst.msk [vmem:[#allocation2 + $0x210] sm:$0xff] %vm548_vm0, %v2304_v44  ;;  %3528 = vmatmul.mubr.f32.gmra.mrb[46].mxu1 %v3235_v25  ;;  %v7543_v16 = vunpack.i.l.bf16 %v7542_v46  ;;  %v7850_v47 = vpack.i.bf16 %v11096_v49, %v2410_v51 }
 0x383   : >> { %v7547_v24 = vpop.permute.xlu1 %7546  ;;  %v3172_v58 = vsel %vm548_vm0, %v7904_v52, %v7539_v9  ;;  %v3268_v41 = vsel %vm548_vm0, %v10705_v53, %v7538_v0  ;;  %v11108_v34 = vld [vmem:[#allocation2 + $0x207] sm:$0xff] }
 0x384   : >> { %v7549_v23 = vunpack.i.h.bf16 %v7547_v24  ;;  %v7548_v55 = vunpack.i.l.bf16 %v7547_v24  ;;  %v7552_v40 = vpop.permute.xlu0 %7551  ;;  %v11110_v22 = vld [vmem:[#allocation2 + $0x208] sm:$0xff]  ;;  %v7845_v57 = vpack.i.bf16 %v11044_v32, %v11108_v34  ;;  %v3173_v32 = vsel %vm548_vm0, %v7905_v6, %v7544_v1 }
 0x385   : >> { %v7554_v5 = vunpack.i.h.bf16 %v7552_v40  ;;  %v7553_v8 = vunpack.i.l.bf16 %v7552_v40  ;;  %7841 = vrot.lane.b32.xlu1 %v7840_v3, %s8888_s24  ;;  %v7855_v27 = vpack.i.bf16 %v11058_v4, %v11110_v22  ;;  %v3269_v61 = vsel %vm548_vm0, %v10717_v12, %v7543_v16  ;;  %v7906_v1 = vld [vmem:[#allocation2 + $0xa7] sm:$0xff] }
 0x386   : >> { %7836 = vrot.lane.b32.xlu0 %v7835_v14, %s8888_s24  ;;  %v3300_v15 = vsel %vm1589_vm1, %v3268_v41, %v7548_v55  ;;  %v3204_v35 = vsel %vm1589_vm1, %v3172_v58, %v7549_v23  ;;  %v2446_v14 = vld [vmem:[#allocation2 + $0x228] sm:$0xff] }
 0x387   : >> { %v7562_v53 = vpop.permute.xlu1 %7561  ;;  %v3332_v28 = vsel %vm1622_vm2, %v3300_v15, %v7553_v8  ;;  %v3236_v60 = vsel %vm1622_vm2, %v3204_v35, %v7554_v5 }
 0x388   : >> { %v7564_v56 = vunpack.i.h.bf16 %v7562_v53  ;;  %v7563_v31 = vunpack.i.l.bf16 %v7562_v53  ;;  %v7557_v63 = vpop.permute.xlu0 %7556  ;;  %3532 = vmatprep.mubr.f32.mxu1 %v3332_v28  ;;  %v7875_v28 = vpack.i.bf16 %v11108_v34, %v2446_v14 }
 0x389   : >> { %v7559_v19 = vunpack.i.h.bf16 %v7557_v63  ;;  %v7558_v11 = vunpack.i.l.bf16 %v7557_v63  ;;  %3533 = vmatmul.mubr.f32.gmra.mrb[48].mxu1 %v3236_v60  ;;  %7846 = vrot.lane.b32.xlu1 %v7845_v57, %s8890_s14  ;;  %v11127_v7 = vld [vmem:[#allocation2 + $0x20f] sm:$0xff] }
 0x38a   : >> { %7856 = vrot.lane.b32.xlu0 %v7855_v27, %s8889_s22  ;;  %v7860_v21 = vpack.i.bf16 %v11041_v26, %v11127_v7  ;;  %v11136_v37 = vld [vmem:[#allocation2 + $0x210] sm:$0xff] }
 0x38b   : >> { %v7572_v62 = vpop.permute.xlu1 %7571  ;;  %v3301_v48 = vsel %vm1589_vm1, %v3269_v61, %v7558_v11  ;;  %v3205_v2 = vsel %vm1589_vm1, %v3173_v32, %v7559_v19  ;;  %v11138_v59 = vld [vmem:[#allocation2 + $0x209] sm:$0xff]  ;;  %v7865_v0 = vpack.i.bf16 %v11083_v17, %v11136_v37  ;;  %v11149_v3 = vld [vmem:[#allocation2 + $0x211] sm:$0xff] }
 0x38c   : >> { %v7567_v18 = vpop.permute.xlu0 %7566  ;;  %v3333_v46 = vsel %vm1622_vm2, %v3301_v48, %v7563_v31  ;;  %v3237_v12 = vsel %vm1622_vm2, %v3205_v2, %v7564_v56  ;;  %v7870_v25 = vpack.i.bf16 %v11060_v39, %v11138_v59  ;;  %v7574_v52 = vunpack.i.h.bf16 %v7572_v62  ;;  %v2447_v31 = vld [vmem:[#allocation2 + $0x230] sm:$0xff] }
 0x38d   : >> { %v7569_v20 = vunpack.i.h.bf16 %v7567_v18  ;;  %v7568_v54 = vunpack.i.l.bf16 %v7567_v18  ;;  %3537 = vmatprep.mubr.f32.mxu1 %v3333_v46  ;;  %7851 = vrot.lane.b32.xlu1 %v7850_v47, %s8890_s14  ;;  %v7573_v58 = vunpack.i.l.bf16 %v7572_v62  ;;  %v7880_v53 = vpack.i.bf16 %v11081_v50, %v11149_v3  ;;  %v2411_v63 = vld [vmem:[#allocation2 + $0x22f] sm:$0xff] }
 0x38e   : >> { %7861 = vrot.lane.b32.xlu0 %v7860_v21, %s8890_s14  ;;  %3538 = vmatmul.mubr.f32.gmra.mrb[50].mxu1 %v3237_v12  ;;  %v7907_v60 = vld [vmem:[#allocation2 + $0xaf] sm:$0xff]  ;;  %v7890_v48 = vpack.i.bf16 %v11127_v7, %v2447_v31  ;;  %v7885_v21 = vpack.i.bf16 %v11094_v45, %v2411_v63 }
 0x38f   : >> { %v7577_v26 = vpop.permute.xlu1 %7576  ;;  %v3174_v24 = vsel %vm548_vm0, %v7906_v1, %v7569_v20  ;;  %v3270_v23 = vsel %vm548_vm0, %v10733_v29, %v7568_v54  ;;  %v3175_v19 = vsel %vm548_vm0, %v7907_v60, %v7574_v52  ;;  %v7908_v11 = vld [vmem:[#allocation2 + $0xd0] sm:$0xff]  ;;  %v7910_v7 = vld [vmem:[#allocation2 + $0xe8] sm:$0xff] }
 0x390   : >> { %v7579_v10 = vunpack.i.h.bf16 %v7577_v26  ;;  %v7578_v44 = vunpack.i.l.bf16 %v7577_v26  ;;  %v7582_v9 = vpop.permute.xlu0 %7581  ;;  %v3271_v51 = vsel %vm548_vm0, %v7908_v11, %v7573_v58  ;;  %v7909_v26 = vld [vmem:[#allocation2 + $0xc7] sm:$0xff] }
 0x391   : >> { %v7584_v55 = vunpack.i.h.bf16 %v7582_v9  ;;  %v7583_v40 = vunpack.i.l.bf16 %v7582_v9  ;;  %7866 = vrot.lane.b32.xlu1 %v7865_v0, %s8889_s22 }
 0x392   : >> { %7871 = vrot.lane.b32.xlu0 %v7870_v25, %s8888_s24  ;;  %v3302_v41 = vsel %vm1589_vm1, %v3270_v23, %v7578_v44  ;;  %v3206_v5 = vsel %vm1589_vm1, %v3174_v24, %v7579_v10 }
 0x393   : >> { %v7592_v8 = vpop.permute.xlu1 %7591  ;;  %v3334_v16 = vsel %vm1622_vm2, %v3302_v41, %v7583_v40  ;;  %v3238_v29 = vsel %vm1622_vm2, %v3206_v5, %v7584_v55 }
 0x394   : >> { %v7594_v15 = vunpack.i.h.bf16 %v7592_v8  ;;  %v7593_v57 = vunpack.i.l.bf16 %v7592_v8  ;;  %v7587_v27 = vpop.permute.xlu0 %7586  ;;  %3542 = vmatprep.mubr.f32.mxu1 %v3334_v16  ;;  %v7911_v16 = vld [vmem:[#allocation2 + $0xcf] sm:$0xff] }
 0x395   : >> { %v7589_v35 = vunpack.i.h.bf16 %v7587_v27  ;;  %v7588_v56 = vunpack.i.l.bf16 %v7587_v27  ;;  %3543 = vmatmul.mubr.f32.gmra.mrb[52].mxu1 %v3238_v29  ;;  %7881 = vrot.lane.b32.xlu1 %v7880_v53, %s8888_s24  ;;  %s6212_s24 = sshll.u32 %s8869_s28, 3 }
 0x396   : >> { %7876 = vrot.lane.b32.xlu0 %v7875_v28, %s8889_s22 }
 0x397   : >> { %v7602_v6 = vpop.permute.xlu1 %7601  ;;  %v3303_v32 = vsel %vm1589_vm1, %v3271_v51, %v7588_v56  ;;  %v3207_v34 = vsel %vm1589_vm1, %v3175_v19, %v7589_v35 }
 0x398   : >> { %v7597_v61 = vpop.permute.xlu0 %7596  ;;  %v3335_v62 = vsel %vm1622_vm2, %v3303_v32, %v7593_v57  ;;  %v3239_v2 = vsel %vm1622_vm2, %v3207_v34, %v7594_v15  ;;  %v7604_v25 = vunpack.i.h.bf16 %v7602_v6  ;;  %v7603_v1 = vunpack.i.l.bf16 %v7602_v6  ;;  %v7912_v15 = vld [vmem:[#allocation2 + $0xf0] sm:$0xff]  ;;  %v7913_v32 = vld [vmem:[#allocation2 + $0xe7] sm:$0xff] }
 0x399   : >> { %v7599_v18 = vunpack.i.h.bf16 %v7597_v61  ;;  %v7598_v46 = vunpack.i.l.bf16 %v7597_v61  ;;  %3547 = vmatprep.mubr.f32.mxu1 %v3335_v62  ;;  %7891 = vrot.lane.b32.xlu1 %v7890_v48, %s8889_s22  ;;  %v7914_v61 = vld [vmem:[#allocation2 + $0x108] sm:$0xff]  ;;  %s4032_s22 = scalar_lea.vmem [#allocation16], %s6212_s24 }
 0x39a   : >> { %7886 = vrot.lane.b32.xlu0 %v7885_v21, %s8890_s14  ;;  %3548 = vmatmul.mubr.f32.gmra.mrb[54].mxu1 %v3239_v2  ;;  %v3177_v29 = vsel %vm548_vm0, %v7911_v16, %v7604_v25  ;;  %v3273_v57 = vsel %vm548_vm0, %v7912_v15, %v7603_v1  ;;  %v7916_v1 = vld [vmem:[#allocation2 + $0x110] sm:$0xff]  ;;  %s3955_s14 = scalar_lea.vmem [#allocation15], %s8869_s28  ;;  %s663_s28 = sadd.s32 1, %s8869_s28  }
 0x39b   : >> { %v7607_v47 = vpop.permute.xlu1 %7606  ;;  %v3176_v10 = vsel %vm548_vm0, %v7909_v26, %v7599_v18  ;;  %v3272_v44 = vsel %vm548_vm0, %v7910_v7, %v7598_v46  ;;  %p660_p13 = scmp.ge.s32.totalorder %s663_s28, 2  }
 0x39c   : >> { %v7609_v12 = vunpack.i.h.bf16 %v7607_v47  ;;  %v7608_v20 = vunpack.i.l.bf16 %v7607_v47  ;;  %v7612_v54 = vpop.permute.xlu0 %7611  ;;  %s8894_s28 = smov (%p660_p13), 32   ;;  %s8895_s29 = smov (%p660_p13), 64  }
 0x39d   : >> { %v7614_v9 = vunpack.i.h.bf16 %v7612_v54  ;;  %v7613_v0 = vunpack.i.l.bf16 %v7612_v54  ;;  %s6253_s30 = sshll.u32 (%p660_p13), %s8981_s23, 12  ;;  %p12934_p2 = scmp.ne.s32.totalorder (%p660_p13), %s12805_s0, 0 }
 0x39e   : >> { %v3304_v24 = vsel %vm1589_vm1, %v3272_v44, %v7608_v20  ;;  %v3208_v23 = vsel %vm1589_vm1, %v3176_v10, %v7609_v12  ;;  %s8897_s23 = smov (%p660_p13), [#allocation22]  }
 0x39f   : >> { %v7622_v55 = vpop.permute.xlu1 %7621  ;;  %v3336_v40 = vsel %vm1622_vm2, %v3304_v24, %v7613_v0  ;;  %v3240_v14 = vsel %vm1622_vm2, %v3208_v23, %v7614_v9  ;;  %v7915_v0 = vld [vmem:[#allocation2 + $0xef] sm:$0xff] }
 0x3a0   : >> { %v7624_v52 = vunpack.i.h.bf16 %v7622_v55  ;;  %v7623_v58 = vunpack.i.l.bf16 %v7622_v55  ;;  %v7617_v41 = vpop.permute.xlu0 %7616  ;;  %3552 = vmatprep.mubr.f32.mxu1 %v3336_v40 }
 0x3a1   : >> { %v7619_v5 = vunpack.i.h.bf16 %v7617_v41  ;;  %v7618_v8 = vunpack.i.l.bf16 %v7617_v41  ;;  %3553 = vmatmul.mubr.f32.gmra.mrb[56].mxu1 %v3240_v14 }
 0x3a3   : >> { %v7632_v27 = vpop.permute.xlu1 %7631  ;;  %v3305_v53 = vsel %vm1589_vm1, %v3273_v57, %v7618_v8  ;;  %v3209_v28 = vsel %vm1589_vm1, %v3177_v29, %v7619_v5  ;;  %v7917_v57 = vld [vmem:[#allocation2 + $0x107] sm:$0xff] }
 0x3a4   : >> { %v7627_v35 = vpop.permute.xlu0 %7626  ;;  %v3337_v56 = vsel %vm1622_vm2, %v3305_v53, %v7623_v58  ;;  %v3241_v31 = vsel %vm1622_vm2, %v3209_v28, %v7624_v52  ;;  %v7634_v2 = vunpack.i.h.bf16 %v7632_v27  ;;  %v7633_v18 = vunpack.i.l.bf16 %v7632_v27  ;;  %v7918_v53 = vld [vmem:[#allocation2 + $0x128] sm:$0xff] }
 0x3a5   : >> { %v7629_v63 = vunpack.i.h.bf16 %v7627_v35  ;;  %v7628_v60 = vunpack.i.l.bf16 %v7627_v35  ;;  %3557 = vmatprep.mubr.f32.mxu1 %v3337_v56 }
 0x3a6   : >> { %3558 = vmatmul.mubr.f32.gmra.mrb[58].mxu1 %v3241_v31  ;;  %v3179_v25 = vsel %vm548_vm0, %v7915_v0, %v7634_v2  ;;  %v3275_v24 = vsel %vm548_vm0, %v7916_v1, %v7633_v18  ;;  %v7919_v18 = vld [vmem:[#allocation2 + $0x10f] sm:$0xff] }
 0x3a7   : >> { %v7637_v19 = vpop.permute.xlu1 %7636  ;;  %v3178_v34 = vsel %vm548_vm0, %v7913_v32, %v7629_v63  ;;  %v3274_v62 = vsel %vm548_vm0, %v7914_v61, %v7628_v60 }
 0x3a8   : >> { %v7639_v11 = vunpack.i.h.bf16 %v7637_v19  ;;  %v7638_v51 = vunpack.i.l.bf16 %v7637_v19  ;;  %v7642_v6 = vpop.permute.xlu0 %7641 }
 0x3a9   : >> { %v7644_v48 = vunpack.i.h.bf16 %v7642_v6  ;;  %v7643_v21 = vunpack.i.l.bf16 %v7642_v6 }
 0x3aa   : >> { %v3306_v46 = vsel %vm1589_vm1, %v3274_v62, %v7638_v51  ;;  %v3210_v47 = vsel %vm1589_vm1, %v3178_v34, %v7639_v11 }
 0x3ab   : >> { %v7652_v12 = vpop.permute.xlu1 %7651  ;;  %v3338_v20 = vsel %vm1622_vm2, %v3306_v46, %v7643_v21  ;;  %v3242_v54 = vsel %vm1622_vm2, %v3210_v47, %v7644_v48  ;;  %v7920_v47 = vld [vmem:[#allocation2 + $0x130] sm:$0xff] }
 0x3ac   : >> { %v7654_v26 = vunpack.i.h.bf16 %v7652_v12  ;;  %v7653_v10 = vunpack.i.l.bf16 %v7652_v12  ;;  %v7647_v7 = vpop.permute.xlu0 %7646  ;;  %3562 = vmatprep.mubr.f32.mxu1 %v3338_v20 }
 0x3ad   : >> { %v7649_v44 = vunpack.i.h.bf16 %v7647_v7  ;;  %v7648_v9 = vunpack.i.l.bf16 %v7647_v7  ;;  %3563 = vmatmul.mubr.f32.gmra.mrb[60].mxu1 %v3242_v54 }
 0x3af   : >> { %v7662_v23 = vpop.permute.xlu1 %7661  ;;  %v3307_v55 = vsel %vm1589_vm1, %v3275_v24, %v7648_v9  ;;  %v3211_v40 = vsel %vm1589_vm1, %v3179_v25, %v7649_v44 }
 0x3b0   : >> { %v7657_v14 = vpop.permute.xlu0 %7656  ;;  %v3339_v52 = vsel %vm1622_vm2, %v3307_v55, %v7653_v10  ;;  %v3243_v58 = vsel %vm1622_vm2, %v3211_v40, %v7654_v26  ;;  %v7664_v31 = vunpack.i.h.bf16 %v7662_v23  ;;  %v7663_v63 = vunpack.i.l.bf16 %v7662_v23  ;;  %v7921_v55 = vld [vmem:[#allocation2 + $0x127] sm:$0xff] }
 0x3b1   : >> { %v7659_v41 = vunpack.i.h.bf16 %v7657_v14  ;;  %v7658_v5 = vunpack.i.l.bf16 %v7657_v14  ;;  %3567 = vmatprep.mubr.f32.mxu1 %v3339_v52  ;;  %v7922_v14 = vld [vmem:[#allocation2 + $0x148] sm:$0xff] }
 0x3b2   : >> { %3568 = vmatmul.mubr.f32.gmra.mrb[62].mxu1 %v3243_v58  ;;  %v3181_v46 = vsel %vm548_vm0, %v7919_v18, %v7664_v31  ;;  %v3277_v12 = vsel %vm548_vm0, %v7920_v47, %v7663_v63 }
 0x3b3   : >> { %v7667_v8 = vpop.permute.xlu1 %7666  ;;  %v3180_v27 = vsel %vm548_vm0, %v7917_v57, %v7659_v41  ;;  %v3276_v28 = vsel %vm548_vm0, %v7918_v53, %v7658_v5 }
 0x3b4   : >> { %v7669_v16 = vunpack.i.h.bf16 %v7667_v8  ;;  %v7668_v29 = vunpack.i.l.bf16 %v7667_v8  ;;  %v7672_v15 = vpop.permute.xlu0 %7671 }
 0x3b5   : >> { %v7674_v35 = vunpack.i.h.bf16 %v7672_v15  ;;  %v7673_v56 = vunpack.i.l.bf16 %v7672_v15 }
 0x3b6   : >> { %v3308_v60 = vsel %vm1589_vm1, %v3276_v28, %v7668_v29  ;;  %v3212_v19 = vsel %vm1589_vm1, %v3180_v27, %v7669_v16  ;;  %v11200_v11 = vpop.f32.mrb[64].mxu0 }
 0x3b7   : >> { %v7682_v51 = vpop.permute.xlu1 %7681  ;;  %v3340_v6 = vsel %vm1622_vm2, %v3308_v60, %v7673_v56  ;;  %v3244_v32 = vsel %vm1622_vm2, %v3212_v19, %v7674_v35  ;;  %v11204_v48 = vpop.f32.mrb[65].mxu0  ;;  %v7923_v19 = vld [vmem:[#allocation2 + $0x12f] sm:$0xff] }
 0x3b8   : >> { %v7684_v34 = vunpack.i.h.bf16 %v7682_v51  ;;  %v7683_v61 = vunpack.i.l.bf16 %v7682_v51  ;;  %v7677_v62 = vpop.permute.xlu0 %7676  ;;  %3572 = vmatprep.mubr.f32.mxu1 %v3340_v6  ;;  %v7924_v6 = vld [vmem:[#allocation2 + $0x150] sm:$0xff] }
 0x3b9   : >> { %v7679_v21 = vunpack.i.h.bf16 %v7677_v62  ;;  %v7678_v2 = vunpack.i.l.bf16 %v7677_v62  ;;  %3573 = vmatmul.mubr.f32.gmra.mrb[64].mxu1 %v3244_v32 }
 0x3bb   : >> { %v7692_v20 = vpop.permute.xlu1 %7691  ;;  %v3309_v54 = vsel %vm1589_vm1, %v3277_v12, %v7678_v2  ;;  %v3213_v26 = vsel %vm1589_vm1, %v3181_v46, %v7679_v21 }
 0x3bc   : >> { %v7687_v10 = vpop.permute.xlu0 %7686  ;;  %v3341_v7 = vsel %vm1622_vm2, %v3309_v54, %v7683_v61  ;;  %v3245_v44 = vsel %vm1622_vm2, %v3213_v26, %v7684_v34  ;;  %v7694_v5 = vunpack.i.h.bf16 %v7692_v20  ;;  %v7693_v8 = vunpack.i.l.bf16 %v7692_v20 }
 0x3bd   : >> { %v7689_v9 = vunpack.i.h.bf16 %v7687_v10  ;;  %v7688_v0 = vunpack.i.l.bf16 %v7687_v10  ;;  %3577 = vmatprep.mubr.f32.mxu1 %v3341_v7 }
 0x3be   : >> { %3578 = vmatmul.mubr.f32.gmra.mrb[66].mxu1 %v3245_v44  ;;  %v3183_v51 = vsel %vm548_vm0, %v7923_v19, %v7694_v5  ;;  %v3279_v32 = vsel %vm548_vm0, %v7924_v6, %v7693_v8 }
 0x3bf   : >> { %v7697_v25 = vpop.permute.xlu1 %7696  ;;  %v3182_v40 = vsel %vm548_vm0, %v7921_v55, %v7689_v9  ;;  %v3278_v52 = vsel %vm548_vm0, %v7922_v14, %v7688_v0  ;;  %v7925_v0 = vld [vmem:[#allocation2 + $0x147] sm:$0xff] }
 0x3c0   : >> { %v7699_v1 = vunpack.i.h.bf16 %v7697_v25  ;;  %v7698_v24 = vunpack.i.l.bf16 %v7697_v25  ;;  %v7702_v23 = vpop.permute.xlu0 %7701 }
 0x3c1   : >> { %v7704_v58 = vunpack.i.h.bf16 %v7702_v23  ;;  %v7703_v41 = vunpack.i.l.bf16 %v7702_v23 }
 0x3c2   : >> { %v3310_v16 = vsel %vm1589_vm1, %v3278_v52, %v7698_v24  ;;  %v3214_v29 = vsel %vm1589_vm1, %v3182_v40, %v7699_v1  ;;  %v11216_v15 = vpop.f32.mrb[66].mxu0  ;;  %v7926_v1 = vld [vmem:[#allocation2 + $0x168] sm:$0xff] }
 0x3c3   : >> { %v3342_v57 = vsel %vm1622_vm2, %v3310_v16, %v7703_v41  ;;  %v3246_v27 = vsel %vm1622_vm2, %v3214_v29, %v7704_v58  ;;  %v7712_v53 = vpop.permute.xlu1 %7711  ;;  %v11220_v60 = vpop.f32.mrb[67].mxu0 }
 0x3c4   : >> { %v7707_v28 = vpop.permute.xlu0 %7706  ;;  %3582 = vmatprep.mubr.f32.mxu1 %v3342_v57  ;;  %v7714_v35 = vunpack.i.h.bf16 %v7712_v53  ;;  %v7713_v56 = vunpack.i.l.bf16 %v7712_v53 }
 0x3c5   : >> { %v7709_v31 = vunpack.i.h.bf16 %v7707_v28  ;;  %v7708_v63 = vunpack.i.l.bf16 %v7707_v28  ;;  %3583 = vmatmul.mubr.f32.gmra.mrb[68].mxu1 %v3246_v27  ;;  %v7927_v27 = vld [vmem:[#allocation2 + $0x14f] sm:$0xff] }
 0x3c6   : >> { %v7928_v28 = vld [vmem:[#allocation2 + $0x170] sm:$0xff] }
 0x3c7   : >> { %v3311_v34 = vsel %vm1589_vm1, %v3279_v32, %v7708_v63  ;;  %v3215_v61 = vsel %vm1589_vm1, %v3183_v51, %v7709_v31  ;;  %v7722_v62 = vpop.permute.xlu1 %7721 }
 0x3c8   : >> { %v7717_v21 = vpop.permute.xlu0 %7716  ;;  %v3343_v2 = vsel %vm1622_vm2, %v3311_v34, %v7713_v56  ;;  %v3247_v18 = vsel %vm1622_vm2, %v3215_v61, %v7714_v35  ;;  %v7724_v44 = vunpack.i.h.bf16 %v7722_v62  ;;  %v7723_v9 = vunpack.i.l.bf16 %v7722_v62 }
 0x3c9   : >> { %3587 = vmatprep.mubr.f32.mxu1 %v3343_v2  ;;  %v7719_v46 = vunpack.i.h.bf16 %v7717_v21  ;;  %v7718_v47 = vunpack.i.l.bf16 %v7717_v21 }
 0x3ca   : >> { %3588 = vmatmul.mubr.f32.gmra.mrb[70].mxu1 %v3247_v18  ;;  %v3185_v53 = vsel %vm548_vm0, %v7927_v27, %v7724_v44  ;;  %v3281_v35 = vsel %vm548_vm0, %v7928_v28, %v7723_v9 }
 0x3cb   : >> { %v7727_v12 = vpop.permute.xlu1 %7726  ;;  %v3184_v25 = vsel %vm548_vm0, %v7925_v0, %v7719_v46  ;;  %v3280_v24 = vsel %vm548_vm0, %v7926_v1, %v7718_v47 }
 0x3cc   : >> { %v7732_v20 = vpop.permute.xlu0 %7731  ;;  %v7729_v54 = vunpack.i.h.bf16 %v7727_v12  ;;  %v7728_v26 = vunpack.i.l.bf16 %v7727_v12 }
 0x3cd   : >> { %v7734_v10 = vunpack.i.h.bf16 %v7732_v20  ;;  %v7733_v7 = vunpack.i.l.bf16 %v7732_v20  ;;  %v7929_v20 = vld [vmem:[#allocation2 + $0x167] sm:$0xff] }
 0x3ce   : >> { %v11230_v23 = vpop.f32.mrb[68].mxu0  ;;  %v3312_v55 = vsel %vm1589_vm1, %v3280_v24, %v7728_v26  ;;  %v3216_v40 = vsel %vm1589_vm1, %v3184_v25, %v7729_v54  ;;  %v7930_v26 = vld [vmem:[#allocation2 + $0x188] sm:$0xff] }
 0x3cf   : >> { %v7742_v14 = vpop.permute.xlu1 %7741  ;;  %v3344_v58 = vsel %vm1622_vm2, %v3312_v55, %v7733_v7  ;;  %v3248_v41 = vsel %vm1622_vm2, %v3216_v40, %v7734_v10  ;;  %v11236_v57 = vpop.f32.mrb[69].mxu0 }
 0x3d0   : >> { %v7737_v52 = vpop.permute.xlu0 %7736  ;;  %v7744_v5 = vunpack.i.h.bf16 %v7742_v14  ;;  %v7743_v8 = vunpack.i.l.bf16 %v7742_v14  ;;  %3592 = vmatprep.mubr.f32.mxu1 %v3344_v58 }
 0x3d1   : >> { %v7739_v16 = vunpack.i.h.bf16 %v7737_v52  ;;  %v7738_v29 = vunpack.i.l.bf16 %v7737_v52  ;;  %3593 = vmatmul.mubr.f32.gmra.mrb[72].mxu1 %v3248_v41  ;;  %v7931_v41 = vld [vmem:[#allocation2 + $0x16f] sm:$0xff] }
 0x3d3   : >> { %v3313_v56 = vsel %vm1589_vm1, %v3281_v35, %v7738_v29  ;;  %v3217_v31 = vsel %vm1589_vm1, %v3185_v53, %v7739_v16  ;;  %v7752_v63 = vpop.permute.xlu1 %7751 }
 0x3d4   : >> { %v7747_v19 = vpop.permute.xlu0 %7746  ;;  %v3345_v51 = vsel %vm1622_vm2, %v3313_v56, %v7743_v8  ;;  %v3249_v6 = vsel %vm1622_vm2, %v3217_v31, %v7744_v5  ;;  %v7754_v47 = vunpack.i.h.bf16 %v7752_v63  ;;  %v7753_v12 = vunpack.i.l.bf16 %v7752_v63  ;;  %v7932_v8 = vld [vmem:[#allocation2 + $0x190] sm:$0xff] }
 0x3d5   : >> { %3597 = vmatprep.mubr.f32.mxu1 %v3345_v51  ;;  %v7749_v32 = vunpack.i.h.bf16 %v7747_v19  ;;  %v7748_v34 = vunpack.i.l.bf16 %v7747_v19 }
 0x3d6   : >> { %3598 = vmatmul.mubr.f32.gmra.mrb[74].mxu1 %v3249_v6  ;;  %v3187_v5 = vsel %vm548_vm0, %v7931_v41, %v7754_v47  ;;  %v3283_v16 = vsel %vm548_vm0, %v7932_v8, %v7753_v12 }
 0x3d7   : >> { %v7757_v61 = vpop.permute.xlu1 %7756  ;;  %v3186_v54 = vsel %vm548_vm0, %v7929_v20, %v7749_v32  ;;  %v3282_v10 = vsel %vm548_vm0, %v7930_v26, %v7748_v34 }
 0x3d8   : >> { %v7762_v62 = vpop.permute.xlu0 %7761  ;;  %v7759_v21 = vunpack.i.h.bf16 %v7757_v61  ;;  %v7758_v2 = vunpack.i.l.bf16 %v7757_v61 }
 0x3d9   : >> { %v7764_v18 = vunpack.i.h.bf16 %v7762_v62  ;;  %v7763_v46 = vunpack.i.l.bf16 %v7762_v62 }
 0x3da   : >> { %v11246_v7 = vpop.f32.mrb[70].mxu0  ;;  %v3314_v44 = vsel %vm1589_vm1, %v3282_v10, %v7758_v2  ;;  %v3218_v9 = vsel %vm1589_vm1, %v3186_v54, %v7759_v21  ;;  %v7933_v2 = vld [vmem:[#allocation2 + $0x187] sm:$0xff] }
 0x3db   : >> { %v7772_v0 = vpop.permute.xlu1 %7771  ;;  %v3346_v1 = vsel %vm1622_vm2, %v3314_v44, %v7763_v46  ;;  %v3250_v24 = vsel %vm1622_vm2, %v3218_v9, %v7764_v18  ;;  %v11252_v58 = vpop.f32.mrb[71].mxu0 }
 0x3dc   : >> { %v7767_v25 = vpop.permute.xlu0 %7766  ;;  %v7774_v55 = vunpack.i.h.bf16 %v7772_v0  ;;  %v7773_v40 = vunpack.i.l.bf16 %v7772_v0  ;;  %3602 = vmatprep.mubr.f32.mxu1 %v3346_v1 }
 0x3dd   : >> { %v7769_v14 = vunpack.i.h.bf16 %v7767_v25  ;;  %v7768_v52 = vunpack.i.l.bf16 %v7767_v25  ;;  %3603 = vmatmul.mubr.f32.gmra.mrb[76].mxu1 %v3250_v24 }
 0x3df   : >> { %v3315_v29 = vsel %vm1589_vm1, %v3283_v16, %v7768_v52  ;;  %v3219_v27 = vsel %vm1589_vm1, %v3187_v5, %v7769_v14  ;;  %v7782_v53 = vpop.permute.xlu1 %7781 }
 0x3e0   : >> { %v7777_v28 = vpop.permute.xlu0 %7776  ;;  %v3347_v35 = vsel %vm1622_vm2, %v3315_v29, %v7773_v40  ;;  %v3251_v56 = vsel %vm1622_vm2, %v3219_v27, %v7774_v55  ;;  %v7784_v62 = vunpack.i.h.bf16 %v7782_v53  ;;  %v7783_v21 = vunpack.i.l.bf16 %v7782_v53 }
 0x3e1   : >> { %3607 = vmatprep.mubr.f32.mxu1 %v3347_v35  ;;  %v7779_v31 = vunpack.i.h.bf16 %v7777_v28  ;;  %v7778_v63 = vunpack.i.l.bf16 %v7777_v28 }
 0x3e2   : >> { %3608 = vmatmul.mubr.f32.gmra.mrb[78].mxu1 %v3251_v56  ;;  %v3285_v40 = vsel %vm548_vm0, %v10973_v33, %v7783_v21 }
 0x3e3   : >> { %v7787_v19 = vpop.permute.xlu1 %7786  ;;  %v3188_v18 = vsel %vm548_vm0, %v7933_v2, %v7779_v31  ;;  %v3284_v46 = vsel %vm548_vm0, %v10952_v13, %v7778_v63  ;;  %v7934_v13 = vld [vmem:[#allocation2 + $0x18f] sm:$0xff] }
 0x3e4   : >> { %v7792_v51 = vpop.permute.xlu0 %7791  ;;  %v7789_v6 = vunpack.i.h.bf16 %v7787_v19  ;;  %v7788_v32 = vunpack.i.l.bf16 %v7787_v19  ;;  %v3189_v55 = vsel %vm548_vm0, %v7934_v13, %v7784_v62 }
 0x3e5   : >> { %v7794_v34 = vunpack.i.h.bf16 %v7792_v51  ;;  %v7793_v61 = vunpack.i.l.bf16 %v7792_v51  ;;  %v7935_v51 = vld [vmem:[#allocation2 + $0x1a7] sm:$0xff] }
 0x3e6   : >> { %v11263_v47 = vpop.f32.mrb[72].mxu0  ;;  %v3316_v12 = vsel %vm1589_vm1, %v3284_v46, %v7788_v32  ;;  %v3220_v20 = vsel %vm1589_vm1, %v3188_v18, %v7789_v6 }
 0x3e7   : >> { %v7802_v54 = vpop.permute.xlu1 %7801  ;;  %v3348_v10 = vsel %vm1622_vm2, %v3316_v12, %v7793_v61  ;;  %v3252_v44 = vsel %vm1622_vm2, %v3220_v20, %v7794_v34  ;;  %v11269_v24 = vpop.f32.mrb[73].mxu0 }
 0x3e8   : >> { %v7797_v26 = vpop.permute.xlu0 %7796  ;;  %v7804_v9 = vunpack.i.h.bf16 %v7802_v54  ;;  %v7803_v0 = vunpack.i.l.bf16 %v7802_v54  ;;  %3612 = vmatprep.mubr.f32.mxu1 %v3348_v10 }
 0x3e9   : >> { %v7799_v25 = vunpack.i.h.bf16 %v7797_v26  ;;  %v7798_v1 = vunpack.i.l.bf16 %v7797_v26  ;;  %3613 = vmatmul.mubr.f32.gmra.mrb[80].mxu1 %v3252_v44 }
 0x3eb   : >> { %v3317_v14 = vsel %vm1589_vm1, %v3285_v40, %v7798_v1  ;;  %v3221_v52 = vsel %vm1589_vm1, %v3189_v55, %v7799_v25  ;;  %v7812_v41 = vpop.permute.xlu1 %7811 }
 0x3ec   : >> { %v7807_v5 = vpop.permute.xlu0 %7806  ;;  %v3349_v8 = vsel %vm1622_vm2, %v3317_v14, %v7803_v0  ;;  %v3253_v16 = vsel %vm1622_vm2, %v3221_v52, %v7804_v9  ;;  %v7814_v63 = vunpack.i.h.bf16 %v7812_v41  ;;  %v7813_v19 = vunpack.i.l.bf16 %v7812_v41 }
 0x3ed   : >> { %3617 = vmatprep.mubr.f32.mxu1 %v3349_v8  ;;  %v7809_v29 = vunpack.i.h.bf16 %v7807_v5  ;;  %v7808_v27 = vunpack.i.l.bf16 %v7807_v5 }
 0x3ee   : >> { %3618 = vmatmul.mubr.f32.gmra.mrb[82].mxu1 %v3253_v16  ;;  %v3287_v9 = vsel %vm548_vm0, %v11029_v43, %v7813_v19 }
 0x3ef   : >> { %v7817_v53 = vpop.permute.xlu1 %7816  ;;  %v3190_v6 = vsel %vm548_vm0, %v7935_v51, %v7809_v29  ;;  %v3286_v32 = vsel %vm548_vm0, %v11008_v42, %v7808_v27  ;;  %v7936_v42 = vld [vmem:[#allocation2 + $0x1af] sm:$0xff] }
 0x3f0   : >> { %v7822_v28 = vpop.permute.xlu0 %7821  ;;  %v7819_v35 = vunpack.i.h.bf16 %v7817_v53  ;;  %v7818_v56 = vunpack.i.l.bf16 %v7817_v53  ;;  %v3191_v44 = vsel %vm548_vm0, %v7936_v42, %v7814_v63 }
 0x3f1   : >> { %v7824_v33 = vunpack.i.h.bf16 %v7822_v28  ;;  %v7823_v31 = vunpack.i.l.bf16 %v7822_v28 }
 0x3f2   : >> { %v11281_v34 = vpop.f32.mrb[74].mxu0  ;;  %v3318_v61 = vsel %vm1589_vm1, %v3286_v32, %v7818_v56  ;;  %v3222_v62 = vsel %vm1589_vm1, %v3190_v6, %v7819_v35 }
 0x3f3   : >> { %v7832_v21 = vpop.permute.xlu1 %7831  ;;  %v3350_v18 = vsel %vm1622_vm2, %v3318_v61, %v7823_v31  ;;  %v3254_v46 = vsel %vm1622_vm2, %v3222_v62, %v7824_v33  ;;  %v11287_v10 = vpop.f32.mrb[75].mxu0 }
 0x3f4   : >> { %v7827_v2 = vpop.permute.xlu0 %7826  ;;  %v7834_v12 = vunpack.i.h.bf16 %v7832_v21  ;;  %v7833_v20 = vunpack.i.l.bf16 %v7832_v21  ;;  %3622 = vmatprep.mubr.f32.mxu1 %v3350_v18 }
 0x3f5   : >> { %v7829_v54 = vunpack.i.h.bf16 %v7827_v2  ;;  %v7828_v26 = vunpack.i.l.bf16 %v7827_v2  ;;  %3623 = vmatmul.mubr.f32.gmra.mrb[84].mxu1 %v3254_v46 }
 0x3f7   : >> { %v3319_v0 = vsel %vm1589_vm1, %v3287_v9, %v7828_v26  ;;  %v3223_v25 = vsel %vm1589_vm1, %v3191_v44, %v7829_v54  ;;  %v7842_v1 = vpop.permute.xlu1 %7841 }
 0x3f8   : >> { %v7837_v13 = vpop.permute.xlu0 %7836  ;;  %v3351_v55 = vsel %vm1622_vm2, %v3319_v0, %v7833_v20  ;;  %v3255_v40 = vsel %vm1622_vm2, %v3223_v25, %v7834_v12  ;;  %v7844_v33 = vunpack.i.h.bf16 %v7842_v1  ;;  %v7843_v31 = vunpack.i.l.bf16 %v7842_v1 }
 0x3f9   : >> { %3627 = vmatprep.mubr.f32.mxu1 %v3351_v55  ;;  %v7839_v14 = vunpack.i.h.bf16 %v7837_v13  ;;  %v7838_v52 = vunpack.i.l.bf16 %v7837_v13 }
 0x3fa   : >> { %3628 = vmatmul.mubr.f32.gmra.mrb[86].mxu1 %v3255_v40  ;;  %v3289_v62 = vsel %vm548_vm0, %v11081_v50, %v7843_v31 }
 0x3fb   : >> { %v7847_v41 = vpop.permute.xlu1 %7846  ;;  %v3192_v27 = vsel %vm548_vm0, %v11006_v38, %v7839_v14  ;;  %v3288_v53 = vsel %vm548_vm0, %v11060_v39, %v7838_v52  ;;  %v3193_v39 = vsel %vm548_vm0, %v11031_v36, %v7844_v33 }
 0x3fc   : >> { %v7857_v5 = vpop.permute.xlu0 %7856  ;;  %v7849_v8 = vunpack.i.h.bf16 %v7847_v41  ;;  %v7848_v16 = vunpack.i.l.bf16 %v7847_v41 }
 0x3fd   : >> { %v7859_v43 = vunpack.i.h.bf16 %v7857_v5  ;;  %v7858_v29 = vunpack.i.l.bf16 %v7857_v5 }
 0x3fe   : >> { %v11300_v28 = vpop.f32.mrb[76].mxu0  ;;  %v3320_v35 = vsel %vm1589_vm1, %v3288_v53, %v7848_v16  ;;  %v3224_v56 = vsel %vm1589_vm1, %v3192_v27, %v7849_v8 }
 0x3ff   : >> { %v7852_v63 = vpop.permute.xlu1 %7851  ;;  %v3352_v51 = vsel %vm1622_vm2, %v3320_v35, %v7858_v29  ;;  %v3256_v6 = vsel %vm1622_vm2, %v3224_v56, %v7859_v43  ;;  %v11306_v32 = vpop.f32.mrb[77].mxu0 }
 0x400   : >> { %v7862_v19 = vpop.permute.xlu0 %7861  ;;  %3632 = vmatprep.mubr.f32.mxu1 %v3352_v51  ;;  %v7854_v9 = vunpack.i.h.bf16 %v7852_v63  ;;  %v7853_v0 = vunpack.i.l.bf16 %v7852_v63 }
 0x401   : >> { %v7864_v38 = vunpack.i.h.bf16 %v7862_v19  ;;  %v7863_v61 = vunpack.i.l.bf16 %v7862_v19  ;;  %3633 = vmatmul.mubr.f32.gmra.mrb[88].mxu1 %v3256_v6  ;;  %v7937_v6 = vld [vmem:[#allocation2 + $0x189] sm:$0xff] }
 0x403   : >> { %v7867_v21 = vpop.permute.xlu1 %7866  ;;  %v3321_v54 = vsel %vm1589_vm1, %v3289_v62, %v7863_v61  ;;  %v3225_v26 = vsel %vm1589_vm1, %v3193_v39, %v7864_v38  ;;  %v7938_v38 = vld [vmem:[#allocation2 + $0x191] sm:$0xff]  ;;  %v7941_v62 = vld [vmem:[#allocation2 + $0x1c9] sm:$0xff] }
 0x404   : >> { %v7872_v2 = vpop.permute.xlu0 %7871  ;;  %v7869_v18 = vunpack.i.h.bf16 %v7867_v21  ;;  %v7868_v46 = vunpack.i.l.bf16 %v7867_v21  ;;  %v7940_v39 = vld [vmem:[#allocation2 + $0x1b1] sm:$0xff] }
 0x405   : >> { %v7874_v12 = vunpack.i.h.bf16 %v7872_v2  ;;  %v7873_v20 = vunpack.i.l.bf16 %v7872_v2  ;;  %v7942_v21 = vld [vmem:[#allocation2 + $0x1d1] sm:$0xff] }
 0x406   : >> { %v3353_v36 = vsel %vm1622_vm2, %v3321_v54, %v7868_v46  ;;  %v3257_v50 = vsel %vm1622_vm2, %v3225_v26, %v7869_v18  ;;  %v2482_v46 = vld [vmem:[#allocation2 + $0x229] sm:$0xff] }
 0x407   : >> { %v3194_v42 = vsel %vm548_vm0, %v11058_v4, %v7874_v12  ;;  %v3290_v44 = vsel %vm548_vm0, %v11110_v22, %v7873_v20  ;;  %v7882_v25 = vpop.permute.xlu1 %7881  ;;  %3637 = vmatprep.mubr.f32.mxu1 %v3353_v36  ;;  %v2483_v12 = vld [vmem:[#allocation2 + $0x231] sm:$0xff]  ;;  %v11360_v20 = vld [vmem:[%s2342_s21] ss:$0 sm:$0xff]  ;;  %s8896_s21 = smov (%p660_p13), 96  }
 0x408   : >> { %v7877_v1 = vpop.permute.xlu0 %7876  ;;  %3638 = vmatmul.mubr.f32.gmra.mrb[90].mxu1 %v3257_v50  ;;  %v7884_v40 = vunpack.i.h.bf16 %v7882_v25  ;;  %v7883_v14 = vunpack.i.l.bf16 %v7882_v25  ;;  %v3322_v52 = vsel %vm1589_vm1, %v3290_v44, %v7853_v0  ;;  %v3226_v4 = vsel %vm1589_vm1, %v3194_v42, %v7854_v9 }
 0x409   : >> { %v7879_v13 = vunpack.i.h.bf16 %v7877_v1  ;;  %v7878_v55 = vunpack.i.l.bf16 %v7877_v1 }
 0x40a   : >> { %v11322_v41 = vpop.f32.mrb[78].mxu0  ;;  %v3195_v56 = vsel %vm548_vm0, %v11083_v17, %v7884_v40  ;;  %v3291_v33 = vsel %vm548_vm0, %v11136_v37, %v7883_v14  ;;  %v7939_v17 = vld [vmem:[#allocation2 + $0x1a9] sm:$0xff] }
 0x40b   : >> { %v3354_v22 = vsel %vm1622_vm2, %v3322_v52, %v7878_v55  ;;  %v3258_v5 = vsel %vm1622_vm2, %v3226_v4, %v7879_v13  ;;  %v7892_v8 = vpop.permute.xlu1 %7891  ;;  %v11326_v35 = vpop.f32.mrb[79].mxu0 }
 0x40c   : >> { %v7887_v16 = vpop.permute.xlu0 %7886  ;;  %3642 = vmatprep.mubr.f32.mxu1 %v3354_v22  ;;  %v7894_v43 = vunpack.i.h.bf16 %v7892_v8  ;;  %v7893_v29 = vunpack.i.l.bf16 %v7892_v8 }
 0x40d   : >> { %v7889_v27 = vunpack.i.h.bf16 %v7887_v16  ;;  %v7888_v53 = vunpack.i.l.bf16 %v7887_v16  ;;  %3643 = vmatmul.mubr.f32.gmra.mrb[92].mxu1 %v3258_v5 }
 0x40f   : >> { %v3323_v31 = vsel %vm1589_vm1, %v3291_v33, %v7888_v53  ;;  %v3227_v63 = vsel %vm1589_vm1, %v3195_v56, %v7889_v27 }
 0x410   : >> { %v3355_v19 = vsel %vm1622_vm2, %v3323_v31, %v7893_v29  ;;  %v3259_v51 = vsel %vm1622_vm2, %v3227_v63, %v7894_v43 }
 0x411   : >> { %3647 = vmatprep.mubr.f32.mxu1 %v3355_v19 }
 0x412   : >> { %3648 = vmatmul.mubr.f32.gmra.mrb[94].mxu1 %v3259_v51 }
 0x413   : >> { %6463 = vmatprep.mubr.msk.f32.mxu1 %vm548_vm0, %v7937_v6 }
 0x416   : >> { %6464 = vmatmul.mubr.msk.f32.vlgmr.msra.gmra.mrb[96].mxu1 %vm548_vm0, %v7938_v38  ;;  %v11339_v37 = vpop.f32.mrb[80].mxu0 }
 0x417   : >> { %6466 = vmatprep.mubr.msk.f32.mxu1 %vm548_vm0, %v7939_v17  ;;  %v11341_v61 = vpop.f32.mrb[81].mxu0 }
 0x41a   : >> { %6467 = vmatmul.mubr.msk.f32.gmra.mrb[98].mxu1 %vm548_vm0, %v7940_v39 }
 0x41b   : >> { %6469 = vmatprep.mubr.msk.f32.mxu1 %vm548_vm0, %v7941_v62 }
 0x41e   : >> { %6470 = vmatmul.mubr.msk.f32.gmra.mrb[100].mxu1 %vm548_vm0, %v7942_v21 }
 0x41f   : >> { %6472 = vmatprep.mubr.msk.f32.mxu1 %vm548_vm0, %v11096_v49 }
 0x422   : >> { %6473 = vmatmul.mubr.msk.f32.gmra.mrb[102].mxu1 %vm548_vm0, %v11094_v45  ;;  %v11352_v2 = vpop.f32.mrb[82].mxu0 }
 0x423   : >> { %6475 = vmatprep.mubr.msk.f32.mxu1 %vm548_vm0, %v11138_v59  ;;  %v11354_v18 = vpop.f32.mrb[83].mxu0 }
 0x426   : >> { %6476 = vmatmul.mubr.msk.f32.gmra.mrb[104].mxu1 %vm548_vm0, %v11149_v3 }
 0x427   : >> { %6478 = vmatprep.mubr.msk.f32.mxu1 %vm548_vm0, %v2482_v46 }
 0x429   : >> { %v3494_v45 = vpop.f32.mrb[32].mxu1 }
 0x42a   : >> { %6479 = vmatmul.mubr.msk.f32.gmra.mrb[106].mxu1 %vm548_vm0, %v2483_v12  ;;  %v3495_v49 = vadd.f32 %v11360_v20, %v3494_v45  ;;  %v3496_v59 = vpop.f32.mrb[33].mxu1 }
 0x42c   : >> { %v11365_v54 = vadd.f32 %v11204_v48, %v3495_v49 }
 0x431   : >> { %v3499_v26 = vpop.f32.mrb[34].mxu1 }
 0x432   : >> { %v3500_v42 = vadd.f32 %v11360_v20, %v3499_v26  ;;  %v3501_v44 = vpop.f32.mrb[35].mxu1 }
 0x434   : >> { %v11369_v3 = vadd.f32 %v11200_v11, %v3500_v42  ;;  %v3951_v42 = vld [vmem:[%s3950_s11] sm:$0xff] }
 0x438   : >> { %v3504_v36 = vpop.f32.mrb[36].mxu1 }
 0x439   : >> { %v3505_v50 = vadd.f32 %v11360_v20, %v3504_v36  ;;  %v3506_v9 = vpop.f32.mrb[37].mxu1 }
 0x43b   : >> { %v11373_v0 = vadd.f32 %v11220_v60, %v3505_v50 }
 0x43d   : >> { %v3509_v25 = vpop.f32.mrb[38].mxu1 }
 0x43e   : >> { %v3510_v1 = vadd.f32 %v11360_v20, %v3509_v25  ;;  %v3511_v13 = vpop.f32.mrb[39].mxu1 }
 0x440   : >> { %v11377_v48 = vadd.f32 %v11216_v15, %v3510_v1 }
 0x444   : >> { %v3514_v55 = vpop.f32.mrb[40].mxu1 }
 0x445   : >> { %v3515_v40 = vadd.f32 %v11360_v20, %v3514_v55  ;;  %v3516_v14 = vpop.f32.mrb[41].mxu1 }
 0x447   : >> { %v11381_v11 = vadd.f32 %v11236_v57, %v3515_v40 }
 0x449   : >> { %v3519_v52 = vpop.f32.mrb[42].mxu1 }
 0x44a   : >> { %v3520_v4 = vadd.f32 %v11360_v20, %v3519_v52  ;;  %v3521_v22 = vpop.f32.mrb[43].mxu1  ;;  %v3953_v52 = vld [vmem:[%s3950_s11 + $0x10] sm:$0xff] }
 0x44c   : >> { %v11385_v60 = vadd.f32 %v11230_v23, %v3520_v4 }
 0x450   : >> { %v3524_v5 = vpop.f32.mrb[44].mxu1 }
 0x451   : >> { %v3525_v8 = vadd.f32 %v11360_v20, %v3524_v5  ;;  %v3526_v16 = vpop.f32.mrb[45].mxu1 }
 0x453   : >> { %v11389_v15 = vadd.f32 %v11252_v58, %v3525_v8 }
 0x455   : >> { %v3529_v43 = vpop.f32.mrb[46].mxu1 }
 0x456   : >> { %v3530_v29 = vadd.f32 %v11360_v20, %v3529_v43  ;;  %v3531_v27 = vpop.f32.mrb[47].mxu1 }
 0x458   : >> { %v11393_v57 = vadd.f32 %v11246_v7, %v3530_v29 }
 0x45c   : >> { %v3534_v53 = vpop.f32.mrb[48].mxu1 }
 0x45d   : >> { %v3535_v56 = vadd.f32 %v11360_v20, %v3534_v53  ;;  %v3536_v33 = vpop.f32.mrb[49].mxu1 }
 0x45f   : >> { %v11397_v23 = vadd.f32 %v11269_v24, %v3535_v56 }
 0x461   : >> { %v3539_v31 = vpop.f32.mrb[50].mxu1 }
 0x462   : >> { %v3540_v63 = vadd.f32 %v11360_v20, %v3539_v31  ;;  %v3541_v19 = vpop.f32.mrb[51].mxu1 }
 0x464   : >> { %v11401_v58 = vadd.f32 %v11263_v47, %v3540_v63 }
 0x468   : >> { %v3544_v51 = vpop.f32.mrb[52].mxu1 }
 0x469   : >> { %v3545_v6 = vadd.f32 %v11360_v20, %v3544_v51  ;;  %v3546_v7 = vpop.f32.mrb[53].mxu1 }
 0x46b   : >> { %v11405_v38 = vadd.f32 %v11287_v10, %v3545_v6 }
 0x46d   : >> { %v3549_v17 = vpop.f32.mrb[54].mxu1 }
 0x46e   : >> { %v3550_v39 = vadd.f32 %v11360_v20, %v3549_v17  ;;  %v3551_v24 = vpop.f32.mrb[55].mxu1 }
 0x470   : >> { %v11409_v62 = vadd.f32 %v11281_v34, %v3550_v39  ;;  %v3952_v34 = vld [vmem:[%s3950_s11 + $0x8] sm:$0xff] }
 0x471   : >> { %v6666_v50 = vpack.c.bf16 %v3952_v34, %v3951_v42  ;;  %v3885_v34 = vsel %vm548_vm0, %v11381_v11, 0.0 }
 0x473   : >> { %6667 = vmatpush3.bf16.msra.mxu1 %v6666_v50 }
 0x474   : >> { %v3554_v21 = vpop.f32.mrb[56].mxu1  ;;  %6668 = vmatprep.subr.bf16.mxu1 %v12886_v30  ;;  %v8892_v30 = vmov 0.0  }
 0x475   : >> { %v3555_v46 = vadd.f32 %v11360_v20, %v3554_v21  ;;  %v3556_v47 = vpop.f32.mrb[57].mxu1  ;;  %6489 = vmatprep.mubr.msk.f32.mxu1 %vm8891_vm3, %v8892_v30 }
 0x476   : >> { %v3881_v47 = vsel %vm548_vm0, %v11373_v0, 0.0 }
 0x477   : >> { %v11413_v12 = vadd.f32 %v11306_v32, %v3555_v46  ;;  %v3879_v46 = vsel %vm548_vm0, %v11369_v3, 0.0 }
 0x479   : >> { %v3559_v45 = vpop.f32.mrb[58].mxu1 }
 0x47a   : >> { %v3560_v49 = vadd.f32 %v11360_v20, %v3559_v45  ;;  %v3561_v59 = vpop.f32.mrb[59].mxu1 }
 0x47c   : >> { %v11417_v10 = vadd.f32 %v11300_v28, %v3560_v49  ;;  %v3883_v49 = vsel %vm548_vm0, %v11377_v48, 0.0 }
 0x480   : >> { %v3564_v26 = vpop.f32.mrb[60].mxu1 }
 0x481   : >> { %v3565_v44 = vadd.f32 %v11360_v20, %v3564_v26  ;;  %v3566_v36 = vpop.f32.mrb[61].mxu1 }
 0x482   : >> { %v3887_v36 = vsel %vm548_vm0, %v11385_v60, 0.0 }
 0x483   : >> { %v11422_v9 = vadd.f32 %v11326_v35, %v3565_v44  ;;  %v3954_v35 = vld [vmem:[%s3950_s11 + $0x18] sm:$0xff]  ;;  %s5930_s11 = sshll.u32 (%p660_p13), %s9474_s12, 4  ;;  %s12671_s11 = int_to_ptr.vmem [resolvable:$true] %s5930_s11 }
 0x484   : >> { %v6669_v22 = vpack.c.bf16 %v3954_v35, %v3953_v52  ;;  %v3893_v52 = vsel %vm548_vm0, %v11397_v23, 0.0 }
 0x485   : >> { %v3569_v32 = vpop.f32.mrb[62].mxu1 }
 0x486   : >> { %v3570_v25 = vadd.f32 %v11360_v20, %v3569_v32  ;;  %v3571_v28 = vpop.f32.mrb[63].mxu1  ;;  %6670 = vmatpush3.bf16.msra.mxu1 %v6669_v22 }
 0x487   : >> { %6492 = vmatprep.subr.mxu1 %v8892_v30  ;;  %v3889_v28 = vsel %vm548_vm0, %v11389_v15, 0.0 }
 0x488   : >> { %v11427_v1 = vadd.f32 %v11322_v41, %v3570_v25 }
 0x48c   : >> { %v3574_v13 = vpop.f32.mrb[64].mxu1 }
 0x48d   : >> { %v3575_v55 = vadd.f32 %v11360_v20, %v3574_v13  ;;  %v3576_v40 = vpop.f32.mrb[65].mxu1 }
 0x48f   : >> { %v11431_v14 = vadd.f32 %v11341_v61, %v3575_v55  ;;  %v3891_v55 = vsel %vm548_vm0, %v11393_v57, 0.0 }
 0x491   : >> { %v3579_v4 = vpop.f32.mrb[66].mxu1 }
 0x492   : >> { %v3580_v5 = vadd.f32 %v11360_v20, %v3579_v4  ;;  %v3581_v41 = vpop.f32.mrb[67].mxu1  ;;  %v3895_v4 = vsel %vm548_vm0, %v11401_v58, 0.0 }
 0x494   : >> { %v11437_v8 = vadd.f32 %v11339_v37, %v3580_v5 }
 0x498   : >> { %v3584_v61 = vpop.f32.mrb[68].mxu1 }
 0x499   : >> { %v3585_v16 = vadd.f32 %v11360_v20, %v3584_v61  ;;  %v3586_v43 = vpop.f32.mrb[69].mxu1  ;;  %v3897_v61 = vsel %vm548_vm0, %v11405_v38, 0.0 }
 0x49a   : >> { %v3899_v43 = vsel %vm548_vm0, %v11409_v62, 0.0 }
 0x49b   : >> { %v11442_v29 = vadd.f32 %v11354_v18, %v3585_v16 }
 0x49d   : >> { %v3589_v27 = vpop.f32.mrb[70].mxu1 }
 0x49e   : >> { %v3590_v53 = vadd.f32 %v11360_v20, %v3589_v27  ;;  %v3591_v56 = vpop.f32.mrb[71].mxu1 }
 0x4a0   : >> { %v11446_v33 = vadd.f32 %v11352_v2, %v3590_v53  ;;  %v3878_v2 = vsel %vm548_vm0, %v11365_v54, 0.0  ;;  %v3901_v53 = vsel %vm548_vm0, %v11413_v12, 0.0 }
 0x4a1   : >> { %v3880_v45 = vadd.f32 %v3879_v46, %v3878_v2  ;;  %v3907_v2 = vsel %vm548_vm0, %v11427_v1, 0.0 }
 0x4a3   : >> { %v3882_v26 = vadd.f32 %v3881_v47, %v3880_v45 }
 0x4a4   : >> { %v3594_v31 = vpop.f32.mrb[72].mxu1 }
 0x4a5   : >> { %v3596_v63 = vpop.f32.mrb[73].mxu1  ;;  %v3884_v44 = vadd.f32 %v3883_v49, %v3882_v26  ;;  %v3909_v49 = vsel %vm548_vm0, %v11431_v14, 0.0 }
 0x4a7   : >> { %v3886_v32 = vadd.f32 %v3885_v34, %v3884_v44 }
 0x4a9   : >> { %v3599_v37 = vpop.f32.mrb[74].mxu1  ;;  %v3888_v13 = vadd.f32 %v3887_v36, %v3886_v32  ;;  %v3913_v32 = vsel %vm548_vm0, %v11442_v29, 0.0 }
 0x4aa   : >> { %v3601_v19 = vpop.f32.mrb[75].mxu1 }
 0x4ab   : >> { %v3890_v40 = vadd.f32 %v3889_v28, %v3888_v13  ;;  %v3903_v19 = vsel %vm548_vm0, %v11417_v10, 0.0  ;;  %v3600_v28 = vadd.f32 %v11360_v20, %v3599_v37  ;;  %v3915_v13 = vsel %vm548_vm0, %v11446_v33, 0.0 }
 0x4ad   : >> { %v3892_v35 = vadd.f32 %v3891_v55, %v3890_v40  ;;  %v3595_v55 = vadd.f32 %v11360_v20, %v3594_v31 }
 0x4af   : >> { %v3894_v5 = vadd.f32 %v3893_v52, %v3892_v35 }
 0x4b0   : >> { %v11448_v51 = vpop.f32.mrb[76].mxu1 }
 0x4b1   : >> { %v3606_v6 = vpop.f32.mrb[77].mxu1  ;;  %v3896_v16 = vadd.f32 %v3895_v4, %v3894_v5 }
 0x4b3   : >> { %v3898_v27 = vadd.f32 %v3897_v61, %v3896_v16  ;;  %v3605_v16 = vadd.f32 %v11360_v20, %v11448_v51 }
 0x4b5   : >> { %v3609_v7 = vpop.f32.mrb[78].mxu1  ;;  %v3900_v56 = vadd.f32 %v3899_v43, %v3898_v27 }
 0x4b6   : >> { %v3611_v17 = vpop.f32.mrb[79].mxu1 }
 0x4b7   : >> { %v3902_v17 = vadd.f32 %v3901_v53, %v3900_v56 }
 0x4bc   : >> { %v11450_v39 = vpop.f32.mrb[80].mxu1 }
 0x4bd   : >> { %v3616_v18 = vpop.f32.mrb[81].mxu1  ;;  %v3615_v51 = vadd.f32 %v11360_v20, %v11450_v39 }
 0x4be   : >> { %v3905_v18 = vsel %vm548_vm0, %v11422_v9, 0.0 }
 0x4c1   : >> { %v11452_v24 = vpop.f32.mrb[82].mxu1 }
 0x4c2   : >> { %v3621_v21 = vpop.f32.mrb[83].mxu1 }
 0x4c3   : >> { %v3904_v21 = vadd.f32 %v3903_v19, %v3902_v17 }
 0x4c5   : >> { %v3906_v45 = vadd.f32 %v3905_v18, %v3904_v21 }
 0x4c7   : >> { %v3908_v26 = vadd.f32 %v3907_v2, %v3906_v45 }
 0x4c8   : >> { %v11462_v59 = vpop.f32.mrb[84].mxu1 }
 0x4c9   : >> { %v3626_v42 = vpop.f32.mrb[85].mxu1  ;;  %v3910_v44 = vadd.f32 %v3909_v49, %v3908_v26  ;;  %v3625_v39 = vadd.f32 %v11360_v20, %v11462_v59 }
 0x4ca   : >> { %v3911_v42 = vsel %vm548_vm0, %v11437_v8, 0.0 }
 0x4cd   : >> { %v11468_v50 = vpop.f32.mrb[86].mxu1 }
 0x4ce   : >> { %v3631_v25 = vpop.f32.mrb[87].mxu1 }
 0x4cf   : >> { %v3912_v25 = vadd.f32 %v3911_v42, %v3910_v44 }
 0x4d1   : >> { %v3914_v52 = vadd.f32 %v3913_v32, %v3912_v25 }
 0x4d3   : >> { %v3916_v61 = vadd.f32 %v3915_v13, %v3914_v52 }
 0x4d4   : >> { %v11478_v22 = vpop.f32.mrb[88].mxu1 }
 0x4d5   : >> { %v3636_v41 = vpop.f32.mrb[89].mxu1 }
 0x4d6   : >> { %v3610_v41 = vadd.f32 %v11360_v20, %v3609_v7  ;;  %v3620_v7 = vadd.f32 %v11360_v20, %v11452_v24  ;;  %v3630_v24 = vadd.f32 %v11360_v20, %v11468_v50 }
 0x4db   : >> { %v3639_v63 = vpop.f32.mrb[90].mxu1 }
 0x4dc   : >> { %v3641_v6 = vpop.f32.mrb[91].mxu1 }
 0x4e0   : >> { %v3644_v46 = vpop.f32.mrb[92].mxu1 }
 0x4e1   : >> { %v3646_v47 = vpop.f32.mrb[93].mxu1 }
 0x4e5   : >> { %v3649_v34 = vpop.f32.mrb[94].mxu1 }
 0x4e6   : >> { %v3651_v36 = vpop.f32.mrb[95].mxu1 }
 0x4e9   : >> { %v6465_v40 = vpop.f32.mrb[96].mxu1 }
 0x4ea   : >> { %v11502_v35 = vadd.f32 %v6465_v40, %v3600_v28  ;;  %v3819_v4 = vpop.f32.mrb[97].mxu1  ;;  %v3635_v40 = vadd.f32 %v11360_v20, %v11478_v22 }
 0x4eb   : >> { %v11504_v5 = vadd.f32 %v3819_v4, %v3595_v55  ;;  %v3640_v55 = vadd.f32 %v11360_v20, %v3639_v63 }
 0x4ec   : >> { %v3919_v56 = vsel %vm548_vm0, %v11502_v35, 0.0 }
 0x4ed   : >> { %v3917_v37 = vsel %vm548_vm0, %v11504_v5, 0.0  ;;  %v6468_v43 = vpop.f32.mrb[98].mxu1 }
 0x4ee   : >> { %v3918_v27 = vadd.f32 %v3917_v37, %v3916_v61  ;;  %v11511_v53 = vadd.f32 %v6468_v43, %v3610_v41  ;;  %v3829_v31 = vpop.f32.mrb[99].mxu1  ;;  %v3650_v43 = vadd.f32 %v11360_v20, %v3649_v34 }
 0x4ef   : >> { %v11515_v19 = vadd.f32 %v3829_v31, %v3605_v16 }
 0x4f0   : >> { %v3920_v6 = vadd.f32 %v3919_v56, %v3918_v27  ;;  %v3923_v45 = vsel %vm548_vm0, %v11511_v53, 0.0  ;;  %v3645_v27 = vadd.f32 %v11360_v20, %v3644_v46 }
 0x4f1   : >> { %v3921_v17 = vsel %vm548_vm0, %v11515_v19, 0.0  ;;  %v6471_v18 = vpop.f32.mrb[100].mxu1 }
 0x4f2   : >> { %v3922_v21 = vadd.f32 %v3921_v17, %v3920_v6  ;;  %v11523_v2 = vadd.f32 %v6471_v18, %v3620_v7  ;;  %v3839_v47 = vpop.f32.mrb[101].mxu1 }
 0x4f3   : >> { %v11527_v49 = vadd.f32 %v3839_v47, %v3615_v51 }
 0x4f4   : >> { %v3924_v26 = vadd.f32 %v3923_v45, %v3922_v21  ;;  %v3927_v28 = vsel %vm548_vm0, %v11523_v2, 0.0 }
 0x4f5   : >> { %v3925_v42 = vsel %vm548_vm0, %v11527_v49, 0.0  ;;  %v6474_v44 = vpop.f32.mrb[102].mxu1 }
 0x4f6   : >> { %v3926_v36 = vadd.f32 %v3925_v42, %v3924_v26  ;;  %v11535_v32 = vadd.f32 %v6474_v44, %v3630_v24  ;;  %v3849_v25 = vpop.f32.mrb[103].mxu1 }
 0x4f7   : >> { %v11539_v13 = vadd.f32 %v3849_v25, %v3625_v39  ;;  %v3956_v25 = vld [vmem:[%s3955_s14] sm:$0x1]  ;;  %s12933_s14 = sld [smem:[#allocation87_spill]] (%p660_p13) }
 0x4f8   : >> { %v3928_v50 = vadd.f32 %v3927_v28, %v3926_v36  ;;  %v3931_v16 = vsel %vm548_vm0, %v11535_v32, 0.0  ;;  %v4033_v36 = vld [vmem:[%s4032_s22] sm:$0xff] }
 0x4f9   : >> { %v3929_v59 = vsel %vm548_vm0, %v11539_v13, 0.0  ;;  %v6477_v52 = vpop.f32.mrb[104].mxu1 }
 0x4fa   : >> { %v3930_v4 = vadd.f32 %v3929_v59, %v3928_v50  ;;  %v11546_v41 = vadd.f32 %v6477_v52, %v3640_v55  ;;  %v3859_v61 = vpop.f32.mrb[105].mxu1  ;;  %v4035_v59 = vld [vmem:[%s4034_s27] sm:$0x1] }
 0x4fb   : >> { %v11550_v37 = vadd.f32 %v3859_v61, %v3635_v40 }
 0x4fc   : >> { %v3932_v63 = vadd.f32 %v3931_v16, %v3930_v4  ;;  %v3935_v51 = vsel %vm548_vm0, %v11546_v41, 0.0 }
 0x4fd   : >> { %v3933_v22 = vsel %vm548_vm0, %v11550_v37, 0.0  ;;  %v6480_v31 = vpop.f32.mrb[106].mxu1  ;;  %s12669_s27 = scalar_lea.hbm (%p660_p13), %s12933_s14, %s6253_s30 }
 0x4fe   : >> { %v3934_v56 = vadd.f32 %v3933_v22, %v3932_v63  ;;  %v11556_v7 = vadd.f32 %v6480_v31, %v3650_v43  ;;  %v3869_v6 = vpop.f32.mrb[107].mxu1 }
 0x4ff   : >> { %v11560_v17 = vadd.f32 %v3869_v6, %v3645_v27 }
 0x500   : >> { %v3936_v18 = vadd.f32 %v3935_v51, %v3934_v56  ;;  %v3939_v20 = vsel %vm548_vm0, %v11556_v7, 0.0 }
 0x501   : >> { %v3937_v34 = vsel %vm548_vm0, %v11560_v17, 0.0 }
 0x502   : >> { %v3938_v21 = vadd.f32 %v3937_v34, %v3936_v18 }
 0x504   : >> { %v3940_v46 = vadd.f32 %v3939_v20, %v3938_v21 }
 0x506   : >> { %v3941_v47 = vrot.slane %v3940_v46, 4 }
 0x508   : >> { %v3942_v45 = vadd.f32 %v3941_v47, %v3940_v46 }
 0x50a   : >> { %v3943_v24 = vrot.slane %v3942_v45, 2 }
 0x50c   : >> { %v3944_v26 = vadd.f32 %v3943_v24, %v3942_v45 }
 0x50e   : >> { %v3945_v39 = vrot.slane %v3944_v26, 1 }
 0x510   : >> { %v3946_v42 = vadd.f32 %v3945_v39, %v3944_v26  ;;  %v12887_v26 = vld [vmem:[#allocation31_spill] sm:$0xff]  ;;  %v12888_v39 = vld [vmem:[#allocation32_spill] sm:$0xff] }
 0x512   : >> { %v3948_v44 = vmul.f32 0.00390625, %v3946_v42  ;;  %v12889_v42 = vld [vmem:[#allocation33_spill] sm:$0xff] }
 0x514   : >> { %6490 = vmatmul.mubr.msk.f32.vlgmr.msra.gmra.mrb[108].mxu1 %vm548_vm0, %v3948_v44  ;;  %v12890_v44 = vld [vmem:[#allocation34_spill] sm:$0xff] }
 0x515   : >> { %6494 = vmatprep.mubr.msk.f32.mxu1 %vm8891_vm3, %v8892_v30  ;;  %6493 = vmatpush3.msra.mxu1 %v4033_v36  ;;  %v4114_v30 = vlaneseq  ;;  %v12891_v36 = vld [vmem:[#allocation35_spill] sm:$0xff] }
 0x517   : >> { %v4115_v43 = vshrl.u32 %v4114_v30, 7 }
 0x519   : >> { %v4116_v22 = vsub.s32 0, %v4115_v43  ;;  %v12900_v43 = vld [vmem:[#allocation44_spill] sm:$0xff] }
 0x5e7   : >> { %v4026_v28 = vpop.f32.mrb[108].mxu1 }
 0x5e8   : >> { %v4027_v55 = vadd.f32 %v4026_v28, %v3956_v25  ;;  %v6491_v50 = vpop.f32.mrb[109].mxu1  ;;  %v12892_v25 = vld [vmem:[#allocation36_spill] sm:$0xff]  ;;  %v12893_v28 = vld [vmem:[#allocation37_spill] sm:$0xff] }
 0x5e9   : >> { %v12895_v50 = vld [vmem:[#allocation39_spill] sm:$0xff] }
 0x5ea   : >> { %v4030_v40 = vmax.f32 %v4027_v55, 0.0  ;;  %v12894_v55 = vld [vmem:[#allocation38_spill] sm:$0xff] }
 0x5ec   : >> { %6495 = vmatmul.mubr.msk.f32.vlgmr.msra.gmra.mrb[110].mxu1 %vm4036_vm4, %v4030_v40  ;;  %v12896_v40 = vld [vmem:[#allocation40_spill] sm:$0xff] }
 0x6bf   : >> { %v4106_v52 = vpop.f32.mrb[110].mxu1 }
 0x6c0   : >> { %v4107_v4 = vadd.f32 %v4106_v52, %v4035_v59  ;;  %v6496_v61 = vpop.f32.mrb[111].mxu1  ;;  %v12897_v59 = vld [vmem:[#allocation41_spill] sm:$0xff] }
 0x6c2   : >> { %v4110_v16 = vmul.f32 0.5, %v4107_v4  ;;  %v12898_v4 = vld [vmem:[#allocation42_spill] sm:$0xff] }
 0x6c4   : >> { %7895 = vtanh.f32 %v4110_v16  ;;  %v12899_v16 = vld [vmem:[#allocation43_spill] sm:$0xff] }
 0x6ce   : >> { %v7896_v63 = vpop.eup %7895 }
 0x6cf   : >> { %v4112_v27 = vadd.f32 1.0, %v7896_v63 }
 0x6d1   : >> { %v4113_v31 = vmul.f32 0.5, %v4112_v27  ;;  %v12901_v27 = vld [vmem:[#allocation45_spill] sm:$0xff] }
 0x6d3   : >> { %v4117_v56 = vrot.slane %v4113_v31, %v4116_v22  ;;  %v12902_v31 = vld [vmem:[#allocation46_spill] sm:$0xff] }
 0x6d5   : >> { %v4118_v6 = vmul.f32 %v4117_v56, %v11365_v54  ;;  %v4119_v51 = vmul.f32 %v4117_v56, %v11369_v3  ;;  %v4120_v18 = vmul.f32 %v4117_v56, %v11373_v0  ;;  %v4121_v34 = vmul.f32 %v4117_v56, %v11377_v48 }
 0x6d6   : >> { %v4122_v21 = vmul.f32 %v4117_v56, %v11381_v11  ;;  %v4123_v20 = vmul.f32 %v4117_v56, %v11385_v60  ;;  %v4124_v46 = vmul.f32 %v4117_v56, %v11389_v15  ;;  %v4125_v47 = vmul.f32 %v4117_v56, %v11393_v57 }
 0x6d7   : >> { %v4126_v45 = vmul.f32 %v4117_v56, %v11397_v23  ;;  %v4127_v24 = vmul.f32 %v4117_v56, %v11401_v58  ;;  %v4128_v54 = vmul.f32 %v4117_v56, %v11405_v38  ;;  %v4129_v3 = vmul.f32 %v4117_v56, %v11409_v62 }
 0x6d8   : >> { %v4130_v0 = vmul.f32 %v4117_v56, %v11413_v12  ;;  %v4131_v48 = vmul.f32 %v4117_v56, %v11417_v10  ;;  %v4132_v11 = vmul.f32 %v4117_v56, %v11422_v9  ;;  %v4133_v60 = vmul.f32 %v4117_v56, %v11427_v1 }
 0x6d9   : >> { %v4134_v15 = vmul.f32 %v4117_v56, %v11431_v14  ;;  %v4135_v57 = vmul.f32 %v4117_v56, %v11437_v8  ;;  %v4136_v23 = vmul.f32 %v4117_v56, %v11442_v29  ;;  %v4137_v58 = vmul.f32 %v4117_v56, %v11446_v33 }
 0x6da   : >> { %v4138_v38 = vmul.f32 %v4117_v56, %v11504_v5  ;;  %v4139_v62 = vmul.f32 %v4117_v56, %v11502_v35  ;;  %v4140_v12 = vmul.f32 %v4117_v56, %v11515_v19  ;;  %v4141_v10 = vmul.f32 %v4117_v56, %v11511_v53 }
 0x6db   : >> { %v4142_v9 = vmul.f32 %v4117_v56, %v11527_v49  ;;  %v4143_v1 = vmul.f32 %v4117_v56, %v11523_v2  ;;  %v4144_v14 = vmul.f32 %v4117_v56, %v11539_v13  ;;  %v4145_v8 = vmul.f32 %v4117_v56, %v11535_v32 }
 0x6dc   : >> { %v4146_v29 = vmul.f32 %v4117_v56, %v11550_v37  ;;  %v4147_v33 = vmul.f32 %v4117_v56, %v11546_v41  ;;  %v4148_v5 = vmul.f32 %v4117_v56, %v11560_v17  ;;  %v4149_v35 = vmul.f32 %v4117_v56, %v11556_v7 }
 0x6dd   : >> { %v4150_v19 = vadd.f32 %v4118_v6, %v12887_v26  ;;  %v4151_v53 = vadd.f32 %v4119_v51, %v12888_v39  ;;  %v4152_v49 = vadd.f32 %v4120_v18, %v12889_v42  ;;  %v4153_v2 = vadd.f32 %v4121_v34, %v12890_v44  ;;  %v12903_v6 = vld [vmem:[#allocation47_spill] sm:$0xff]  ;;  %v12904_v18 = vld [vmem:[#allocation48_spill] sm:$0xff]  ;;  %v12913_v26 = vld [vmem:[#allocation57_spill] sm:$0xff] }
 0x6de   : >> { %v4154_v13 = vadd.f32 %v4122_v21, %v12891_v36  ;;  %v4155_v32 = vadd.f32 %v4123_v20, %v12892_v25  ;;  %v4156_v37 = vadd.f32 %v4124_v46, %v12893_v28  ;;  %v4157_v41 = vadd.f32 %v4125_v47, %v12894_v55  ;;  %v12905_v21 = vld [vmem:[#allocation49_spill] sm:$0xff]  ;;  %v12906_v46 = vld [vmem:[#allocation50_spill] sm:$0xff]  ;;  %v12916_v39 = vld [vmem:[#allocation60_spill] sm:$0xff] }
 0x6df   : >> { %v4158_v17 = vadd.f32 %v4126_v45, %v12895_v50  ;;  %v4159_v7 = vadd.f32 %v4127_v24, %v12896_v40  ;;  %v4160_v52 = vadd.f32 %v4128_v54, %v12897_v59  ;;  %v4161_v61 = vadd.f32 %v4129_v3, %v12898_v4  ;;  %4182 = vst.msk [vmem:[#allocation3] sm:$0xff] %vm548_vm0, %v4150_v19  ;;  %v12907_v45 = vld [vmem:[#allocation51_spill] sm:$0xff]  ;;  %v12908_v54 = vld [vmem:[#allocation52_spill] sm:$0xff]  ;;  %v12914_v19 = vld [vmem:[#allocation58_spill] sm:$0xff] }
 0x6e0   : >> { %4183 = vst.msk [vmem:[#allocation3 + $0x8] sm:$0xff] %vm548_vm0, %v4151_v53  ;;  %4184 = vst.msk [vmem:[#allocation3 + $0x10] sm:$0xff] %vm548_vm0, %v4152_v49  ;;  %v4162_v30 = vadd.f32 %v4130_v0, %v12899_v16  ;;  %v4163_v63 = vadd.f32 %v4131_v48, %v12900_v43  ;;  %v4164_v22 = vadd.f32 %v4132_v11, %v12901_v27  ;;  %v12909_v0 = vld [vmem:[#allocation53_spill] sm:$0xff]  ;;  %v12910_v11 = vld [vmem:[#allocation54_spill] sm:$0xff] }
 0x6e1   : >> { %4185 = vst.msk [vmem:[#allocation3 + $0x18] sm:$0xff] %vm548_vm0, %v4153_v2  ;;  %v4165_v56 = vadd.f32 %v4133_v60, %v12902_v31  ;;  %4186 = vst.msk [vmem:[#allocation3 + $0x20] sm:$0xff] %vm548_vm0, %v4154_v13  ;;  %v4166_v51 = vadd.f32 %v4134_v15, %v12903_v6  ;;  %v4167_v34 = vadd.f32 %v4135_v57, %v12904_v18  ;;  %v12911_v15 = vld [vmem:[#allocation55_spill] sm:$0xff]  ;;  %v12917_v42 = vld [vmem:[#allocation61_spill] sm:$0xff]  ;;  %v8893_v2 = vmov (%p660_p13), 0.0|0.0  }
 0x6e2   : >> { %4187 = vst.msk [vmem:[#allocation3 + $0x28] sm:$0xff] %vm548_vm0, %v4155_v32  ;;  %4188 = vst.msk [vmem:[#allocation3 + $0x30] sm:$0xff] %vm548_vm0, %v4156_v37  ;;  %v4168_v20 = vadd.f32 %v4136_v23, %v12905_v21  ;;  %v4169_v47 = vadd.f32 %v4137_v58, %v12906_v46  ;;  %v4170_v24 = vadd.f32 %v4138_v38, %v12907_v45  ;;  %v12912_v23 = vld [vmem:[#allocation56_spill] sm:$0xff]  ;;  %v12918_v49 = vld [vmem:[#allocation62_spill] sm:$0xff]  ;;  %6671 = vmatprep.subr.bf16.mxu0 (%p660_p13), %v8893_v2 }
 0x6e3   : >> { %4189 = vst.msk [vmem:[#allocation3 + $0x38] sm:$0xff] %vm548_vm0, %v4157_v41  ;;  %4190 = vst.msk [vmem:[#allocation3 + $0x40] sm:$0xff] %vm548_vm0, %v4158_v17  ;;  %v4171_v3 = vadd.f32 %v4139_v62, %v12908_v54  ;;  %v4172_v48 = vadd.f32 %v4140_v12, %v12909_v0  ;;  %v4173_v60 = vadd.f32 %v4141_v10, %v12910_v11  ;;  %v12915_v12 = vld [vmem:[#allocation59_spill] sm:$0xff]  ;;  %6731 = vmatprep.subr.bf16.mxu1 (%p660_p13), %v8893_v2  ;;  %v4388_v43 = vld [vmem:[#allocation2 + $0x9] sm:$0xff] (%p660_p13) }
 0x6e4   : >> { %4191 = vst.msk [vmem:[#allocation3 + $0x48] sm:$0xff] %vm548_vm0, %v4159_v7  ;;  %4192 = vst.msk [vmem:[#allocation3 + $0x50] sm:$0xff] %vm548_vm0, %v4160_v52  ;;  %v4174_v57 = vadd.f32 %v4142_v9, %v12911_v15  ;;  %v4175_v58 = vadd.f32 %v4143_v1, %v12912_v23  ;;  %v4176_v38 = vadd.f32 %v4144_v14, %v12913_v26  ;;  %v4352_v14 = vld [vmem:[#allocation2 + $0x8] sm:$0xff] (%p660_p13)  ;;  %v4246_v4 = vld [vmem:[#allocation19] sm:$0xff] (%p660_p13) }
 0x6e5   : >> { %4193 = vst.msk [vmem:[#allocation3 + $0x58] sm:$0xff] %vm548_vm0, %v4161_v61  ;;  %4194 = vst.msk [vmem:[#allocation3 + $0x60] sm:$0xff] %vm548_vm0, %v4162_v30  ;;  %v4177_v62 = vadd.f32 %v4145_v8, %v12914_v19  ;;  %v4178_v10 = vadd.f32 %v4146_v29, %v12915_v12  ;;  %v4179_v53 = vadd.f32 %v4147_v33, %v12916_v39  ;;  %v4353_v8 = vld [vmem:[#allocation2 + $0x10] sm:$0xff] (%p660_p13)  ;;  %v4247_v61 = vld [vmem:[#allocation19 + $0x8] sm:$0xff] (%p660_p13) }
 0x6e6   : >> { %4195 = vst.msk [vmem:[#allocation3 + $0x68] sm:$0xff] %vm548_vm0, %v4163_v63  ;;  %4196 = vst.msk [vmem:[#allocation3 + $0x70] sm:$0xff] %vm548_vm0, %v4164_v22  ;;  %v4180_v9 = vadd.f32 %v4148_v5, %v12917_v42  ;;  %v4181_v1 = vadd.f32 %v4149_v35, %v12918_v49  ;;  %v7943_v33 = vpack.i.bf16 (%p660_p13), %v4353_v8, %v4352_v14  ;;  %v4214_v35 = vld [vmem:[#allocation3] sm:$0xff] (%p660_p13)  ;;  %v4389_v15 = vld [vmem:[#allocation2 + $0x11] sm:$0xff] (%p660_p13) }
 0x6e7   : >> { %4197 = vst.msk [vmem:[#allocation3 + $0x78] sm:$0xff] %vm548_vm0, %v4165_v56  ;;  %4198 = vst.msk [vmem:[#allocation3 + $0x80] sm:$0xff] %vm548_vm0, %v4166_v51  ;;  %v4216_v29 = vld [vmem:[#allocation3 + $0x10] sm:$0xff] (%p660_p13)  ;;  %v4215_v44 = vld [vmem:[#allocation3 + $0x8] sm:$0xff] (%p660_p13)  ;;  %v6672_v63 = vpack.c.bf16 (%p660_p13), %v4247_v61, %v4246_v4 }
 0x6e8   : >> { %4199 = vst.msk [vmem:[#allocation3 + $0x88] sm:$0xff] %vm548_vm0, %v4167_v34  ;;  %4200 = vst.msk [vmem:[#allocation3 + $0x90] sm:$0xff] %vm548_vm0, %v4168_v20  ;;  %v4217_v5 = vld [vmem:[#allocation3 + $0x18] sm:$0xff] (%p660_p13)  ;;  %7944 = vrot.lane.b32.xlu0 (%p660_p13), %v7943_v33, %s8894_s28  ;;  %v4218_v55 = vld [vmem:[#allocation3 + $0x20] sm:$0xff] (%p660_p13) }
 0x6e9   : >> { %4201 = vst.msk [vmem:[#allocation3 + $0x98] sm:$0xff] %vm548_vm0, %v4169_v47  ;;  %4202 = vst.msk [vmem:[#allocation3 + $0xa0] sm:$0xff] %vm548_vm0, %v4170_v24  ;;  %662 = sbr.rel (!%p660_p13) target bundleno = 358 (0x166), region = 167  ;;  %v4219_v17 = vld [vmem:[#allocation3 + $0x28] sm:$0xff] (%p660_p13)  ;;  %v4220_v40 = vld [vmem:[#allocation3 + $0x30] sm:$0xff] (%p660_p13)  ;;  %6673 = vmatpush1.bf16.msra.mxu0 (%p660_p13), %v6672_v63  ;;  %6747 = vmatpush1.bf16.msra.mxu1 (%p660_p13), %v6672_v63 }
 0x6ea   : >> { %4203 = vst.msk [vmem:[#allocation3 + $0xa8] sm:$0xff] %vm548_vm0, %v4171_v3  ;;  %4204 = vst.msk [vmem:[#allocation3 + $0xb0] sm:$0xff] %vm548_vm0, %v4172_v48  ;;  %v4221_v59 = vld [vmem:[#allocation3 + $0x38] sm:$0xff] (%p660_p13)  ;;  %6674 = vmatprep.subr.bf16.mxu0 (%p660_p13), %v8893_v2  ;;  %6732 = vmatprep.subr.bf16.mxu1 (%p660_p13), %v8893_v2  ;;  %v4248_v26 = vld [vmem:[#allocation19 + $0x10] sm:$0xff] (%p660_p13) }
 0x6eb   : >> { %4205 = vst.msk [vmem:[#allocation3 + $0xb8] sm:$0xff] %vm548_vm0, %v4173_v60  ;;  %4206 = vst.msk [vmem:[#allocation3 + $0xc0] sm:$0xff] %vm548_vm0, %v4174_v57  ;;  %v4222_v42 = vld [vmem:[#allocation3 + $0x40] sm:$0xff] (%p660_p13)  ;;  %v4252_v33 = vld [vmem:[#allocation19 + $0x30] sm:$0xff] (%p660_p13) }
 0x6ec   : >> { %4207 = vst.msk [vmem:[#allocation3 + $0xc8] sm:$0xff] %vm548_vm0, %v4175_v58  ;;  %4208 = vst.msk [vmem:[#allocation3 + $0xd0] sm:$0xff] %vm548_vm0, %v4176_v38  ;;  %v4251_v49 = vld [vmem:[#allocation19 + $0x28] sm:$0xff] (%p660_p13)  ;;  %v4257_v63 = vld [vmem:[#allocation19 + $0x58] sm:$0xff] (%p660_p13) }
 0x6ed   : >> { %4209 = vst.msk [vmem:[#allocation3 + $0xd8] sm:$0xff] %vm548_vm0, %v4177_v62  ;;  %4210 = vst.msk [vmem:[#allocation3 + $0xe0] sm:$0xff] %vm548_vm0, %v4178_v10  ;;  %v4249_v10 = vld [vmem:[#allocation19 + $0x18] sm:$0xff] (%p660_p13) }
 0x6ee   : >> { %4211 = vst.msk [vmem:[#allocation3 + $0xe8] sm:$0xff] %vm548_vm0, %v4179_v53  ;;  %4212 = vst.msk [vmem:[#allocation3 + $0xf0] sm:$0xff] %vm548_vm0, %v4180_v9  ;;  %v6675_v53 = vpack.c.bf16 (%p660_p13), %v4249_v10, %v4248_v26  ;;  %v4250_v9 = vld [vmem:[#allocation19 + $0x20] sm:$0xff] (%p660_p13)  ;;  %v4260_v26 = vld [vmem:[#allocation19 + $0x70] sm:$0xff] (%p660_p13) }
 0x6ef   : >> { %4213 = vst.msk [vmem:[#allocation3 + $0xf8] sm:$0xff] %vm548_vm0, %v4181_v1  ;;  %4286 = vst.msk [vmem:[#allocation2 + $0x48] sm:$0xff] (%p660_p13), %vm548_vm0, %v4216_v29  ;;  %v6678_v14 = vpack.c.bf16 (%p660_p13), %v4251_v49, %v4250_v9  ;;  %v4262_v9 = vld [vmem:[#allocation19 + $0x80] sm:$0xff] (%p660_p13)  ;;  %v4263_v49 = vld [vmem:[#allocation19 + $0x88] sm:$0xff] (%p660_p13) }
 0x6f0   : > { %4287 = vst.msk [vmem:[#allocation2 + $0x50] sm:$0xff] %vm548_vm0, %v4217_v5  ;;  %4284 = vst.msk [vmem:[#allocation2 + $0x28] sm:$0xff] %vm548_vm0, %v4214_v35  ;;  %6676 = vmatpush1.bf16.msra.mxu0 %v6675_v53  ;;  %6748 = vmatpush1.bf16.msra.mxu1 %v6675_v53  ;;  %v4253_v5 = vld [vmem:[#allocation19 + $0x38] sm:$0xff]  ;;  %v4223_v35 = vld [vmem:[#allocation3 + $0x48] sm:$0xff] }
 0x6f1   : > { %4285 = vst.msk [vmem:[#allocation2 + $0x30] sm:$0xff] %vm548_vm0, %v4215_v44  ;;  %v4236_v25 = vld [vmem:[#allocation3 + $0xb0] sm:$0xff]  ;;  %4288 = vst.msk [vmem:[#allocation2 + $0x68] sm:$0xff] %vm548_vm0, %v4218_v55  ;;  %6677 = vmatprep.subr.bf16.mxu0 %v8893_v2  ;;  %6733 = vmatprep.subr.bf16.mxu1 %v8893_v2  ;;  %v4254_v55 = vld [vmem:[#allocation19 + $0x40] sm:$0xff] }
 0x6f2   : > { %v4238_v36 = vld [vmem:[#allocation3 + $0xc0] sm:$0xff]  ;;  %v4237_v32 = vld [vmem:[#allocation3 + $0xb8] sm:$0xff]  ;;  %4306 = vst.msk [vmem:[#allocation2 + $0x188] sm:$0xff] %vm548_vm0, %v4236_v25  ;;  %4289 = vst.msk [vmem:[#allocation2 + $0x70] sm:$0xff] %vm548_vm0, %v4219_v17 }
 0x6f3   : > { %v4239_v13 = vld [vmem:[#allocation3 + $0xc8] sm:$0xff]  ;;  %4308 = vst.msk [vmem:[#allocation2 + $0x1a8] sm:$0xff] %vm548_vm0, %v4238_v36  ;;  %v4240_v28 = vld [vmem:[#allocation3 + $0xd0] sm:$0xff]  ;;  %4307 = vst.msk [vmem:[#allocation2 + $0x190] sm:$0xff] %vm548_vm0, %v4237_v32  ;;  %v6681_v32 = vpack.c.bf16 %v4253_v5, %v4252_v33 }
 0x6f4   : > { %4309 = vst.msk [vmem:[#allocation2 + $0x1b0] sm:$0xff] %vm548_vm0, %v4239_v13  ;;  %4310 = vst.msk [vmem:[#allocation2 + $0x1c8] sm:$0xff] %vm548_vm0, %v4240_v28  ;;  %v4241_v37 = vld [vmem:[#allocation3 + $0xd8] sm:$0xff]  ;;  %v4242_v41 = vld [vmem:[#allocation3 + $0xe0] sm:$0xff]  ;;  %6679 = vmatpush1.bf16.msra.mxu0 %v6678_v14  ;;  %6749 = vmatpush1.bf16.msra.mxu1 %v6678_v14 }
 0x6f5   : > { %4311 = vst.msk [vmem:[#allocation2 + $0x1d0] sm:$0xff] %vm548_vm0, %v4241_v37  ;;  %v4243_v50 = vld [vmem:[#allocation3 + $0xe8] sm:$0xff]  ;;  %4312 = vst.msk [vmem:[#allocation2 + $0x1e8] sm:$0xff] %vm548_vm0, %v4242_v41  ;;  %v4244_v7 = vld [vmem:[#allocation3 + $0xf0] sm:$0xff]  ;;  %6680 = vmatprep.subr.bf16.mxu0 %v8893_v2  ;;  %6734 = vmatprep.subr.bf16.mxu1 %v8893_v2 }
 0x6f6   : > { %4313 = vst.msk [vmem:[#allocation2 + $0x1f0] sm:$0xff] %vm548_vm0, %v4243_v50  ;;  %4290 = vst.msk [vmem:[#allocation2 + $0x88] sm:$0xff] %vm548_vm0, %v4220_v40  ;;  %v4245_v52 = vld [vmem:[#allocation3 + $0xf8] sm:$0xff]  ;;  %v11691_v16 = vld [vmem:[#allocation2 + $0x48] sm:$0xff] }
 0x6f7   : > { %4314 = vst.msk [vmem:[#allocation2 + $0x208] sm:$0xff] %vm548_vm0, %v4244_v7  ;;  %4291 = vst.msk [vmem:[#allocation2 + $0x90] sm:$0xff] %vm548_vm0, %v4221_v59  ;;  %v11693_v30 = vld [vmem:[#allocation2 + $0x47] sm:$0xff]  ;;  %v11696_v27 = vld [vmem:[#allocation2 + $0x50] sm:$0xff] }
 0x6f8   : > { %4315 = vst.msk [vmem:[#allocation2 + $0x210] sm:$0xff] %vm548_vm0, %v4245_v52  ;;  %v11698_v22 = vld [vmem:[#allocation2 + $0x28] sm:$0xff]  ;;  %v11700_v31 = vld [vmem:[#allocation2 + $0x30] sm:$0xff]  ;;  %v7953_v56 = vpack.i.bf16 %v11696_v27, %v11691_v16  ;;  %v7963_v21 = vpack.i.bf16 %v4388_v43, %v11693_v30  ;;  %4292 = vst.msk [vmem:[#allocation2 + $0xa8] sm:$0xff] %vm548_vm0, %v4222_v42  ;;  %6682 = vmatpush1.bf16.msra.mxu0 %v6681_v32  ;;  %6750 = vmatpush1.bf16.msra.mxu1 %v6681_v32 }
 0x6f9   : > { %v7948_v6 = vpack.i.bf16 %v11700_v31, %v11698_v22  ;;  %v11706_v51 = vld [vmem:[#allocation2 + $0x29] sm:$0xff]  ;;  %v11717_v20 = vld [vmem:[#allocation2 + $0x31] sm:$0xff]  ;;  %4293 = vst.msk [vmem:[#allocation2 + $0xb0] sm:$0xff] %vm548_vm0, %v4223_v35  ;;  %v4255_v41 = vld [vmem:[#allocation19 + $0x48] sm:$0xff]  ;;  %6683 = vmatprep.subr.bf16.mxu0 %v8893_v2  ;;  %6735 = vmatprep.subr.bf16.mxu1 %v8893_v2 }
 0x6fa   : > { %7954 = vrot.lane.b32.xlu1 %v7953_v56, %s8894_s28  ;;  %v4376_v46 = vld [vmem:[#allocation2 + $0x188] sm:$0xff]  ;;  %v4377_v23 = vld [vmem:[#allocation2 + $0x190] sm:$0xff]  ;;  %v4225_v7 = vld [vmem:[#allocation3 + $0x58] sm:$0xff]  ;;  %v6684_v59 = vpack.c.bf16 %v4255_v41, %v4254_v55 }
 0x6fb   : > { %v11708_v18 = vld [vmem:[#allocation2 + $0x1a9] sm:$0xff]  ;;  %7949 = vrot.lane.b32.xlu0 %v7948_v6, %s8894_s28  ;;  %v7968_v24 = vpack.i.bf16 %v11717_v20, %v4376_v46  ;;  %v11739_v58 = vld [vmem:[#allocation2 + $0x1b1] sm:$0xff]  ;;  %4295 = vst.msk [vmem:[#allocation2 + $0xd0] sm:$0xff] %vm548_vm0, %v4225_v7  ;;  %v4226_v52 = vld [vmem:[#allocation3 + $0x60] sm:$0xff] }
 0x6fc   : > { %v7958_v34 = vpack.i.bf16 %v11708_v18, %v11706_v51  ;;  %v11719_v47 = vld [vmem:[#allocation2 + $0x1c7] sm:$0xff]  ;;  %v11737_v57 = vld [vmem:[#allocation2 + $0x4f] sm:$0xff]  ;;  %v7988_v19 = vpack.i.bf16 %v4377_v23, %v11739_v58  ;;  %4296 = vst.msk [vmem:[#allocation2 + $0xe8] sm:$0xff] %vm548_vm0, %v4226_v52  ;;  %6685 = vmatpush1.bf16.msra.mxu0 %v6684_v59  ;;  %6751 = vmatpush1.bf16.msra.mxu1 %v6684_v59  ;;  %v4266_v52 = vld [vmem:[#allocation19 + $0xa0] sm:$0xff] }
 0x6fd   : > { %v4412_v45 = vld [vmem:[#allocation2 + $0x189] sm:$0xff]  ;;  %v7993_v38 = vpack.i.bf16 %v4389_v15, %v11737_v57  ;;  %v4413_v39 = vld [vmem:[#allocation2 + $0x191] sm:$0xff]  ;;  %6686 = vmatprep.subr.bf16.mxu0 %v8893_v2  ;;  %6736 = vmatprep.subr.bf16.mxu1 %v8893_v2  ;;  %v4234_v33 = vld [vmem:[#allocation3 + $0xa0] sm:$0xff] }
 0x6fe   : > { %7959 = vrot.lane.b32.xlu1 %v7958_v34, %s8894_s28  ;;  %v7973_v54 = vpack.i.bf16 %v4412_v45, %v11719_v47  ;;  %v11725_v3 = vld [vmem:[#allocation2 + $0x1a7] sm:$0xff]  ;;  %v11745_v62 = vld [vmem:[#allocation2 + $0x2f] sm:$0xff]  ;;  %v4258_v45 = vld [vmem:[#allocation19 + $0x60] sm:$0xff]  ;;  %4304 = vst.msk [vmem:[#allocation2 + $0x168] sm:$0xff] %vm548_vm0, %v4234_v33 }
 0x6ff   : > { %7964 = vrot.lane.b32.xlu0 %v7963_v21, %s8895_s29  ;;  %v11727_v0 = vld [vmem:[#allocation2 + $0x1c8] sm:$0xff]  ;;  %v8003_v8 = vpack.i.bf16 %v11745_v62, %v11696_v27  ;;  %v11761_v13 = vld [vmem:[#allocation2 + $0x1d0] sm:$0xff]  ;;  %v4229_v15 = vld [vmem:[#allocation3 + $0x78] sm:$0xff] }
 0x700   : > { %v11729_v48 = vld [vmem:[#allocation2 + $0x27] sm:$0xff]  ;;  %v7983_v11 = vpack.i.bf16 %v11725_v3, %v11727_v0  ;;  %v11747_v12 = vld [vmem:[#allocation2 + $0x1cf] sm:$0xff]  ;;  %4299 = vst.msk [vmem:[#allocation2 + $0x110] sm:$0xff] %vm548_vm0, %v4229_v15  ;;  %v4270_v15 = vld [vmem:[#allocation19 + $0xc0] sm:$0xff] }
 0x701   : > { %v7978_v60 = vpack.i.bf16 %v11729_v48, %v11691_v16  ;;  %v11750_v1 = vld [vmem:[#allocation2 + $0x49] sm:$0xff]  ;;  %v7998_v29 = vpack.i.bf16 %v4413_v39, %v11747_v12  ;;  %v11774_v17 = vld [vmem:[#allocation2 + $0x51] sm:$0xff] }
 0x702   : > { %7969 = vrot.lane.b32.xlu1 %v7968_v24, %s8894_s28  ;;  %v11757_v44 = vld [vmem:[#allocation2 + $0x1c9] sm:$0xff]  ;;  %v4259_v24 = vld [vmem:[#allocation19 + $0x68] sm:$0xff] }
 0x703   : > { %7974 = vrot.lane.b32.xlu0 %v7973_v54, %s8895_s29  ;;  %v11759_v36 = vld [vmem:[#allocation2 + $0x1af] sm:$0xff]  ;;  %v8013_v28 = vpack.i.bf16 %v11757_v44, %v11750_v1  ;;  %v11776_v40 = vld [vmem:[#allocation2 + $0x67] sm:$0xff] }
 0x704   : > { %v11766_v25 = vld [vmem:[#allocation2 + $0x1a8] sm:$0xff]  ;;  %v8008_v37 = vpack.i.bf16 %v11759_v36, %v11761_v13  ;;  %v4224_v50 = vld [vmem:[#allocation3 + $0x50] sm:$0xff]  ;;  %v8018_v61 = vpack.i.bf16 %v11706_v51, %v11776_v40 }
 0x705   : > { %4294 = vst.msk [vmem:[#allocation2 + $0xc8] sm:$0xff] %vm548_vm0, %v4224_v50  ;;  %v8023_v4 = vpack.i.bf16 %v11774_v17, %v11766_v25  ;;  %v4256_v43 = vld [vmem:[#allocation19 + $0x50] sm:$0xff]  ;;  %v4228_v21 = vld [vmem:[#allocation3 + $0x70] sm:$0xff] }
 0x706   : > { %7979 = vrot.lane.b32.xlu1 %v7978_v60, %s8896_s21  ;;  %v11789_v27 = vld [vmem:[#allocation2 + $0x68] sm:$0xff]  ;;  %v6687_v34 = vpack.c.bf16 %v4257_v63, %v4256_v43  ;;  %4298 = vst.msk [vmem:[#allocation2 + $0x108] sm:$0xff] %vm548_vm0, %v4228_v21  ;;  %v11803_v54 = vld [vmem:[#allocation2 + $0x1b0] sm:$0xff] }
 0x707   : > { %7984 = vrot.lane.b32.xlu0 %v7983_v11, %s8896_s21  ;;  %v11791_v56 = vld [vmem:[#allocation2 + $0x1e7] sm:$0xff]  ;;  %v8033_v51 = vpack.i.bf16 %v11693_v30, %v11789_v27  ;;  %v11805_v11 = vld [vmem:[#allocation2 + $0x1d1] sm:$0xff]  ;;  %v6690_v30 = vpack.c.bf16 %v4259_v24, %v4258_v45 }
 0x708   : > { %v4227_v6 = vld [vmem:[#allocation3 + $0x68] sm:$0xff]  ;;  %v8028_v46 = vpack.i.bf16 %v11708_v18, %v11791_v56  ;;  %6688 = vmatpush1.bf16.msra.mxu0 %v6687_v34  ;;  %6752 = vmatpush1.bf16.msra.mxu1 %v6687_v34  ;;  %v8043_v18 = vpack.i.bf16 %v11803_v54, %v11805_v11  ;;  %v11832_v5 = vld [vmem:[#allocation2 + $0x1f0] sm:$0xff] }
 0x709   : > { %4297 = vst.msk [vmem:[#allocation2 + $0xf0] sm:$0xff] %vm548_vm0, %v4227_v6  ;;  %v11807_v60 = vld [vmem:[#allocation2 + $0x1e8] sm:$0xff]  ;;  %6689 = vmatprep.subr.bf16.mxu0 %v8893_v2  ;;  %6737 = vmatprep.subr.bf16.mxu1 %v8893_v2  ;;  %v11834_v35 = vld [vmem:[#allocation2 + $0x70] sm:$0xff]  ;;  %v8063_v32 = vpack.i.bf16 %v11747_v12, %v11832_v5 }
 0x70a   : > { %7989 = vrot.lane.b32.xlu1 %v7988_v19, %s8894_s28  ;;  %v8038_v23 = vpack.i.bf16 %v11719_v47, %v11807_v60  ;;  %v4230_v19 = vld [vmem:[#allocation3 + $0x80] sm:$0xff]  ;;  %v11818_v10 = vld [vmem:[#allocation2 + $0x1ef] sm:$0xff] }
 0x70b   : > { %7994 = vrot.lane.b32.xlu0 %v7993_v38, %s8895_s29  ;;  %v4261_v38 = vld [vmem:[#allocation19 + $0x78] sm:$0xff]  ;;  %4300 = vst.msk [vmem:[#allocation2 + $0x128] sm:$0xff] %vm548_vm0, %v4230_v19  ;;  %v4231_v53 = vld [vmem:[#allocation3 + $0x88] sm:$0xff]  ;;  %v8053_v47 = vpack.i.bf16 %v11739_v58, %v11818_v10 }
 0x70c   : > { %v11820_v39 = vld [vmem:[#allocation2 + $0x6f] sm:$0xff]  ;;  %6691 = vmatpush1.bf16.msra.mxu0 %v6690_v30  ;;  %6753 = vmatpush1.bf16.msra.mxu1 %v6690_v30  ;;  %v6693_v42 = vpack.c.bf16 %v4261_v38, %v4260_v26  ;;  %4301 = vst.msk [vmem:[#allocation2 + $0x130] sm:$0xff] %vm548_vm0, %v4231_v53  ;;  %v11848_v41 = vld [vmem:[#allocation2 + $0x87] sm:$0xff] }
 0x70d   : > { %v8048_v14 = vpack.i.bf16 %v11717_v20, %v11820_v39  ;;  %6692 = vmatprep.subr.bf16.mxu0 %v8893_v2  ;;  %6738 = vmatprep.subr.bf16.mxu1 %v8893_v2  ;;  %v4235_v58 = vld [vmem:[#allocation3 + $0xa8] sm:$0xff]  ;;  %v6696_v20 = vpack.c.bf16 %v4263_v49, %v4262_v9  ;;  %v4265_v55 = vld [vmem:[#allocation19 + $0x98] sm:$0xff]  ;;  %v4271_v30 = vld [vmem:[#allocation19 + $0xc8] sm:$0xff] }
 0x70e   : > { %7999 = vrot.lane.b32.xlu1 %v7998_v29, %s8895_s29  ;;  %v4233_v29 = vld [vmem:[#allocation3 + $0x98] sm:$0xff]  ;;  %4305 = vst.msk [vmem:[#allocation2 + $0x170] sm:$0xff] %vm548_vm0, %v4235_v58  ;;  %v11850_v50 = vld [vmem:[#allocation2 + $0x69] sm:$0xff]  ;;  %v6708_v26 = vpack.c.bf16 %v4271_v30, %v4270_v15 }
 0x70f   : > { %8004 = vrot.lane.b32.xlu0 %v8003_v8, %s8896_s21  ;;  %v4232_v8 = vld [vmem:[#allocation3 + $0x90] sm:$0xff]  ;;  %4303 = vst.msk [vmem:[#allocation2 + $0x150] sm:$0xff] %vm548_vm0, %v4233_v29  ;;  %v4268_v34 = vld [vmem:[#allocation19 + $0xb0] sm:$0xff] }
 0x710   : > { %4302 = vst.msk [vmem:[#allocation2 + $0x148] sm:$0xff] %vm548_vm0, %v4232_v8  ;;  %6694 = vmatpush1.bf16.msra.mxu0 %v6693_v42  ;;  %6754 = vmatpush1.bf16.msra.mxu1 %v6693_v42  ;;  %v11852_v7 = vld [vmem:[#allocation2 + $0x1e9] sm:$0xff]  ;;  %v11864_v43 = vld [vmem:[#allocation2 + $0x71] sm:$0xff] }
 0x711   : > { %6695 = vmatprep.subr.bf16.mxu0 %v8893_v2  ;;  %6739 = vmatprep.subr.bf16.mxu1 %v8893_v2  ;;  %v8068_v12 = vpack.i.bf16 %v11852_v7, %v11850_v50  ;;  %v8078_v6 = vpack.i.bf16 %v11864_v43, %v11727_v0  ;;  %v4269_v21 = vld [vmem:[#allocation19 + $0xb8] sm:$0xff]  ;;  %v4272_v38 = vld [vmem:[#allocation19 + $0xd0] sm:$0xff] }
 0x712   : > { %8009 = vrot.lane.b32.xlu1 %v8008_v37, %s8896_s21  ;;  %v4264_v37 = vld [vmem:[#allocation19 + $0x90] sm:$0xff]  ;;  %v6705_v45 = vpack.c.bf16 %v4269_v21, %v4268_v34  ;;  %v4273_v19 = vld [vmem:[#allocation19 + $0xd8] sm:$0xff] }
 0x713   : > { %8014 = vrot.lane.b32.xlu0 %v8013_v28, %s8894_s28  ;;  %v8058_v28 = vpack.i.bf16 %v11737_v57, %v11834_v35  ;;  %v6699_v59 = vpack.c.bf16 %v4265_v55, %v4264_v37  ;;  %v8073_v57 = vpack.i.bf16 %v11750_v1, %v11848_v41  ;;  %v11898_v53 = vld [vmem:[#allocation2 + $0x90] sm:$0xff]  ;;  %v6711_v9 = vpack.c.bf16 %v4273_v19, %v4272_v38  ;;  %v4276_v58 = vld [vmem:[#allocation19 + $0xf0] sm:$0xff] }
 0x714   : > { %6697 = vmatpush1.bf16.msra.mxu0 %v6696_v20  ;;  %6755 = vmatpush1.bf16.msra.mxu1 %v6696_v20  ;;  %v11900_v42 = vld [vmem:[#allocation2 + $0x20f] sm:$0xff] }
 0x715   : > { %6698 = vmatprep.subr.bf16.mxu0 %v8893_v2  ;;  %6740 = vmatprep.subr.bf16.mxu1 %v8893_v2  ;;  %v8108_v49 = vpack.i.bf16 %v11805_v11, %v11900_v42  ;;  %v11910_v8 = vld [vmem:[#allocation2 + $0x89] sm:$0xff]  ;;  %v4421_v21 = vld [vmem:[#allocation2 + $0x211] sm:$0xff] }
 0x716   : > { %8019 = vrot.lane.b32.xlu1 %v8018_v61, %s8895_s29  ;;  %v11862_v61 = vld [vmem:[#allocation2 + $0x207] sm:$0xff]  ;;  %v11912_v29 = vld [vmem:[#allocation2 + $0x210] sm:$0xff]  ;;  %v8123_v11 = vpack.i.bf16 %v11789_v27, %v11910_v8 }
 0x717   : > { %8024 = vrot.lane.b32.xlu0 %v8023_v4, %s8894_s28  ;;  %v4267_v4 = vld [vmem:[#allocation19 + $0xa8] sm:$0xff]  ;;  %v8083_v1 = vpack.i.bf16 %v11757_v44, %v11862_v61  ;;  %v4277_v20 = vld [vmem:[#allocation19 + $0xf8] sm:$0xff]  ;;  %v11973_v38 = vld [vmem:[#allocation2 + $0xc8] sm:$0xff] }
 0x718   : > { %6700 = vmatpush1.bf16.msra.mxu0 %v6699_v59  ;;  %6756 = vmatpush1.bf16.msra.mxu1 %v6699_v59  ;;  %v6702_v63 = vpack.c.bf16 %v4267_v4, %v4266_v52  ;;  %v6717_v37 = vpack.c.bf16 %v4277_v20, %v4276_v58  ;;  %v11931_v59 = vld [vmem:[#allocation2 + $0xa8] sm:$0xff]  ;;  %v11940_v52 = vld [vmem:[#allocation2 + $0x91] sm:$0xff] }
 0x719   : > { %6701 = vmatprep.subr.bf16.mxu0 %v8893_v2  ;;  %6741 = vmatprep.subr.bf16.mxu1 %v8893_v2  ;;  %v4386_v4 = vld [vmem:[#allocation2 + $0x228] sm:$0xff]  ;;  %v4387_v30 = vld [vmem:[#allocation2 + $0x230] sm:$0xff] }
 0x71a   : > { %8029 = vrot.lane.b32.xlu1 %v8028_v46, %s8895_s29  ;;  %v11876_v46 = vld [vmem:[#allocation2 + $0x88] sm:$0xff]  ;;  %v11981_v19 = vld [vmem:[#allocation2 + $0xb1] sm:$0xff] }
 0x71b   : > { %8034 = vrot.lane.b32.xlu0 %v8033_v51, %s8896_s21  ;;  %v11874_v51 = vld [vmem:[#allocation2 + $0x208] sm:$0xff]  ;;  %v8088_v24 = vpack.i.bf16 %v11776_v40, %v11876_v46  ;;  %v12005_v20 = vld [vmem:[#allocation2 + $0xd1] sm:$0xff] }
 0x71c   : > { %6703 = vmatpush1.bf16.msra.mxu0 %v6702_v63  ;;  %6757 = vmatpush1.bf16.msra.mxu1 %v6702_v63  ;;  %v8093_v44 = vpack.i.bf16 %v11791_v56, %v11874_v51  ;;  %v8148_v63 = vpack.i.bf16 %v11862_v61, %v4386_v4  ;;  %v11947_v34 = vld [vmem:[#allocation2 + $0xaf] sm:$0xff]  ;;  %12924 = vst [vmem:[#allocation83_spill] sm:$0xff] %v12005_v20 }
 0x71d   : > { %6704 = vmatprep.subr.bf16.mxu0 %v8893_v2  ;;  %6742 = vmatprep.subr.bf16.mxu1 %v8893_v2  ;;  %12919 = vst [vmem:[#allocation78_spill] sm:$0xff] %v11947_v34  ;;  %v4351_v61 = vld [vmem:[#allocation2 + $0x22f] sm:$0xff] }
 0x71e   : > { %8039 = vrot.lane.b32.xlu1 %v8038_v23, %s8896_s21  ;;  %v11888_v23 = vld [vmem:[#allocation2 + $0x1f1] sm:$0xff] }
 0x71f   : > { %8044 = vrot.lane.b32.xlu0 %v8043_v18, %s8894_s28  ;;  %v11886_v18 = vld [vmem:[#allocation2 + $0x8f] sm:$0xff]  ;;  %v8098_v56 = vpack.i.bf16 %v11761_v13, %v11888_v23  ;;  %v8168_v15 = vpack.i.bf16 %v11888_v23, %v4351_v61 }
 0x720   : > { %6706 = vmatpush1.bf16.msra.mxu0 %v6705_v45  ;;  %6758 = vmatpush1.bf16.msra.mxu1 %v6705_v45  ;;  %v8103_v40 = vpack.i.bf16 %v11774_v17, %v11886_v18  ;;  %v8113_v17 = vpack.i.bf16 %v11820_v39, %v11898_v53  ;;  %v8118_v39 = vpack.i.bf16 %v11818_v10, %v11912_v29  ;;  %v12041_v61 = vld [vmem:[#allocation2 + $0x10f] sm:$0xff] }
 0x721   : > { %6707 = vmatprep.subr.bf16.mxu0 %v8893_v2  ;;  %6743 = vmatprep.subr.bf16.mxu1 %v8893_v2  ;;  %v8158_v45 = vpack.i.bf16 %v11832_v5, %v4421_v21 }
 0x722   : > { %8049 = vrot.lane.b32.xlu1 %v8048_v14, %s8895_s29  ;;  %v4275_v14 = vld [vmem:[#allocation19 + $0xe8] sm:$0xff] }
 0x723   : > { %8054 = vrot.lane.b32.xlu0 %v8053_v47, %s8895_s29  ;;  %v4274_v47 = vld [vmem:[#allocation19 + $0xe0] sm:$0xff] }
 0x724   : > { %6709 = vmatpush1.bf16.msra.mxu0 %v6708_v26  ;;  %6759 = vmatpush1.bf16.msra.mxu1 %v6708_v26  ;;  %v6714_v33 = vpack.c.bf16 %v4275_v14, %v4274_v47  ;;  %v11964_v26 = vld [vmem:[#allocation2 + $0xa9] sm:$0xff] }
 0x725   : > { %6710 = vmatprep.subr.bf16.mxu0 %v8893_v2  ;;  %6744 = vmatprep.subr.bf16.mxu1 %v8893_v2  ;;  %v11990_v47 = vld [vmem:[#allocation2 + $0xc9] sm:$0xff] }
 0x726   : > { %8059 = vrot.lane.b32.xlu1 %v8058_v28, %s8896_s21  ;;  %v4420_v28 = vld [vmem:[#allocation2 + $0x209] sm:$0xff]  ;;  %12922 = vst [vmem:[#allocation81_spill] sm:$0xff] %v11990_v47 }
 0x727   : > { %8064 = vrot.lane.b32.xlu0 %v8063_v32, %s8896_s21  ;;  %v11922_v32 = vld [vmem:[#allocation2 + $0xa7] sm:$0xff]  ;;  %v8128_v10 = vpack.i.bf16 %v11807_v60, %v4420_v28  ;;  %v12007_v28 = vld [vmem:[#allocation2 + $0xef] sm:$0xff] }
 0x728   : > { %6712 = vmatpush1.bf16.msra.mxu0 %v6711_v9  ;;  %6760 = vmatpush1.bf16.msra.mxu1 %v6711_v9  ;;  %v8133_v55 = vpack.i.bf16 %v11850_v50, %v11922_v32  ;;  %v8193_v23 = vpack.i.bf16 %v11922_v32, %v11973_v38  ;;  %v8198_v9 = vpack.i.bf16 %v11898_v53, %v11981_v19 }
 0x729   : > { %6713 = vmatprep.subr.bf16.mxu0 %v8893_v2  ;;  %6745 = vmatprep.subr.bf16.mxu1 %v8893_v2 }
 0x72a   : > { %8069 = vrot.lane.b32.xlu1 %v8068_v12, %s8894_s28  ;;  %v8143_v12 = vpack.i.bf16 %v11848_v41, %v11931_v59 }
 0x72b   : > { %8074 = vrot.lane.b32.xlu0 %v8073_v57, %s8895_s29  ;;  %v4350_v57 = vld [vmem:[#allocation2 + $0x227] sm:$0xff] }
 0x72c   : > { %6715 = vmatpush1.bf16.msra.mxu0 %v6714_v33  ;;  %6761 = vmatpush1.bf16.msra.mxu1 %v6714_v33  ;;  %v8138_v50 = vpack.i.bf16 %v11852_v7, %v4350_v57  ;;  %v8163_v7 = vpack.i.bf16 %v11864_v43, %v11947_v34  ;;  %v8178_v43 = vpack.i.bf16 %v11900_v42, %v4387_v30  ;;  %v4329_v42 = vld [vmem:[#allocation2 + $0xcf] sm:$0xff]  ;;  %v4330_v33 = vld [vmem:[#allocation2 + $0xe7] sm:$0xff] }
 0x72d   : > { %6716 = vmatprep.subr.bf16.mxu0 %v8893_v2  ;;  %6746 = vmatprep.subr.bf16.mxu1 %v8893_v2  ;;  %v8153_v2 = vpack.i.bf16 %v11834_v35, %v11940_v52  ;;  %v12017_v57 = vld [vmem:[#allocation2 + $0xf0] sm:$0xff] }
 0x72e   : > { %8079 = vrot.lane.b32.xlu1 %v8078_v6, %s8894_s28  ;;  %v4279_v6 = vld [vmem:[#allocation19 + $0x108] sm:$0xff] }
 0x72f   : > { %8084 = vrot.lane.b32.xlu0 %v8083_v1, %s8895_s29  ;;  %v4278_v1 = vld [vmem:[#allocation19 + $0x100] sm:$0xff] }
 0x730   : > { %6718 = vmatpush1.bf16.msra.mxu0 %v6717_v37  ;;  %6762 = vmatpush1.bf16.msra.mxu1 %v6717_v37  ;;  %v11949_v41 = vpack.c.bf16 %v4279_v6, %v4278_v1 }
 0x732   : > { %8089 = vrot.lane.b32.xlu1 %v8088_v24, %s8896_s21  ;;  %6720 = vmatprep.subr.bf16.mxu1 %v11949_v41 }
 0x733   : > { %8094 = vrot.lane.b32.xlu0 %v8093_v44, %s8896_s21  ;;  %v11957_v44 = vld [vmem:[#allocation2 + $0xb0] sm:$0xff] }
 0x734   : > { %v8173_v24 = vpack.i.bf16 %v11886_v18, %v11957_v44 }
 0x736   : > { %8099 = vrot.lane.b32.xlu1 %v8098_v56, %s8894_s28  ;;  %v11971_v56 = vld [vmem:[#allocation2 + $0xc7] sm:$0xff] }
 0x737   : > { %8104 = vrot.lane.b32.xlu0 %v8103_v40, %s8895_s29  ;;  %v8183_v40 = vpack.i.bf16 %v11876_v46, %v11964_v26  ;;  %12920 = vst [vmem:[#allocation79_spill] sm:$0xff] %v11971_v56  ;;  %v8188_v18 = vpack.i.bf16 %v11910_v8, %v11971_v56  ;;  %v8213_v8 = vpack.i.bf16 %v11931_v59, %v11990_v47 }
 0x73a   : > { %8109 = vrot.lane.b32.xlu1 %v8108_v49, %s8895_s29  ;;  %v11988_v49 = vld [vmem:[#allocation2 + $0xd0] sm:$0xff] }
 0x73b   : > { %8114 = vrot.lane.b32.xlu0 %v8113_v17, %s8896_s21  ;;  %v8203_v17 = vpack.i.bf16 %v11940_v52, %v4329_v42  ;;  %12921 = vst [vmem:[#allocation80_spill] sm:$0xff] %v11988_v49  ;;  %v8208_v14 = vpack.i.bf16 %v11947_v34, %v11988_v49 }
 0x73e   : > { %8119 = vrot.lane.b32.xlu1 %v8118_v39, %s8896_s21  ;;  %v8218_v39 = vpack.i.bf16 %v11964_v26, %v4330_v33 }
 0x73f   : > { %8124 = vrot.lane.b32.xlu0 %v8123_v11, %s8894_s28  ;;  %v11998_v11 = vld [vmem:[#allocation2 + $0xe8] sm:$0xff] }
 0x740   : > { %12923 = vst [vmem:[#allocation82_spill] sm:$0xff] %v11998_v11  ;;  %v8223_v58 = vpack.i.bf16 %v11971_v56, %v11998_v11 }
 0x742   : > { %8129 = vrot.lane.b32.xlu1 %v8128_v10, %s8894_s28  ;;  %v8233_v10 = vpack.i.bf16 %v11981_v19, %v12007_v28 }
 0x743   : > { %8134 = vrot.lane.b32.xlu0 %v8133_v55, %s8895_s29  ;;  %v8228_v55 = vpack.i.bf16 %v11957_v44, %v12005_v20 }
 0x746   : > { %8139 = vrot.lane.b32.xlu1 %v8138_v50, %s8895_s29  ;;  %v8238_v50 = vpack.i.bf16 %v4329_v42, %v12017_v57  ;;  %v12052_v42 = vld [vmem:[#allocation2 + $0x109] sm:$0xff] }
 0x747   : > { %8144 = vrot.lane.b32.xlu0 %v8143_v12, %s8896_s21  ;;  %v12019_v12 = vld [vmem:[#allocation2 + $0xe9] sm:$0xff] }
 0x748   : > { %12925 = vst [vmem:[#allocation84_spill] sm:$0xff] %v12019_v12  ;;  %v8243_v4 = vpack.i.bf16 %v11973_v38, %v12019_v12 }
 0x74a   : > { %8149 = vrot.lane.b32.xlu1 %v8148_v63, %s8896_s21  ;;  %v12028_v63 = vld [vmem:[#allocation2 + $0x108] sm:$0xff] }
 0x74b   : > { %8154 = vrot.lane.b32.xlu0 %v8153_v2, %s8894_s28  ;;  %v12026_v2 = vld [vmem:[#allocation2 + $0x107] sm:$0xff] }
 0x74c   : > { %v8248_v21 = vpack.i.bf16 %v11990_v47, %v12026_v2  ;;  %v4281_v47 = vld [vmem:[#allocation19 + $0x118] sm:$0xff] }
 0x74e   : > { %8159 = vrot.lane.b32.xlu1 %v8158_v45, %s8894_s28  ;;  %v12039_v45 = vld [vmem:[#allocation2 + $0xf1] sm:$0xff] }
 0x74f   : > { %8164 = vrot.lane.b32.xlu0 %v8163_v7, %s8895_s29  ;;  %v8253_v7 = vpack.i.bf16 %v4330_v33, %v12028_v63  ;;  %v8258_v30 = vpack.i.bf16 %v11988_v49, %v12039_v45  ;;  %v4316_v33 = vld [vmem:[#allocation2 + $0x7] sm:$0xff] }
 0x752   : > { %8169 = vrot.lane.b32.xlu1 %v8168_v15, %s8895_s29 }
 0x753   : > { %8174 = vrot.lane.b32.xlu0 %v8173_v24, %s8896_s21 }
 0x756   : > { %8179 = vrot.lane.b32.xlu1 %v8178_v43, %s8896_s21  ;;  %v8263_v43 = vpack.i.bf16 %v12005_v20, %v12041_v61 }
 0x757   : > { %8184 = vrot.lane.b32.xlu0 %v8183_v40, %s8894_s28  ;;  %v12049_v40 = vld [vmem:[#allocation2 + $0x110] sm:$0xff] }
 0x75a   : > { %8189 = vrot.lane.b32.xlu1 %v8188_v18, %s8895_s29  ;;  %v12011_v37 = vpop.permute.xlu0 %7944 }
 0x75b   : > { %8194 = vrot.lane.b32.xlu0 %v8193_v23, %s8896_s21  ;;  %v7946_v18 = vunpack.i.l.bf16 %v12011_v37 }
 0x75d   : > { %v5104_v20 = vsel %vm548_vm0, %v4316_v33, %v7946_v18  ;;  %v4280_v33 = vld [vmem:[#allocation19 + $0x110] sm:$0xff] }
 0x75e   : > { %8199 = vrot.lane.b32.xlu1 %v8198_v9, %s8894_s28 }
 0x75f   : > { %8204 = vrot.lane.b32.xlu0 %v8203_v17, %s8895_s29 }
 0x762   : > { %8209 = vrot.lane.b32.xlu1 %v8208_v14, %s8896_s21 }
 0x763   : > { %8214 = vrot.lane.b32.xlu0 %v8213_v8, %s8894_s28 }
 0x766   : > { %8219 = vrot.lane.b32.xlu1 %v8218_v39, %s8895_s29  ;;  %v12056_v39 = vld [vmem:[#allocation2 + $0x187] sm:$0xff] }
 0x767   : > { %8224 = vrot.lane.b32.xlu0 %v8223_v58, %s8896_s21 }
 0x76a   : > { %8229 = vrot.lane.b32.xlu1 %v8228_v55, %s8894_s28  ;;  %v8268_v55 = vpack.i.bf16 %v12007_v28, %v12049_v40 }
 0x76b   : > { %8234 = vrot.lane.b32.xlu0 %v8233_v10, %s8895_s29  ;;  %v12061_v10 = vld [vmem:[#allocation2 + $0x127] sm:$0xff] }
 0x76c   : > { %v12030_v1 = vpop.permute.xlu1 %7954 }
 0x76d   : > { %v12032_v6 = vpop.permute.xlu0 %7949 }
 0x76e   : > { %8239 = vrot.lane.b32.xlu1 %v8238_v50, %s8896_s21  ;;  %v12063_v50 = vld [vmem:[#allocation2 + $0x128] sm:$0xff] }
 0x76f   : > { %8244 = vrot.lane.b32.xlu0 %v8243_v4, %s8894_s28 }
 0x770   : > { %v7960_v24 = vpop.permute.xlu1 %7959 }
 0x771   : > { %v7965_v15 = vpop.permute.xlu0 %7964  ;;  %v7961_v23 = vunpack.i.l.bf16 %v7960_v24  ;;  %v7962_v9 = vunpack.i.h.bf16 %v7960_v24  ;;  %v8273_v24 = vpack.i.bf16 %v11998_v11, %v12052_v42 }
 0x772   : > { %8249 = vrot.lane.b32.xlu1 %v8248_v21, %s8895_s29  ;;  %v7967_v17 = vunpack.i.h.bf16 %v7965_v15  ;;  %v7966_v4 = vunpack.i.l.bf16 %v7965_v15 }
 0x773   : > { %8254 = vrot.lane.b32.xlu0 %v8253_v7, %s8896_s21  ;;  %v5202_v56 = vsel %vm548_vm0, %v11698_v22, %v7961_v23  ;;  %v5226_v15 = vsel %vm548_vm0, %v11766_v25, %v7962_v9 }
 0x774   : > { %v12054_v14 = vpop.permute.xlu1 %7969 }
 0x775   : > { %v7975_v8 = vpop.permute.xlu0 %7974  ;;  %v7971_v58 = vunpack.i.l.bf16 %v12054_v14 }
 0x776   : > { %v7977_v21 = vunpack.i.h.bf16 %v7975_v8  ;;  %v7976_v7 = vunpack.i.l.bf16 %v7975_v8  ;;  %8259 = vrot.lane.b32.xlu1 %v8258_v30, %s8894_s28  ;;  %v5137_v30 = vsel %vm1589_vm1, %v5104_v20, %v7967_v17  ;;  %v8283_v8 = vpack.i.bf16 %v12026_v2, %v12063_v50 }
 0x777   : > { %8264 = vrot.lane.b32.xlu0 %v8263_v43, %s8895_s29  ;;  %v5128_v28 = vsel %vm548_vm0, %v12056_v39, %v7971_v58  ;;  %v8278_v43 = vpack.i.bf16 %v12019_v12, %v12061_v10  ;;  %v5234_v20 = vsel %vm1589_vm1, %v5202_v56, %v7966_v4  ;;  %v12092_v12 = vld [vmem:[#allocation2 + $0x12f] sm:$0xff]  ;;  %v6723_v4 = vpack.c.bf16 %v4281_v47, %v4280_v33 }
 0x778   : > { %v7980_v49 = vpop.permute.xlu1 %7979  ;;  %v5258_v25 = vsel %vm1589_vm1, %v5226_v15, %v7976_v7  ;;  %v5161_v9 = vsel %vm1589_vm1, %v5128_v28, %v7977_v21  ;;  %v7972_v7 = vunpack.i.h.bf16 %v12054_v14  ;;  %v4317_v21 = vld [vmem:[#allocation2 + $0xf] sm:$0xff]  ;;  %v8293_v14 = vpack.i.bf16 %v12039_v45, %v12092_v12 }
 0x779   : > { %v7985_v34 = vpop.permute.xlu0 %7984  ;;  %v7982_v22 = vunpack.i.h.bf16 %v7980_v49  ;;  %v7981_v18 = vunpack.i.l.bf16 %v7980_v49  ;;  %v12090_v49 = vld [vmem:[#allocation2 + $0x111] sm:$0xff]  ;;  %v12098_v15 = vld [vmem:[#allocation2 + $0x129] sm:$0xff] }
 0x77a   : > { %v7987_v11 = vunpack.i.h.bf16 %v7985_v34  ;;  %v7986_v23 = vunpack.i.l.bf16 %v7985_v34  ;;  %8269 = vrot.lane.b32.xlu1 %v8268_v55, %s8896_s21  ;;  %v7947_v55 = vunpack.i.h.bf16 %v12011_v37  ;;  %v12096_v28 = vld [vmem:[#allocation2 + $0x130] sm:$0xff]  ;;  %v8288_v37 = vpack.i.bf16 %v12017_v57, %v12090_v49 }
 0x77b   : > { %8274 = vrot.lane.b32.xlu0 %v8273_v24, %s8894_s28  ;;  %v5266_v2 = vsel %vm1622_vm2, %v5234_v20, %v7981_v18  ;;  %v5170_v58 = vsel %vm1622_vm2, %v5137_v30, %v7982_v22 }
 0x77c   : > { %v5290_v17 = vsel %vm1622_vm2, %v5258_v25, %v7986_v23  ;;  %v5194_v34 = vsel %vm1622_vm2, %v5161_v9, %v7987_v11  ;;  %v7990_v56 = vpop.permute.xlu1 %7989  ;;  %5434 = vmatprep.mubr.f32.mxu0 %v5266_v2  ;;  %v5203_v23 = vsel %vm548_vm0, %v11700_v31, %v7972_v7  ;;  %v5105_v18 = vsel %vm548_vm0, %v4317_v21, %v7947_v55  ;;  %v12124_v7 = vld [vmem:[#allocation2 + $0x148] sm:$0xff] }
 0x77d   : > { %v7995_v24 = vpop.permute.xlu0 %7994  ;;  %5554 = vmatprep.mubr.f32.mxu1 %v5290_v17  ;;  %5435 = vmatmul.mubr.f32.vlgmr.msra.gmra.mrb[0].mxu0 %v5170_v58  ;;  %v7992_v33 = vunpack.i.h.bf16 %v7990_v56  ;;  %v7991_v25 = vunpack.i.l.bf16 %v7990_v56  ;;  %v12114_v17 = vld [vmem:[#allocation2 + $0x147] sm:$0xff]  ;;  %v12120_v58 = vld [vmem:[#allocation2 + $0x18f] sm:$0xff] }
 0x77e   : > { %5555 = vmatmul.mubr.f32.vlgmr.msra.gmra.mrb[0].mxu1 %v5194_v34  ;;  %v7997_v11 = vunpack.i.h.bf16 %v7995_v24  ;;  %v7996_v30 = vunpack.i.l.bf16 %v7995_v24  ;;  %8279 = vrot.lane.b32.xlu1 %v8278_v43, %s8895_s29  ;;  %v8298_v43 = vpack.i.bf16 %v12041_v61, %v12096_v28  ;;  %v8308_v21 = vpack.i.bf16 %v12052_v42, %v12114_v17 }
 0x77f   : > { %8284 = vrot.lane.b32.xlu0 %v8283_v8, %s8896_s21  ;;  %6722 = vmatpush3.bf16.msra.mxu1 %v11949_v41  ;;  %v8303_v8 = vpack.i.bf16 %v12028_v63, %v12098_v15 }
 0x780   : > { %v8000_v22 = vpop.permute.xlu1 %7999  ;;  %6724 = vmatprep.subr.bf16.mxu1 %v6723_v4  ;;  %v5235_v31 = vsel %vm1589_vm1, %v5203_v23, %v7996_v30  ;;  %v5138_v61 = vsel %vm1589_vm1, %v5105_v18, %v7997_v11  ;;  %v5227_v11 = vsel %vm548_vm0, %v11803_v54, %v7991_v25  ;;  %v5129_v30 = vsel %vm548_vm0, %v12120_v58, %v7992_v33  ;;  %v12140_v54 = vld [vmem:[#allocation2 + $0x131] sm:$0xff] }
 0x781   : > { %v8005_v47 = vpop.permute.xlu0 %8004  ;;  %v8002_v41 = vunpack.i.h.bf16 %v8000_v22  ;;  %v8001_v2 = vunpack.i.l.bf16 %v8000_v22  ;;  %v8313_v22 = vpack.i.bf16 %v12061_v10, %v12124_v7  ;;  %v12142_v25 = vld [vmem:[#allocation2 + $0x14f] sm:$0xff] }
 0x782   : > { %v8007_v20 = vunpack.i.h.bf16 %v8005_v47  ;;  %v8006_v9 = vunpack.i.l.bf16 %v8005_v47  ;;  %8289 = vrot.lane.b32.xlu1 %v8288_v37, %s8894_s28 }
 0x783   : > { %8294 = vrot.lane.b32.xlu0 %v8293_v14, %s8895_s29  ;;  %6726 = vmatpush3.bf16.msra.mxu1 %v6723_v4  ;;  %v5259_v4 = vsel %vm1589_vm1, %v5227_v11, %v8001_v2  ;;  %v5162_v47 = vsel %vm1589_vm1, %v5129_v30, %v8002_v41  ;;  %v12149_v41 = vld [vmem:[#allocation2 + $0x149] sm:$0xff] }
 0x784   : > { %v5267_v34 = vsel %vm1622_vm2, %v5235_v31, %v8006_v9  ;;  %v5171_v55 = vsel %vm1622_vm2, %v5138_v61, %v8007_v20  ;;  %v8010_v56 = vpop.permute.xlu1 %8009  ;;  %v12147_v9 = vld [vmem:[#allocation2 + $0x150] sm:$0xff]  ;;  %v8318_v31 = vpack.i.bf16 %v12049_v40, %v12140_v54  ;;  %v8323_v61 = vpack.i.bf16 %v12090_v49, %v12142_v25 }
 0x785   : > { %v8015_v24 = vpop.permute.xlu0 %8014  ;;  %5439 = vmatprep.mubr.f32.mxu0 %v5267_v34  ;;  %v8012_v37 = vunpack.i.h.bf16 %v8010_v56  ;;  %v8011_v14 = vunpack.i.l.bf16 %v8010_v56 }
 0x786   : > { %5440 = vmatmul.mubr.f32.gmra.mrb[2].mxu0 %v5171_v55  ;;  %8299 = vrot.lane.b32.xlu1 %v8298_v43, %s8896_s21  ;;  %v8016_v23 = vunpack.i.l.bf16 %v8015_v24  ;;  %v8017_v11 = vunpack.i.h.bf16 %v8015_v24 }
 0x787   : > { %8304 = vrot.lane.b32.xlu0 %v8303_v8, %s8894_s28  ;;  %v5291_v18 = vsel %vm1622_vm2, %v5259_v4, %v8011_v14  ;;  %v5195_v20 = vsel %vm1622_vm2, %v5162_v47, %v8012_v37  ;;  %v7951_v8 = vunpack.i.l.bf16 %v12032_v6  ;;  %v8328_v14 = vpack.i.bf16 %v12092_v12, %v12147_v9  ;;  %v12170_v12 = vld [vmem:[#allocation2 + $0x167] sm:$0xff] }
 0x788   : > { %v8020_v43 = vpop.permute.xlu1 %8019  ;;  %5559 = vmatprep.mubr.f32.mxu1 %v5291_v18  ;;  %v5204_v55 = vsel %vm548_vm0, %v11691_v16, %v8016_v23 }
 0x789   : > { %v12144_v33 = vpop.permute.xlu0 %8024  ;;  %5560 = vmatmul.mubr.f32.gmra.mrb[2].mxu1 %v5195_v20  ;;  %v8022_v10 = vunpack.i.h.bf16 %v8020_v43  ;;  %v8021_v2 = vunpack.i.l.bf16 %v8020_v43  ;;  %v5106_v47 = vsel %vm548_vm0, %v11729_v48, %v7951_v8  ;;  %v12176_v48 = vld [vmem:[#allocation2 + $0x168] sm:$0xff] }
 0x78a   : > { %8309 = vrot.lane.b32.xlu1 %v8308_v21, %s8895_s29  ;;  %v8026_v34 = vunpack.i.l.bf16 %v12144_v33  ;;  %v8333_v21 = vpack.i.bf16 %v12063_v50, %v12149_v41 }
 0x78b   : > { %8314 = vrot.lane.b32.xlu0 %v8313_v22, %s8896_s21  ;;  %v5236_v16 = vsel %vm1589_vm1, %v5204_v55, %v8021_v2  ;;  %v5139_v23 = vsel %vm1589_vm1, %v5106_v47, %v8022_v10  ;;  %v5228_v10 = vsel %vm548_vm0, %v11727_v0, %v8017_v11  ;;  %v8338_v2 = vpack.i.bf16 %v12098_v15, %v12170_v12 }
 0x78c   : > { %v8030_v37 = vpop.permute.xlu1 %8029  ;;  %v5130_v20 = vsel %vm548_vm0, %v11725_v3, %v8026_v34  ;;  %v8027_v55 = vunpack.i.h.bf16 %v12144_v33  ;;  %v12193_v33 = vld [vmem:[#allocation2 + $0x16f] sm:$0xff] }
 0x78d   : > { %v8035_v56 = vpop.permute.xlu0 %8034  ;;  %v8032_v22 = vunpack.i.h.bf16 %v8030_v37  ;;  %v8031_v18 = vunpack.i.l.bf16 %v8030_v37  ;;  %v12189_v37 = vld [vmem:[#allocation2 + $0x151] sm:$0xff] }
 0x78e   : > { %v8037_v30 = vunpack.i.h.bf16 %v8035_v56  ;;  %v8036_v4 = vunpack.i.l.bf16 %v8035_v56  ;;  %8319 = vrot.lane.b32.xlu1 %v8318_v31, %s8894_s28  ;;  %v8343_v56 = vpack.i.bf16 %v12114_v17, %v12176_v48  ;;  %v8348_v17 = vpack.i.bf16 %v12096_v28, %v12189_v37 }
 0x78f   : > { %8324 = vrot.lane.b32.xlu0 %v8323_v61, %s8895_s29  ;;  %v5260_v3 = vsel %vm1589_vm1, %v5228_v10, %v8031_v18  ;;  %v5163_v34 = vsel %vm1589_vm1, %v5130_v20, %v8032_v22  ;;  %v12198_v22 = vld [vmem:[#allocation2 + $0x170] sm:$0xff] }
 0x790   : > { %v5268_v50 = vsel %vm1622_vm2, %v5236_v16, %v8036_v4  ;;  %v5172_v24 = vsel %vm1622_vm2, %v5139_v23, %v8037_v30  ;;  %v8040_v8 = vpop.permute.xlu1 %8039  ;;  %v12200_v16 = vld [vmem:[#allocation2 + $0x169] sm:$0xff] }
 0x791   : > { %v8045_v43 = vpop.permute.xlu0 %8044  ;;  %5444 = vmatprep.mubr.f32.mxu0 %v5268_v50  ;;  %v8042_v31 = vunpack.i.h.bf16 %v8040_v8  ;;  %v8041_v61 = vunpack.i.l.bf16 %v8040_v8  ;;  %v8423_v20 = vld [vmem:[#allocation2 + $0x50] sm:$0xff] }
 0x792   : > { %5445 = vmatmul.mubr.f32.gmra.mrb[4].mxu0 %v5172_v24  ;;  %8329 = vrot.lane.b32.xlu1 %v8328_v14, %s8896_s21  ;;  %v8047_v30 = vunpack.i.h.bf16 %v8045_v43  ;;  %v8046_v0 = vunpack.i.l.bf16 %v8045_v43  ;;  %v7952_v14 = vunpack.i.h.bf16 %v12032_v6  ;;  %v8353_v6 = vpack.i.bf16 %v12140_v54, %v12193_v33 }
 0x793   : > { %8334 = vrot.lane.b32.xlu0 %v8333_v21, %s8894_s28  ;;  %v5292_v11 = vsel %vm1622_vm2, %v5260_v3, %v8041_v61  ;;  %v5196_v4 = vsel %vm1622_vm2, %v5163_v34, %v8042_v31  ;;  %v5205_v43 = vsel %vm548_vm0, %v8423_v20, %v8027_v55  ;;  %v8358_v34 = vpack.i.bf16 %v12142_v25, %v12198_v22 }
 0x794   : > { %v8050_v47 = vpop.permute.xlu1 %8049  ;;  %5564 = vmatprep.mubr.f32.mxu1 %v5292_v11  ;;  %v5229_v8 = vsel %vm548_vm0, %v11761_v13, %v8046_v0  ;;  %v5131_v31 = vsel %vm548_vm0, %v11759_v36, %v8047_v30 }
 0x795   : > { %v8055_v21 = vpop.permute.xlu0 %8054  ;;  %v8051_v18 = vunpack.i.l.bf16 %v8050_v47  ;;  %5565 = vmatmul.mubr.f32.gmra.mrb[4].mxu1 %v5196_v4  ;;  %v8052_v24 = vunpack.i.h.bf16 %v8050_v47 }
 0x796   : > { %v8057_v23 = vunpack.i.h.bf16 %v8055_v21  ;;  %v8056_v50 = vunpack.i.l.bf16 %v8055_v21  ;;  %8339 = vrot.lane.b32.xlu1 %v8338_v2, %s8895_s29  ;;  %v5107_v2 = vsel %vm548_vm0, %v11745_v62, %v7952_v14 }
 0x797   : > { %8344 = vrot.lane.b32.xlu0 %v8343_v56, %s8896_s21  ;;  %v5237_v3 = vsel %vm1589_vm1, %v5205_v43, %v8051_v18  ;;  %v8363_v56 = vpack.i.bf16 %v12124_v7, %v12200_v16  ;;  %v5140_v30 = vsel %vm1589_vm1, %v5107_v2, %v8052_v24  ;;  %v12235_v24 = vld [vmem:[#allocation2 + $0x171] sm:$0xff] }
 0x798   : > { %v8060_v10 = vpop.permute.xlu1 %8059  ;;  %v5261_v36 = vsel %vm1589_vm1, %v5229_v8, %v8056_v50  ;;  %v5164_v62 = vsel %vm1589_vm1, %v5131_v31, %v8057_v23  ;;  %v12231_v23 = vld [vmem:[#allocation2 + $0x188] sm:$0xff] }
 0x799   : > { %v8065_v61 = vpop.permute.xlu0 %8064  ;;  %v8062_v4 = vunpack.i.h.bf16 %v8060_v10  ;;  %v8061_v13 = vunpack.i.l.bf16 %v8060_v10  ;;  %v8373_v50 = vpack.i.bf16 %v12170_v12, %v12231_v23 }
 0x79a   : > { %v8067_v55 = vunpack.i.h.bf16 %v8065_v61  ;;  %v8066_v11 = vunpack.i.l.bf16 %v8065_v61  ;;  %8349 = vrot.lane.b32.xlu1 %v8348_v17, %s8894_s28  ;;  %v8368_v17 = vpack.i.bf16 %v12149_v41, %v12056_v39 }
 0x79b   : > { %8354 = vrot.lane.b32.xlu0 %v8353_v6, %s8895_s29  ;;  %v5269_v0 = vsel %vm1622_vm2, %v5237_v3, %v8061_v13  ;;  %v5173_v14 = vsel %vm1622_vm2, %v5140_v30, %v8062_v4  ;;  %v7956_v6 = vunpack.i.l.bf16 %v12030_v1  ;;  %v8378_v3 = vpack.i.bf16 %v12147_v9, %v12235_v24  ;;  %v8425_v4 = vld [vmem:[#allocation2 + $0x47] sm:$0xff] }
 0x79c   : > { %v5293_v25 = vsel %vm1622_vm2, %v5261_v36, %v8066_v11  ;;  %v5197_v21 = vsel %vm1622_vm2, %v5164_v62, %v8067_v55  ;;  %v8070_v18 = vpop.permute.xlu1 %8069  ;;  %5449 = vmatprep.mubr.f32.mxu0 %v5269_v0  ;;  %v8383_v55 = vpack.i.bf16 %v12189_v37, %v12120_v58  ;;  %v8426_v36 = vld [vmem:[#allocation2 + $0x1c7] sm:$0xff] }
 0x79d   : > { %v8075_v47 = vpop.permute.xlu0 %8074  ;;  %5569 = vmatprep.mubr.f32.mxu1 %v5293_v25  ;;  %5450 = vmatmul.mubr.f32.gmra.mrb[6].mxu0 %v5173_v14  ;;  %v8071_v20 = vunpack.i.l.bf16 %v8070_v18  ;;  %v8072_v8 = vunpack.i.h.bf16 %v8070_v18  ;;  %v5108_v13 = vsel %vm548_vm0, %v8425_v4, %v7956_v6  ;;  %v12255_v18 = vld [vmem:[#allocation2 + $0x189] sm:$0xff] }
 0x79e   : > { %5570 = vmatmul.mubr.f32.gmra.mrb[6].mxu1 %v5197_v21  ;;  %8359 = vrot.lane.b32.xlu1 %v8358_v34, %s8896_s21  ;;  %v8077_v43 = vunpack.i.h.bf16 %v8075_v47  ;;  %v8076_v2 = vunpack.i.l.bf16 %v8075_v47  ;;  %v12251_v21 = vld [vmem:[#allocation2 + $0x190] sm:$0xff] }
 0x79f   : > { %8364 = vrot.lane.b32.xlu0 %v8363_v56, %s8894_s28  ;;  %v5206_v11 = vsel %vm548_vm0, %v11789_v27, %v8071_v20  ;;  %v5230_v25 = vsel %vm548_vm0, %v11807_v60, %v8072_v8  ;;  %v8388_v47 = vpack.i.bf16 %v12193_v33, %v12251_v21  ;;  %v8393_v27 = vpack.i.bf16 %v12176_v48, %v12255_v18 }
 0x7a0   : > { %v8080_v61 = vpop.permute.xlu1 %8079  ;;  %v5141_v14 = vsel %vm1589_vm1, %v5108_v13, %v8077_v43  ;;  %v5238_v60 = vsel %vm1589_vm1, %v5206_v11, %v8076_v2  ;;  %v8430_v11 = vld [vmem:[#allocation2 + $0x1a8] sm:$0xff] }
 0x7a1   : > { %v8085_v31 = vpop.permute.xlu0 %8084  ;;  %v8081_v10 = vunpack.i.l.bf16 %v8080_v61 }
 0x7a2   : > { %v8087_v34 = vunpack.i.h.bf16 %v8085_v31  ;;  %v8086_v56 = vunpack.i.l.bf16 %v8085_v31  ;;  %8369 = vrot.lane.b32.xlu1 %v8368_v17, %s8895_s29 }
 0x7a3   : > { %8374 = vrot.lane.b32.xlu0 %v8373_v50, %s8896_s21  ;;  %v5132_v30 = vsel %vm548_vm0, %v8426_v36, %v8081_v10  ;;  %v7957_v36 = vunpack.i.h.bf16 %v12030_v1 }
 0x7a4   : > { %v8090_v0 = vpop.permute.xlu1 %8089  ;;  %v5262_v43 = vsel %vm1589_vm1, %v5230_v25, %v8086_v56  ;;  %v5165_v8 = vsel %vm1589_vm1, %v5132_v30, %v8087_v34  ;;  %v8429_v34 = vld [vmem:[#allocation2 + $0x1a7] sm:$0xff]  ;;  %v8403_v30 = vpack.i.bf16 %v12056_v39, %v8430_v11 }
 0x7a5   : > { %v8095_v62 = vpop.permute.xlu0 %8094  ;;  %v8092_v6 = vunpack.i.h.bf16 %v8090_v0  ;;  %v8091_v20 = vunpack.i.l.bf16 %v8090_v0 }
 0x7a6   : > { %v8097_v17 = vunpack.i.h.bf16 %v8095_v62  ;;  %v8096_v50 = vunpack.i.l.bf16 %v8095_v62  ;;  %8379 = vrot.lane.b32.xlu1 %v8378_v3, %s8894_s28  ;;  %v8082_v62 = vunpack.i.h.bf16 %v8080_v61 }
 0x7a7   : > { %8384 = vrot.lane.b32.xlu0 %v8383_v55, %s8895_s29  ;;  %v5270_v31 = vsel %vm1622_vm2, %v5238_v60, %v8091_v20  ;;  %v5174_v4 = vsel %vm1622_vm2, %v5141_v14, %v8092_v6  ;;  %v8398_v55 = vpack.i.bf16 %v12200_v16, %v8429_v34  ;;  %v8431_v14 = vld [vmem:[#allocation2 + $0x4f] sm:$0xff] }
 0x7a8   : > { %v5294_v10 = vsel %vm1622_vm2, %v5262_v43, %v8096_v50  ;;  %v5198_v13 = vsel %vm1622_vm2, %v5165_v8, %v8097_v17  ;;  %v8100_v0 = vpop.permute.xlu1 %8099  ;;  %5454 = vmatprep.mubr.f32.mxu0 %v5270_v31  ;;  %v5207_v25 = vsel %vm548_vm0, %v11834_v35, %v8082_v62  ;;  %v5109_v17 = vsel %vm548_vm0, %v8431_v14, %v7957_v36  ;;  %v12276_v50 = vld [vmem:[#allocation2 + $0x191] sm:$0xff] }
 0x7a9   : > { %v8105_v3 = vpop.permute.xlu0 %8104  ;;  %5574 = vmatprep.mubr.f32.mxu1 %v5294_v10  ;;  %5455 = vmatmul.mubr.f32.gmra.mrb[8].mxu0 %v5174_v4  ;;  %v8102_v20 = vunpack.i.h.bf16 %v8100_v0  ;;  %v8101_v60 = vunpack.i.l.bf16 %v8100_v0 }
 0x7aa   : > { %5575 = vmatmul.mubr.f32.gmra.mrb[8].mxu1 %v5198_v13  ;;  %v8107_v2 = vunpack.i.h.bf16 %v8105_v3  ;;  %v8106_v56 = vunpack.i.l.bf16 %v8105_v3  ;;  %8389 = vrot.lane.b32.xlu1 %v8388_v47, %s8896_s21  ;;  %v8408_v47 = vpack.i.bf16 %v12198_v22, %v12276_v50 }
 0x7ab   : > { %8394 = vrot.lane.b32.xlu0 %v8393_v27, %s8894_s28  ;;  %v8433_v27 = vld [vmem:[#allocation2 + $0x1af] sm:$0xff]  ;;  %v5231_v34 = vsel %vm548_vm0, %v11832_v5, %v8101_v60  ;;  %v8436_v60 = vld [vmem:[#allocation2 + $0x67] sm:$0xff] }
 0x7ac   : > { %v8110_v61 = vpop.permute.xlu1 %8109  ;;  %v8413_v6 = vpack.i.bf16 %v12235_v24, %v8433_v27  ;;  %v5239_v35 = vsel %vm1589_vm1, %v5207_v25, %v8106_v56  ;;  %v5142_v10 = vsel %vm1589_vm1, %v5109_v17, %v8107_v2 }
 0x7ad   : > { %v8115_v1 = vpop.permute.xlu0 %8114  ;;  %v8112_v8 = vunpack.i.h.bf16 %v8110_v61  ;;  %v8111_v31 = vunpack.i.l.bf16 %v8110_v61 }
 0x7ae   : > { %v8117_v43 = vunpack.i.h.bf16 %v8115_v1  ;;  %v8116_v39 = vunpack.i.l.bf16 %v8115_v1  ;;  %8399 = vrot.lane.b32.xlu1 %v8398_v55, %s8895_s29  ;;  %v8434_v55 = vld [vmem:[#allocation2 + $0x1cf] sm:$0xff] }
 0x7af   : > { %8404 = vrot.lane.b32.xlu0 %v8403_v30, %s8896_s21  ;;  %v5133_v11 = vsel %vm548_vm0, %v8434_v55, %v8102_v20  ;;  %v5263_v2 = vsel %vm1589_vm1, %v5231_v34, %v8111_v31  ;;  %v8435_v30 = vld [vmem:[#allocation2 + $0x1b0] sm:$0xff] }
 0x7b0   : > { %v5271_v4 = vsel %vm1622_vm2, %v5239_v35, %v8116_v39  ;;  %v5175_v13 = vsel %vm1622_vm2, %v5142_v10, %v8117_v43  ;;  %v8120_v62 = vpop.permute.xlu1 %8119  ;;  %v5166_v56 = vsel %vm1589_vm1, %v5133_v11, %v8112_v8  ;;  %v8418_v1 = vpack.i.bf16 %v12120_v58, %v8435_v30 }
 0x7b1   : > { %v8125_v36 = vpop.permute.xlu0 %8124  ;;  %5459 = vmatprep.mubr.f32.mxu0 %v5271_v4  ;;  %v8122_v3 = vunpack.i.h.bf16 %v8120_v62  ;;  %v8121_v0 = vunpack.i.l.bf16 %v8120_v62 }
 0x7b2   : > { %5460 = vmatmul.mubr.f32.gmra.mrb[10].mxu0 %v5175_v13  ;;  %8409 = vrot.lane.b32.xlu1 %v8408_v47, %s8894_s28  ;;  %v8127_v61 = vunpack.i.h.bf16 %v8125_v36  ;;  %v8126_v25 = vunpack.i.l.bf16 %v8125_v36  ;;  %s5917_s28 = scalar_lea.sflag [#allocation6], %s9332_s1 }
 0x7b3   : > { %8414 = vrot.lane.b32.xlu0 %v8413_v6, %s8895_s29  ;;  %v5295_v14 = vsel %vm1622_vm2, %v5263_v2, %v8121_v0  ;;  %v5199_v5 = vsel %vm1622_vm2, %v5166_v56, %v8122_v3  ;;  %v8437_v56 = vld [vmem:[#allocation2 + $0x1e7] sm:$0xff]  ;;  %s8775_s29 = scalar_lea.vmem %s12671_s11, 4096 }
 0x7b4   : > { %v8130_v27 = vpop.permute.xlu1 %8129  ;;  %5579 = vmatprep.mubr.f32.mxu1 %v5295_v14  ;;  %v5208_v6 = vsel %vm548_vm0, %v11876_v46, %v8126_v25  ;;  %v5110_v58 = vsel %vm548_vm0, %v8436_v60, %v8127_v61  ;;  %v8438_v60 = vld [vmem:[#allocation2 + $0x6f] sm:$0xff]  ;;  %p8776_p0 = scmp.ne.s32.totalorder %s12671_s11, %s8775_s29 }
 0x7b5   : > { %v8135_v17 = vpop.permute.xlu0 %8134  ;;  %5580 = vmatmul.mubr.f32.gmra.mrb[10].mxu1 %v5199_v5  ;;  %v8132_v8 = vunpack.i.h.bf16 %v8130_v27  ;;  %v8131_v31 = vunpack.i.l.bf16 %v8130_v27 }
 0x7b6   : > { %v8137_v47 = vunpack.i.h.bf16 %v8135_v17  ;;  %v8136_v20 = vunpack.i.l.bf16 %v8135_v17  ;;  %8419 = vrot.lane.b32.xlu1 %v8418_v1, %s8896_s21  ;;  %p8777_p8 = pnand %p8776_p0, %p12934_p2 }
 0x7b7   : > { %v5232_v2 = vsel %vm548_vm0, %v11874_v51, %v8131_v31  ;;  %v5134_v30 = vsel %vm548_vm0, %v8437_v56, %v8132_v8 }
 0x7b8   : > { %v8140_v39 = vpop.permute.xlu1 %8139  ;;  %v5240_v36 = vsel %vm1589_vm1, %v5208_v6, %v8136_v20  ;;  %v5143_v62 = vsel %vm1589_vm1, %v5110_v58, %v8137_v47  ;;  %p8778_p4 = pneg %p8777_p8 }
 0x7b9   : > { %v8145_v43 = vpop.permute.xlu0 %8144  ;;  %v8142_v4 = vunpack.i.h.bf16 %v8140_v39  ;;  %v8141_v13 = vunpack.i.l.bf16 %v8140_v39 }
 0x7ba   : > { %v8147_v35 = vunpack.i.h.bf16 %v8145_v43  ;;  %v8146_v10 = vunpack.i.l.bf16 %v8145_v43 }
 0x7bb   : > { %v5264_v1 = vsel %vm1589_vm1, %v5232_v2, %v8141_v13  ;;  %v5167_v61 = vsel %vm1589_vm1, %v5134_v30, %v8142_v4 }
 0x7bc   : > { %v5272_v3 = vsel %vm1622_vm2, %v5240_v36, %v8146_v10  ;;  %v5176_v0 = vsel %vm1622_vm2, %v5143_v62, %v8147_v35  ;;  %v8150_v34 = vpop.permute.xlu1 %8149 }
 0x7bd   : > { %v8155_v46 = vpop.permute.xlu0 %8154  ;;  %5464 = vmatprep.mubr.f32.mxu0 %v5272_v3  ;;  %v8152_v55 = vunpack.i.h.bf16 %v8150_v34  ;;  %v8151_v11 = vunpack.i.l.bf16 %v8150_v34 }
 0x7be   : > { %5465 = vmatmul.mubr.f32.gmra.mrb[12].mxu0 %v5176_v0  ;;  %v8157_v25 = vunpack.i.h.bf16 %v8155_v46  ;;  %v8156_v14 = vunpack.i.l.bf16 %v8155_v46 }
 0x7bf   : > { %v5296_v5 = vsel %vm1622_vm2, %v5264_v1, %v8151_v11  ;;  %v5200_v17 = vsel %vm1622_vm2, %v5167_v61, %v8152_v55  ;;  %v8439_v55 = vld [vmem:[#allocation2 + $0x1ef] sm:$0xff] }
 0x7c0   : > { %v8160_v47 = vpop.permute.xlu1 %8159  ;;  %5584 = vmatprep.mubr.f32.mxu1 %v5296_v5  ;;  %v5209_v51 = vsel %vm548_vm0, %v11898_v53, %v8156_v14  ;;  %v5111_v58 = vsel %vm548_vm0, %v8438_v60, %v8157_v25 }
 0x7c1   : > { %v8165_v27 = vpop.permute.xlu0 %8164  ;;  %5585 = vmatmul.mubr.f32.gmra.mrb[12].mxu1 %v5200_v17  ;;  %v8162_v43 = vunpack.i.h.bf16 %v8160_v47  ;;  %v8161_v39 = vunpack.i.l.bf16 %v8160_v47  ;;  %v8440_v47 = vld [vmem:[#allocation2 + $0x87] sm:$0xff] }
 0x7c2   : > { %v8167_v20 = vunpack.i.h.bf16 %v8165_v27  ;;  %v8166_v6 = vunpack.i.l.bf16 %v8165_v27 }
 0x7c3   : > { %v5233_v34 = vsel %vm548_vm0, %v11912_v29, %v8161_v39  ;;  %v5135_v11 = vsel %vm548_vm0, %v8439_v55, %v8162_v43  ;;  %v8441_v43 = vld [vmem:[#allocation2 + $0x49] sm:$0xff] }
 0x7c4   : > { %v8170_v31 = vpop.permute.xlu1 %8169  ;;  %v5241_v36 = vsel %vm1589_vm1, %v5209_v51, %v8166_v6  ;;  %v5144_v62 = vsel %vm1589_vm1, %v5111_v58, %v8167_v20 }
 0x7c5   : > { %v8175_v8 = vpop.permute.xlu0 %8174  ;;  %v8172_v4 = vunpack.i.h.bf16 %v8170_v31  ;;  %v8171_v13 = vunpack.i.l.bf16 %v8170_v31 }
 0x7c6   : > { %v8177_v35 = vunpack.i.h.bf16 %v8175_v8  ;;  %v8176_v10 = vunpack.i.l.bf16 %v8175_v8 }
 0x7c7   : > { %v5265_v61 = vsel %vm1589_vm1, %v5233_v34, %v8171_v13  ;;  %v5168_v25 = vsel %vm1589_vm1, %v5135_v11, %v8172_v4 }
 0x7c8   : > { %v5273_v3 = vsel %vm1622_vm2, %v5241_v36, %v8176_v10  ;;  %v5177_v0 = vsel %vm1622_vm2, %v5144_v62, %v8177_v35  ;;  %v8180_v53 = vpop.permute.xlu1 %8179  ;;  %v8442_v36 = vld [vmem:[#allocation2 + $0x51] sm:$0xff] }
 0x7c9   : > { %5469 = vmatprep.mubr.f32.mxu0 %v5273_v3  ;;  %v8185_v46 = vpop.permute.xlu0 %8184  ;;  %v8182_v2 = vunpack.i.h.bf16 %v8180_v53  ;;  %v8181_v56 = vunpack.i.l.bf16 %v8180_v53 }
 0x7ca   : > { %v8187_v30 = vunpack.i.h.bf16 %v8185_v46  ;;  %v8186_v1 = vunpack.i.l.bf16 %v8185_v46  ;;  %5470 = vmatmul.mubr.f32.gmra.mrb[14].mxu0 %v5177_v0  ;;  %v8443_v0 = vld [vmem:[#allocation2 + $0x69] sm:$0xff] }
 0x7cb   : > { %v5297_v14 = vsel %vm1622_vm2, %v5265_v61, %v8181_v56  ;;  %v5201_v5 = vsel %vm1622_vm2, %v5168_v25, %v8182_v2  ;;  %v8444_v46 = vld [vmem:[#allocation2 + $0x8f] sm:$0xff] }
 0x7cc   : > { %v8190_v17 = vpop.permute.xlu1 %8189  ;;  %5589 = vmatprep.mubr.f32.mxu1 %v5297_v14  ;;  %v5210_v29 = vsel %vm548_vm0, %v11931_v59, %v8186_v1  ;;  %v5112_v20 = vsel %vm548_vm0, %v8440_v47, %v8187_v30  ;;  %v8445_v61 = vld [vmem:[#allocation2 + $0x71] sm:$0xff]  ;;  %v8446_v14 = vld [vmem:[#allocation2 + $0x89] sm:$0xff] }
 0x7cd   : > { %v8195_v27 = vpop.permute.xlu0 %8194  ;;  %v8192_v6 = vunpack.i.h.bf16 %v8190_v17  ;;  %v8191_v51 = vunpack.i.l.bf16 %v8190_v17  ;;  %5590 = vmatmul.mubr.f32.gmra.mrb[14].mxu1 %v5201_v5 }
 0x7ce   : > { %v8197_v60 = vunpack.i.h.bf16 %v8195_v27  ;;  %v8196_v58 = vunpack.i.l.bf16 %v8195_v27  ;;  %6505 = vmatprep.mubr.msk.f32.mxu1 %vm548_vm0, %v8441_v43 }
 0x7cf   : > { %v5242_v39 = vsel %vm1589_vm1, %v5210_v29, %v8191_v51  ;;  %v5145_v8 = vsel %vm1589_vm1, %v5112_v20, %v8192_v6 }
 0x7d0   : > { %v8200_v31 = vpop.permute.xlu1 %8199  ;;  %v5274_v10 = vsel %vm1622_vm2, %v5242_v39, %v8196_v58  ;;  %v5178_v59 = vsel %vm1622_vm2, %v5145_v8, %v8197_v60 }
 0x7d1   : > { %v8205_v35 = vpop.permute.xlu0 %8204  ;;  %v8202_v4 = vunpack.i.h.bf16 %v8200_v31  ;;  %v8201_v13 = vunpack.i.l.bf16 %v8200_v31  ;;  %5474 = vmatprep.mubr.f32.mxu0 %v5274_v10  ;;  %6506 = vmatmul.mubr.msk.f32.vlgmr.msra.gmra.mrb[16].mxu1 %vm548_vm0, %v8442_v36  ;;  %v12928_v36 = vld [vmem:[#allocation78_spill] sm:$0xff] }
 0x7d2   : > { %v8207_v62 = vunpack.i.h.bf16 %v8205_v35  ;;  %v8206_v3 = vunpack.i.l.bf16 %v8205_v35  ;;  %5475 = vmatmul.mubr.f32.gmra.mrb[16].mxu0 %v5178_v59  ;;  %6508 = vmatprep.mubr.msk.f32.mxu1 %vm548_vm0, %v8443_v0 }
 0x7d3   : > { %v5211_v53 = vsel %vm548_vm0, %v11957_v44, %v8201_v13  ;;  %v5113_v34 = vsel %vm548_vm0, %v8444_v46, %v8202_v4  ;;  %v12927_v4 = vld [vmem:[#allocation80_spill] sm:$0xff] }
 0x7d4   : > { %v8210_v55 = vpop.permute.xlu1 %8209  ;;  %v5243_v25 = vsel %vm1589_vm1, %v5211_v53, %v8206_v3  ;;  %v5146_v5 = vsel %vm1589_vm1, %v5113_v34, %v8207_v62 }
 0x7d5   : > { %v8215_v11 = vpop.permute.xlu0 %8214  ;;  %v8212_v2 = vunpack.i.h.bf16 %v8210_v55  ;;  %v8211_v56 = vunpack.i.l.bf16 %v8210_v55  ;;  %6509 = vmatmul.mubr.msk.f32.gmra.mrb[18].mxu1 %vm548_vm0, %v8445_v61 }
 0x7d6   : > { %v8217_v30 = vunpack.i.h.bf16 %v8215_v11  ;;  %v8216_v1 = vunpack.i.l.bf16 %v8215_v11  ;;  %6511 = vmatprep.mubr.msk.f32.mxu1 %vm548_vm0, %v8446_v14  ;;  %v12929_v11 = vld [vmem:[#allocation83_spill] sm:$0xff]  ;;  %v12931_v14 = vld [vmem:[#allocation82_spill] sm:$0xff] }
 0x7d7   : > { %v5275_v44 = vsel %vm1622_vm2, %v5243_v25, %v8211_v56  ;;  %v5179_v17 = vsel %vm1622_vm2, %v5146_v5, %v8212_v2  ;;  %v12930_v2 = vld [vmem:[#allocation84_spill] sm:$0xff] }
 0x7d8   : > { %v8220_v27 = vpop.permute.xlu1 %8219  ;;  %5479 = vmatprep.mubr.f32.mxu0 %v5275_v44  ;;  %v5212_v47 = vsel %vm548_vm0, %v11973_v38, %v8216_v1  ;;  %v5114_v20 = vsel %vm548_vm0, %v11922_v32, %v8217_v30  ;;  %v12932_v44 = vld [vmem:[#allocation79_spill] sm:$0xff] }
 0x7d9   : > { %v8225_v29 = vpop.permute.xlu0 %8224  ;;  %v8222_v6 = vunpack.i.h.bf16 %v8220_v27  ;;  %v8221_v51 = vunpack.i.l.bf16 %v8220_v27  ;;  %5480 = vmatmul.mubr.f32.gmra.mrb[18].mxu0 %v5179_v17  ;;  %6512 = vmatmul.mubr.msk.f32.gmra.mrb[20].mxu1 %vm548_vm0, %v11940_v52 }
 0x7da   : > { %v8227_v60 = vunpack.i.h.bf16 %v8225_v29  ;;  %v8226_v58 = vunpack.i.l.bf16 %v8225_v29  ;;  %6514 = vmatprep.mubr.msk.f32.mxu1 %vm548_vm0, %v11964_v26  ;;  %v12926_v26 = vld [vmem:[#allocation81_spill] sm:$0xff] }
 0x7db   : > { %v5244_v43 = vsel %vm1589_vm1, %v5212_v47, %v8221_v51  ;;  %v5147_v39 = vsel %vm1589_vm1, %v5114_v20, %v8222_v6 }
 0x7dc   : > { %v8230_v8 = vpop.permute.xlu1 %8229  ;;  %v5276_v31 = vsel %vm1622_vm2, %v5244_v43, %v8226_v58  ;;  %v5180_v32 = vsel %vm1622_vm2, %v5147_v39, %v8227_v60 }
 0x7dd   : > { %v8235_v38 = vpop.permute.xlu0 %8234  ;;  %v8232_v35 = vunpack.i.h.bf16 %v8230_v8  ;;  %v8231_v10 = vunpack.i.l.bf16 %v8230_v8  ;;  %5484 = vmatprep.mubr.f32.mxu0 %v5276_v31  ;;  %6515 = vmatmul.mubr.msk.f32.gmra.mrb[22].mxu1 %vm548_vm0, %v11981_v19 }
 0x7de   : > { %v8237_v52 = vunpack.i.h.bf16 %v8235_v38  ;;  %v8236_v59 = vunpack.i.l.bf16 %v8235_v38  ;;  %5485 = vmatmul.mubr.f32.gmra.mrb[20].mxu0 %v5180_v32  ;;  %6517 = vmatprep.mubr.msk.f32.mxu1 %vm548_vm0, %v12926_v26  ;;  %v8447_v32 = vld [vmem:[#allocation2 + $0xcf] sm:$0xff] }
 0x7df   : > { %v5213_v13 = vsel %vm548_vm0, %v12927_v4, %v8231_v10  ;;  %v5115_v62 = vsel %vm548_vm0, %v12928_v36, %v8232_v35 }
 0x7e0   : > { %v8240_v3 = vpop.permute.xlu1 %8239  ;;  %v5245_v19 = vsel %vm1589_vm1, %v5213_v13, %v8236_v59  ;;  %v5148_v56 = vsel %vm1589_vm1, %v5115_v62, %v8237_v52 }
 0x7e1   : > { %v8245_v0 = vpop.permute.xlu0 %8244  ;;  %v8242_v53 = vunpack.i.h.bf16 %v8240_v3  ;;  %v8241_v46 = vunpack.i.l.bf16 %v8240_v3  ;;  %6518 = vmatmul.mubr.msk.f32.gmra.mrb[24].mxu1 %vm548_vm0, %v12929_v11 }
 0x7e2   : > { %v8247_v34 = vunpack.i.h.bf16 %v8245_v0  ;;  %v8246_v55 = vunpack.i.l.bf16 %v8245_v0  ;;  %6520 = vmatprep.mubr.msk.f32.mxu1 %vm548_vm0, %v12930_v2 }
 0x7e3   : > { %v5277_v30 = vsel %vm1622_vm2, %v5245_v19, %v8241_v46  ;;  %v5181_v1 = vsel %vm1622_vm2, %v5148_v56, %v8242_v53  ;;  %v8448_v53 = vld [vmem:[#allocation2 + $0xe7] sm:$0xff] }
 0x7e4   : > { %v8250_v61 = vpop.permute.xlu1 %8249  ;;  %5489 = vmatprep.mubr.f32.mxu0 %v5277_v30  ;;  %v5214_v5 = vsel %vm548_vm0, %v12931_v14, %v8246_v55  ;;  %v5116_v17 = vsel %vm548_vm0, %v12932_v44, %v8247_v34  ;;  %v8449_v14 = vld [vmem:[#allocation2 + $0xef] sm:$0xff] }
 0x7e5   : > { %v8255_v25 = vpop.permute.xlu0 %8254  ;;  %v8252_v27 = vunpack.i.h.bf16 %v8250_v61  ;;  %v8251_v29 = vunpack.i.l.bf16 %v8250_v61  ;;  %5490 = vmatmul.mubr.f32.gmra.mrb[22].mxu0 %v5181_v1  ;;  %6521 = vmatmul.mubr.msk.f32.gmra.mrb[26].mxu1 %vm548_vm0, %v12039_v45 }
 0x7e6   : > { %v8257_v47 = vunpack.i.h.bf16 %v8255_v25  ;;  %v8256_v20 = vunpack.i.l.bf16 %v8255_v25  ;;  %6523 = vmatprep.mubr.msk.f32.mxu1 %vm548_vm0, %v12052_v42 }
 0x7e7   : > { %v5246_v6 = vsel %vm1589_vm1, %v5214_v5, %v8251_v29  ;;  %v5149_v51 = vsel %vm1589_vm1, %v5116_v17, %v8252_v27 }
 0x7e8   : > { %v8260_v60 = vpop.permute.xlu1 %8259  ;;  %v5278_v43 = vsel %vm1622_vm2, %v5246_v6, %v8256_v20  ;;  %v5182_v39 = vsel %vm1622_vm2, %v5149_v51, %v8257_v47  ;;  %v8450_v6 = vld [vmem:[#allocation2 + $0x1a9] sm:$0xff] }
 0x7e9   : > { %v8265_v58 = vpop.permute.xlu0 %8264  ;;  %v8262_v8 = vunpack.i.h.bf16 %v8260_v60  ;;  %v8261_v38 = vunpack.i.l.bf16 %v8260_v60  ;;  %5494 = vmatprep.mubr.f32.mxu0 %v5278_v43  ;;  %6524 = vmatmul.mubr.msk.f32.gmra.mrb[28].mxu1 %vm548_vm0, %v12090_v49  ;;  %v8451_v43 = vld [vmem:[#allocation2 + $0x128] sm:$0xff] }
 0x7ea   : > { %v8267_v45 = vunpack.i.h.bf16 %v8265_v58  ;;  %v8266_v31 = vunpack.i.l.bf16 %v8265_v58  ;;  %5495 = vmatmul.mubr.f32.gmra.mrb[24].mxu0 %v5182_v39  ;;  %6526 = vmatprep.mubr.msk.f32.mxu1 %vm548_vm0, %v12098_v15 }
 0x7eb   : > { %v5215_v42 = vsel %vm548_vm0, %v12017_v57, %v8261_v38  ;;  %v5117_v35 = vsel %vm548_vm0, %v8447_v32, %v8262_v8  ;;  %v8452_v8 = vld [vmem:[#allocation2 + $0x107] sm:$0xff]  ;;  %v8453_v32 = vld [vmem:[#allocation2 + $0x1b1] sm:$0xff] }
 0x7ec   : > { %v8270_v10 = vpop.permute.xlu1 %8269  ;;  %v5247_v49 = vsel %vm1589_vm1, %v5215_v42, %v8266_v31  ;;  %v5150_v15 = vsel %vm1589_vm1, %v5117_v35, %v8267_v45  ;;  %v8454_v35 = vld [vmem:[#allocation2 + $0x1c9] sm:$0xff] }
 0x7ed   : > { %v8275_v52 = vpop.permute.xlu0 %8274  ;;  %v8272_v59 = vunpack.i.h.bf16 %v8270_v10  ;;  %v8271_v26 = vunpack.i.l.bf16 %v8270_v10  ;;  %6527 = vmatmul.mubr.msk.f32.gmra.mrb[30].mxu1 %vm548_vm0, %v12140_v54 }
 0x7ee   : > { %v8277_v4 = vunpack.i.h.bf16 %v8275_v52  ;;  %v8276_v13 = vunpack.i.l.bf16 %v8275_v52  ;;  %6529 = vmatprep.mubr.msk.f32.mxu1 %vm548_vm0, %v12149_v41 }
 0x7ef   : > { %v5279_v57 = vsel %vm1622_vm2, %v5247_v49, %v8271_v26  ;;  %v5183_v36 = vsel %vm1622_vm2, %v5150_v15, %v8272_v59 }
 0x7f0   : > { %v8280_v62 = vpop.permute.xlu1 %8279  ;;  %5499 = vmatprep.mubr.f32.mxu0 %v5279_v57  ;;  %v5216_v0 = vsel %vm548_vm0, %v12028_v63, %v8276_v13  ;;  %v5118_v54 = vsel %vm548_vm0, %v8448_v53, %v8277_v4  ;;  %v8455_v57 = vld [vmem:[#allocation2 + $0x1d1] sm:$0xff] }
 0x7f1   : > { %v8285_v3 = vpop.permute.xlu0 %8284  ;;  %v8282_v46 = vunpack.i.h.bf16 %v8280_v62  ;;  %v8281_v34 = vunpack.i.l.bf16 %v8280_v62  ;;  %5500 = vmatmul.mubr.f32.gmra.mrb[26].mxu0 %v5183_v36  ;;  %6530 = vmatmul.mubr.msk.f32.gmra.mrb[32].mxu1 %vm548_vm0, %v12189_v37  ;;  %v8457_v53 = vld [vmem:[#allocation2 + $0x10f] sm:$0xff] }
 0x7f2   : > { %v8287_v55 = vunpack.i.h.bf16 %v8285_v3  ;;  %v8286_v11 = vunpack.i.l.bf16 %v8285_v3  ;;  %6532 = vmatprep.mubr.msk.f32.mxu1 %vm548_vm0, %v12200_v16  ;;  %v8456_v3 = vld [vmem:[#allocation2 + $0x1e9] sm:$0xff] }
 0x7f3   : > { %v5248_v41 = vsel %vm1589_vm1, %v5216_v0, %v8281_v34  ;;  %v5151_v19 = vsel %vm1589_vm1, %v5118_v54, %v8282_v46 }
 0x7f4   : > { %v8290_v2 = vpop.permute.xlu1 %8289  ;;  %v5280_v56 = vsel %vm1622_vm2, %v5248_v41, %v8286_v11  ;;  %v5184_v30 = vsel %vm1622_vm2, %v5151_v19, %v8287_v55 }
 0x7f5   : > { %v8295_v63 = vpop.permute.xlu0 %8294  ;;  %v8292_v1 = vunpack.i.h.bf16 %v8290_v2  ;;  %v8291_v61 = vunpack.i.l.bf16 %v8290_v2  ;;  %5504 = vmatprep.mubr.f32.mxu0 %v5280_v56  ;;  %6533 = vmatmul.mubr.msk.f32.gmra.mrb[34].mxu1 %vm548_vm0, %v12235_v24  ;;  %v8458_v2 = vld [vmem:[#allocation2 + $0x1f1] sm:$0xff]  ;;  %v8459_v56 = vld [vmem:[#allocation2 + $0x209] sm:$0xff] }
 0x7f6   : > { %v8297_v37 = vunpack.i.h.bf16 %v8295_v63  ;;  %v8296_v25 = vunpack.i.l.bf16 %v8295_v63  ;;  %5505 = vmatmul.mubr.f32.gmra.mrb[28].mxu0 %v5184_v30  ;;  %6535 = vmatprep.mubr.msk.f32.mxu1 %vm548_vm0, %v12255_v18 }
 0x7f7   : > { %v5217_v16 = vsel %vm548_vm0, %v12049_v40, %v8291_v61  ;;  %v5119_v5 = vsel %vm548_vm0, %v8449_v14, %v8292_v1  ;;  %v4422_v61 = vld [vmem:[#allocation2 + $0x229] sm:$0xff] }
 0x7f8   : > { %v8300_v44 = vpop.permute.xlu1 %8299  ;;  %v5249_v24 = vsel %vm1589_vm1, %v5217_v16, %v8296_v25  ;;  %v5152_v18 = vsel %vm1589_vm1, %v5119_v5, %v8297_v37  ;;  %v8460_v14 = vld [vmem:[#allocation2 + $0x127] sm:$0xff] }
 0x7f9   : > { %v8305_v17 = vpop.permute.xlu0 %8304  ;;  %v8302_v27 = vunpack.i.h.bf16 %v8300_v44  ;;  %v8301_v29 = vunpack.i.l.bf16 %v8300_v44  ;;  %6536 = vmatmul.mubr.msk.f32.gmra.mrb[36].mxu1 %vm548_vm0, %v12276_v50 }
 0x7fa   : > { %v8307_v47 = vunpack.i.h.bf16 %v8305_v17  ;;  %v8306_v20 = vunpack.i.l.bf16 %v8305_v17  ;;  %6538 = vmatprep.mubr.msk.f32.mxu1 %vm548_vm0, %v8450_v6 }
 0x7fb   : > { %v5281_v40 = vsel %vm1622_vm2, %v5249_v24, %v8301_v29  ;;  %v5185_v51 = vsel %vm1622_vm2, %v5152_v18, %v8302_v27 }
 0x7fc   : > { %v8310_v60 = vpop.permute.xlu1 %8309  ;;  %5509 = vmatprep.mubr.f32.mxu0 %v5281_v40  ;;  %v5218_v39 = vsel %vm548_vm0, %v8451_v43, %v8306_v20  ;;  %v5120_v50 = vsel %vm548_vm0, %v8452_v8, %v8307_v47  ;;  %v8461_v47 = vld [vmem:[#allocation2 + $0x211] sm:$0xff] }
 0x7fd   : > { %v8315_v58 = vpop.permute.xlu0 %8314  ;;  %v8312_v38 = vunpack.i.h.bf16 %v8310_v60  ;;  %v8311_v45 = vunpack.i.l.bf16 %v8310_v60  ;;  %5510 = vmatmul.mubr.f32.gmra.mrb[30].mxu0 %v5185_v51  ;;  %6539 = vmatmul.mubr.msk.f32.gmra.mrb[38].mxu1 %vm548_vm0, %v8453_v32  ;;  %v4423_v20 = vld [vmem:[#allocation2 + $0x231] sm:$0xff] }
 0x7fe   : > { %v8317_v31 = vunpack.i.h.bf16 %v8315_v58  ;;  %v8316_v42 = vunpack.i.l.bf16 %v8315_v58  ;;  %6541 = vmatprep.mubr.msk.f32.mxu1 %vm548_vm0, %v8454_v35 }
 0x7ff   : > { %v5250_v10 = vsel %vm1589_vm1, %v5218_v39, %v8311_v45  ;;  %v5153_v52 = vsel %vm1589_vm1, %v5120_v50, %v8312_v38  ;;  %v8462_v50 = vld [vmem:[#allocation2 + $0x12f] sm:$0xff] }
 0x800   : > { %v8320_v59 = vpop.permute.xlu1 %8319  ;;  %v5282_v4 = vsel %vm1622_vm2, %v5250_v10, %v8316_v42  ;;  %v5186_v13 = vsel %vm1622_vm2, %v5153_v52, %v8317_v31 }
 0x801   : > { %v8325_v26 = vpop.permute.xlu0 %8324  ;;  %v8322_v49 = vunpack.i.h.bf16 %v8320_v59  ;;  %v8321_v15 = vunpack.i.l.bf16 %v8320_v59  ;;  %5514 = vmatprep.mubr.f32.mxu0 %v5282_v4  ;;  %6542 = vmatmul.mubr.msk.f32.gmra.mrb[40].mxu1 %vm548_vm0, %v8455_v57 }
 0x802   : > { %v8327_v36 = vunpack.i.h.bf16 %v8325_v26  ;;  %v8326_v62 = vunpack.i.l.bf16 %v8325_v26  ;;  %5515 = vmatmul.mubr.f32.gmra.mrb[32].mxu0 %v5186_v13  ;;  %6544 = vmatprep.mubr.msk.f32.mxu1 %vm548_vm0, %v8456_v3 }
 0x803   : > { %v5219_v0 = vsel %vm548_vm0, %v12096_v28, %v8321_v15  ;;  %v5121_v54 = vsel %vm548_vm0, %v8457_v53, %v8322_v49  ;;  %v8463_v15 = vld [vmem:[#allocation2 + $0x147] sm:$0xff] }
 0x804   : > { %v8330_v46 = vpop.permute.xlu1 %8329  ;;  %v5251_v63 = vsel %vm1589_vm1, %v5219_v0, %v8326_v62  ;;  %v5154_v30 = vsel %vm1589_vm1, %v5121_v54, %v8327_v36 }
 0x805   : > { %v8335_v34 = vpop.permute.xlu0 %8334  ;;  %v8332_v55 = vunpack.i.h.bf16 %v8330_v46  ;;  %v8331_v11 = vunpack.i.l.bf16 %v8330_v46  ;;  %6545 = vmatmul.mubr.msk.f32.gmra.mrb[42].mxu1 %vm548_vm0, %v8458_v2 }
 0x806   : > { %v8337_v41 = vunpack.i.h.bf16 %v8335_v34  ;;  %v8336_v19 = vunpack.i.l.bf16 %v8335_v34  ;;  %6547 = vmatprep.mubr.msk.f32.mxu1 %vm548_vm0, %v8459_v56  ;;  %v8464_v56 = vld [vmem:[#allocation2 + $0x14f] sm:$0xff] }
 0x807   : > { %v5283_v28 = vsel %vm1622_vm2, %v5251_v63, %v8331_v11  ;;  %v5187_v1 = vsel %vm1622_vm2, %v5154_v30, %v8332_v55 }
 0x808   : > { %v8340_v37 = vpop.permute.xlu1 %8339  ;;  %5519 = vmatprep.mubr.f32.mxu0 %v5283_v28  ;;  %v5220_v16 = vsel %vm548_vm0, %v12124_v7, %v8336_v19  ;;  %v5122_v5 = vsel %vm548_vm0, %v8460_v14, %v8337_v41 }
 0x809   : > { %v8345_v25 = vpop.permute.xlu0 %8344  ;;  %v8342_v44 = vunpack.i.h.bf16 %v8340_v37  ;;  %v8341_v17 = vunpack.i.l.bf16 %v8340_v37  ;;  %5520 = vmatmul.mubr.f32.gmra.mrb[34].mxu0 %v5187_v1  ;;  %6548 = vmatmul.mubr.msk.f32.gmra.mrb[44].mxu1 %vm548_vm0, %v8461_v47 }
 0x80a   : > { %v8347_v27 = vunpack.i.h.bf16 %v8345_v25  ;;  %v8346_v29 = vunpack.i.l.bf16 %v8345_v25  ;;  %6550 = vmatprep.mubr.msk.f32.mxu1 %vm548_vm0, %v4422_v61 }
 0x80b   : > { %v5252_v24 = vsel %vm1589_vm1, %v5220_v16, %v8341_v17  ;;  %v5155_v6 = vsel %vm1589_vm1, %v5122_v5, %v8342_v44 }
 0x80c   : > { %v8350_v18 = vpop.permute.xlu1 %8349  ;;  %v5284_v40 = vsel %vm1622_vm2, %v5252_v24, %v8346_v29  ;;  %v5188_v51 = vsel %vm1622_vm2, %v5155_v6, %v8347_v27 }
 0x80d   : > { %v8355_v7 = vpop.permute.xlu0 %8354  ;;  %v8352_v60 = vunpack.i.h.bf16 %v8350_v18  ;;  %v8351_v58 = vunpack.i.l.bf16 %v8350_v18  ;;  %5524 = vmatprep.mubr.f32.mxu0 %v5284_v40  ;;  %6551 = vmatmul.mubr.msk.f32.gmra.mrb[46].mxu1 %vm548_vm0, %v4423_v20 }
 0x80e   : > { %v8357_v43 = vunpack.i.h.bf16 %v8355_v7  ;;  %v8356_v39 = vunpack.i.l.bf16 %v8355_v7  ;;  %5525 = vmatmul.mubr.f32.gmra.mrb[36].mxu0 %v5188_v51 }
 0x80f   : > { %v5221_v8 = vsel %vm548_vm0, %v12147_v9, %v8351_v58  ;;  %v5123_v38 = vsel %vm548_vm0, %v8462_v50, %v8352_v60 }
 0x810   : > { %v8360_v45 = vpop.permute.xlu1 %8359  ;;  %v5253_v52 = vsel %vm1589_vm1, %v5221_v8, %v8356_v39  ;;  %v5156_v59 = vsel %vm1589_vm1, %v5123_v38, %v8357_v43 }
 0x811   : > { %v8365_v31 = vpop.permute.xlu0 %8364  ;;  %v8362_v42 = vunpack.i.h.bf16 %v8360_v45  ;;  %v8361_v32 = vunpack.i.l.bf16 %v8360_v45 }
 0x812   : > { %v8367_v35 = vunpack.i.h.bf16 %v8365_v31  ;;  %v8366_v10 = vunpack.i.l.bf16 %v8365_v31 }
 0x813   : > { %v5285_v26 = vsel %vm1622_vm2, %v5253_v52, %v8361_v32  ;;  %v5189_v4 = vsel %vm1622_vm2, %v5156_v59, %v8362_v42 }
 0x814   : > { %v8370_v13 = vpop.permute.xlu1 %8369  ;;  %5529 = vmatprep.mubr.f32.mxu0 %v5285_v26  ;;  %v5222_v49 = vsel %vm548_vm0, %v12176_v48, %v8366_v10  ;;  %v5124_v57 = vsel %vm548_vm0, %v8463_v15, %v8367_v35 }
 0x815   : > { %v8375_v9 = vpop.permute.xlu0 %8374  ;;  %v8372_v36 = vunpack.i.h.bf16 %v8370_v13  ;;  %v8371_v62 = vunpack.i.l.bf16 %v8370_v13  ;;  %5530 = vmatmul.mubr.f32.gmra.mrb[38].mxu0 %v5189_v4 }
 0x816   : > { %v8377_v3 = vunpack.i.h.bf16 %v8375_v9  ;;  %v8376_v0 = vunpack.i.l.bf16 %v8375_v9 }
 0x817   : > { %v5254_v53 = vsel %vm1589_vm1, %v5222_v49, %v8371_v62  ;;  %v5157_v54 = vsel %vm1589_vm1, %v5124_v57, %v8372_v36 }
 0x818   : > { %v8380_v46 = vpop.permute.xlu1 %8379  ;;  %v5286_v55 = vsel %vm1622_vm2, %v5254_v53, %v8376_v0  ;;  %v5190_v11 = vsel %vm1622_vm2, %v5157_v54, %v8377_v3 }
 0x819   : > { %v8385_v34 = vpop.permute.xlu0 %8384  ;;  %v8382_v41 = vunpack.i.h.bf16 %v8380_v46  ;;  %v8381_v48 = vunpack.i.l.bf16 %v8380_v46  ;;  %5534 = vmatprep.mubr.f32.mxu0 %v5286_v55 }
 0x81a   : > { %v8387_v19 = vunpack.i.h.bf16 %v8385_v34  ;;  %v8386_v2 = vunpack.i.l.bf16 %v8385_v34  ;;  %5535 = vmatmul.mubr.f32.gmra.mrb[40].mxu0 %v5190_v11 }
 0x81b   : > { %v5223_v63 = vsel %vm548_vm0, %v12198_v22, %v8381_v48  ;;  %v5125_v30 = vsel %vm548_vm0, %v8464_v56, %v8382_v41 }
 0x81c   : > { %v8390_v28 = vpop.permute.xlu1 %8389  ;;  %v5255_v14 = vsel %vm1589_vm1, %v5223_v63, %v8386_v2  ;;  %v5158_v5 = vsel %vm1589_vm1, %v5125_v30, %v8387_v19 }
 0x81d   : > { %v8395_v1 = vpop.permute.xlu0 %8394  ;;  %v8392_v61 = vunpack.i.h.bf16 %v8390_v28  ;;  %v8391_v37 = vunpack.i.l.bf16 %v8390_v28 }
 0x81e   : > { %v8397_v25 = vunpack.i.h.bf16 %v8395_v1  ;;  %v8396_v16 = vunpack.i.l.bf16 %v8395_v1 }
 0x81f   : > { %v5287_v44 = vsel %vm1622_vm2, %v5255_v14, %v8391_v37  ;;  %v5191_v17 = vsel %vm1622_vm2, %v5158_v5, %v8392_v61 }
 0x820   : > { %v8400_v27 = vpop.permute.xlu1 %8399  ;;  %5539 = vmatprep.mubr.f32.mxu0 %v5287_v44  ;;  %v5224_v29 = vsel %vm548_vm0, %v12231_v23, %v8396_v16  ;;  %v5126_v47 = vsel %vm548_vm0, %v12170_v12, %v8397_v25  ;;  %v12507_v25 = vld [vmem:[#allocation21] ss:$0 sm:$0xff] }
 0x821   : > { %v8405_v22 = vpop.permute.xlu0 %8404  ;;  %v8402_v20 = vunpack.i.h.bf16 %v8400_v27  ;;  %v8401_v24 = vunpack.i.l.bf16 %v8400_v27  ;;  %5540 = vmatmul.mubr.f32.gmra.mrb[42].mxu0 %v5191_v17  ;;  %v5821_v17 = vld [vmem:[%s9338_s25 + $0x8] sm:$0xff] }
 0x822   : > { %v8407_v6 = vunpack.i.h.bf16 %v8405_v22  ;;  %v8406_v18 = vunpack.i.l.bf16 %v8405_v22 }
 0x823   : > { %v5256_v7 = vsel %vm1589_vm1, %v5224_v29, %v8401_v24  ;;  %v5159_v40 = vsel %vm1589_vm1, %v5126_v47, %v8402_v20  ;;  %v5820_v47 = vld [vmem:[%s9338_s25] sm:$0xff] }
 0x824   : > { %v8410_v51 = vpop.permute.xlu1 %8409  ;;  %v5288_v58 = vsel %vm1622_vm2, %v5256_v7, %v8406_v18  ;;  %v5192_v43 = vsel %vm1622_vm2, %v5159_v40, %v8407_v6 }
 0x825   : > { %v8415_v60 = vpop.permute.xlu0 %8414  ;;  %v8412_v39 = vunpack.i.h.bf16 %v8410_v51  ;;  %v8411_v23 = vunpack.i.l.bf16 %v8410_v51  ;;  %5544 = vmatprep.mubr.f32.mxu0 %v5288_v58 }
 0x826   : > { %v8417_v8 = vunpack.i.h.bf16 %v8415_v60  ;;  %v8416_v12 = vunpack.i.l.bf16 %v8415_v60  ;;  %5545 = vmatmul.mubr.f32.gmra.mrb[44].mxu0 %v5192_v43  ;;  %v5823_v60 = vld [vmem:[%s9338_s25 + $0x18] sm:$0xff] }
 0x827   : > { %v5127_v50 = vsel %vm548_vm0, %v12193_v33, %v8412_v39  ;;  %v5225_v38 = vsel %vm548_vm0, %v12251_v21, %v8411_v23  ;;  %v5822_v39 = vld [vmem:[%s9338_s25 + $0x10] sm:$0xff] }
 0x828   : > { %v8420_v45 = vpop.permute.xlu1 %8419  ;;  %v5160_v32 = vsel %vm1589_vm1, %v5127_v50, %v8417_v8  ;;  %v5257_v35 = vsel %vm1589_vm1, %v5225_v38, %v8416_v12 }
 0x829   : > { %v8422_v31 = vunpack.i.h.bf16 %v8420_v45  ;;  %v8421_v42 = vunpack.i.l.bf16 %v8420_v45 }
 0x82b   : > { %v5289_v10 = vsel %vm1622_vm2, %v5257_v35, %v8421_v42  ;;  %v5193_v52 = vsel %vm1622_vm2, %v5160_v32, %v8422_v31  ;;  %v5825_v42 = vld [vmem:[%s9338_s25 + $0x28] sm:$0xff] }
 0x82c   : > { %5549 = vmatprep.mubr.f32.mxu0 %v5289_v10 }
 0x82d   : > { %5550 = vmatmul.mubr.f32.gmra.mrb[46].mxu0 %v5193_v52  ;;  %v5824_v52 = vld [vmem:[%s9338_s25 + $0x20] sm:$0xff] }
 0x850   : > { %v5436_v59 = vpop.f32.mrb[0].mxu0 }
 0x851   : > { %v12491_v26 = vpop.f32.mrb[0].mxu1  ;;  %v5438_v33 = vpop.f32.mrb[1].mxu0  ;;  %v5437_v5 = vadd.f32 %v12507_v25, %v5436_v59 }
 0x852   : > { %v5558_v4 = vpop.f32.mrb[1].mxu1 }
 0x859   : > { %v5441_v13 = vpop.f32.mrb[2].mxu0 }
 0x85a   : > { %v5443_v21 = vpop.f32.mrb[3].mxu0  ;;  %v5442_v14 = vadd.f32 %v12507_v25, %v5441_v13 }
 0x85c   : > { %v12493_v9 = vpop.f32.mrb[2].mxu1 }
 0x85d   : > { %v5563_v49 = vpop.f32.mrb[3].mxu1 }
 0x865   : > { %v5446_v15 = vpop.f32.mrb[4].mxu0 }
 0x866   : > { %v5448_v57 = vpop.f32.mrb[5].mxu0  ;;  %v5447_v7 = vadd.f32 %v12507_v25, %v5446_v15  ;;  %v5827_v15 = vld [vmem:[%s9338_s25 + $0x38] sm:$0xff] }
 0x868   : > { %v12495_v36 = vpop.f32.mrb[4].mxu1 }
 0x869   : > { %v5568_v62 = vpop.f32.mrb[5].mxu1 }
 0x870   : > { %v5451_v3 = vpop.f32.mrb[6].mxu0 }
 0x871   : > { %v12497_v0 = vpop.f32.mrb[6].mxu1  ;;  %v5453_v53 = vpop.f32.mrb[7].mxu0  ;;  %v5452_v6 = vadd.f32 %v12507_v25, %v5451_v3 }
 0x872   : > { %v5573_v54 = vpop.f32.mrb[7].mxu1  ;;  %v5826_v53 = vld [vmem:[%s9338_s25 + $0x30] sm:$0xff] }
 0x87c   : > { %v5456_v46 = vpop.f32.mrb[8].mxu0 }
 0x87d   : > { %v12499_v34 = vpop.f32.mrb[8].mxu1  ;;  %v5458_v55 = vpop.f32.mrb[9].mxu0  ;;  %v5457_v50 = vadd.f32 %v12507_v25, %v5456_v46 }
 0x87e   : > { %v5578_v11 = vpop.f32.mrb[9].mxu1 }
 0x885   : > { %v5461_v41 = vpop.f32.mrb[10].mxu0 }
 0x886   : > { %v5463_v48 = vpop.f32.mrb[11].mxu0  ;;  %v5462_v8 = vadd.f32 %v12507_v25, %v5461_v41 }
 0x888   : > { %v12501_v19 = vpop.f32.mrb[10].mxu1 }
 0x889   : > { %v5583_v2 = vpop.f32.mrb[11].mxu1 }
 0x891   : > { %v5466_v63 = vpop.f32.mrb[12].mxu0 }
 0x892   : > { %v5468_v56 = vpop.f32.mrb[13].mxu0  ;;  %v5467_v13 = vadd.f32 %v12507_v25, %v5466_v63  ;;  %v5829_v63 = vld [vmem:[%s9338_s25 + $0x48] sm:$0xff] }
 0x894   : > { %v12503_v30 = vpop.f32.mrb[12].mxu1 }
 0x895   : > { %v5588_v28 = vpop.f32.mrb[13].mxu1 }
 0x89d   : > { %v5471_v1 = vpop.f32.mrb[14].mxu0 }
 0x89e   : > { %v5473_v61 = vpop.f32.mrb[15].mxu0  ;;  %v5472_v33 = vadd.f32 %v12507_v25, %v5471_v1  ;;  %v5828_v1 = vld [vmem:[%s9338_s25 + $0x40] sm:$0xff] }
 0x8a0   : > { %v12505_v37 = vpop.f32.mrb[14].mxu1 }
 0x8a1   : > { %v5593_v16 = vpop.f32.mrb[15].mxu1 }
 0x8a4   : > { %v6507_v44 = vpop.f32.mrb[16].mxu1 }
 0x8a5   : > { %v5667_v27 = vadd.f32 %v6507_v44, %v5442_v14  ;;  %v5476_v22 = vpop.f32.mrb[16].mxu0  ;;  %v5661_v29 = vpop.f32.mrb[17].mxu1 }
 0x8a6   : > { %v5662_v20 = vadd.f32 %v5661_v29, %v5437_v5  ;;  %v5478_v24 = vpop.f32.mrb[17].mxu0  ;;  %v5477_v41 = vadd.f32 %v12507_v25, %v5476_v22 }
 0x8a7   : > { %v5853_v18 = vadd.f32 %v5821_v17, %v5667_v27 }
 0x8a8   : > { %v5852_v40 = vadd.f32 %v5820_v47, %v5662_v20  ;;  %v6510_v51 = vpop.f32.mrb[18].mxu1  ;;  %v5830_v47 = vld [vmem:[%s9338_s25 + $0x50] sm:$0xff]  ;;  %v5831_v20 = vld [vmem:[%s9338_s25 + $0x58] sm:$0xff] }
 0x8a9   : > { %5885 = vst.msk [vmem:[%s9474_s12 + $0x8] sm:$0xff] %vm548_vm0, %v5853_v18  ;;  %v5677_v58 = vadd.f32 %v6510_v51, %v5452_v6  ;;  %v5671_v43 = vpop.f32.mrb[19].mxu1 }
 0x8aa   : > { %5884 = vst.msk [vmem:[%s9474_s12] sm:$0xff] %vm548_vm0, %v5852_v40  ;;  %v5672_v23 = vadd.f32 %v5671_v43, %v5447_v7 }
 0x8ab   : > { %v5855_v12 = vadd.f32 %v5823_v60, %v5677_v58 }
 0x8ac   : > { %v5854_v38 = vadd.f32 %v5822_v39, %v5672_v23  ;;  %v5481_v45 = vpop.f32.mrb[18].mxu0  ;;  %v6513_v31 = vpop.f32.mrb[20].mxu1  ;;  %v5832_v39 = vld [vmem:[%s9338_s25 + $0x60] sm:$0xff] }
 0x8ad   : > { %5887 = vst.msk [vmem:[%s9474_s12 + $0x18] sm:$0xff] %vm548_vm0, %v5855_v12  ;;  %v5687_v32 = vadd.f32 %v6513_v31, %v5462_v8  ;;  %v5483_v35 = vpop.f32.mrb[19].mxu0  ;;  %v5681_v10 = vpop.f32.mrb[21].mxu1  ;;  %v5482_v55 = vadd.f32 %v12507_v25, %v5481_v45 }
 0x8ae   : > { %5886 = vst.msk [vmem:[%s9474_s12 + $0x10] sm:$0xff] %vm548_vm0, %v5854_v38  ;;  %v5682_v59 = vadd.f32 %v5681_v10, %v5457_v50  ;;  %v5833_v35 = vld [vmem:[%s9338_s25 + $0x68] sm:$0xff] }
 0x8af   : > { %v5857_v4 = vadd.f32 %v5825_v42, %v5687_v32 }
 0x8b0   : > { %v5856_v21 = vadd.f32 %v5824_v52, %v5682_v59  ;;  %v6516_v49 = vpop.f32.mrb[22].mxu1 }
 0x8b1   : > { %5889 = vst.msk [vmem:[%s9474_s12 + $0x28] sm:$0xff] %vm548_vm0, %v5857_v4  ;;  %v5697_v57 = vadd.f32 %v6516_v49, %v5472_v33  ;;  %v5486_v62 = vpop.f32.mrb[20].mxu0  ;;  %v5691_v3 = vpop.f32.mrb[23].mxu1  ;;  %v5834_v49 = vld [vmem:[%s9338_s25 + $0x70] sm:$0xff] }
 0x8b2   : > { %5888 = vst.msk [vmem:[%s9474_s12 + $0x20] sm:$0xff] %vm548_vm0, %v5856_v21  ;;  %v5692_v54 = vadd.f32 %v5691_v3, %v5467_v13  ;;  %v5488_v46 = vpop.f32.mrb[21].mxu0  ;;  %v5487_v14 = vadd.f32 %v12507_v25, %v5486_v62 }
 0x8b3   : > { %v5859_v11 = vadd.f32 %v5827_v15, %v5697_v57 }
 0x8b4   : > { %v5858_v48 = vadd.f32 %v5826_v53, %v5692_v54  ;;  %v6519_v2 = vpop.f32.mrb[24].mxu1 }
 0x8b5   : > { %5891 = vst.msk [vmem:[%s9474_s12 + $0x38] sm:$0xff] %vm548_vm0, %v5859_v11  ;;  %v5707_v56 = vadd.f32 %v6519_v2, %v5482_v55  ;;  %v5701_v28 = vpop.f32.mrb[25].mxu1 }
 0x8b6   : > { %5890 = vst.msk [vmem:[%s9474_s12 + $0x30] sm:$0xff] %vm548_vm0, %v5858_v48  ;;  %v5702_v61 = vadd.f32 %v5701_v28, %v5477_v41  ;;  %v5835_v41 = vld [vmem:[%s9338_s25 + $0x78] sm:$0xff]  ;;  %v5562_v48 = vadd.f32 %v12507_v25, %v12493_v9  ;;  %v5845_v28 = vld [vmem:[%s9338_s25 + $0xc8] sm:$0xff] }
 0x8b7   : > { %v5861_v16 = vadd.f32 %v5829_v63, %v5707_v56  ;;  %v5557_v63 = vadd.f32 %v12507_v25, %v12491_v26 }
 0x8b8   : > { %v5860_v5 = vadd.f32 %v5828_v1, %v5702_v61  ;;  %v5491_v44 = vpop.f32.mrb[22].mxu0  ;;  %v6522_v17 = vpop.f32.mrb[26].mxu1 }
 0x8b9   : > { %5893 = vst.msk [vmem:[%s9474_s12 + $0x48] sm:$0xff] %vm548_vm0, %v5861_v16  ;;  %v5492_v27 = vadd.f32 %v12507_v25, %v5491_v44  ;;  %v5493_v22 = vpop.f32.mrb[23].mxu0  ;;  %v5711_v29 = vpop.f32.mrb[27].mxu1 }
 0x8ba   : > { %5892 = vst.msk [vmem:[%s9474_s12 + $0x40] sm:$0xff] %vm548_vm0, %v5860_v5  ;;  %v5712_v24 = vadd.f32 %v5711_v29, %v5487_v14  ;;  %v5844_v5 = vld [vmem:[%s9338_s25 + $0xc0] sm:$0xff]  ;;  %v5567_v29 = vadd.f32 %v12507_v25, %v12495_v36  ;;  %v5582_v36 = vadd.f32 %v12507_v25, %v12501_v19 }
 0x8bb   : > { %v5717_v6 = vadd.f32 %v6522_v17, %v5492_v27  ;;  %v5572_v27 = vadd.f32 %v12507_v25, %v12497_v0  ;;  %v5836_v22 = vld [vmem:[%s9338_s25 + $0x80] sm:$0xff] }
 0x8bc   : > { %v5862_v18 = vadd.f32 %v5830_v47, %v5712_v24  ;;  %v6525_v7 = vpop.f32.mrb[28].mxu1  ;;  %v5848_v19 = vld [vmem:[%s9338_s25 + $0xe0] sm:$0xff] }
 0x8bd   : > { %v5863_v40 = vadd.f32 %v5831_v20, %v5717_v6  ;;  %v5496_v51 = vpop.f32.mrb[24].mxu0  ;;  %v5721_v60 = vpop.f32.mrb[29].mxu1  ;;  %v5847_v6 = vld [vmem:[%s9338_s25 + $0xd8] sm:$0xff] }
 0x8be   : > { %5894 = vst.msk [vmem:[%s9474_s12 + $0x50] sm:$0xff] %vm548_vm0, %v5862_v18  ;;  %v5497_v58 = vadd.f32 %v12507_v25, %v5496_v51  ;;  %v5498_v43 = vpop.f32.mrb[25].mxu0 }
 0x8bf   : > { %5895 = vst.msk [vmem:[%s9474_s12 + $0x58] sm:$0xff] %vm548_vm0, %v5863_v40  ;;  %v5846_v40 = vld [vmem:[%s9338_s25 + $0xd0] sm:$0xff] }
 0x8c0   : > { %v5722_v23 = vadd.f32 %v5721_v60, %v5497_v58  ;;  %v6528_v8 = vpop.f32.mrb[30].mxu1  ;;  %v5577_v58 = vadd.f32 %v12507_v25, %v12499_v34  ;;  %v5837_v34 = vld [vmem:[%s9338_s25 + $0x88] sm:$0xff] }
 0x8c1   : > { %v5731_v12 = vpop.f32.mrb[31].mxu1 }
 0x8c2   : > { %v5864_v50 = vadd.f32 %v5832_v39, %v5722_v23 }
 0x8c4   : > { %5896 = vst.msk [vmem:[%s9474_s12 + $0x60] sm:$0xff] %vm548_vm0, %v5864_v50  ;;  %v5501_v38 = vpop.f32.mrb[26].mxu0  ;;  %v12561_v45 = vpop.f32.mrb[32].mxu1 }
 0x8c5   : > { %v5502_v31 = vadd.f32 %v12507_v25, %v5501_v38  ;;  %v5503_v42 = vpop.f32.mrb[27].mxu0  ;;  %v5741_v32 = vpop.f32.mrb[33].mxu1 }
 0x8c7   : > { %v5727_v10 = vadd.f32 %v6525_v7, %v5502_v31 }
 0x8c8   : > { %v12565_v52 = vpop.f32.mrb[34].mxu1 }
 0x8c9   : > { %v5865_v59 = vadd.f32 %v5833_v35, %v5727_v10  ;;  %v5506_v33 = vpop.f32.mrb[28].mxu0  ;;  %v12567_v4 = vpop.f32.mrb[35].mxu1 }
 0x8ca   : > { %v5507_v13 = vadd.f32 %v12507_v25, %v5506_v33  ;;  %v5508_v21 = vpop.f32.mrb[29].mxu0 }
 0x8cb   : > { %5897 = vst.msk [vmem:[%s9474_s12 + $0x68] sm:$0xff] %vm548_vm0, %v5865_v59  ;;  %v5587_v59 = vadd.f32 %v12507_v25, %v12503_v30  ;;  %v5851_v21 = vld [vmem:[%s9338_s25 + $0xf8] sm:$0xff] }
 0x8cc   : > { %v5732_v15 = vadd.f32 %v5731_v12, %v5507_v13  ;;  %v12573_v57 = vpop.f32.mrb[36].mxu1 }
 0x8cd   : > { %v12575_v62 = vpop.f32.mrb[37].mxu1 }
 0x8ce   : > { %v5866_v3 = vadd.f32 %v5834_v49, %v5732_v15 }
 0x8d0   : > { %5898 = vst.msk [vmem:[%s9474_s12 + $0x70] sm:$0xff] %vm548_vm0, %v5866_v3  ;;  %v5511_v53 = vpop.f32.mrb[30].mxu0  ;;  %v12579_v54 = vpop.f32.mrb[38].mxu1 }
 0x8d1   : > { %v5512_v46 = vadd.f32 %v12507_v25, %v5511_v53  ;;  %v5513_v55 = vpop.f32.mrb[31].mxu0  ;;  %v12582_v11 = vpop.f32.mrb[39].mxu1  ;;  %v5850_v53 = vld [vmem:[%s9338_s25 + $0xf0] sm:$0xff] }
 0x8d3   : > { %v5737_v2 = vadd.f32 %v6528_v8, %v5512_v46  ;;  %v5849_v8 = vld [vmem:[%s9338_s25 + $0xe8] sm:$0xff] }
 0x8d4   : > { %v6543_v56 = vpop.f32.mrb[40].mxu1 }
 0x8d5   : > { %v5867_v1 = vadd.f32 %v5835_v41, %v5737_v2  ;;  %v5787_v61 = vadd.f32 %v6543_v56, %v5562_v48  ;;  %v5516_v16 = vpop.f32.mrb[32].mxu0  ;;  %v5781_v14 = vpop.f32.mrb[41].mxu1  ;;  %v5838_v41 = vld [vmem:[%s9338_s25 + $0x90] sm:$0xff] }
 0x8d6   : > { %v5517_v44 = vadd.f32 %v12507_v25, %v5516_v16  ;;  %v5782_v17 = vadd.f32 %v5781_v14, %v5557_v63  ;;  %v5518_v9 = vpop.f32.mrb[33].mxu0 }
 0x8d7   : > { %5899 = vst.msk [vmem:[%s9474_s12 + $0x78] sm:$0xff] %vm548_vm0, %v5867_v1  ;;  %v5877_v26 = vadd.f32 %v5845_v28, %v5787_v61  ;;  %v5839_v61 = vld [vmem:[%s9338_s25 + $0x98] sm:$0xff] }
 0x8d8   : > { %v5742_v47 = vadd.f32 %v5741_v32, %v5517_v44  ;;  %v5876_v20 = vadd.f32 %v5844_v5, %v5782_v17  ;;  %v6546_v24 = vpop.f32.mrb[42].mxu1  ;;  %v5592_v32 = vadd.f32 %v12507_v25, %v12505_v37  ;;  %v5840_v17 = vld [vmem:[%s9338_s25 + $0xa0] sm:$0xff] }
 0x8d9   : > { %5909 = vst.msk [vmem:[%s9474_s12 + $0xc8] sm:$0xff] %vm548_vm0, %v5877_v26  ;;  %v5797_v18 = vadd.f32 %v6546_v24, %v5572_v27  ;;  %v5791_v7 = vpop.f32.mrb[43].mxu1 }
 0x8da   : > { %v5868_v0 = vadd.f32 %v5836_v22, %v5742_v47  ;;  %5908 = vst.msk [vmem:[%s9474_s12 + $0xc0] sm:$0xff] %vm548_vm0, %v5876_v20  ;;  %v5792_v51 = vadd.f32 %v5791_v7, %v5567_v29  ;;  %v5841_v29 = vld [vmem:[%s9338_s25 + $0xa8] sm:$0xff] }
 0x8db   : > { %v5879_v60 = vadd.f32 %v5847_v6, %v5797_v18 }
 0x8dc   : > { %5900 = vst.msk [vmem:[%s9474_s12 + $0x80] sm:$0xff] %vm548_vm0, %v5868_v0  ;;  %v5878_v43 = vadd.f32 %v5846_v40, %v5792_v51  ;;  %v5521_v39 = vpop.f32.mrb[34].mxu0  ;;  %v6549_v23 = vpop.f32.mrb[44].mxu1 }
 0x8dd   : > { %5911 = vst.msk [vmem:[%s9474_s12 + $0xd8] sm:$0xff] %vm548_vm0, %v5879_v60  ;;  %v5522_v12 = vadd.f32 %v12507_v25, %v5521_v39  ;;  %v5807_v50 = vadd.f32 %v6549_v23, %v5582_v36  ;;  %v5523_v38 = vpop.f32.mrb[35].mxu0  ;;  %v5801_v31 = vpop.f32.mrb[45].mxu1  ;;  %v5843_v36 = vld [vmem:[%s9338_s25 + $0xb8] sm:$0xff] }
 0x8de   : > { %5910 = vst.msk [vmem:[%s9474_s12 + $0xd0] sm:$0xff] %vm548_vm0, %v5878_v43  ;;  %v5802_v42 = vadd.f32 %v5801_v31, %v5577_v58 }
 0x8df   : > { %v5747_v35 = vadd.f32 %v12561_v45, %v5522_v12  ;;  %v5881_v10 = vadd.f32 %v5849_v8, %v5807_v50 }
 0x8e0   : > { %v5880_v33 = vadd.f32 %v5848_v19, %v5802_v42  ;;  %v6552_v13 = vpop.f32.mrb[46].mxu1 }
 0x8e1   : > { %v5869_v49 = vadd.f32 %v5837_v34, %v5747_v35  ;;  %5913 = vst.msk [vmem:[%s9474_s12 + $0xe8] sm:$0xff] %vm548_vm0, %v5881_v10  ;;  %v5817_v15 = vadd.f32 %v6552_v13, %v5592_v32  ;;  %v5526_v3 = vpop.f32.mrb[36].mxu0  ;;  %v5811_v37 = vpop.f32.mrb[47].mxu1 }
 0x8e2   : > { %5912 = vst.msk [vmem:[%s9474_s12 + $0xe0] sm:$0xff] %vm548_vm0, %v5880_v33  ;;  %v5527_v45 = vadd.f32 %v12507_v25, %v5526_v3  ;;  %v5812_v30 = vadd.f32 %v5811_v37, %v5587_v59  ;;  %v5528_v46 = vpop.f32.mrb[37].mxu0 }
 0x8e3   : > { %5901 = vst.msk [vmem:[%s9474_s12 + $0x88] sm:$0xff] %vm548_vm0, %v5869_v49  ;;  %v5883_v55 = vadd.f32 %v5851_v21, %v5817_v15 }
 0x8e4   : > { %v5752_v48 = vadd.f32 %v12567_v4, %v5527_v45  ;;  %v5882_v2 = vadd.f32 %v5850_v53, %v5812_v30 }
 0x8e5   : > { %5915 = vst.msk [vmem:[%s9474_s12 + $0xf8] sm:$0xff] %vm548_vm0, %v5883_v55 }
 0x8e6   : > { %v5870_v63 = vadd.f32 %v5838_v41, %v5752_v48  ;;  %5914 = vst.msk [vmem:[%s9474_s12 + $0xf0] sm:$0xff] %vm548_vm0, %v5882_v2 }
 0x8e8   : > { %5902 = vst.msk [vmem:[%s9474_s12 + $0x90] sm:$0xff] %vm548_vm0, %v5870_v63  ;;  %v5531_v56 = vpop.f32.mrb[38].mxu0 }
 0x8e9   : > { %v5532_v28 = vadd.f32 %v12507_v25, %v5531_v56  ;;  %v5533_v1 = vpop.f32.mrb[39].mxu0 }
 0x8eb   : > { %v5757_v16 = vadd.f32 %v12565_v52, %v5532_v28 }
 0x8ed   : > { %v5871_v14 = vadd.f32 %v5839_v61, %v5757_v16  ;;  %v5536_v4 = vpop.f32.mrb[40].mxu0 }
 0x8ee   : > { %v5537_v5 = vadd.f32 %v12507_v25, %v5536_v4  ;;  %v5538_v44 = vpop.f32.mrb[41].mxu0 }
 0x8ef   : > { %5903 = vst.msk [vmem:[%s9474_s12 + $0x98] sm:$0xff] %vm548_vm0, %v5871_v14 }
 0x8f0   : > { %v5762_v9 = vadd.f32 %v12575_v62, %v5537_v5  ;;  %v5842_v62 = vld [vmem:[%s9338_s25 + $0xb0] sm:$0xff]  ;;  %s8779_s25 = sshll.u32 %s8897_s23, 4  ;;  %s8780_s25 = int_to_ptr.vmem [resolvable:$false] %s8779_s25 }
 0x8f1   : > { %s8781_s21 = scalar_lea.vmem %s8780_s25, 8192  ;;  %p8782_p10 = scmp.lt.s32.totalorder %s12671_s11, %s8780_s25 }
 0x8f2   : > { %v5872_v27 = vadd.f32 %v5840_v17, %v5762_v9  ;;  %p8783_p11 = scmp.lt.s32.totalorder %s8781_s21, %s8775_s29 }
 0x8f4   : > { %5904 = vst.msk [vmem:[%s9474_s12 + $0xa0] sm:$0xff] %vm548_vm0, %v5872_v27  ;;  %v5541_v26 = vpop.f32.mrb[42].mxu0  ;;  %p8784_p3 = por %p8783_p11, %p8782_p10 }
 0x8f5   : > { %v5542_v22 = vadd.f32 %v12507_v25, %v5541_v26  ;;  %v5543_v52 = vpop.f32.mrb[43].mxu0 }
 0x8f6   : > { %p8785_p5 = pnand %p8784_p3, %p8778_p4 }
 0x8f7   : > { %v5767_v47 = vadd.f32 %v12573_v57, %v5542_v22 }
 0x8f9   : > { %v5873_v20 = vadd.f32 %v5841_v29, %v5767_v47  ;;  %v5546_v24 = vpop.f32.mrb[44].mxu0 }
 0x8fa   : > { %v5547_v6 = vadd.f32 %v12507_v25, %v5546_v24  ;;  %v5548_v18 = vpop.f32.mrb[45].mxu0 }
 0x8fb   : > { %5905 = vst.msk [vmem:[%s9474_s12 + $0xa8] sm:$0xff] %vm548_vm0, %v5873_v20 }
 0x8fc   : > { %v5772_v7 = vadd.f32 %v12582_v11, %v5547_v6 }
 0x8fe   : > { %v5874_v40 = vadd.f32 %v5842_v62, %v5772_v7 }
 0x900   : > { %5906 = vst.msk [vmem:[%s9474_s12 + $0xb0] sm:$0xff] %vm548_vm0, %v5874_v40  ;;  %v5551_v0 = vpop.f32.mrb[46].mxu0 }
 0x901   : > { %v5552_v51 = vadd.f32 %v12507_v25, %v5551_v0  ;;  %v5553_v57 = vpop.f32.mrb[47].mxu0 }
 0x903   : > { %v5777_v60 = vadd.f32 %v12579_v54, %v5552_v51 }
 0x905   : > { %v5875_v11 = vadd.f32 %v5843_v36, %v5777_v60 }
 0x907   : > { %5907 = vst.msk [vmem:[%s9474_s12 + $0xb8] sm:$0xff] %vm548_vm0, %v5875_v11 }
 0x908   : > { %8788 = shalt.err (!%p8785_p5)
}
 0x909   : > { %s8789_s12 = scalar_lea.hbm %s12669_s27, 4096  ;;  %s8793_s22 = scalar_lea.hbm %s12933_s14, 8192 }
 0x90a   : > { %p8790_p7 = scmp.ne.s32.totalorder %s12669_s27, %s8789_s12  ;;  %p8794_p12 = scmp.lt.u32.totalorder %s12669_s27, %s12933_s14 }
 0x90b   : > { %p8795_p1 = scmp.lt.u32.totalorder %s8793_s22, %s8789_s12  ;;  %p8797_p0 = scmp.lt.u32.totalorder %s8789_s12, %s12669_s27 }
 0x90c   : > { %p8791_p6 = pnand %p8790_p7, %p12934_p2 }
 0x90d   : > { %p8796_p13 = por %p8795_p1, %p8794_p12 }
 0x90e   : > { %p8792_p9 = pneg %p8791_p6 }
 0x90f   : > { %p8798_p8 = por %p8797_p0, %p8796_p13 }
 0x911   : > { %p8799_p4 = pnand %p8798_p8, %p8792_p9 }
 0x913   : > { %8802 = shalt.err (!%p8799_p4)
}
 0x914   : > { %s8898_s29 = smov 128   ;;  %s8899_s21 = smov 8  }
 0x915   : > { %6805 = dma.vmem_to_hbm [thread:$0]  (%p12934_p2), %s12671_s11, 4096, %s12669_s27, %s5917_s28, %s8898_s29, %s8898_s29, %s8899_s21  }
 0x916 PF: > { %s5945_s30 = sand.u32 1, %s8853_s17   ;;  %p12935_p10 = scmp.ne.s32.totalorder %s12806_s13, 0 }
 0x917   : > { %p12936_p11 = scmp.ge.s32.totalorder %s8865_s20, 2  ;;  %s5946_s12 = scalar_lea.sflag [#allocation6], %s5945_s30 }
 0x919   : > { %p6843_p3 = pnand %p12936_p11, %p12935_p10 }
 0x91b   : > { %8848 = dma.done.wait (!%p6843_p3), %s5946_s12, 4096  }
 0x91c   : > { %8850 = vsyncadd (!%p6843_p3), %s5946_s12, 4294963200  ;;  %p29_p5 = scmp.ge.s32.totalorder %s9250_s16, 4   ;;  %s12937_s17 = smov %s8857_s18 }
 0x91d   : > { %s12938_s18 = smov %s8861_s19  ;;  %s12939_s19 = smov %s9261_s26 }
 0x91e   : > { %s12940_s20 = smov %s9250_s16  ;;  %31 = sbr.rel (!%p29_p5) target bundleno = 14 (0xe), region = 178 }
 0x925   :  { %5951 = vsyncpa [#allocation5], 1 }
 0x926   :  { %5953 = vsyncpa [#allocation5 + $0x1], 1 }
 0x927   :  { %5954 = vsyncpa [#allocation8], 1 }
 0x928   :  { %5955 = vsyncpa [#allocation11], 1 }
 0x929   :  { %5956 = vsyncpa [#allocation14], 1 }
 0x92a   :  { %5957 = vsyncpa [#allocation17], 1 }
 0x92b   :  { %5958 = vsyncpa [#allocation20], 1 }
 0x92c   :  { %5959 = vsyncpa [#allocation6], 1 }
 0x92d   :  { %5961 = vsyncpa [#allocation6 + $0x1], 1 }

</bundles_post_ra>
